<compile_context>
chip_gen: v7x
topology: tpu7x:2x2x1
jax: 0.10.0
libtpu: 0.0.40
codegen_flags: <defaults>
</compile_context>

<pallas_src>
import functools

import jax
import jax.numpy as jnp
import numpy as np
from jax.experimental import pallas as pl
from jax.experimental.pallas import tpu as pltpu


def _erf(x):
    # Abramowitz & Stegun 7.1.26 rational approximation, |err| <= 1.5e-7.
    # Only VPU ops + one EUP exp; matches exact-erf F.gelu to well under 1e-5.
    a1, a2, a3, a4, a5 = (0.254829592, -0.284496736, 1.421413741,
                          -1.453152027, 1.061405429)
    p = 0.3275911
    z = jnp.abs(x)
    t = 1.0 / (1.0 + p * z)
    poly = ((((a5 * t + a4) * t + a3) * t + a2) * t + a1) * t
    y = 1.0 - poly * jnp.exp(-z * z)
    return jnp.where(x >= 0, y, -y)


def _gelu(x):
    # Exact (erf-based) GELU, matching PyTorch F.gelu(approximate='none').
    return 0.5 * x * (1.0 + _erf(x * 0.7071067811865476))


def _conv_layer_kernel(x_ref, w1_ref, b1_ref, wd_ref, bd_ref, o_ref, pad_ref, *,
                       dilations, H, W, C, halo):
    f32 = jnp.float32

    # ---- base: 1x1 conv over channels (MXU) + bias + GELU ------------------
    x = x_ref[0].astype(f32)                                   # (H*W, C_in)
    w1 = w1_ref[...].astype(f32)                               # (C_in, C)
    y = jnp.dot(x, w1, preferred_element_type=f32) + b1_ref[...].astype(f32)
    y = _gelu(y)                                               # (H*W, C)

    # Zero the halo scratch once per grid step; only the centre region is ever
    # rewritten below, so the border provides the conv's `padding=d` zeros.
    pad_ref[...] = jnp.zeros_like(pad_ref)
    for h in range(H):                                         # stage rows
        pad_ref[halo + h, halo:halo + W, :] = y[h * W:(h + 1) * W, :]

    # ---- chained depthwise dilated 3x3 convs + GELU (VPU) ------------------
    for di, d in enumerate(dilations):
        acc = jnp.zeros((H, W, C), f32)
        for ki in range(3):
            for kj in range(3):
                r0 = halo + (ki - 1) * d
                c0 = halo + (kj - 1) * d
                w_tap = wd_ref[di, ki, kj:kj + 1, :].astype(f32)   # (1, C)
                acc = acc + pad_ref[r0:r0 + H, c0:c0 + W, :] * w_tap
        cur = _gelu(acc + bd_ref[di:di + 1, :].astype(f32))        # (H, W, C)
        # channel-concat == write this dilation's lane slice of the output
        o_ref[0, :, :, di * C:(di + 1) * C] = cur.astype(o_ref.dtype)
        if di + 1 < len(dilations):
            # next depthwise conv consumes this output: restage the centre
            pad_ref[halo:halo + H, halo:halo + W, :] = cur


def conv_layer_pallas(x, w1, b1, wd, bd, dilations):
    """x: (B, H, W, C_in) channels-last. Returns (B, H, W, len(dilations)*C)."""
    B, H, W, C_in = x.shape
    C = w1.shape[1]
    n_dil = len(dilations)
    halo = max(dilations)

    x_flat = x.reshape(B, H * W, C_in)       # rows of the 1x1-conv matmul
    b1_2d = b1.reshape(1, C)

    kernel = functools.partial(_conv_layer_kernel, dilations=tuple(dilations),
                               H=H, W=W, C=C, halo=halo)

    return pl.pallas_call(
        kernel,
        out_shape=jax.ShapeDtypeStruct((B, H, W, n_dil * C), x.dtype),
        grid_spec=pltpu.PrefetchScalarGridSpec(
            num_scalar_prefetch=0,
            grid=(B,),
            in_specs=[
                pl.BlockSpec((1, H * W, C_in), lambda b: (b, 0, 0)),
                pl.BlockSpec((C_in, C), lambda b: (0, 0)),
                pl.BlockSpec((1, C), lambda b: (0, 0)),
                pl.BlockSpec((n_dil, 3, 3, C), lambda b: (0, 0, 0, 0)),
                pl.BlockSpec((n_dil, C), lambda b: (0, 0)),
            ],
            out_specs=pl.BlockSpec((1, H, W, n_dil * C), lambda b: (b, 0, 0, 0)),
            scratch_shapes=[
                pltpu.VMEM((H + 2 * halo, W + 2 * halo, C), jnp.float32),
            ],
        ),
        compiler_params=pltpu.CompilerParams(
            dimension_semantics=("parallel",),
        ),
    )(x_flat, w1, b1_2d, wd, bd)


def conv_layer_ref(x, w1, b1, wd, bd, dilations):
    """Pure-JAX reference mirroring the PyTorch forward (eval mode)."""
    hi = jax.lax.Precision.HIGHEST
    C = w1.shape[1]
    h = jnp.einsum("bhwc,co->bhwo", x, w1, precision=hi) + b1
    h = jax.nn.gelu(h, approximate=False)
    outs = []
    for di, d in enumerate(dilations):
        rhs = wd[di].reshape(3, 3, 1, C)          # HWIO, depthwise (I=1)
        h = jax.lax.conv_general_dilated(
            h, rhs, window_strides=(1, 1), padding=[(d, d), (d, d)],
            rhs_dilation=(d, d), dimension_numbers=("NHWC", "HWIO", "NHWC"),
            feature_group_count=C, precision=hi) + bd[di]
        h = jax.nn.gelu(h, approximate=False)
        outs.append(h)
    return jnp.concatenate(outs, axis=-1)


if __name__ == "__main__":
    key = jax.random.PRNGKey(0)
    k_x, k_w1, k_b1, k_wd, k_bd = jax.random.split(key, 5)

    B, H, W = 2, 16, 16
    C_in, C = 32, 128            # input_size=32, channels=128 (lane-dense)
    dilations = (1, 2)           # dilation=[1, 2] -> 256 output channels

    def bf16_round(a):
        # Makes the MXU's default-precision bf16 pass exact, so the kernel and
        # the HIGHEST-precision reference agree to f32 accumulation error.
        return a.astype(jnp.bfloat16).astype(jnp.float32)

    x = bf16_round(jax.random.normal(k_x, (B, H, W, C_in), jnp.float32))
    w1 = bf16_round(jax.random.normal(k_w1, (C_in, C), jnp.float32)
                    / np.sqrt(C_in))
    b1 = 0.1 * jax.random.normal(k_b1, (C,), jnp.float32)
    wd = jax.random.normal(k_wd, (len(dilations), 3, 3, C), jnp.float32) / 3.0
    bd = 0.1 * jax.random.normal(k_bd, (len(dilations), C), jnp.float32)

    y = conv_layer_pallas(x, w1, b1, wd, bd, dilations)
    y = jax.block_until_ready(y)

    y_ref = conv_layer_ref(x, w1, b1, wd, bd, dilations)
    np.testing.assert_allclose(np.asarray(y), np.asarray(y_ref),
                               rtol=1e-4, atol=1e-4)

    print("KERNEL_OK")
</pallas_src>

<mosaic_0001>
module attributes {stable_mosaic.version = 11 : i64} {
  func.func @_conv_layer_kernel(%arg0: i32, %arg1: memref<1x256x32xf32, #tpu.memory_space<vmem>>, %arg2: memref<32x128xf32, #tpu.memory_space<vmem>>, %arg3: memref<1x128xf32, #tpu.memory_space<vmem>>, %arg4: memref<2x3x3x128xf32, #tpu.memory_space<vmem>>, %arg5: memref<2x128xf32, #tpu.memory_space<vmem>>, %arg6: memref<1x16x16x256xf32, #tpu.memory_space<vmem>>, %arg7: memref<20x20x128xf32, #tpu.memory_space<vmem>>) attributes {dimension_semantics = [#tpu.dimension_semantics<parallel>], iteration_bounds = array<i64: 2>, scalar_prefetch = 0 : i64, scratch_operands = 1 : i64, tpu.core_type = #tpu.core_type<tc>, window_params = [{transform_indices = @transform_0, window_bounds = array<i64: 1, 256, 32>}, {pipeline_mode = #tpu.pipeline_mode<synchronous>, transform_indices = @transform_1, window_bounds = array<i64: 32, 128>}, {pipeline_mode = #tpu.pipeline_mode<synchronous>, transform_indices = @transform_2, window_bounds = array<i64: 1, 128>}, {pipeline_mode = #tpu.pipeline_mode<synchronous>, transform_indices = @transform_3, window_bounds = array<i64: 2, 3, 3, 128>}, {pipeline_mode = #tpu.pipeline_mode<synchronous>, transform_indices = @transform_4, window_bounds = array<i64: 2, 128>}, {transform_indices = @transform_5, window_bounds = array<i64: 1, 16, 16, 256>}]} {
    %c0 = arith.constant 0 : index
    %c0_0 = arith.constant 0 : index
    %c0_1 = arith.constant 0 : index
    %0 = vector.load %arg1[%c0, %c0_0, %c0_1] : memref<1x256x32xf32, #tpu.memory_space<vmem>>, vector<1x256x32xf32>
    %1 = vector.shape_cast %0 : vector<1x256x32xf32> to vector<256x32xf32>
    %c0_2 = arith.constant 0 : index
    %c0_3 = arith.constant 0 : index
    %2 = vector.load %arg2[%c0_2, %c0_3] : memref<32x128xf32, #tpu.memory_space<vmem>>, vector<32x128xf32>
    %cst = arith.constant dense<0.000000e+00> : vector<256x128xf32>
    %3 = tpu.matmul %1, %2, %cst {dimension_numbers = #tpu.dot_dimension_numbers<[1], [0], [0], [1], [0, 0, 1, 1], [], []>} : vector<256x32xf32>, vector<32x128xf32>, vector<256x128xf32> -> vector<256x128xf32>
    %c0_4 = arith.constant 0 : index
    %c0_5 = arith.constant 0 : index
    %4 = vector.load %arg3[%c0_4, %c0_5] : memref<1x128xf32, #tpu.memory_space<vmem>>, vector<1x128xf32>
    %5 = vector.broadcast %4 : vector<1x128xf32> to vector<256x128xf32>
    %6 = arith.addf %3, %5 : vector<256x128xf32>
    %cst_6 = arith.constant 5.000000e-01 : f32
    %7 = vector.broadcast %cst_6 : f32 to vector<256x128xf32>
    %8 = arith.mulf %7, %6 : vector<256x128xf32>
    %cst_7 = arith.constant 0.707106769 : f32
    %9 = vector.broadcast %cst_7 : f32 to vector<256x128xf32>
    %10 = arith.mulf %6, %9 : vector<256x128xf32>
    %11 = math.absf %10 : vector<256x128xf32>
    %cst_8 = arith.constant 0.327591091 : f32
    %12 = vector.broadcast %cst_8 : f32 to vector<256x128xf32>
    %13 = arith.mulf %12, %11 : vector<256x128xf32>
    %cst_9 = arith.constant 1.000000e+00 : f32
    %14 = vector.broadcast %cst_9 : f32 to vector<256x128xf32>
    %15 = arith.addf %14, %13 : vector<256x128xf32>
    %cst_10 = arith.constant 1.000000e+00 : f32
    %16 = vector.broadcast %cst_10 : f32 to vector<256x128xf32>
    %17 = arith.divf %16, %15 : vector<256x128xf32>
    %cst_11 = arith.constant 1.06140542 : f32
    %18 = vector.broadcast %cst_11 : f32 to vector<256x128xf32>
    %19 = arith.mulf %18, %17 : vector<256x128xf32>
    %cst_12 = arith.constant -1.45315206 : f32
    %20 = vector.broadcast %cst_12 : f32 to vector<256x128xf32>
    %21 = arith.addf %19, %20 : vector<256x128xf32>
    %22 = arith.mulf %21, %17 : vector<256x128xf32>
    %cst_13 = arith.constant 1.42141378 : f32
    %23 = vector.broadcast %cst_13 : f32 to vector<256x128xf32>
    %24 = arith.addf %22, %23 : vector<256x128xf32>
    %25 = arith.mulf %24, %17 : vector<256x128xf32>
    %cst_14 = arith.constant -0.284496725 : f32
    %26 = vector.broadcast %cst_14 : f32 to vector<256x128xf32>
    %27 = arith.addf %25, %26 : vector<256x128xf32>
    %28 = arith.mulf %27, %17 : vector<256x128xf32>
    %cst_15 = arith.constant 0.254829586 : f32
    %29 = vector.broadcast %cst_15 : f32 to vector<256x128xf32>
    %30 = arith.addf %28, %29 : vector<256x128xf32>
    %31 = arith.mulf %30, %17 : vector<256x128xf32>
    %cst_16 = arith.constant 0.000000e+00 : f32
    %32 = vector.broadcast %cst_16 : f32 to vector<256x128xf32>
    %33 = arith.subf %32, %11 : vector<256x128xf32>
    %34 = arith.mulf %33, %11 : vector<256x128xf32>
    %35 = math.exp %34 : vector<256x128xf32>
    %36 = arith.mulf %31, %35 : vector<256x128xf32>
    %cst_17 = arith.constant 1.000000e+00 : f32
    %37 = vector.broadcast %cst_17 : f32 to vector<256x128xf32>
    %38 = arith.subf %37, %36 : vector<256x128xf32>
    %cst_18 = arith.constant 0.000000e+00 : f32
    %39 = vector.broadcast %cst_18 : f32 to vector<256x128xf32>
    %40 = arith.cmpf oge, %10, %39 : vector<256x128xf32>
    %cst_19 = arith.constant 0.000000e+00 : f32
    %41 = vector.broadcast %cst_19 : f32 to vector<256x128xf32>
    %42 = arith.subf %41, %38 : vector<256x128xf32>
    %43 = arith.select %40, %38, %42 : vector<256x128xi1>, vector<256x128xf32>
    %cst_20 = arith.constant 1.000000e+00 : f32
    %44 = vector.broadcast %cst_20 : f32 to vector<256x128xf32>
    %45 = arith.addf %44, %43 : vector<256x128xf32>
    %46 = arith.mulf %8, %45 : vector<256x128xf32>
    %cst_21 = arith.constant 0.000000e+00 : f32
    %47 = vector.broadcast %cst_21 : f32 to vector<20x20x128xf32>
    %c0_22 = arith.constant 0 : index
    %c0_23 = arith.constant 0 : index
    %c0_24 = arith.constant 0 : index
    %48 = vector.load %arg7[%c0_22, %c0_23, %c0_24] : memref<20x20x128xf32, #tpu.memory_space<vmem>>, vector<20x20x128xf32>
    tpu.vector_store %arg7[%c0_22, %c0_23, %c0_24], %47 {strides = array<i32>} : memref<20x20x128xf32, #tpu.memory_space<vmem>>, vector<20x20x128xf32>,
    %49 = vector.extract_strided_slice %46 {offsets = [0, 0], sizes = [16, 128], strides = [1, 1]} : vector<256x128xf32> to vector<16x128xf32>
    %c2 = arith.constant 2 : index
    %c2_25 = arith.constant 2 : index
    %c0_26 = arith.constant 0 : index
    %50 = vector.load %arg7[%c2, %c2_25, %c0_26] : memref<20x20x128xf32, #tpu.memory_space<vmem>>, vector<1x16x128xf32>
    %51 = vector.shape_cast %50 : vector<1x16x128xf32> to vector<16x128xf32>
    %52 = vector.shape_cast %49 : vector<16x128xf32> to vector<1x16x128xf32>
    tpu.vector_store %arg7[%c2, %c2_25, %c0_26], %52 {strides = array<i32>} : memref<20x20x128xf32, #tpu.memory_space<vmem>>, vector<1x16x128xf32>,
    %53 = vector.extract_strided_slice %46 {offsets = [16, 0], sizes = [16, 128], strides = [1, 1]} : vector<256x128xf32> to vector<16x128xf32>
    %c3 = arith.constant 3 : index
    %c2_27 = arith.constant 2 : index
    %c0_28 = arith.constant 0 : index
    %54 = vector.load %arg7[%c3, %c2_27, %c0_28] : memref<20x20x128xf32, #tpu.memory_space<vmem>>, vector<1x16x128xf32>
    %55 = vector.shape_cast %54 : vector<1x16x128xf32> to vector<16x128xf32>
    %56 = vector.shape_cast %53 : vector<16x128xf32> to vector<1x16x128xf32>
    tpu.vector_store %arg7[%c3, %c2_27, %c0_28], %56 {strides = array<i32>} : memref<20x20x128xf32, #tpu.memory_space<vmem>>, vector<1x16x128xf32>,
    %57 = vector.extract_strided_slice %46 {offsets = [32, 0], sizes = [16, 128], strides = [1, 1]} : vector<256x128xf32> to vector<16x128xf32>
    %c4 = arith.constant 4 : index
    %c2_29 = arith.constant 2 : index
    %c0_30 = arith.constant 0 : index
    %58 = vector.load %arg7[%c4, %c2_29, %c0_30] : memref<20x20x128xf32, #tpu.memory_space<vmem>>, vector<1x16x128xf32>
    %59 = vector.shape_cast %58 : vector<1x16x128xf32> to vector<16x128xf32>
    %60 = vector.shape_cast %57 : vector<16x128xf32> to vector<1x16x128xf32>
    tpu.vector_store %arg7[%c4, %c2_29, %c0_30], %60 {strides = array<i32>} : memref<20x20x128xf32, #tpu.memory_space<vmem>>, vector<1x16x128xf32>,
    %61 = vector.extract_strided_slice %46 {offsets = [48, 0], sizes = [16, 128], strides = [1, 1]} : vector<256x128xf32> to vector<16x128xf32>
    %c5 = arith.constant 5 : index
    %c2_31 = arith.constant 2 : index
    %c0_32 = arith.constant 0 : index
    %62 = vector.load %arg7[%c5, %c2_31, %c0_32] : memref<20x20x128xf32, #tpu.memory_space<vmem>>, vector<1x16x128xf32>
    %63 = vector.shape_cast %62 : vector<1x16x128xf32> to vector<16x128xf32>
    %64 = vector.shape_cast %61 : vector<16x128xf32> to vector<1x16x128xf32>
    tpu.vector_store %arg7[%c5, %c2_31, %c0_32], %64 {strides = array<i32>} : memref<20x20x128xf32, #tpu.memory_space<vmem>>, vector<1x16x128xf32>,
    %65 = vector.extract_strided_slice %46 {offsets = [64, 0], sizes = [16, 128], strides = [1, 1]} : vector<256x128xf32> to vector<16x128xf32>
    %c6 = arith.constant 6 : index
    %c2_33 = arith.constant 2 : index
    %c0_34 = arith.constant 0 : index
    %66 = vector.load %arg7[%c6, %c2_33, %c0_34] : memref<20x20x128xf32, #tpu.memory_space<vmem>>, vector<1x16x128xf32>
    %67 = vector.shape_cast %66 : vector<1x16x128xf32> to vector<16x128xf32>
    %68 = vector.shape_cast %65 : vector<16x128xf32> to vector<1x16x128xf32>
    tpu.vector_store %arg7[%c6, %c2_33, %c0_34], %68 {strides = array<i32>} : memref<20x20x128xf32, #tpu.memory_space<vmem>>, vector<1x16x128xf32>,
    %69 = vector.extract_strided_slice %46 {offsets = [80, 0], sizes = [16, 128], strides = [1, 1]} : vector<256x128xf32> to vector<16x128xf32>
    %c7 = arith.constant 7 : index
    %c2_35 = arith.constant 2 : index
    %c0_36 = arith.constant 0 : index
    %70 = vector.load %arg7[%c7, %c2_35, %c0_36] : memref<20x20x128xf32, #tpu.memory_space<vmem>>, vector<1x16x128xf32>
    %71 = vector.shape_cast %70 : vector<1x16x128xf32> to vector<16x128xf32>
    %72 = vector.shape_cast %69 : vector<16x128xf32> to vector<1x16x128xf32>
    tpu.vector_store %arg7[%c7, %c2_35, %c0_36], %72 {strides = array<i32>} : memref<20x20x128xf32, #tpu.memory_space<vmem>>, vector<1x16x128xf32>,
    %73 = vector.extract_strided_slice %46 {offsets = [96, 0], sizes = [16, 128], strides = [1, 1]} : vector<256x128xf32> to vector<16x128xf32>
    %c8 = arith.constant 8 : index
    %c2_37 = arith.constant 2 : index
    %c0_38 = arith.constant 0 : index
    %74 = vector.load %arg7[%c8, %c2_37, %c0_38] : memref<20x20x128xf32, #tpu.memory_space<vmem>>, vector<1x16x128xf32>
    %75 = vector.shape_cast %74 : vector<1x16x128xf32> to vector<16x128xf32>
    %76 = vector.shape_cast %73 : vector<16x128xf32> to vector<1x16x128xf32>
    tpu.vector_store %arg7[%c8, %c2_37, %c0_38], %76 {strides = array<i32>} : memref<20x20x128xf32, #tpu.memory_space<vmem>>, vector<1x16x128xf32>,
    %77 = vector.extract_strided_slice %46 {offsets = [112, 0], sizes = [16, 128], strides = [1, 1]} : vector<256x128xf32> to vector<16x128xf32>
    %c9 = arith.constant 9 : index
    %c2_39 = arith.constant 2 : index
    %c0_40 = arith.constant 0 : index
    %78 = vector.load %arg7[%c9, %c2_39, %c0_40] : memref<20x20x128xf32, #tpu.memory_space<vmem>>, vector<1x16x128xf32>
    %79 = vector.shape_cast %78 : vector<1x16x128xf32> to vector<16x128xf32>
    %80 = vector.shape_cast %77 : vector<16x128xf32> to vector<1x16x128xf32>
    tpu.vector_store %arg7[%c9, %c2_39, %c0_40], %80 {strides = array<i32>} : memref<20x20x128xf32, #tpu.memory_space<vmem>>, vector<1x16x128xf32>,
    %81 = vector.extract_strided_slice %46 {offsets = [128, 0], sizes = [16, 128], strides = [1, 1]} : vector<256x128xf32> to vector<16x128xf32>
    %c10 = arith.constant 10 : index
    %c2_41 = arith.constant 2 : index
    %c0_42 = arith.constant 0 : index
    %82 = vector.load %arg7[%c10, %c2_41, %c0_42] : memref<20x20x128xf32, #tpu.memory_space<vmem>>, vector<1x16x128xf32>
    %83 = vector.shape_cast %82 : vector<1x16x128xf32> to vector<16x128xf32>
    %84 = vector.shape_cast %81 : vector<16x128xf32> to vector<1x16x128xf32>
    tpu.vector_store %arg7[%c10, %c2_41, %c0_42], %84 {strides = array<i32>} : memref<20x20x128xf32, #tpu.memory_space<vmem>>, vector<1x16x128xf32>,
    %85 = vector.extract_strided_slice %46 {offsets = [144, 0], sizes = [16, 128], strides = [1, 1]} : vector<256x128xf32> to vector<16x128xf32>
    %c11 = arith.constant 11 : index
    %c2_43 = arith.constant 2 : index
    %c0_44 = arith.constant 0 : index
    %86 = vector.load %arg7[%c11, %c2_43, %c0_44] : memref<20x20x128xf32, #tpu.memory_space<vmem>>, vector<1x16x128xf32>
    %87 = vector.shape_cast %86 : vector<1x16x128xf32> to vector<16x128xf32>
    %88 = vector.shape_cast %85 : vector<16x128xf32> to vector<1x16x128xf32>
    tpu.vector_store %arg7[%c11, %c2_43, %c0_44], %88 {strides = array<i32>} : memref<20x20x128xf32, #tpu.memory_space<vmem>>, vector<1x16x128xf32>,
    %89 = vector.extract_strided_slice %46 {offsets = [160, 0], sizes = [16, 128], strides = [1, 1]} : vector<256x128xf32> to vector<16x128xf32>
    %c12 = arith.constant 12 : index
    %c2_45 = arith.constant 2 : index
    %c0_46 = arith.constant 0 : index
    %90 = vector.load %arg7[%c12, %c2_45, %c0_46] : memref<20x20x128xf32, #tpu.memory_space<vmem>>, vector<1x16x128xf32>
    %91 = vector.shape_cast %90 : vector<1x16x128xf32> to vector<16x128xf32>
    %92 = vector.shape_cast %89 : vector<16x128xf32> to vector<1x16x128xf32>
    tpu.vector_store %arg7[%c12, %c2_45, %c0_46], %92 {strides = array<i32>} : memref<20x20x128xf32, #tpu.memory_space<vmem>>, vector<1x16x128xf32>,
    %93 = vector.extract_strided_slice %46 {offsets = [176, 0], sizes = [16, 128], strides = [1, 1]} : vector<256x128xf32> to vector<16x128xf32>
    %c13 = arith.constant 13 : index
    %c2_47 = arith.constant 2 : index
    %c0_48 = arith.constant 0 : index
    %94 = vector.load %arg7[%c13, %c2_47, %c0_48] : memref<20x20x128xf32, #tpu.memory_space<vmem>>, vector<1x16x128xf32>
    %95 = vector.shape_cast %94 : vector<1x16x128xf32> to vector<16x128xf32>
    %96 = vector.shape_cast %93 : vector<16x128xf32> to vector<1x16x128xf32>
    tpu.vector_store %arg7[%c13, %c2_47, %c0_48], %96 {strides = array<i32>} : memref<20x20x128xf32, #tpu.memory_space<vmem>>, vector<1x16x128xf32>,
    %97 = vector.extract_strided_slice %46 {offsets = [192, 0], sizes = [16, 128], strides = [1, 1]} : vector<256x128xf32> to vector<16x128xf32>
    %c14 = arith.constant 14 : index
    %c2_49 = arith.constant 2 : index
    %c0_50 = arith.constant 0 : index
    %98 = vector.load %arg7[%c14, %c2_49, %c0_50] : memref<20x20x128xf32, #tpu.memory_space<vmem>>, vector<1x16x128xf32>
    %99 = vector.shape_cast %98 : vector<1x16x128xf32> to vector<16x128xf32>
    %100 = vector.shape_cast %97 : vector<16x128xf32> to vector<1x16x128xf32>
    tpu.vector_store %arg7[%c14, %c2_49, %c0_50], %100 {strides = array<i32>} : memref<20x20x128xf32, #tpu.memory_space<vmem>>, vector<1x16x128xf32>,
    %101 = vector.extract_strided_slice %46 {offsets = [208, 0], sizes = [16, 128], strides = [1, 1]} : vector<256x128xf32> to vector<16x128xf32>
    %c15 = arith.constant 15 : index
    %c2_51 = arith.constant 2 : index
    %c0_52 = arith.constant 0 : index
    %102 = vector.load %arg7[%c15, %c2_51, %c0_52] : memref<20x20x128xf32, #tpu.memory_space<vmem>>, vector<1x16x128xf32>
    %103 = vector.shape_cast %102 : vector<1x16x128xf32> to vector<16x128xf32>
    %104 = vector.shape_cast %101 : vector<16x128xf32> to vector<1x16x128xf32>
    tpu.vector_store %arg7[%c15, %c2_51, %c0_52], %104 {strides = array<i32>} : memref<20x20x128xf32, #tpu.memory_space<vmem>>, vector<1x16x128xf32>,
    %105 = vector.extract_strided_slice %46 {offsets = [224, 0], sizes = [16, 128], strides = [1, 1]} : vector<256x128xf32> to vector<16x128xf32>
    %c16 = arith.constant 16 : index
    %c2_53 = arith.constant 2 : index
    %c0_54 = arith.constant 0 : index
    %106 = vector.load %arg7[%c16, %c2_53, %c0_54] : memref<20x20x128xf32, #tpu.memory_space<vmem>>, vector<1x16x128xf32>
    %107 = vector.shape_cast %106 : vector<1x16x128xf32> to vector<16x128xf32>
    %108 = vector.shape_cast %105 : vector<16x128xf32> to vector<1x16x128xf32>
    tpu.vector_store %arg7[%c16, %c2_53, %c0_54], %108 {strides = array<i32>} : memref<20x20x128xf32, #tpu.memory_space<vmem>>, vector<1x16x128xf32>,
    %109 = vector.extract_strided_slice %46 {offsets = [240, 0], sizes = [16, 128], strides = [1, 1]} : vector<256x128xf32> to vector<16x128xf32>
    %c17 = arith.constant 17 : index
    %c2_55 = arith.constant 2 : index
    %c0_56 = arith.constant 0 : index
    %110 = vector.load %arg7[%c17, %c2_55, %c0_56] : memref<20x20x128xf32, #tpu.memory_space<vmem>>, vector<1x16x128xf32>
    %111 = vector.shape_cast %110 : vector<1x16x128xf32> to vector<16x128xf32>
    %112 = vector.shape_cast %109 : vector<16x128xf32> to vector<1x16x128xf32>
    tpu.vector_store %arg7[%c17, %c2_55, %c0_56], %112 {strides = array<i32>} : memref<20x20x128xf32, #tpu.memory_space<vmem>>, vector<1x16x128xf32>,
    %cst_57 = arith.constant 0.000000e+00 : f32
    %113 = vector.broadcast %cst_57 : f32 to vector<16x16x128xf32>
    %c0_58 = arith.constant 0 : index
    %c0_59 = arith.constant 0 : index
    %c0_60 = arith.constant 0 : index
    %c0_61 = arith.constant 0 : index
    %114 = vector.load %arg4[%c0_58, %c0_59, %c0_60, %c0_61] : memref<2x3x3x128xf32, #tpu.memory_space<vmem>>, vector<1x1x1x128xf32>
    %115 = vector.shape_cast %114 : vector<1x1x1x128xf32> to vector<1x128xf32>
    %c1 = arith.constant 1 : index
    %c1_62 = arith.constant 1 : index
    %c0_63 = arith.constant 0 : index
    %116 = vector.load %arg7[%c1, %c1_62, %c0_63] : memref<20x20x128xf32, #tpu.memory_space<vmem>>, vector<16x16x128xf32>
    %117 = vector.shape_cast %115 : vector<1x128xf32> to vector<1x1x128xf32>
    %118 = vector.broadcast %117 : vector<1x1x128xf32> to vector<16x16x128xf32>
    %119 = arith.mulf %116, %118 : vector<16x16x128xf32>
    %120 = arith.addf %113, %119 : vector<16x16x128xf32>
    %c0_64 = arith.constant 0 : index
    %c0_65 = arith.constant 0 : index
    %c1_66 = arith.constant 1 : index
    %c0_67 = arith.constant 0 : index
    %121 = vector.load %arg4[%c0_64, %c0_65, %c1_66, %c0_67] : memref<2x3x3x128xf32, #tpu.memory_space<vmem>>, vector<1x1x1x128xf32>
    %122 = vector.shape_cast %121 : vector<1x1x1x128xf32> to vector<1x128xf32>
    %c1_68 = arith.constant 1 : index
    %c2_69 = arith.constant 2 : index
    %c0_70 = arith.constant 0 : index
    %123 = vector.load %arg7[%c1_68, %c2_69, %c0_70] : memref<20x20x128xf32, #tpu.memory_space<vmem>>, vector<16x16x128xf32>
    %124 = vector.shape_cast %122 : vector<1x128xf32> to vector<1x1x128xf32>
    %125 = vector.broadcast %124 : vector<1x1x128xf32> to vector<16x16x128xf32>
    %126 = arith.mulf %123, %125 : vector<16x16x128xf32>
    %127 = arith.addf %120, %126 : vector<16x16x128xf32>
    %c0_71 = arith.constant 0 : index
    %c0_72 = arith.constant 0 : index
    %c2_73 = arith.constant 2 : index
    %c0_74 = arith.constant 0 : index
    %128 = vector.load %arg4[%c0_71, %c0_72, %c2_73, %c0_74] : memref<2x3x3x128xf32, #tpu.memory_space<vmem>>, vector<1x1x1x128xf32>
    %129 = vector.shape_cast %128 : vector<1x1x1x128xf32> to vector<1x128xf32>
    %c1_75 = arith.constant 1 : index
    %c3_76 = arith.constant 3 : index
    %c0_77 = arith.constant 0 : index
    %130 = vector.load %arg7[%c1_75, %c3_76, %c0_77] : memref<20x20x128xf32, #tpu.memory_space<vmem>>, vector<16x16x128xf32>
    %131 = vector.shape_cast %129 : vector<1x128xf32> to vector<1x1x128xf32>
    %132 = vector.broadcast %131 : vector<1x1x128xf32> to vector<16x16x128xf32>
    %133 = arith.mulf %130, %132 : vector<16x16x128xf32>
    %134 = arith.addf %127, %133 : vector<16x16x128xf32>
    %c0_78 = arith.constant 0 : index
    %c1_79 = arith.constant 1 : index
    %c0_80 = arith.constant 0 : index
    %c0_81 = arith.constant 0 : index
    %135 = vector.load %arg4[%c0_78, %c1_79, %c0_80, %c0_81] : memref<2x3x3x128xf32, #tpu.memory_space<vmem>>, vector<1x1x1x128xf32>
    %136 = vector.shape_cast %135 : vector<1x1x1x128xf32> to vector<1x128xf32>
    %c2_82 = arith.constant 2 : index
    %c1_83 = arith.constant 1 : index
    %c0_84 = arith.constant 0 : index
    %137 = vector.load %arg7[%c2_82, %c1_83, %c0_84] : memref<20x20x128xf32, #tpu.memory_space<vmem>>, vector<16x16x128xf32>
    %138 = vector.shape_cast %136 : vector<1x128xf32> to vector<1x1x128xf32>
    %139 = vector.broadcast %138 : vector<1x1x128xf32> to vector<16x16x128xf32>
    %140 = arith.mulf %137, %139 : vector<16x16x128xf32>
    %141 = arith.addf %134, %140 : vector<16x16x128xf32>
    %c0_85 = arith.constant 0 : index
    %c1_86 = arith.constant 1 : index
    %c1_87 = arith.constant 1 : index
    %c0_88 = arith.constant 0 : index
    %142 = vector.load %arg4[%c0_85, %c1_86, %c1_87, %c0_88] : memref<2x3x3x128xf32, #tpu.memory_space<vmem>>, vector<1x1x1x128xf32>
    %143 = vector.shape_cast %142 : vector<1x1x1x128xf32> to vector<1x128xf32>
    %c2_89 = arith.constant 2 : index
    %c2_90 = arith.constant 2 : index
    %c0_91 = arith.constant 0 : index
    %144 = vector.load %arg7[%c2_89, %c2_90, %c0_91] : memref<20x20x128xf32, #tpu.memory_space<vmem>>, vector<16x16x128xf32>
    %145 = vector.shape_cast %143 : vector<1x128xf32> to vector<1x1x128xf32>
    %146 = vector.broadcast %145 : vector<1x1x128xf32> to vector<16x16x128xf32>
    %147 = arith.mulf %144, %146 : vector<16x16x128xf32>
    %148 = arith.addf %141, %147 : vector<16x16x128xf32>
    %c0_92 = arith.constant 0 : index
    %c1_93 = arith.constant 1 : index
    %c2_94 = arith.constant 2 : index
    %c0_95 = arith.constant 0 : index
    %149 = vector.load %arg4[%c0_92, %c1_93, %c2_94, %c0_95] : memref<2x3x3x128xf32, #tpu.memory_space<vmem>>, vector<1x1x1x128xf32>
    %150 = vector.shape_cast %149 : vector<1x1x1x128xf32> to vector<1x128xf32>
    %c2_96 = arith.constant 2 : index
    %c3_97 = arith.constant 3 : index
    %c0_98 = arith.constant 0 : index
    %151 = vector.load %arg7[%c2_96, %c3_97, %c0_98] : memref<20x20x128xf32, #tpu.memory_space<vmem>>, vector<16x16x128xf32>
    %152 = vector.shape_cast %150 : vector<1x128xf32> to vector<1x1x128xf32>
    %153 = vector.broadcast %152 : vector<1x1x128xf32> to vector<16x16x128xf32>
    %154 = arith.mulf %151, %153 : vector<16x16x128xf32>
    %155 = arith.addf %148, %154 : vector<16x16x128xf32>
    %c0_99 = arith.constant 0 : index
    %c2_100 = arith.constant 2 : index
    %c0_101 = arith.constant 0 : index
    %c0_102 = arith.constant 0 : index
    %156 = vector.load %arg4[%c0_99, %c2_100, %c0_101, %c0_102] : memref<2x3x3x128xf32, #tpu.memory_space<vmem>>, vector<1x1x1x128xf32>
    %157 = vector.shape_cast %156 : vector<1x1x1x128xf32> to vector<1x128xf32>
    %c3_103 = arith.constant 3 : index
    %c1_104 = arith.constant 1 : index
    %c0_105 = arith.constant 0 : index
    %158 = vector.load %arg7[%c3_103, %c1_104, %c0_105] : memref<20x20x128xf32, #tpu.memory_space<vmem>>, vector<16x16x128xf32>
    %159 = vector.shape_cast %157 : vector<1x128xf32> to vector<1x1x128xf32>
    %160 = vector.broadcast %159 : vector<1x1x128xf32> to vector<16x16x128xf32>
    %161 = arith.mulf %158, %160 : vector<16x16x128xf32>
    %162 = arith.addf %155, %161 : vector<16x16x128xf32>
    %c0_106 = arith.constant 0 : index
    %c2_107 = arith.constant 2 : index
    %c1_108 = arith.constant 1 : index
    %c0_109 = arith.constant 0 : index
    %163 = vector.load %arg4[%c0_106, %c2_107, %c1_108, %c0_109] : memref<2x3x3x128xf32, #tpu.memory_space<vmem>>, vector<1x1x1x128xf32>
    %164 = vector.shape_cast %163 : vector<1x1x1x128xf32> to vector<1x128xf32>
    %c3_110 = arith.constant 3 : index
    %c2_111 = arith.constant 2 : index
    %c0_112 = arith.constant 0 : index
    %165 = vector.load %arg7[%c3_110, %c2_111, %c0_112] : memref<20x20x128xf32, #tpu.memory_space<vmem>>, vector<16x16x128xf32>
    %166 = vector.shape_cast %164 : vector<1x128xf32> to vector<1x1x128xf32>
    %167 = vector.broadcast %166 : vector<1x1x128xf32> to vector<16x16x128xf32>
    %168 = arith.mulf %165, %167 : vector<16x16x128xf32>
    %169 = arith.addf %162, %168 : vector<16x16x128xf32>
    %c0_113 = arith.constant 0 : index
    %c2_114 = arith.constant 2 : index
    %c2_115 = arith.constant 2 : index
    %c0_116 = arith.constant 0 : index
    %170 = vector.load %arg4[%c0_113, %c2_114, %c2_115, %c0_116] : memref<2x3x3x128xf32, #tpu.memory_space<vmem>>, vector<1x1x1x128xf32>
    %171 = vector.shape_cast %170 : vector<1x1x1x128xf32> to vector<1x128xf32>
    %c3_117 = arith.constant 3 : index
    %c3_118 = arith.constant 3 : index
    %c0_119 = arith.constant 0 : index
    %172 = vector.load %arg7[%c3_117, %c3_118, %c0_119] : memref<20x20x128xf32, #tpu.memory_space<vmem>>, vector<16x16x128xf32>
    %173 = vector.shape_cast %171 : vector<1x128xf32> to vector<1x1x128xf32>
    %174 = vector.broadcast %173 : vector<1x1x128xf32> to vector<16x16x128xf32>
    %175 = arith.mulf %172, %174 : vector<16x16x128xf32>
    %176 = arith.addf %169, %175 : vector<16x16x128xf32>
    %c0_120 = arith.constant 0 : index
    %c0_121 = arith.constant 0 : index
    %177 = vector.load %arg5[%c0_120, %c0_121] : memref<2x128xf32, #tpu.memory_space<vmem>>, vector<1x128xf32>
    %178 = vector.shape_cast %177 : vector<1x128xf32> to vector<1x1x128xf32>
    %179 = vector.broadcast %178 : vector<1x1x128xf32> to vector<16x16x128xf32>
    %180 = arith.addf %176, %179 : vector<16x16x128xf32>
    %cst_122 = arith.constant 5.000000e-01 : f32
    %181 = vector.broadcast %cst_122 : f32 to vector<16x16x128xf32>
    %182 = arith.mulf %181, %180 : vector<16x16x128xf32>
    %cst_123 = arith.constant 0.707106769 : f32
    %183 = vector.broadcast %cst_123 : f32 to vector<16x16x128xf32>
    %184 = arith.mulf %180, %183 : vector<16x16x128xf32>
    %185 = math.absf %184 : vector<16x16x128xf32>
    %cst_124 = arith.constant 0.327591091 : f32
    %186 = vector.broadcast %cst_124 : f32 to vector<16x16x128xf32>
    %187 = arith.mulf %186, %185 : vector<16x16x128xf32>
    %cst_125 = arith.constant 1.000000e+00 : f32
    %188 = vector.broadcast %cst_125 : f32 to vector<16x16x128xf32>
    %189 = arith.addf %188, %187 : vector<16x16x128xf32>
    %cst_126 = arith.constant 1.000000e+00 : f32
    %190 = vector.broadcast %cst_126 : f32 to vector<16x16x128xf32>
    %191 = arith.divf %190, %189 : vector<16x16x128xf32>
    %cst_127 = arith.constant 1.06140542 : f32
    %192 = vector.broadcast %cst_127 : f32 to vector<16x16x128xf32>
    %193 = arith.mulf %192, %191 : vector<16x16x128xf32>
    %cst_128 = arith.constant -1.45315206 : f32
    %194 = vector.broadcast %cst_128 : f32 to vector<16x16x128xf32>
    %195 = arith.addf %193, %194 : vector<16x16x128xf32>
    %196 = arith.mulf %195, %191 : vector<16x16x128xf32>
    %cst_129 = arith.constant 1.42141378 : f32
    %197 = vector.broadcast %cst_129 : f32 to vector<16x16x128xf32>
    %198 = arith.addf %196, %197 : vector<16x16x128xf32>
    %199 = arith.mulf %198, %191 : vector<16x16x128xf32>
    %cst_130 = arith.constant -0.284496725 : f32
    %200 = vector.broadcast %cst_130 : f32 to vector<16x16x128xf32>
    %201 = arith.addf %199, %200 : vector<16x16x128xf32>
    %202 = arith.mulf %201, %191 : vector<16x16x128xf32>
    %cst_131 = arith.constant 0.254829586 : f32
    %203 = vector.broadcast %cst_131 : f32 to vector<16x16x128xf32>
    %204 = arith.addf %202, %203 : vector<16x16x128xf32>
    %205 = arith.mulf %204, %191 : vector<16x16x128xf32>
    %cst_132 = arith.constant 0.000000e+00 : f32
    %206 = vector.broadcast %cst_132 : f32 to vector<16x16x128xf32>
    %207 = arith.subf %206, %185 : vector<16x16x128xf32>
    %208 = arith.mulf %207, %185 : vector<16x16x128xf32>
    %209 = math.exp %208 : vector<16x16x128xf32>
    %210 = arith.mulf %205, %209 : vector<16x16x128xf32>
    %cst_133 = arith.constant 1.000000e+00 : f32
    %211 = vector.broadcast %cst_133 : f32 to vector<16x16x128xf32>
    %212 = arith.subf %211, %210 : vector<16x16x128xf32>
    %cst_134 = arith.constant 0.000000e+00 : f32
    %213 = vector.broadcast %cst_134 : f32 to vector<16x16x128xf32>
    %214 = arith.cmpf oge, %184, %213 : vector<16x16x128xf32>
    %cst_135 = arith.constant 0.000000e+00 : f32
    %215 = vector.broadcast %cst_135 : f32 to vector<16x16x128xf32>
    %216 = arith.subf %215, %212 : vector<16x16x128xf32>
    %217 = arith.select %214, %212, %216 : vector<16x16x128xi1>, vector<16x16x128xf32>
    %cst_136 = arith.constant 1.000000e+00 : f32
    %218 = vector.broadcast %cst_136 : f32 to vector<16x16x128xf32>
    %219 = arith.addf %218, %217 : vector<16x16x128xf32>
    %220 = arith.mulf %182, %219 : vector<16x16x128xf32>
    %c0_137 = arith.constant 0 : index
    %c0_138 = arith.constant 0 : index
    %c0_139 = arith.constant 0 : index
    %c0_140 = arith.constant 0 : index
    %221 = vector.load %arg6[%c0_137, %c0_138, %c0_139, %c0_140] : memref<1x16x16x256xf32, #tpu.memory_space<vmem>>, vector<1x16x16x128xf32>
    %222 = vector.shape_cast %221 : vector<1x16x16x128xf32> to vector<16x16x128xf32>
    %223 = vector.shape_cast %220 : vector<16x16x128xf32> to vector<1x16x16x128xf32>
    tpu.vector_store %arg6[%c0_137, %c0_138, %c0_139, %c0_140], %223 {strides = array<i32>} : memref<1x16x16x256xf32, #tpu.memory_space<vmem>>, vector<1x16x16x128xf32>,
    %c2_141 = arith.constant 2 : index
    %c2_142 = arith.constant 2 : index
    %c0_143 = arith.constant 0 : index
    %224 = vector.load %arg7[%c2_141, %c2_142, %c0_143] : memref<20x20x128xf32, #tpu.memory_space<vmem>>, vector<16x16x128xf32>
    tpu.vector_store %arg7[%c2_141, %c2_142, %c0_143], %220 {strides = array<i32>} : memref<20x20x128xf32, #tpu.memory_space<vmem>>, vector<16x16x128xf32>,
    %cst_144 = arith.constant 0.000000e+00 : f32
    %225 = vector.broadcast %cst_144 : f32 to vector<16x16x128xf32>
    %c1_145 = arith.constant 1 : index
    %c0_146 = arith.constant 0 : index
    %c0_147 = arith.constant 0 : index
    %c0_148 = arith.constant 0 : index
    %226 = vector.load %arg4[%c1_145, %c0_146, %c0_147, %c0_148] : memref<2x3x3x128xf32, #tpu.memory_space<vmem>>, vector<1x1x1x128xf32>
    %227 = vector.shape_cast %226 : vector<1x1x1x128xf32> to vector<1x128xf32>
    %c0_149 = arith.constant 0 : index
    %c0_150 = arith.constant 0 : index
    %c0_151 = arith.constant 0 : index
    %228 = vector.load %arg7[%c0_149, %c0_150, %c0_151] : memref<20x20x128xf32, #tpu.memory_space<vmem>>, vector<16x16x128xf32>
    %229 = vector.shape_cast %227 : vector<1x128xf32> to vector<1x1x128xf32>
    %230 = vector.broadcast %229 : vector<1x1x128xf32> to vector<16x16x128xf32>
    %231 = arith.mulf %228, %230 : vector<16x16x128xf32>
    %232 = arith.addf %225, %231 : vector<16x16x128xf32>
    %c1_152 = arith.constant 1 : index
    %c0_153 = arith.constant 0 : index
    %c1_154 = arith.constant 1 : index
    %c0_155 = arith.constant 0 : index
    %233 = vector.load %arg4[%c1_152, %c0_153, %c1_154, %c0_155] : memref<2x3x3x128xf32, #tpu.memory_space<vmem>>, vector<1x1x1x128xf32>
    %234 = vector.shape_cast %233 : vector<1x1x1x128xf32> to vector<1x128xf32>
    %c0_156 = arith.constant 0 : index
    %c2_157 = arith.constant 2 : index
    %c0_158 = arith.constant 0 : index
    %235 = vector.load %arg7[%c0_156, %c2_157, %c0_158] : memref<20x20x128xf32, #tpu.memory_space<vmem>>, vector<16x16x128xf32>
    %236 = vector.shape_cast %234 : vector<1x128xf32> to vector<1x1x128xf32>
    %237 = vector.broadcast %236 : vector<1x1x128xf32> to vector<16x16x128xf32>
    %238 = arith.mulf %235, %237 : vector<16x16x128xf32>
    %239 = arith.addf %232, %238 : vector<16x16x128xf32>
    %c1_159 = arith.constant 1 : index
    %c0_160 = arith.constant 0 : index
    %c2_161 = arith.constant 2 : index
    %c0_162 = arith.constant 0 : index
    %240 = vector.load %arg4[%c1_159, %c0_160, %c2_161, %c0_162] : memref<2x3x3x128xf32, #tpu.memory_space<vmem>>, vector<1x1x1x128xf32>
    %241 = vector.shape_cast %240 : vector<1x1x1x128xf32> to vector<1x128xf32>
    %c0_163 = arith.constant 0 : index
    %c4_164 = arith.constant 4 : index
    %c0_165 = arith.constant 0 : index
    %242 = vector.load %arg7[%c0_163, %c4_164, %c0_165] : memref<20x20x128xf32, #tpu.memory_space<vmem>>, vector<16x16x128xf32>
    %243 = vector.shape_cast %241 : vector<1x128xf32> to vector<1x1x128xf32>
    %244 = vector.broadcast %243 : vector<1x1x128xf32> to vector<16x16x128xf32>
    %245 = arith.mulf %242, %244 : vector<16x16x128xf32>
    %246 = arith.addf %239, %245 : vector<16x16x128xf32>
    %c1_166 = arith.constant 1 : index
    %c1_167 = arith.constant 1 : index
    %c0_168 = arith.constant 0 : index
    %c0_169 = arith.constant 0 : index
    %247 = vector.load %arg4[%c1_166, %c1_167, %c0_168, %c0_169] : memref<2x3x3x128xf32, #tpu.memory_space<vmem>>, vector<1x1x1x128xf32>
    %248 = vector.shape_cast %247 : vector<1x1x1x128xf32> to vector<1x128xf32>
    %c2_170 = arith.constant 2 : index
    %c0_171 = arith.constant 0 : index
    %c0_172 = arith.constant 0 : index
    %249 = vector.load %arg7[%c2_170, %c0_171, %c0_172] : memref<20x20x128xf32, #tpu.memory_space<vmem>>, vector<16x16x128xf32>
    %250 = vector.shape_cast %248 : vector<1x128xf32> to vector<1x1x128xf32>
    %251 = vector.broadcast %250 : vector<1x1x128xf32> to vector<16x16x128xf32>
    %252 = arith.mulf %249, %251 : vector<16x16x128xf32>
    %253 = arith.addf %246, %252 : vector<16x16x128xf32>
    %c1_173 = arith.constant 1 : index
    %c1_174 = arith.constant 1 : index
    %c1_175 = arith.constant 1 : index
    %c0_176 = arith.constant 0 : index
    %254 = vector.load %arg4[%c1_173, %c1_174, %c1_175, %c0_176] : memref<2x3x3x128xf32, #tpu.memory_space<vmem>>, vector<1x1x1x128xf32>
    %255 = vector.shape_cast %254 : vector<1x1x1x128xf32> to vector<1x128xf32>
    %c2_177 = arith.constant 2 : index
    %c2_178 = arith.constant 2 : index
    %c0_179 = arith.constant 0 : index
    %256 = vector.load %arg7[%c2_177, %c2_178, %c0_179] : memref<20x20x128xf32, #tpu.memory_space<vmem>>, vector<16x16x128xf32>
    %257 = vector.shape_cast %255 : vector<1x128xf32> to vector<1x1x128xf32>
    %258 = vector.broadcast %257 : vector<1x1x128xf32> to vector<16x16x128xf32>
    %259 = arith.mulf %256, %258 : vector<16x16x128xf32>
    %260 = arith.addf %253, %259 : vector<16x16x128xf32>
    %c1_180 = arith.constant 1 : index
    %c1_181 = arith.constant 1 : index
    %c2_182 = arith.constant 2 : index
    %c0_183 = arith.constant 0 : index
    %261 = vector.load %arg4[%c1_180, %c1_181, %c2_182, %c0_183] : memref<2x3x3x128xf32, #tpu.memory_space<vmem>>, vector<1x1x1x128xf32>
    %262 = vector.shape_cast %261 : vector<1x1x1x128xf32> to vector<1x128xf32>
    %c2_184 = arith.constant 2 : index
    %c4_185 = arith.constant 4 : index
    %c0_186 = arith.constant 0 : index
    %263 = vector.load %arg7[%c2_184, %c4_185, %c0_186] : memref<20x20x128xf32, #tpu.memory_space<vmem>>, vector<16x16x128xf32>
    %264 = vector.shape_cast %262 : vector<1x128xf32> to vector<1x1x128xf32>
    %265 = vector.broadcast %264 : vector<1x1x128xf32> to vector<16x16x128xf32>
    %266 = arith.mulf %263, %265 : vector<16x16x128xf32>
    %267 = arith.addf %260, %266 : vector<16x16x128xf32>
    %c1_187 = arith.constant 1 : index
    %c2_188 = arith.constant 2 : index
    %c0_189 = arith.constant 0 : index
    %c0_190 = arith.constant 0 : index
    %268 = vector.load %arg4[%c1_187, %c2_188, %c0_189, %c0_190] : memref<2x3x3x128xf32, #tpu.memory_space<vmem>>, vector<1x1x1x128xf32>
    %269 = vector.shape_cast %268 : vector<1x1x1x128xf32> to vector<1x128xf32>
    %c4_191 = arith.constant 4 : index
    %c0_192 = arith.constant 0 : index
    %c0_193 = arith.constant 0 : index
    %270 = vector.load %arg7[%c4_191, %c0_192, %c0_193] : memref<20x20x128xf32, #tpu.memory_space<vmem>>, vector<16x16x128xf32>
    %271 = vector.shape_cast %269 : vector<1x128xf32> to vector<1x1x128xf32>
    %272 = vector.broadcast %271 : vector<1x1x128xf32> to vector<16x16x128xf32>
    %273 = arith.mulf %270, %272 : vector<16x16x128xf32>
    %274 = arith.addf %267, %273 : vector<16x16x128xf32>
    %c1_194 = arith.constant 1 : index
    %c2_195 = arith.constant 2 : index
    %c1_196 = arith.constant 1 : index
    %c0_197 = arith.constant 0 : index
    %275 = vector.load %arg4[%c1_194, %c2_195, %c1_196, %c0_197] : memref<2x3x3x128xf32, #tpu.memory_space<vmem>>, vector<1x1x1x128xf32>
    %276 = vector.shape_cast %275 : vector<1x1x1x128xf32> to vector<1x128xf32>
    %c4_198 = arith.constant 4 : index
    %c2_199 = arith.constant 2 : index
    %c0_200 = arith.constant 0 : index
    %277 = vector.load %arg7[%c4_198, %c2_199, %c0_200] : memref<20x20x128xf32, #tpu.memory_space<vmem>>, vector<16x16x128xf32>
    %278 = vector.shape_cast %276 : vector<1x128xf32> to vector<1x1x128xf32>
    %279 = vector.broadcast %278 : vector<1x1x128xf32> to vector<16x16x128xf32>
    %280 = arith.mulf %277, %279 : vector<16x16x128xf32>
    %281 = arith.addf %274, %280 : vector<16x16x128xf32>
    %c1_201 = arith.constant 1 : index
    %c2_202 = arith.constant 2 : index
    %c2_203 = arith.constant 2 : index
    %c0_204 = arith.constant 0 : index
    %282 = vector.load %arg4[%c1_201, %c2_202, %c2_203, %c0_204] : memref<2x3x3x128xf32, #tpu.memory_space<vmem>>, vector<1x1x1x128xf32>
    %283 = vector.shape_cast %282 : vector<1x1x1x128xf32> to vector<1x128xf32>
    %c4_205 = arith.constant 4 : index
    %c4_206 = arith.constant 4 : index
    %c0_207 = arith.constant 0 : index
    %284 = vector.load %arg7[%c4_205, %c4_206, %c0_207] : memref<20x20x128xf32, #tpu.memory_space<vmem>>, vector<16x16x128xf32>
    %285 = vector.shape_cast %283 : vector<1x128xf32> to vector<1x1x128xf32>
    %286 = vector.broadcast %285 : vector<1x1x128xf32> to vector<16x16x128xf32>
    %287 = arith.mulf %284, %286 : vector<16x16x128xf32>
    %288 = arith.addf %281, %287 : vector<16x16x128xf32>
    %c1_208 = arith.constant 1 : index
    %c0_209 = arith.constant 0 : index
    %289 = vector.load %arg5[%c1_208, %c0_209] : memref<2x128xf32, #tpu.memory_space<vmem>>, vector<1x128xf32>
    %290 = vector.shape_cast %289 : vector<1x128xf32> to vector<1x1x128xf32>
    %291 = vector.broadcast %290 : vector<1x1x128xf32> to vector<16x16x128xf32>
    %292 = arith.addf %288, %291 : vector<16x16x128xf32>
    %cst_210 = arith.constant 5.000000e-01 : f32
    %293 = vector.broadcast %cst_210 : f32 to vector<16x16x128xf32>
    %294 = arith.mulf %293, %292 : vector<16x16x128xf32>
    %cst_211 = arith.constant 0.707106769 : f32
    %295 = vector.broadcast %cst_211 : f32 to vector<16x16x128xf32>
    %296 = arith.mulf %292, %295 : vector<16x16x128xf32>
    %297 = math.absf %296 : vector<16x16x128xf32>
    %cst_212 = arith.constant 0.327591091 : f32
    %298 = vector.broadcast %cst_212 : f32 to vector<16x16x128xf32>
    %299 = arith.mulf %298, %297 : vector<16x16x128xf32>
    %cst_213 = arith.constant 1.000000e+00 : f32
    %300 = vector.broadcast %cst_213 : f32 to vector<16x16x128xf32>
    %301 = arith.addf %300, %299 : vector<16x16x128xf32>
    %cst_214 = arith.constant 1.000000e+00 : f32
    %302 = vector.broadcast %cst_214 : f32 to vector<16x16x128xf32>
    %303 = arith.divf %302, %301 : vector<16x16x128xf32>
    %cst_215 = arith.constant 1.06140542 : f32
    %304 = vector.broadcast %cst_215 : f32 to vector<16x16x128xf32>
    %305 = arith.mulf %304, %303 : vector<16x16x128xf32>
    %cst_216 = arith.constant -1.45315206 : f32
    %306 = vector.broadcast %cst_216 : f32 to vector<16x16x128xf32>
    %307 = arith.addf %305, %306 : vector<16x16x128xf32>
    %308 = arith.mulf %307, %303 : vector<16x16x128xf32>
    %cst_217 = arith.constant 1.42141378 : f32
    %309 = vector.broadcast %cst_217 : f32 to vector<16x16x128xf32>
    %310 = arith.addf %308, %309 : vector<16x16x128xf32>
    %311 = arith.mulf %310, %303 : vector<16x16x128xf32>
    %cst_218 = arith.constant -0.284496725 : f32
    %312 = vector.broadcast %cst_218 : f32 to vector<16x16x128xf32>
    %313 = arith.addf %311, %312 : vector<16x16x128xf32>
    %314 = arith.mulf %313, %303 : vector<16x16x128xf32>
    %cst_219 = arith.constant 0.254829586 : f32
    %315 = vector.broadcast %cst_219 : f32 to vector<16x16x128xf32>
    %316 = arith.addf %314, %315 : vector<16x16x128xf32>
    %317 = arith.mulf %316, %303 : vector<16x16x128xf32>
    %cst_220 = arith.constant 0.000000e+00 : f32
    %318 = vector.broadcast %cst_220 : f32 to vector<16x16x128xf32>
    %319 = arith.subf %318, %297 : vector<16x16x128xf32>
    %320 = arith.mulf %319, %297 : vector<16x16x128xf32>
    %321 = math.exp %320 : vector<16x16x128xf32>
    %322 = arith.mulf %317, %321 : vector<16x16x128xf32>
    %cst_221 = arith.constant 1.000000e+00 : f32
    %323 = vector.broadcast %cst_221 : f32 to vector<16x16x128xf32>
    %324 = arith.subf %323, %322 : vector<16x16x128xf32>
    %cst_222 = arith.constant 0.000000e+00 : f32
    %325 = vector.broadcast %cst_222 : f32 to vector<16x16x128xf32>
    %326 = arith.cmpf oge, %296, %325 : vector<16x16x128xf32>
    %cst_223 = arith.constant 0.000000e+00 : f32
    %327 = vector.broadcast %cst_223 : f32 to vector<16x16x128xf32>
    %328 = arith.subf %327, %324 : vector<16x16x128xf32>
    %329 = arith.select %326, %324, %328 : vector<16x16x128xi1>, vector<16x16x128xf32>
    %cst_224 = arith.constant 1.000000e+00 : f32
    %330 = vector.broadcast %cst_224 : f32 to vector<16x16x128xf32>
    %331 = arith.addf %330, %329 : vector<16x16x128xf32>
    %332 = arith.mulf %294, %331 : vector<16x16x128xf32>
    %c0_225 = arith.constant 0 : index
    %c0_226 = arith.constant 0 : index
    %c0_227 = arith.constant 0 : index
    %c128 = arith.constant 128 : index
    %333 = vector.load %arg6[%c0_225, %c0_226, %c0_227, %c128] : memref<1x16x16x256xf32, #tpu.memory_space<vmem>>, vector<1x16x16x128xf32>
    %334 = vector.shape_cast %333 : vector<1x16x16x128xf32> to vector<16x16x128xf32>
    %335 = vector.shape_cast %332 : vector<16x16x128xf32> to vector<1x16x16x128xf32>
    tpu.vector_store %arg6[%c0_225, %c0_226, %c0_227, %c128], %335 {strides = array<i32>} : memref<1x16x16x256xf32, #tpu.memory_space<vmem>>, vector<1x16x16x128xf32>,
    return
  }
  func.func @transform_0(%arg0: i32) -> (i32, i32, i32) {
    %c0_i32 = arith.constant 0 : i32
    %c0_i32_0 = arith.constant 0 : i32
    %c0_i32_1 = arith.constant 0 : i32
    return %arg0, %c0_i32, %c0_i32_0 : i32, i32, i32
  }
  func.func @transform_1(%arg0: i32) -> (i32, i32) {
    %c0_i32 = arith.constant 0 : i32
    %c0_i32_0 = arith.constant 0 : i32
    %c0_i32_1 = arith.constant 0 : i32
    return %c0_i32, %c0_i32_0 : i32, i32
  }
  func.func @transform_2(%arg0: i32) -> (i32, i32) {
    %c0_i32 = arith.constant 0 : i32
    %c0_i32_0 = arith.constant 0 : i32
    %c0_i32_1 = arith.constant 0 : i32
    return %c0_i32, %c0_i32_0 : i32, i32
  }
  func.func @transform_3(%arg0: i32) -> (i32, i32, i32, i32) {
    %c0_i32 = arith.constant 0 : i32
    %c0_i32_0 = arith.constant 0 : i32
    %c0_i32_1 = arith.constant 0 : i32
    %c0_i32_2 = arith.constant 0 : i32
    %c0_i32_3 = arith.constant 0 : i32
    return %c0_i32, %c0_i32_0, %c0_i32_1, %c0_i32_2 : i32, i32, i32, i32
  }
  func.func @transform_4(%arg0: i32) -> (i32, i32) {
    %c0_i32 = arith.constant 0 : i32
    %c0_i32_0 = arith.constant 0 : i32
    %c0_i32_1 = arith.constant 0 : i32
    return %c0_i32, %c0_i32_0 : i32, i32
  }
  func.func @transform_5(%arg0: i32) -> (i32, i32, i32, i32) {
    %c0_i32 = arith.constant 0 : i32
    %c0_i32_0 = arith.constant 0 : i32
    %c0_i32_1 = arith.constant 0 : i32
    %c0_i32_2 = arith.constant 0 : i32
    return %arg0, %c0_i32, %c0_i32_0, %c0_i32_1 : i32, i32, i32, i32
  }
}

</mosaic_0001>

<bundles_post_ra>
// kernel: tpu_custom_call.1
= control target key start
LH: loop header
LB: loop body
LE: loop exit
PB: predicated region body
PF: predicated region fallthrough
CT: control target
= control target key end

     0   :  { %10 = vsyncpa [#allocation4], 0  ;;  %s11065_s0 = inlined_call_operand.vmem [shape: f32[2,256,32], index: 0, kind: input, shape index: {}]   ;;  %s11066_s1 = inlined_call_operand.vmem [shape: f32[32,128], index: 1, kind: input, shape index: {}]   ;;  %s11067_s2 = inlined_call_operand.vmem [shape: f32[1,128], index: 2, kind: input, shape index: {}]   ;;  %s11068_s3 = inlined_call_operand.vmem [shape: f32[2,3,3,128], index: 3, kind: input, shape index: {}]   ;;  %s11069_s4 = inlined_call_operand.vmem [shape: f32[2,128], index: 4, kind: input, shape index: {}]   ;;  %s11070_s5 = inlined_call_operand.hbm [shape: f32[2,16,16,256], index: 5, kind: output, shape index: {}]  }
   0x1   :  { %12 = vsyncpa [#allocation4 + $0x1], 0  ;;  %s6177_s18 = smov 0   ;;  %s6179_s19 = smov 0  }
   0x2   :  { %s6181_s20 = smov 0   ;;  %s6183_s21 = smov 0  }
   0x3 LB: > { %s6198_s22 = sadd.s32 4294967295, %s6141_s21   ;;  %s5358_s23 = sadd.s32 4294967294, %s6141_s21   ;;  %s6141_s21 = sphi %s6183_s21, %s11783_s21   ;;  %s6137_s20 = sphi %s6181_s20, %s11782_s20   ;;  %s6133_s19 = sphi %s6179_s19, %s11781_s19   ;;  %s6129_s18 = sphi %s6177_s18, %s11780_s18  }
   0x4   : > { %s6202_s24 = sadd.s32 1, %s6141_s21   ;;  %s135_s25 = sadd.s32 1, %s6137_s20 }
   0x5   : > { %s132_s26 = ssub.s32 %s6141_s21, %s6202_s24  ;;  %p145_p0 = scmp.ne.s32.totalorder %s6137_s20, %s6133_s19 }
   0x6   : > { %p133_p1 = scmp.eq.s32.totalorder %s132_s26, 0  ;;  %p146_p2 = scmp.eq.s32.totalorder %s6198_s22, 1 }
   0x7   : > { %p151_p3 = scmp.ne.s32.totalorder %s6133_s19, %s6129_s18  ;;  %p152_p4 = scmp.eq.s32.totalorder %s5358_s23, 1 }
   0x8   : > { %s6213_s27 = scalar_select %p133_p1, %s6137_s20, %s135_s25  }
   0x9   : > { %p6215_p5 = por %p146_p2, %p145_p0  ;;  %p6219_p6 = por %p152_p4, %p151_p3 }
   0xa   : > { %p5361_p7 = scmp.ge.s32.totalorder %s6141_s21, 1  ;;  %p190_p8 = scmp.lt.s32.totalorder %s6141_s21, 3 }
   0xc   : > { %p191_p9 = pnand %p5361_p7, %p190_p8 }
   0xe   : > { %194 = sbr.rel (%p191_p9) target bundleno = 1251 (0x4e3), region = 40 }
  0x15   : > { %v255_v0 = vld [vmem:[%s11066_s1] sm:$0xff]  ;;  %v256_v1 = vld [vmem:[%s11066_s1 + $0x8] sm:$0xff]  ;;  %v257_v2 = vld [vmem:[%s11066_s1 + $0x10] sm:$0xff]  ;;  %p218_p10 = scmp.lt.s32.totalorder %s6198_s22, 1  ;;  %vm266_vm0 = vcmask 261120   ;;  %v6143_v38 = vmov 0.0  }
  0x16   : > { %v5532_v3 = vpack.c.bf16 %v256_v1, %v255_v0  ;;  %v258_v4 = vld [vmem:[%s11066_s1 + $0x18] sm:$0xff]  ;;  %1459 = vst [vmem:[#allocation2 + $0x38] sm:$0xff] %v6143_v38  ;;  %1460 = vst [vmem:[#allocation2 + $0x40] sm:$0xf] %v6143_v38  ;;  %v6311_v39 = vld [vmem:[%s11067_s2] ss:$0 sm:$0xff] }
  0x17   : > { %v5536_v5 = vpack.c.bf16 %v258_v4, %v257_v2  ;;  %s219_s13 = scalar_select %p218_p10, %s6198_s22, 1  ;;  %1452 = vst [vmem:[#allocation2] sm:$0xff] %v6143_v38  ;;  %1453 = vst [vmem:[#allocation2 + $0x8] sm:$0xff] %v6143_v38 }
  0x18   : > { %5533 = vmatprep.subr.bf16.mxu0 %v5532_v3  ;;  %5540 = vmatprep.subr.bf16.mxu1 %v5532_v3  ;;  %1454 = vst [vmem:[#allocation2 + $0x10] sm:$0xf] %v6143_v38  ;;  %1455 = vst [vmem:[#allocation2 + $0x18] sm:$0xff] %v6143_v38  ;;  %s215_s16 = sand.u32 1, %s6133_s19   ;;  %s5439_s7 = sshll.u32 %s6198_s22, 13 }
  0x19   : > { %5535 = vmatpush3.bf16.msra.mxu0 %v5532_v3  ;;  %5542 = vmatpush3.bf16.msra.mxu1 %v5532_v3  ;;  %s5438_s14 = sshll.u32 %s219_s13, 8  ;;  %1456 = vst [vmem:[#allocation2 + $0x20] sm:$0xff] %v6143_v38  ;;  %1457 = vst [vmem:[#allocation2 + $0x28] sm:$0xf] %v6143_v38  ;;  %s11015_s10 = scalar_lea.hbm %s11070_s5, %s5439_s7 }
  0x1a   : > { %5537 = vmatprep.subr.bf16.mxu0 %v5536_v5  ;;  %5541 = vmatprep.subr.bf16.mxu1 %v5536_v5  ;;  %s6242_s17 = scalar_lea.vmem %s11065_s0, %s5438_s14  ;;  %1458 = vst [vmem:[#allocation2 + $0x30] sm:$0xff] %v6143_v38  ;;  %1461 = vst [vmem:[#allocation2 + $0x48] sm:$0xff] %v6143_v38  ;;  %s11024_s11 = scalar_lea.sflag [#allocation4], %s215_s16 }
  0x1b   : > { %v223_v6 = vld [vmem:[%s6242_s17] sm:$0xff]  ;;  %v224_v8 = vld [vmem:[%s6242_s17 + $0x8] sm:$0xff]  ;;  %v225_v10 = vld [vmem:[%s6242_s17 + $0x10] sm:$0xff]  ;;  %1462 = vst [vmem:[#allocation2 + $0x50] sm:$0xff] %v6143_v38  ;;  %s6144_s13 = smov [#allocation3]  }
  0x1c   : > { %v239_v7 = vld [vmem:[%s6242_s17 + $0x80] sm:$0xff]  ;;  %5484 = vmatprep.mubr.msk.f32.mxu0 %vm266_vm0, %v223_v6  ;;  %v240_v9 = vld [vmem:[%s6242_s17 + $0x88] sm:$0xff]  ;;  %v241_v11 = vld [vmem:[%s6242_s17 + $0x90] sm:$0xff]  ;;  %1463 = vst [vmem:[#allocation2 + $0x58] sm:$0xf] %v6143_v38  ;;  %s6083_s14 = sshll.u32 %s6144_s13, 4  ;;  %s6084_s14 = int_to_ptr.vmem [resolvable:$false] %s6083_s14 }
  0x1d   : > { %5508 = vmatprep.mubr.msk.f32.mxu1 %vm266_vm0, %v239_v7  ;;  %5539 = vmatpush3.bf16.msra.mxu0 %v5536_v5  ;;  %v226_v12 = vld [vmem:[%s6242_s17 + $0x18] sm:$0xff]  ;;  %v227_v14 = vld [vmem:[%s6242_s17 + $0x20] sm:$0xff]  ;;  %v228_v16 = vld [vmem:[%s6242_s17 + $0x28] sm:$0xff]  ;;  %1464 = vst [vmem:[#allocation2 + $0x60] sm:$0xff] %v6143_v38  ;;  %s6085_s15 = scalar_lea.vmem %s6084_s14, 16384 }
  0x1e   : > { %5543 = vmatpush3.bf16.msra.mxu1 %v5536_v5  ;;  %v242_v13 = vld [vmem:[%s6242_s17 + $0x98] sm:$0xff]  ;;  %v243_v15 = vld [vmem:[%s6242_s17 + $0xa0] sm:$0xff]  ;;  %v244_v17 = vld [vmem:[%s6242_s17 + $0xa8] sm:$0xff]  ;;  %1465 = vst [vmem:[#allocation2 + $0x68] sm:$0xff] %v6143_v38 }
  0x1f   : > { %v229_v18 = vld [vmem:[%s6242_s17 + $0x30] sm:$0xff]  ;;  %v230_v20 = vld [vmem:[%s6242_s17 + $0x38] sm:$0xff]  ;;  %v231_v22 = vld [vmem:[%s6242_s17 + $0x40] sm:$0xff]  ;;  %1466 = vst [vmem:[#allocation2 + $0x70] sm:$0xf] %v6143_v38 }
  0x20   : > { %5485 = vmatmul.mubr.msk.f32.vlgmr.msra.gmra.mrb[0].mxu0 %vm266_vm0, %v224_v8  ;;  %v245_v19 = vld [vmem:[%s6242_s17 + $0xb0] sm:$0xff]  ;;  %v246_v21 = vld [vmem:[%s6242_s17 + $0xb8] sm:$0xff]  ;;  %v247_v23 = vld [vmem:[%s6242_s17 + $0xc0] sm:$0xff]  ;;  %1467 = vst [vmem:[#allocation2 + $0x78] sm:$0xff] %v6143_v38 }
  0x21   : > { %5509 = vmatmul.mubr.msk.f32.vlgmr.msra.gmra.mrb[0].mxu1 %vm266_vm0, %v240_v9  ;;  %5487 = vmatprep.mubr.msk.f32.mxu0 %vm266_vm0, %v225_v10  ;;  %v232_v24 = vld [vmem:[%s6242_s17 + $0x48] sm:$0xff]  ;;  %v233_v26 = vld [vmem:[%s6242_s17 + $0x50] sm:$0xff]  ;;  %v234_v28 = vld [vmem:[%s6242_s17 + $0x58] sm:$0xff]  ;;  %1468 = vst [vmem:[#allocation2 + $0x80] sm:$0xff] %v6143_v38 }
  0x22   : > { %5511 = vmatprep.mubr.msk.f32.mxu1 %vm266_vm0, %v241_v11  ;;  %v248_v25 = vld [vmem:[%s6242_s17 + $0xc8] sm:$0xff]  ;;  %v249_v27 = vld [vmem:[%s6242_s17 + $0xd0] sm:$0xff]  ;;  %v250_v29 = vld [vmem:[%s6242_s17 + $0xd8] sm:$0xff]  ;;  %1469 = vst [vmem:[#allocation2 + $0x88] sm:$0xf] %v6143_v38 }
  0x23   : > { %v235_v30 = vld [vmem:[%s6242_s17 + $0x60] sm:$0xff]  ;;  %v236_v32 = vld [vmem:[%s6242_s17 + $0x68] sm:$0xff]  ;;  %v237_v34 = vld [vmem:[%s6242_s17 + $0x70] sm:$0xff]  ;;  %1470 = vst [vmem:[#allocation2 + $0x90] sm:$0xff] %v6143_v38 }
  0x24   : > { %5488 = vmatmul.mubr.msk.f32.gmra.mrb[2].mxu0 %vm266_vm0, %v226_v12  ;;  %v251_v31 = vld [vmem:[%s6242_s17 + $0xe0] sm:$0xff]  ;;  %v252_v33 = vld [vmem:[%s6242_s17 + $0xe8] sm:$0xff]  ;;  %v253_v35 = vld [vmem:[%s6242_s17 + $0xf0] sm:$0xff]  ;;  %1471 = vst [vmem:[#allocation2 + $0x98] sm:$0xff] %v6143_v38 }
  0x25   : > { %5512 = vmatmul.mubr.msk.f32.gmra.mrb[2].mxu1 %vm266_vm0, %v242_v13  ;;  %5490 = vmatprep.mubr.msk.f32.mxu0 %vm266_vm0, %v227_v14  ;;  %v238_v36 = vld [vmem:[%s6242_s17 + $0x78] sm:$0xff]  ;;  %1472 = vst [vmem:[#allocation2 + $0xa0] sm:$0xf] %v6143_v38  ;;  %1473 = vst [vmem:[#allocation2 + $0xa8] sm:$0xff] %v6143_v38 }
  0x26   : > { %5514 = vmatprep.mubr.msk.f32.mxu1 %vm266_vm0, %v243_v15  ;;  %v254_v37 = vld [vmem:[%s6242_s17 + $0xf8] sm:$0xff]  ;;  %1474 = vst [vmem:[#allocation2 + $0xb0] sm:$0xff] %v6143_v38  ;;  %1475 = vst [vmem:[#allocation2 + $0xb8] sm:$0xf] %v6143_v38  ;;  %s5362_s17 = sshll.u32 %s215_s16, 9 }
  0x27   : > { %1476 = vst [vmem:[#allocation2 + $0xc0] sm:$0xff] %v6143_v38  ;;  %1477 = vst [vmem:[#allocation2 + $0xc8] sm:$0xff] %v6143_v38  ;;  %s6998_s23 = scalar_lea.vmem [#allocation3], %s5362_s17 }
  0x28   : > { %5491 = vmatmul.mubr.msk.f32.gmra.mrb[4].mxu0 %vm266_vm0, %v228_v16  ;;  %1478 = vst [vmem:[#allocation2 + $0xd0] sm:$0xf] %v6143_v38  ;;  %1479 = vst [vmem:[#allocation2 + $0xd8] sm:$0xff] %v6143_v38  ;;  %s5296_s8 = sshll.u32 %s6998_s23, 4  ;;  %s11017_s8 = int_to_ptr.vmem [resolvable:$true] %s5296_s8 }
  0x29   : > { %5515 = vmatmul.mubr.msk.f32.gmra.mrb[4].mxu1 %vm266_vm0, %v244_v17  ;;  %5493 = vmatprep.mubr.msk.f32.mxu0 %vm266_vm0, %v229_v18  ;;  %1480 = vst [vmem:[#allocation2 + $0xe0] sm:$0xff] %v6143_v38  ;;  %1481 = vst [vmem:[#allocation2 + $0xe8] sm:$0xf] %v6143_v38  ;;  %s6079_s12 = scalar_lea.vmem %s11017_s8, 8192  ;;  %p6086_p0 = scmp.lt.s32.totalorder %s11017_s8, %s6084_s14 }
  0x2a   : > { %5517 = vmatprep.mubr.msk.f32.mxu1 %vm266_vm0, %v245_v19  ;;  %1482 = vst [vmem:[#allocation2 + $0xf0] sm:$0xff] %v6143_v38  ;;  %1483 = vst [vmem:[#allocation2 + $0xf8] sm:$0xff] %v6143_v38  ;;  %p6080_p11 = scmp.ne.s32.totalorder %s11017_s8, %s6079_s12  ;;  %p6087_p1 = scmp.lt.s32.totalorder %s6085_s15, %s6079_s12 }
  0x2b   : > { %1484 = vst [vmem:[#allocation2 + $0x100] sm:$0xf] %v6143_v38  ;;  %1485 = vst [vmem:[#allocation2 + $0x108] sm:$0xff] %v6143_v38 }
  0x2c   : > { %5494 = vmatmul.mubr.msk.f32.gmra.mrb[6].mxu0 %vm266_vm0, %v230_v20  ;;  %1486 = vst [vmem:[#allocation2 + $0x110] sm:$0xff] %v6143_v38  ;;  %1487 = vst [vmem:[#allocation2 + $0x118] sm:$0xf] %v6143_v38  ;;  %p6081_p12 = pnand %p6080_p11, %p6215_p5  ;;  %p6088_p2 = por %p6087_p1, %p6086_p0 }
  0x2d   : > { %5518 = vmatmul.mubr.msk.f32.gmra.mrb[6].mxu1 %vm266_vm0, %v246_v21  ;;  %5496 = vmatprep.mubr.msk.f32.mxu0 %vm266_vm0, %v231_v22  ;;  %1488 = vst [vmem:[#allocation2 + $0x120] sm:$0xff] %v6143_v38  ;;  %1489 = vst [vmem:[#allocation2 + $0x128] sm:$0xff] %v6143_v38 }
  0x2e   : > { %5520 = vmatprep.mubr.msk.f32.mxu1 %vm266_vm0, %v247_v23  ;;  %1490 = vst [vmem:[#allocation2 + $0x130] sm:$0xf] %v6143_v38  ;;  %1491 = vst [vmem:[#allocation2 + $0x138] sm:$0xff] %v6143_v38  ;;  %p6082_p13 = pneg %p6081_p12 }
  0x2f   : > { %1492 = vst [vmem:[#allocation2 + $0x140] sm:$0xff] %v6143_v38  ;;  %1493 = vst [vmem:[#allocation2 + $0x148] sm:$0xf] %v6143_v38 }
  0x30   : > { %5497 = vmatmul.mubr.msk.f32.gmra.mrb[8].mxu0 %vm266_vm0, %v232_v24  ;;  %1494 = vst [vmem:[#allocation2 + $0x150] sm:$0xff] %v6143_v38  ;;  %1495 = vst [vmem:[#allocation2 + $0x158] sm:$0xff] %v6143_v38  ;;  %p6089_p3 = pnand %p6088_p2, %p6082_p13 }
  0x31   : > { %5521 = vmatmul.mubr.msk.f32.gmra.mrb[8].mxu1 %vm266_vm0, %v248_v25  ;;  %5499 = vmatprep.mubr.msk.f32.mxu0 %vm266_vm0, %v233_v26  ;;  %1496 = vst [vmem:[#allocation2 + $0x160] sm:$0xf] %v6143_v38  ;;  %1497 = vst [vmem:[#allocation2 + $0x168] sm:$0xff] %v6143_v38 }
  0x32   : > { %5523 = vmatprep.mubr.msk.f32.mxu1 %vm266_vm0, %v249_v27  ;;  %1498 = vst [vmem:[#allocation2 + $0x170] sm:$0xff] %v6143_v38  ;;  %1499 = vst [vmem:[#allocation2 + $0x178] sm:$0xf] %v6143_v38 }
  0x33   : > { %1500 = vst [vmem:[#allocation2 + $0x180] sm:$0xff] %v6143_v38  ;;  %1501 = vst [vmem:[#allocation2 + $0x188] sm:$0xff] %v6143_v38 }
  0x34   : > { %5500 = vmatmul.mubr.msk.f32.gmra.mrb[10].mxu0 %vm266_vm0, %v234_v28  ;;  %1502 = vst [vmem:[#allocation2 + $0x190] sm:$0xf] %v6143_v38  ;;  %1503 = vst [vmem:[#allocation2 + $0x198] sm:$0xff] %v6143_v38 }
  0x35   : > { %5524 = vmatmul.mubr.msk.f32.gmra.mrb[10].mxu1 %vm266_vm0, %v250_v29  ;;  %5502 = vmatprep.mubr.msk.f32.mxu0 %vm266_vm0, %v235_v30  ;;  %1504 = vst [vmem:[#allocation2 + $0x1a0] sm:$0xff] %v6143_v38  ;;  %1505 = vst [vmem:[#allocation2 + $0x1a8] sm:$0xf] %v6143_v38 }
  0x36   : > { %5526 = vmatprep.mubr.msk.f32.mxu1 %vm266_vm0, %v251_v31  ;;  %1506 = vst [vmem:[#allocation2 + $0x1b0] sm:$0xff] %v6143_v38  ;;  %1507 = vst [vmem:[#allocation2 + $0x1b8] sm:$0xff] %v6143_v38 }
  0x37   : > { %1508 = vst [vmem:[#allocation2 + $0x1c0] sm:$0xf] %v6143_v38  ;;  %1509 = vst [vmem:[#allocation2 + $0x1c8] sm:$0xff] %v6143_v38 }
  0x38   : > { %5503 = vmatmul.mubr.msk.f32.gmra.mrb[12].mxu0 %vm266_vm0, %v236_v32  ;;  %1510 = vst [vmem:[#allocation2 + $0x1d0] sm:$0xff] %v6143_v38  ;;  %1511 = vst [vmem:[#allocation2 + $0x1d8] sm:$0xf] %v6143_v38 }
  0x39   : > { %5527 = vmatmul.mubr.msk.f32.gmra.mrb[12].mxu1 %vm266_vm0, %v252_v33  ;;  %5505 = vmatprep.mubr.msk.f32.mxu0 %vm266_vm0, %v237_v34 }
  0x3a   : > { %5529 = vmatprep.mubr.msk.f32.mxu1 %vm266_vm0, %v253_v35 }
  0x3c   : > { %5506 = vmatmul.mubr.msk.f32.gmra.mrb[14].mxu0 %vm266_vm0, %v238_v36 }
  0x3d   : > { %5530 = vmatmul.mubr.msk.f32.gmra.mrb[14].mxu1 %vm266_vm0, %v254_v37 }
  0xf3   : > { %v5486_v40 = vpop.f32.mrb[0].mxu0 }
  0xf4   : > { %v5510_v41 = vpop.f32.mrb[0].mxu1  ;;  %v6314_v42 = vadd.f32 %v5486_v40, %v6311_v39  ;;  %v429_v44 = vpop.f32.mrb[1].mxu0 }
  0xf5   : > { %v6317_v43 = vadd.f32 %v5510_v41, %v6311_v39  ;;  %v509_v45 = vpop.f32.mrb[1].mxu1  ;;  %v6320_v46 = vadd.f32 %v6311_v39, %v429_v44 }
  0xf6   : > { %v6323_v47 = vadd.f32 %v6311_v39, %v509_v45  ;;  %v6326_v48 = vmul.f32 0.70710677, %v6314_v42  ;;  %v6394_v45 = vmul.f32 0.5, %v6314_v42 }
  0xf7   : > { %v6329_v49 = vmul.f32 0.70710677, %v6317_v43  ;;  %v6332_v50 = vmul.f32 0.70710677, %v6320_v46  ;;  %v5489_v62 = vpop.f32.mrb[2].mxu0  ;;  %v6402_v42 = vmul.f32 0.5, %v6317_v43 }
  0xf8   : > { %v6335_v51 = vmul.f32 0.70710677, %v6323_v47  ;;  %v653_v52 = vand.u32 2147483647, %v6326_v48  ;;  %v5513_v63 = vpop.f32.mrb[2].mxu1  ;;  %v439_v0 = vpop.f32.mrb[3].mxu0  ;;  %v6342_v3 = vadd.f32 %v5489_v62, %v6311_v39 }
  0xf9   : > { %v669_v53 = vand.u32 2147483647, %v6329_v49  ;;  %v652_v54 = vand.u32 2147483647, %v6332_v50  ;;  %v519_v1 = vpop.f32.mrb[3].mxu1  ;;  %v6349_v6 = vadd.f32 %v5513_v63, %v6311_v39  ;;  %v6359_v11 = vadd.f32 %v6311_v39, %v439_v0 }
  0xfa   : > { %v668_v55 = vand.u32 2147483647, %v6335_v51  ;;  %v685_v56 = vmul.f32 0.3275911, %v653_v52  ;;  %v6356_v10 = vmul.f32 0.70710677, %v6342_v3  ;;  %v6372_v19 = vadd.f32 %v6311_v39, %v519_v1 }
  0xfb   : > { %v701_v57 = vmul.f32 0.3275911, %v669_v53  ;;  %v684_v58 = vmul.f32 0.3275911, %v652_v54  ;;  %v6344_v4 = vpop.f32.mrb[4].mxu0  ;;  %v1101_v14 = vsub.f32 0.0, %v653_v52 }
  0xfc   : > { %v717_v59 = vadd.f32 1.0, %v685_v56  ;;  %v700_v61 = vmul.f32 0.3275911, %v668_v55  ;;  %v6346_v5 = vpop.f32.mrb[4].mxu1  ;;  %v6351_v7 = vpop.f32.mrb[5].mxu0  ;;  %v1117_v17 = vsub.f32 0.0, %v669_v53 }
  0xfd   : > { %v733_v60 = vadd.f32 1.0, %v701_v57  ;;  %v716_v2 = vadd.f32 1.0, %v684_v58  ;;  %v6353_v8 = vpop.f32.mrb[5].mxu1  ;;  %v6366_v15 = vmul.f32 0.70710677, %v6349_v6  ;;  %v1100_v20 = vsub.f32 0.0, %v652_v54 }
  0xfe   : > { %5586 = vrcp.f32 %v717_v59  ;;  %v732_v9 = vadd.f32 1.0, %v700_v61  ;;  %v655_v18 = vand.u32 2147483647, %v6356_v10  ;;  %v1116_v21 = vsub.f32 0.0, %v668_v55 }
  0xff   : > { %5588 = vrcp.f32 %v733_v60  ;;  %v6361_v12 = vpop.f32.mrb[6].mxu0  ;;  %v671_v22 = vand.u32 2147483647, %v6366_v15  ;;  %v6376_v23 = vmul.f32 0.70710677, %v6359_v11  ;;  %v1133_v25 = vmul.f32 %v1101_v14, %v653_v52 }
 0x100   : > { %v6363_v13 = vpop.f32.mrb[6].mxu1  ;;  %v6368_v16 = vpop.f32.mrb[7].mxu0  ;;  %5590 = vrcp.f32 %v716_v2  ;;  %v687_v24 = vmul.f32 0.3275911, %v655_v18  ;;  %v1149_v28 = vmul.f32 %v1117_v17, %v669_v53  ;;  %v6382_v30 = vmul.f32 0.70710677, %v6372_v19 }
 0x101   : > { %11265 = vst [vmem:[#allocation6_spill] sm:$0xff] %v6368_v16  ;;  %5592 = vrcp.f32 %v732_v9  ;;  %v703_v26 = vmul.f32 0.3275911, %v671_v22  ;;  %v6379_v27 = vand.u32 2147483647, %v6376_v23  ;;  %v1132_v31 = vmul.f32 %v1100_v20, %v652_v54  ;;  %v6405_v0 = vpop.f32.mrb[7].mxu1 }
 0x102   : > { %v719_v29 = vadd.f32 1.0, %v687_v24  ;;  %v1148_v32 = vmul.f32 %v1116_v21, %v668_v55  ;;  %v1103_v36 = vsub.f32 0.0, %v655_v18  ;;  %v6388_v37 = vand.u32 2147483647, %v6382_v30  ;;  %11266 = vst [vmem:[#allocation7_spill] sm:$0xff] %v6405_v0 }
 0x103   : > { %v735_v33 = vadd.f32 1.0, %v703_v26  ;;  %v686_v34 = vmul.f32 0.3275911, %v6379_v27  ;;  %v1166_v41 = vmul.f32 1.442695, %v1133_v25  ;;  %v1119_v54 = vsub.f32 0.0, %v671_v22 }
 0x104   : > { %5594 = vrcp.f32 %v719_v29  ;;  %v1198_v53 = vmul.f32 1.442695, %v1149_v28  ;;  %v1164_v56 = vmul.f32 1.442695, %v1132_v31  ;;  %v1196_v57 = vmul.f32 1.442695, %v1148_v32 }
 0x105   : > { %5596 = vrcp.f32 %v735_v33  ;;  %v718_v44 = vadd.f32 1.0, %v686_v34  ;;  %v1135_v60 = vmul.f32 %v1103_v36, %v655_v18  ;;  %v702_v61 = vmul.f32 0.3275911, %v6388_v37 }
 0x106   : > { %v1151_v9 = vmul.f32 %v1119_v54, %v671_v22  ;;  %v6412_v14 = vadd.f32 %v6344_v4, %v6311_v39  ;;  %v1102_v22 = vsub.f32 0.0, %v6379_v27  ;;  %vm1293_vm1 = vcmp.ge.f32.partialorder %v6326_v48, 0.0 }
 0x107   : > { %5598 = vrcp.f32 %v718_v44  ;;  %v1170_v21 = vmul.f32 1.442695, %v1135_v60  ;;  %v734_v24 = vadd.f32 1.0, %v702_v61  ;;  %vm1309_vm2 = vcmp.ge.f32.partialorder %v6329_v49, 0.0 }
 0x108   : > { %v6385_v35 = vpop.eup %5586  ;;  %5600 = vpow2.f32 %v1166_v41  ;;  %v1202_v31 = vmul.f32 1.442695, %v1151_v9  ;;  %v6422_v32 = vmul.f32 0.70710677, %v6412_v14  ;;  %v588_v48 = vmul.f32 0.5, %v6320_v46 }
 0x109   : > { %v6390_v38 = vpop.eup %5588  ;;  %v813_v40 = vmul.f32 1.0614054, %v6385_v35  ;;  %5602 = vpow2.f32 %v1198_v53  ;;  %vm1292_vm3 = vcmp.ge.f32.partialorder %v6332_v50, 0.0  ;;  %vm1308_vm4 = vcmp.ge.f32.partialorder %v6335_v51, 0.0 }
 0x10a   : > { %v829_v52 = vmul.f32 1.0614054, %v6390_v38  ;;  %v6397_v58 = vpop.eup %5590  ;;  %5604 = vpow2.f32 %v1164_v56  ;;  %v6430_v53 = vand.u32 2147483647, %v6422_v32  ;;  %v604_v46 = vmul.f32 0.5, %v6323_v47 }
 0x10b   : > { %v845_v55 = vadd.f32 -1.4531521, %v813_v40  ;;  %v812_v63 = vmul.f32 1.0614054, %v6397_v58  ;;  %v6407_v1 = vpop.eup %5592  ;;  %5606 = vpow2.f32 %v1196_v57  ;;  %v6490_v47 = vld [vmem:[%s11068_s3] ss:$0 sm:$0xff] }
 0x10c   : > { %v861_v59 = vadd.f32 -1.4531521, %v829_v52  ;;  %v828_v43 = vmul.f32 1.0614054, %v6407_v1  ;;  %5608 = vrcp.f32 %v734_v24  ;;  %vm1295_vm5 = vcmp.ge.f32.partialorder %v6356_v10, 0.0 }
 0x10d   : > { %v877_v62 = vmul.f32 %v6385_v35, %v845_v55  ;;  %v844_v18 = vadd.f32 -1.4531521, %v812_v63  ;;  %5610 = vpow2.f32 %v1170_v21  ;;  %v689_v63 = vmul.f32 0.3275911, %v6430_v53 }
 0x10e   : > { %v893_v2 = vmul.f32 %v6390_v38, %v861_v59  ;;  %v860_v28 = vadd.f32 -1.4531521, %v828_v43  ;;  %v6418_v29 = vpop.eup %5594  ;;  %5612 = vpow2.f32 %v1202_v31  ;;  %vm1311_vm6 = vcmp.ge.f32.partialorder %v6366_v15, 0.0 }
 0x10f   : > { %v909_v17 = vadd.f32 1.4214138, %v877_v62  ;;  %v876_v26 = vmul.f32 %v6397_v58, %v844_v18  ;;  %v6424_v33 = vpop.eup %5596  ;;  %v815_v41 = vmul.f32 1.0614054, %v6418_v29  ;;  %v1134_v62 = vmul.f32 %v1102_v22, %v6379_v27 }
 0x110   : > { %v925_v20 = vadd.f32 1.4214138, %v893_v2  ;;  %v892_v40 = vmul.f32 %v6407_v1, %v860_v28  ;;  %v831_v52 = vmul.f32 1.0614054, %v6424_v33  ;;  %vm1294_vm7 = vcmp.ge.f32.partialorder %v6376_v23, 0.0 }
 0x111   : > { %v941_v25 = vmul.f32 %v6385_v35, %v909_v17  ;;  %v908_v36 = vadd.f32 1.4214138, %v876_v26  ;;  %v847_v57 = vadd.f32 -1.4531521, %v815_v41  ;;  %v6434_v59 = vpop.eup %5598  ;;  %vm1310_vm8 = vcmp.ge.f32.partialorder %v6382_v30, 0.0 }
 0x112   : > { %v957_v4 = vmul.f32 %v6390_v38, %v925_v20  ;;  %v924_v56 = vadd.f32 1.4214138, %v892_v40  ;;  %v863_v61 = vadd.f32 -1.4531521, %v831_v52  ;;  %v5601_v2 = vpop.eup %5600  ;;  %v6673_v30 = vld [vmem:[%s11068_s3 + $0x8] ss:$0 sm:$0xff] }
 0x113   : > { %v973_v34 = vadd.f32 -0.28449672, %v941_v25  ;;  %v940_v55 = vmul.f32 %v6397_v58, %v908_v36  ;;  %v879_v43 = vmul.f32 %v6418_v29, %v847_v57  ;;  %v5603_v20 = vpop.eup %5602  ;;  %v814_v25 = vmul.f32 1.0614054, %v6434_v59  ;;  %11279 = vst [vmem:[#allocation20_spill] sm:$0xff] %v6673_v30 }
 0x114   : > { %v989_v44 = vadd.f32 -0.28449672, %v957_v4  ;;  %v956_v18 = vmul.f32 %v6407_v1, %v924_v56  ;;  %v895_v24 = vmul.f32 %v6424_v33, %v863_v61  ;;  %v5605_v26 = vpop.eup %5604  ;;  %v1168_v61 = vmul.f32 1.442695, %v1134_v62 }
 0x115   : > { %v1005_v54 = vmul.f32 %v6385_v35, %v973_v34  ;;  %v972_v17 = vadd.f32 -0.28449672, %v940_v55  ;;  %v911_v4 = vadd.f32 1.4214138, %v879_v43  ;;  %v5607_v34 = vpop.eup %5606  ;;  %v846_v41 = vadd.f32 -1.4531521, %v814_v25 }
 0x116   : > { %v1021_v60 = vmul.f32 %v6390_v38, %v989_v44  ;;  %v988_v22 = vadd.f32 -0.28449672, %v956_v18  ;;  %v927_v40 = vadd.f32 1.4214138, %v895_v24  ;;  %v721_v44 = vadd.f32 1.0, %v689_v63  ;;  %v6450_v56 = vpop.eup %5608 }
 0x117   : > { %v1037_v9 = vadd.f32 0.2548296, %v1005_v54  ;;  %v1004_v28 = vmul.f32 %v6397_v58, %v972_v17  ;;  %v943_v55 = vmul.f32 %v6418_v29, %v911_v4  ;;  %v5611_v63 = vpop.eup %5610  ;;  %vm1297_vm9 = vcmp.ge.f32.partialorder %v6422_v32, 0.0 }
 0x118   : > { %v1053_v21 = vadd.f32 0.2548296, %v1021_v60  ;;  %v1020_v31 = vmul.f32 %v6407_v1, %v988_v22  ;;  %v959_v57 = vmul.f32 %v6424_v33, %v927_v40  ;;  %v878_v60 = vmul.f32 %v6434_v59, %v846_v41 }
 0x119   : > { %v1069_v27 = vmul.f32 %v6385_v35, %v1037_v9  ;;  %v1036_v54 = vadd.f32 0.2548296, %v1004_v28  ;;  %v975_v18 = vadd.f32 -0.28449672, %v943_v55  ;;  %5614 = vrcp.f32 %v721_v44  ;;  %v5613_v44 = vpop.eup %5612 }
 0x11a   : > { %v1085_v36 = vmul.f32 %v6390_v38, %v1053_v21  ;;  %v1052_v17 = vadd.f32 0.2548296, %v1020_v31  ;;  %v991_v43 = vadd.f32 -0.28449672, %v959_v57  ;;  %v910_v21 = vadd.f32 1.4214138, %v878_v60 }
 0x11b   : > { %v1229_v52 = vmul.f32 %v5601_v2, %v1069_v27  ;;  %v1068_v38 = vmul.f32 %v6397_v58, %v1036_v54  ;;  %v830_v58 = vmul.f32 1.0614054, %v6450_v56  ;;  %5616 = vpow2.f32 %v1168_v61 }
 0x11c   : > { %v1245_v35 = vmul.f32 %v5603_v20, %v1085_v36  ;;  %v1084_v27 = vmul.f32 %v6407_v1, %v1052_v17  ;;  %v1007_v20 = vmul.f32 %v6418_v29, %v975_v18  ;;  %v1023_v22 = vmul.f32 %v6424_v33, %v991_v43 }
 0x11d   : > { %v1261_v9 = vsub.f32 1.0, %v1229_v52  ;;  %v1228_v25 = vmul.f32 %v5605_v26, %v1068_v38  ;;  %v942_v62 = vmul.f32 %v6434_v59, %v910_v21 }
 0x11e   : > { %v1277_v2 = vsub.f32 1.0, %v1245_v35  ;;  %v1244_v40 = vmul.f32 %v5607_v34, %v1084_v27  ;;  %v1039_v41 = vadd.f32 0.2548296, %v1007_v20  ;;  %v1055_v26 = vadd.f32 0.2548296, %v1023_v22  ;;  %v1562_v22 = vld [vmem:[#allocation2 + $0x19] sm:$0xff] }
 0x11f   : > { %v1325_v24 = vsub.f32 0.0, %v1261_v9  ;;  %v1260_v36 = vsub.f32 1.0, %v1228_v25  ;;  %v974_v54 = vadd.f32 -0.28449672, %v942_v62  ;;  %v1118_v27 = vsub.f32 0.0, %v6388_v37  ;;  %v1563_v62 = vld [vmem:[#allocation2 + $0x21] sm:$0xff] }
 0x120   : > { %v1341_v28 = vsub.f32 0.0, %v1277_v2  ;;  %v1276_v35 = vsub.f32 1.0, %v1244_v40  ;;  %v1071_v57 = vmul.f32 %v6418_v29, %v1039_v41  ;;  %v1087_v34 = vmul.f32 %v6424_v33, %v1055_v26  ;;  %v1664_v40 = vld [vmem:[#allocation2 + $0x22] sm:$0xff] }
 0x121   : > { %v1357_v4 = vsel %vm1293_vm1, %v1261_v9, %v1325_v24  ;;  %v1324_v55 = vsub.f32 0.0, %v1260_v36  ;;  %v862_v33 = vadd.f32 -1.4531521, %v830_v58  ;;  %v591_v41 = vmul.f32 0.5, %v6342_v3 }
 0x122   : > { %v1389_v52 = vadd.f32 1.0, %v1357_v4  ;;  %v1373_v1 = vsel %vm1309_vm2, %v1277_v2, %v1341_v28  ;;  %v1340_v38 = vsub.f32 0.0, %v1276_v35  ;;  %v1231_v17 = vmul.f32 %v5611_v63, %v1071_v57  ;;  %v6494_v28 = vpop.f32.mrb[8].mxu0  ;;  %v1764_v57 = vld [vmem:[#allocation2 + $0x1b] sm:$0xff] }
 0x123   : > { %v1405_v31 = vadd.f32 1.0, %v1373_v1  ;;  %v1356_v49 = vsel %vm1292_vm3, %v1260_v36, %v1324_v55  ;;  %v1247_v29 = vmul.f32 %v5613_v44, %v1087_v34  ;;  %v894_v20 = vmul.f32 %v6450_v56, %v862_v33  ;;  %11267 = vst [vmem:[#allocation8_spill] sm:$0xff] %v6494_v28  ;;  %v1663_v36 = vld [vmem:[#allocation2 + $0x1a] sm:$0xff] }
 0x124   : > { %v6466_v60 = vmul.f32 %v1389_v52, %v6394_v45  ;;  %v1388_v18 = vadd.f32 1.0, %v1356_v49  ;;  %v1006_v45 = vmul.f32 %v6434_v59, %v974_v54  ;;  %v1372_v50 = vsel %vm1308_vm4, %v1276_v35, %v1340_v38  ;;  %v1765_v38 = vld [vmem:[#allocation2 + $0x23] sm:$0xff] }
 0x125   : > { %v6472_v9 = vmul.f32 %v1405_v31, %v6402_v42  ;;  %v6479_v42 = vpop.eup %5614  ;;  %v1404_v63 = vadd.f32 1.0, %v1372_v50  ;;  %v1263_v43 = vsub.f32 1.0, %v1231_v17  ;;  %v1279_v21 = vsub.f32 1.0, %v1247_v29  ;;  %v6506_v31 = vld [vmem:[%s11068_s3 + $0x1] ss:$0 sm:$0xff] }
 0x126   : > { %1514 = vst [vmem:[#allocation2 + $0x3a] sm:$0xff] %v6466_v60  ;;  %v6481_v2 = vmul.f32 %v1388_v18, %v588_v48  ;;  %v1038_v25 = vadd.f32 0.2548296, %v1006_v45  ;;  %v817_v4 = vmul.f32 1.0614054, %v6479_v42  ;;  %v607_v52 = vmul.f32 0.5, %v6349_v6  ;;  %v5617_v49 = vpop.eup %5616 }
 0x127   : > { %1538 = vst [vmem:[#allocation2 + $0xfa] sm:$0xff] %v6472_v9  ;;  %v6484_v51 = vmul.f32 %v1404_v63, %v604_v46  ;;  %v1327_v24 = vsub.f32 0.0, %v1263_v43  ;;  %v1343_v61 = vsub.f32 0.0, %v1279_v21  ;;  %v1150_v54 = vmul.f32 %v1118_v27, %v6388_v37  ;;  %v6515_v6 = vld [vmem:[%s11068_s3 + $0x2] ss:$0 sm:$0xff] }
 0x128   : > { %1513 = vst [vmem:[#allocation2 + $0x32] sm:$0xff] %v6481_v2  ;;  %v1070_v26 = vmul.f32 %v6434_v59, %v1038_v25  ;;  %v1598_v15 = vmul.f32 %v6490_v47, %v1562_v22  ;;  %v1599_v55 = vmul.f32 %v6490_v47, %v1563_v62  ;;  %v926_v3 = vadd.f32 1.4214138, %v894_v20  ;;  %v3644_v20 = vld [vmem:[#allocation2 + $0x24] sm:$0xff] }
 0x129   : > { %1537 = vst [vmem:[#allocation2 + $0xf2] sm:$0xff] %v6484_v51  ;;  %v1359_v58 = vsel %vm1295_vm5, %v1263_v43, %v1327_v24  ;;  %v1375_v10 = vsel %vm1311_vm6, %v1279_v21, %v1343_v61  ;;  %v1699_v59 = vmul.f32 %v6506_v31, %v1663_v36  ;;  %v1700_v37 = vmul.f32 %v6506_v31, %v1664_v40  ;;  %v6530_v43 = vld [vmem:[%s11068_s3 + $0xc] ss:$0 sm:$0xff]  ;;  %v6535_v21 = vld [vmem:[%s11068_s3 + $0xd] ss:$0 sm:$0xff]  ;;  %v3643_v61 = vld [vmem:[#allocation2 + $0x1c] sm:$0xff] }
 0x12a   : > { %v1391_v44 = vadd.f32 1.0, %v1359_v58  ;;  %v1407_v1 = vadd.f32 1.0, %v1375_v10  ;;  %v849_v34 = vadd.f32 -1.4531521, %v817_v4  ;;  %v1230_v17 = vmul.f32 %v5617_v49, %v1070_v26  ;;  %11268 = vst [vmem:[#allocation9_spill] sm:$0xff] %v6530_v43  ;;  %11269 = vst [vmem:[#allocation10_spill] sm:$0xff] %v6535_v21 }
 0x12b   : > { %v1200_v18 = vmul.f32 1.442695, %v1150_v54  ;;  %v1105_v29 = vsub.f32 0.0, %v6430_v53  ;;  %v1800_v45 = vmul.f32 %v6515_v6, %v1764_v57  ;;  %v958_v46 = vmul.f32 %v6450_v56, %v926_v3  ;;  %v6547_v10 = vld [vmem:[%s11068_s3 + $0xe] ss:$0 sm:$0xff] }
 0x12c   : > { %v6510_v35 = vmul.f32 %v1391_v44, %v591_v41  ;;  %v6519_v48 = vmul.f32 %v1407_v1, %v607_v52  ;;  %v1731_v50 = vadd.f32 %v1699_v59, %v1598_v15  ;;  %v1732_v33 = vadd.f32 %v1700_v37, %v1599_v55  ;;  %11270 = vst [vmem:[#allocation11_spill] sm:$0xff] %v6547_v10  ;;  %v6552_v26 = vld [vmem:[%s11068_s3 + $0x4] ss:$0 sm:$0xff]  ;;  %v3541_v57 = vld [vmem:[#allocation2 + $0xa] sm:$0xff] }
 0x12d   : > { %v1801_v63 = vmul.f32 %v6515_v6, %v1765_v38  ;;  %v881_v24 = vmul.f32 %v6479_v42, %v849_v34  ;;  %v3578_v25 = vmul.f32 %v6535_v21, %v1663_v36  ;;  %v3579_v27 = vmul.f32 %v6535_v21, %v1664_v40  ;;  %v3540_v36 = vld [vmem:[#allocation2 + $0x2] sm:$0xff] }
 0x12e   : > { %1517 = vst [vmem:[#allocation2 + $0x52] sm:$0xff] %v6510_v35  ;;  %1541 = vst [vmem:[#allocation2 + $0x112] sm:$0xff] %v6519_v48  ;;  %v1262_v22 = vsub.f32 1.0, %v1230_v17  ;;  %5618 = vpow2.f32 %v1200_v18  ;;  %v1137_v62 = vmul.f32 %v1105_v29, %v6430_v53  ;;  %v6542_v58 = vmul.f32 0.0, %v6530_v43 }
 0x12f   : > { %v990_v4 = vadd.f32 -0.28449672, %v958_v46  ;;  %v1832_v41 = vadd.f32 %v1800_v45, %v1731_v50  ;;  %v1833_v44 = vadd.f32 %v1801_v63, %v1732_v33  ;;  %v913_v52 = vadd.f32 1.4214138, %v881_v24  ;;  %v1564_v40 = vld [vmem:[#allocation2 + $0x31] sm:$0xff]  ;;  %v1565_v1 = vld [vmem:[#allocation2 + $0x39] sm:$0xff] }
 0x130   : > { %v6555_v53 = vadd.f32 %v3578_v25, %v6542_v58  ;;  %v6558_v54 = vmul.f32 %v6547_v10, %v3643_v61  ;;  %v6561_v15 = vmul.f32 %v6547_v10, %v3644_v20  ;;  %v6565_v55 = vadd.f32 %v6346_v5, %v6311_v39  ;;  %v6579_v5 = vpop.f32.mrb[8].mxu1  ;;  %v6600_v25 = vld [vmem:[%s11068_s3 + $0x5] ss:$0 sm:$0xff]  ;;  %v6699_v43 = vld [vmem:[#allocation2 + $0xf9] sm:$0xff] }
 0x131   : > { %v6568_v3 = vadd.f32 %v3579_v27, %v6542_v58  ;;  %v590_v59 = vmul.f32 0.5, %v6359_v11  ;;  %v1326_v37 = vsub.f32 0.0, %v1262_v22  ;;  %v1174_v34 = vmul.f32 1.442695, %v1137_v62  ;;  %11271 = vst [vmem:[#allocation12_spill] sm:$0xff] %v6579_v5 }
 0x132   : > { %v6573_v49 = vmul.f32 %v6535_v21, %v3540_v36  ;;  %v6576_v38 = vmul.f32 0.5, %v6372_v19  ;;  %v1022_v17 = vmul.f32 %v6450_v56, %v990_v4  ;;  %v1902_v18 = vmul.f32 %v6552_v26, %v1564_v40  ;;  %v1767_v4 = vld [vmem:[#allocation2 + $0x3b] sm:$0xff] }
 0x133   : > { %v1903_v29 = vmul.f32 %v6552_v26, %v1565_v1  ;;  %v1358_v11 = vsel %vm1294_vm7, %v1262_v22, %v1326_v37  ;;  %v945_v45 = vmul.f32 %v6479_v42, %v913_v52  ;;  %v6585_v23 = vmul.f32 %v6535_v21, %v3541_v57 }
 0x134   : > { %v1390_v46 = vadd.f32 1.0, %v1358_v11  ;;  %v1054_v50 = vadd.f32 0.2548296, %v1022_v17  ;;  %v6588_v33 = vmul.f32 0.70710677, %v6565_v55  ;;  %v1702_v19 = vmul.f32 %v6506_v31, %v6466_v60 }
 0x135   : > { %v977_v63 = vadd.f32 -0.28449672, %v945_v45  ;;  %5620 = vpow2.f32 %v1174_v34  ;;  %v6595_v24 = vadd.f32 %v6311_v39, %v6351_v7  ;;  %v1600_v27 = vmul.f32 %v6490_v47, %v1564_v40  ;;  %v1766_v7 = vld [vmem:[#allocation2 + $0x33] sm:$0xff] }
 0x136   : > { %v6603_v61 = vmul.f32 %v1390_v46, %v590_v59  ;;  %v1086_v20 = vmul.f32 %v6450_v56, %v1054_v50  ;;  %v6607_v22 = vand.u32 2147483647, %v6588_v33  ;;  %v1601_v36 = vmul.f32 %v6490_v47, %v1565_v1 }
 0x137   : > { %v1934_v52 = vadd.f32 %v1902_v18, %v1832_v41  ;;  %v1935_v37 = vadd.f32 %v1903_v29, %v1833_v44  ;;  %v1009_v57 = vmul.f32 %v6479_v42, %v977_v63  ;;  %v1701_v34 = vmul.f32 %v6506_v31, %v6481_v2  ;;  %v6630_v29 = vld [vmem:[%s11068_s3 + $0x6] ss:$0 sm:$0xff]  ;;  %v6638_v63 = vld [vmem:[#allocation2 + $0xf1] sm:$0xff] }
 0x138   : > { %11272 = vst [vmem:[#allocation13_spill] sm:$0xff] %v6603_v61  ;;  %v5619_v62 = vpop.eup %5618  ;;  %1516 = vst [vmem:[#allocation2 + $0x4a] sm:$0xff] %v6603_v61  ;;  %v6615_v56 = vmul.f32 0.70710677, %v6595_v24  ;;  %v6619_v59 = vadd.f32 %v6311_v39, %v6353_v8  ;;  %v2004_v1 = vmul.f32 %v6600_v25, %v6466_v60  ;;  %v2003_v41 = vmul.f32 %v6600_v25, %v6481_v2  ;;  %v6636_v60 = vld [vmem:[%s11068_s3 + $0x9] ss:$0 sm:$0xff] }
 0x139   : > { %v1246_v40 = vmul.f32 %v5619_v62, %v1086_v20  ;;  %v1041_v44 = vadd.f32 0.2548296, %v1009_v57  ;;  %v705_v17 = vmul.f32 0.3275911, %v6607_v22  ;;  %v1803_v18 = vmul.f32 %v6515_v6, %v1767_v4  ;;  %v6640_v62 = vpop.f32.mrb[9].mxu0 }
 0x13a   : > { %11273 = vst [vmem:[#allocation14_spill] sm:$0xff] %v6615_v56  ;;  %11274 = vst [vmem:[#allocation15_spill] sm:$0xff] %v6619_v59  ;;  %v1733_v11 = vadd.f32 %v1701_v34, %v1600_v27  ;;  %v1802_v8 = vmul.f32 %v6515_v6, %v1766_v7  ;;  %v1734_v2 = vadd.f32 %v1702_v19, %v1601_v36  ;;  %v6644_v27 = vand.u32 2147483647, %v6615_v56 }
 0x13b   : > { %v1278_v45 = vsub.f32 1.0, %v1246_v40  ;;  %v2035_v46 = vadd.f32 %v2003_v41, %v1934_v52  ;;  %v2036_v50 = vadd.f32 %v2004_v1, %v1935_v37  ;;  %v737_v20 = vadd.f32 1.0, %v705_v17  ;;  %11275 = vst [vmem:[#allocation16_spill] sm:$0xff] %v6640_v62  ;;  %v6657_v1 = vld [vmem:[#allocation2 + $0x53] sm:$0xff] }
 0x13c   : > { %v1073_v5 = vmul.f32 %v6479_v42, %v1041_v44  ;;  %v6647_v34 = vmul.f32 0.70710677, %v6619_v59  ;;  %v2105_v40 = vmul.f32 %v6630_v29, %v1767_v4  ;;  %v2104_v19 = vmul.f32 %v6630_v29, %v1766_v7  ;;  %v6664_v4 = vld [vmem:[%s11068_s3 + $0xa] ss:$0 sm:$0xff] }
 0x13d   : > { %v1342_v57 = vsub.f32 0.0, %v1278_v45  ;;  %v2006_v36 = vmul.f32 %v6600_v25, %v6510_v35  ;;  %v2308_v52 = vmul.f32 %v6636_v60, %v6510_v35  ;;  %v1834_v37 = vadd.f32 %v1802_v8, %v1733_v11 }
 0x13e   : > { %11276 = vst [vmem:[#allocation17_spill] sm:$0xff] %v6647_v34  ;;  %v1616_v42 = vmul.f32 %v6490_v47, %v6638_v63  ;;  %5622 = vrcp.f32 %v737_v20  ;;  %v2136_v7 = vadd.f32 %v2104_v19, %v2035_v46  ;;  %v1835_v11 = vadd.f32 %v1803_v18, %v1734_v2 }
 0x13f   : > { %v1374_v41 = vsel %vm1310_vm8, %v1278_v45, %v1342_v57  ;;  %v5621_v44 = vpop.eup %5620  ;;  %v6666_v17 = vld [vmem:[#allocation2 + $0x49] sm:$0xff]  ;;  %v6668_v62 = vld [vmem:[#allocation2 + $0x51] sm:$0xff]  ;;  %v2137_v8 = vadd.f32 %v2105_v40, %v2036_v50  ;;  %v688_v57 = vmul.f32 0.3275911, %v6644_v27  ;;  %v6679_v46 = vand.u32 2147483647, %v6647_v34 }
 0x140   : > { %11277 = vst [vmem:[#allocation18_spill] sm:$0xff] %v6666_v17  ;;  %11278 = vst [vmem:[#allocation19_spill] sm:$0xff] %v6668_v62  ;;  %v1406_v28 = vadd.f32 1.0, %v1374_v41  ;;  %v1904_v45 = vmul.f32 %v6552_v26, %v6666_v17  ;;  %v1233_v20 = vmul.f32 %v5621_v44, %v1073_v5  ;;  %v2409_v19 = vmul.f32 %v6664_v4, %v6657_v1  ;;  %v6689_v40 = vld [vmem:[#allocation2 + $0x4b] sm:$0xff] }
 0x141   : > { %v1905_v18 = vmul.f32 %v6552_v26, %v6668_v62  ;;  %v2206_v2 = vmul.f32 %v6673_v30, %v6666_v17  ;;  %v2207_v50 = vmul.f32 %v6673_v30, %v6668_v62  ;;  %v2005_v41 = vmul.f32 %v6600_v25, %v6603_v61 }
 0x142   : > { %v1936_v5 = vadd.f32 %v1904_v45, %v1834_v37  ;;  %v2307_v44 = vmul.f32 %v6636_v60, %v6603_v61  ;;  %v6697_v21 = vadd.f32 %v6361_v12, %v6311_v39  ;;  %v6702_v30 = vmul.f32 %v1406_v28, %v6576_v38  ;;  %v6719_v38 = vld [vmem:[%s11069_s4] ss:$0 sm:$0xff] }
 0x143   : > { %v1937_v0 = vadd.f32 %v1905_v18, %v1835_v11  ;;  %v2238_v34 = vadd.f32 %v2206_v2, %v2136_v7  ;;  %v2239_v16 = vadd.f32 %v2207_v50, %v2137_v8  ;;  %v1265_v37 = vsub.f32 1.0, %v1233_v20  ;;  %11280 = vst [vmem:[#allocation21_spill] sm:$0xff] %v6719_v38  ;;  %v6732_v50 = vld [vmem:[#allocation2 + $0xfb] sm:$0xff] }
 0x144   : > { %v6704_v62 = vadd.f32 %v2005_v41, %v1936_v5  ;;  %v720_v45 = vadd.f32 1.0, %v688_v57  ;;  %v704_v56 = vmul.f32 0.3275911, %v6679_v46  ;;  %v2408_v12 = vmul.f32 %v6664_v4, %v6689_v40  ;;  %1540 = vst [vmem:[#allocation2 + $0x10a] sm:$0xff] %v6702_v30 }
 0x145   : > { %v6707_v17 = vadd.f32 %v2006_v36, %v1937_v0  ;;  %v2339_v61 = vadd.f32 %v2307_v44, %v2238_v34  ;;  %v2340_v59 = vadd.f32 %v2308_v52, %v2239_v16  ;;  %v1617_v7 = vmul.f32 %v6490_v47, %v6699_v43  ;;  %v6724_v36 = vld [vmem:[#allocation2 + $0xf3] sm:$0xff] }
 0x146   : > { %v1717_v28 = vmul.f32 %v6506_v31, %v6484_v51  ;;  %v593_v0 = vmul.f32 0.5, %v6412_v14  ;;  %v1329_v34 = vsub.f32 0.0, %v1265_v37  ;;  %v1718_v16 = vmul.f32 %v6506_v31, %v6472_v9  ;;  %11281 = vst [vmem:[#allocation22_spill] sm:$0xff] %v6724_v36 }
 0x147   : > { %v2440_v52 = vadd.f32 %v2408_v12, %v2339_v61  ;;  %v2441_v11 = vadd.f32 %v2409_v19, %v2340_v59  ;;  %v736_v18 = vadd.f32 1.0, %v704_v56  ;;  %v6730_v2 = vmul.f32 0.70710677, %v6697_v21  ;;  %v3642_v19 = vld [vmem:[#allocation2 + $0xc] sm:$0xff] }
 0x148   : > { %v6727_v8 = vpop.eup %5622  ;;  %v1749_v20 = vadd.f32 %v1717_v28, %v1616_v42  ;;  %v1361_v57 = vsel %vm1297_vm9, %v1265_v37, %v1329_v34  ;;  %5624 = vrcp.f32 %v720_v45  ;;  %v1750_v59 = vadd.f32 %v1718_v16, %v1617_v7  ;;  %v3641_v42 = vld [vmem:[#allocation2 + $0x4] sm:$0xff] }
 0x149   : > { %11282 = vst [vmem:[#allocation23_spill] sm:$0xff] %v6730_v2  ;;  %v6735_v14 = vadd.f32 %v6719_v38, %v2440_v52  ;;  %v6738_v5 = vadd.f32 %v6719_v38, %v2441_v11  ;;  %v1393_v61 = vadd.f32 1.0, %v1361_v57  ;;  %v1818_v32 = vmul.f32 %v6515_v6, %v6724_v36 }
 0x14a   : > { %v1121_v56 = vsub.f32 0.0, %v6607_v22  ;;  %5626 = vrcp.f32 %v736_v18  ;;  %v6745_v41 = vadd.f32 %v6558_v54, %v6555_v53  ;;  %v833_v45 = vmul.f32 1.0614054, %v6727_v8 }
 0x14b   : > { %v6748_v44 = vmul.f32 0.70710677, %v6735_v14  ;;  %v6751_v37 = vmul.f32 0.70710677, %v6738_v5  ;;  %v1819_v12 = vmul.f32 %v6515_v6, %v6732_v50  ;;  %v1850_v7 = vadd.f32 %v1818_v32, %v1749_v20  ;;  %v6756_v28 = vld [vmem:[#allocation2 + $0x109] sm:$0xff]  ;;  %v6773_v20 = vld [vmem:[#allocation2 + $0x111] sm:$0xff] }
 0x14c   : > { %11283 = vst [vmem:[#allocation24_spill] sm:$0xff] %v6745_v41  ;;  %v6758_v34 = vmul.f32 %v1393_v61, %v593_v0  ;;  %v6761_v16 = vand.u32 2147483647, %v6730_v2  ;;  %v3608_v52 = vadd.f32 %v6573_v49, %v6542_v58  ;;  %v3609_v11 = vadd.f32 %v6585_v23, %v6542_v58 }
 0x14d   : > { %v6764_v53 = vand.u32 2147483647, %v6748_v44  ;;  %v6767_v54 = vand.u32 2147483647, %v6751_v37  ;;  %v3677_v0 = vmul.f32 %v6547_v10, %v3641_v42  ;;  %v3678_v57 = vmul.f32 %v6547_v10, %v3642_v19 }
 0x14e   : > { %v1851_v18 = vadd.f32 %v1819_v12, %v1750_v59  ;;  %v1920_v61 = vmul.f32 %v6552_v26, %v6756_v28  ;;  %1520 = vst [vmem:[#allocation2 + $0x6a] sm:$0xff] %v6758_v34  ;;  %v865_v49 = vadd.f32 -1.4531521, %v833_v45  ;;  %v1153_v36 = vmul.f32 %v1121_v56, %v6607_v22 }
 0x14f   : > { %v2605_v32 = vmul.f32 0.3275911, %v6764_v53  ;;  %v2606_v41 = vmul.f32 0.3275911, %v6767_v54  ;;  %v1921_v58 = vmul.f32 %v6552_v26, %v6773_v20  ;;  %v2021_v42 = vmul.f32 %v6600_v25, %v6702_v30 }
 0x150   : > { %v1952_v23 = vadd.f32 %v1920_v61, %v1850_v7  ;;  %v691_v59 = vmul.f32 0.3275911, %v6761_v16  ;;  %v6790_v19 = vadd.f32 %v6561_v15, %v6568_v3  ;;  %v1104_v38 = vsub.f32 0.0, %v6644_v27 }
 0x151   : > { %v2637_v12 = vadd.f32 1.0, %v2605_v32  ;;  %v2638_v2 = vadd.f32 1.0, %v2606_v41  ;;  %v2022_v22 = vmul.f32 %v6600_v25, %v6519_v48  ;;  %v1953_v56 = vadd.f32 %v1921_v58, %v1851_v18 }
 0x152   : > { %11284 = vst [vmem:[#allocation25_spill] sm:$0xff] %v6790_v19  ;;  %v6795_v45 = vadd.f32 %v2021_v42, %v1952_v23  ;;  %v1120_v7 = vsub.f32 0.0, %v6679_v46  ;;  %v6798_v61 = vpop.eup %5624  ;;  %v6800_v10 = vadd.f32 %v3677_v0, %v3608_v52  ;;  %v897_v15 = vmul.f32 %v6727_v8, %v865_v49 }
 0x153   : > { %5628 = vrcp.f32 %v2637_v12  ;;  %v1206_v3 = vmul.f32 1.442695, %v1153_v36  ;;  %v6805_v41 = vadd.f32 %v3678_v57, %v3609_v11  ;;  %v6807_v19 = vadd.f32 %v2022_v22, %v1953_v56 }
 0x154   : > { %11285 = vst [vmem:[#allocation26_spill] sm:$0xff] %v6800_v10  ;;  %v6803_v32 = vpop.eup %5626  ;;  %5630 = vrcp.f32 %v2638_v2  ;;  %v723_v18 = vadd.f32 1.0, %v691_v59  ;;  %v6811_v58 = vmul.f32 %v6600_v25, %v6472_v9  ;;  %v6815_v23 = vmul.f32 %v6636_v60, %v6472_v9 }
 0x155   : > { %11286 = vst [vmem:[#allocation27_spill] sm:$0xff] %v6805_v41  ;;  %v6819_v52 = vmul.f32 %v6600_v25, %v6484_v51  ;;  %v1136_v36 = vmul.f32 %v1104_v38, %v6644_v27  ;;  %v6824_v2 = vmul.f32 %v6630_v29, %v6732_v50  ;;  %v6828_v11 = vmul.f32 %v6636_v60, %v6484_v51 }
 0x156   : > { %11287 = vst [vmem:[#allocation28_spill] sm:$0xff] %v6811_v58  ;;  %11288 = vst [vmem:[#allocation29_spill] sm:$0xff] %v6815_v23  ;;  %v1152_v0 = vmul.f32 %v1120_v7, %v6679_v46  ;;  %v6833_v9 = vadd.f32 %v6363_v13, %v6311_v39  ;;  %v929_v57 = vadd.f32 1.4214138, %v897_v15  ;;  %5632 = vpow2.f32 %v1206_v3 }
 0x157   : > { %11289 = vst [vmem:[#allocation30_spill] sm:$0xff] %v6819_v52  ;;  %11290 = vst [vmem:[#allocation31_spill] sm:$0xff] %v6824_v2  ;;  %v816_v49 = vmul.f32 1.0614054, %v6798_v61  ;;  %v832_v27 = vmul.f32 1.0614054, %v6803_v32  ;;  %v6839_v38 = vmul.f32 %v6664_v4, %v6732_v50  ;;  %v6843_v51 = vmul.f32 %v6506_v31, %v6510_v35 }
 0x158   : > { %11291 = vst [vmem:[#allocation32_spill] sm:$0xff] %v6828_v11  ;;  %v3021_v46 = vsub.f32 0.0, %v6764_v53  ;;  %5634 = vrcp.f32 %v723_v18  ;;  %v961_v39 = vmul.f32 %v6727_v8, %v929_v57  ;;  %v1172_v42 = vmul.f32 1.442695, %v1136_v36 }
 0x159   : > { %11292 = vst [vmem:[#allocation33_spill] sm:$0xff] %v6839_v38  ;;  %v848_v13 = vadd.f32 -1.4531521, %v816_v49  ;;  %v864_v59 = vadd.f32 -1.4531521, %v832_v27  ;;  %v6849_v12 = vmul.f32 %v6506_v31, %v6519_v48  ;;  %v3022_v22 = vsub.f32 0.0, %v6767_v54 }
 0x15a   : > { %v1204_v50 = vmul.f32 1.442695, %v1152_v0  ;;  %v6853_v56 = vmul.f32 0.70710677, %v6833_v9  ;;  %v6857_v35 = vmul.f32 %v6552_v26, %v6638_v63  ;;  %v993_v7 = vadd.f32 -0.28449672, %v961_v39 }
 0x15b   : > { %v880_v15 = vmul.f32 %v6798_v61, %v848_v13  ;;  %v896_v3 = vmul.f32 %v6803_v32, %v864_v59  ;;  %v6863_v18 = vmul.f32 %v6552_v26, %v6699_v43  ;;  %v6867_v48 = vmul.f32 %v6515_v6, %v6657_v1  ;;  %v6875_v49 = vld [vmem:[#allocation2 + $0x113] sm:$0xff] }
 0x15c   : > { %11293 = vst [vmem:[#allocation34_spill] sm:$0xff] %v6857_v35  ;;  %v3053_v36 = vmul.f32 %v3021_v46, %v6764_v53  ;;  %v6871_v0 = vand.u32 2147483647, %v6853_v56  ;;  %11295 = vst [vmem:[#allocation36_spill] sm:$0xff] %v6875_v49  ;;  %v1025_v27 = vmul.f32 %v6727_v8, %v993_v7  ;;  %5636 = vpow2.f32 %v1172_v42 }
 0x15d   : > { %11294 = vst [vmem:[#allocation35_spill] sm:$0xff] %v6863_v18  ;;  %v6873_v57 = vpop.eup %5628  ;;  %v912_v39 = vadd.f32 1.4214138, %v880_v15  ;;  %v928_v13 = vadd.f32 1.4214138, %v896_v3  ;;  %v6882_v38 = vmul.f32 %v6630_v29, %v6657_v1  ;;  %v3054_v46 = vmul.f32 %v3022_v22, %v6767_v54 }
 0x15e   : > { %v6878_v59 = vpop.eup %5630  ;;  %v2733_v53 = vmul.f32 1.0614054, %v6873_v57  ;;  %5638 = vpow2.f32 %v1204_v50  ;;  %v1057_v11 = vadd.f32 0.2548296, %v1025_v27  ;;  %v6891_v42 = vmul.f32 %v6515_v6, %v6875_v49 }
 0x15f   : > { %v2734_v23 = vmul.f32 1.0614054, %v6878_v59  ;;  %v944_v2 = vmul.f32 %v6798_v61, %v912_v39  ;;  %v960_v7 = vmul.f32 %v6803_v32, %v928_v13  ;;  %v3085_v3 = vmul.f32 1.442695, %v3053_v36 }
 0x160   : > { %v2765_v15 = vadd.f32 -1.4531521, %v2733_v53  ;;  %v707_v1 = vmul.f32 0.3275911, %v6871_v0  ;;  %v5633_v58 = vpop.eup %5632  ;;  %v1089_v54 = vmul.f32 %v6727_v8, %v1057_v11  ;;  %v6899_v27 = vmul.f32 %v6630_v29, %v6875_v49  ;;  %v6912_v49 = vpop.f32.mrb[9].mxu1 }
 0x161   : > { %v2766_v52 = vadd.f32 -1.4531521, %v2734_v23  ;;  %v976_v22 = vadd.f32 -0.28449672, %v944_v2  ;;  %v992_v50 = vadd.f32 -0.28449672, %v960_v7  ;;  %5640 = vpow2.f32 %v3085_v3 }
 0x162   : > { %v6895_v18 = vpop.eup %5634  ;;  %v2797_v39 = vmul.f32 %v6873_v57, %v2765_v15  ;;  %v3087_v13 = vmul.f32 1.442695, %v3054_v46  ;;  %v609_v53 = vmul.f32 0.5, %v6565_v55  ;;  %v1249_v35 = vmul.f32 %v5633_v58, %v1089_v54  ;;  %11296 = vst [vmem:[#allocation37_spill] sm:$0xff] %v6912_v49  ;;  %v11297_v3 = vld [vmem:[#allocation15_spill] sm:$0xff] }
 0x163   : > { %v2798_v36 = vmul.f32 %v6878_v59, %v2766_v52  ;;  %v1008_v23 = vmul.f32 %v6798_v61, %v976_v22  ;;  %v1024_v8 = vmul.f32 %v6803_v32, %v992_v50  ;;  %vm1313_vm10 = vcmp.ge.f32.partialorder %v6588_v33, 0.0 }
 0x164   : > { %v2829_v2 = vadd.f32 1.4214138, %v2797_v39  ;;  %v819_v11 = vmul.f32 1.0614054, %v6895_v18  ;;  %v739_v7 = vadd.f32 1.0, %v707_v1  ;;  %v1281_v10 = vsub.f32 1.0, %v1249_v35 }
 0x165   : > { %v2830_v41 = vadd.f32 1.4214138, %v2798_v36  ;;  %v1040_v15 = vadd.f32 0.2548296, %v1008_v23  ;;  %5642 = vpow2.f32 %v3087_v13  ;;  %v1056_v55 = vadd.f32 0.2548296, %v1024_v8 }
 0x166   : > { %v2861_v46 = vmul.f32 %v6873_v57, %v2829_v2  ;;  %v851_v52 = vadd.f32 -1.4531521, %v819_v11  ;;  %v5637_v58 = vpop.eup %5636  ;;  %v1345_v22 = vsub.f32 0.0, %v1281_v10  ;;  %v592_v50 = vmul.f32 0.5, %v6595_v24  ;;  %v11298_v11 = vld [vmem:[#allocation13_spill] sm:$0xff] }
 0x167   : > { %v2862_v54 = vmul.f32 %v6878_v59, %v2830_v41  ;;  %v1072_v39 = vmul.f32 %v6798_v61, %v1040_v15  ;;  %v608_v35 = vmul.f32 0.5, %v11297_v3  ;;  %v1088_v23 = vmul.f32 %v6803_v32, %v1056_v55  ;;  %v11300_v55 = vld [vmem:[#allocation14_spill] sm:$0xff] }
 0x168   : > { %v5639_v1 = vpop.eup %5638  ;;  %v2893_v36 = vadd.f32 -0.28449672, %v2861_v46  ;;  %5644 = vrcp.f32 %v739_v7  ;;  %v1377_v8 = vsel %vm1313_vm10, %v1281_v10, %v1345_v22  ;;  %v883_v41 = vmul.f32 %v6895_v18, %v851_v52  ;;  %v11299_v46 = vld [vmem:[#allocation18_spill] sm:$0xff] }
 0x169   : > { %v2894_v13 = vadd.f32 -0.28449672, %v2862_v54  ;;  %v1232_v2 = vmul.f32 %v5637_v58, %v1072_v39  ;;  %v1703_v24 = vmul.f32 %v6506_v31, %v11298_v11  ;;  %v1409_v15 = vadd.f32 1.0, %v1377_v8  ;;  %v6931_v52 = vld [vmem:[%s11067_s2] ss:$0 sm:$0xff]  ;;  %v11303_v8 = vld [vmem:[#allocation17_spill] sm:$0xff] }
 0x16a   : > { %v2925_v61 = vmul.f32 %v6873_v57, %v2893_v36  ;;  %v1248_v49 = vmul.f32 %v5639_v1, %v1088_v23  ;;  %v1602_v3 = vmul.f32 %v6490_v47, %v11299_v46  ;;  %vm1296_vm11 = vcmp.ge.f32.partialorder %v11300_v55, 0.0  ;;  %v11301_v54 = vld [vmem:[#allocation6_spill] sm:$0xff] }
 0x16b   : > { %v2926_v32 = vmul.f32 %v6878_v59, %v2894_v13  ;;  %v1264_v7 = vsub.f32 1.0, %v1232_v2  ;;  %v6926_v10 = vmul.f32 %v1409_v15, %v609_v53  ;;  %v6935_v22 = vadd.f32 %v6931_v52, %v11301_v54  ;;  %v11302_v13 = vld [vmem:[#allocation19_spill] sm:$0xff]  ;;  %v5641_v11 = vpop.eup %5640 }
 0x16c   : > { %v2957_v33 = vadd.f32 0.2548296, %v2925_v61  ;;  %v1280_v58 = vsub.f32 1.0, %v1248_v49  ;;  %v6938_v36 = vmul.f32 0.5, %v6697_v21  ;;  %v915_v23 = vadd.f32 1.4214138, %v883_v41 }
 0x16d   : > { %v2958_v39 = vadd.f32 0.2548296, %v2926_v32  ;;  %v1328_v1 = vsub.f32 0.0, %v1264_v7  ;;  %v1603_v53 = vmul.f32 %v6490_v47, %v11302_v13  ;;  %1544 = vst [vmem:[#allocation2 + $0x12a] sm:$0xff] %v6926_v10  ;;  %vm1312_vm12 = vcmp.ge.f32.partialorder %v11303_v8, 0.0 }
 0x16e   : > { %v2989_v49 = vmul.f32 %v6873_v57, %v2957_v33  ;;  %v1107_v2 = vsub.f32 0.0, %v6761_v16  ;;  %v1735_v61 = vadd.f32 %v1703_v24, %v1602_v3  ;;  %v1344_v41 = vsub.f32 0.0, %v1280_v58 }
 0x16f   : > { %v2990_v15 = vmul.f32 %v6878_v59, %v2958_v39  ;;  %v1360_v21 = vsel %vm1296_vm11, %v1264_v7, %v1328_v1  ;;  %v5643_v46 = vpop.eup %5642  ;;  %v1804_v32 = vmul.f32 %v6515_v6, %v6689_v40  ;;  %v6952_v54 = vmul.f32 0.70710677, %v6935_v22 }
 0x170   : > { %v3149_v57 = vmul.f32 %v5641_v11, %v2989_v49  ;;  %v1392_v33 = vadd.f32 1.0, %v1360_v21  ;;  %v2106_v13 = vmul.f32 %v6630_v29, %v6689_v40  ;;  %v1376_v24 = vsel %vm1312_vm12, %v1280_v58, %v1344_v41 }
 0x171   : > { %v3150_v8 = vmul.f32 %v5643_v46, %v2990_v15  ;;  %v947_v59 = vmul.f32 %v6895_v18, %v915_v23  ;;  %v1408_v39 = vadd.f32 1.0, %v1376_v24  ;;  %v1139_v1 = vmul.f32 %v1107_v2, %v6761_v16 }
 0x172   : > { %v6957_v3 = vpop.eup %5644  ;;  %v3181_v7 = vsub.f32 1.0, %v3149_v57  ;;  %v6960_v55 = vmul.f32 %v1392_v33, %v592_v50  ;;  %v1736_v49 = vadd.f32 %v6843_v51, %v1603_v53  ;;  %v1836_v11 = vadd.f32 %v1804_v32, %v1735_v61 }
 0x173   : > { %v3182_v21 = vsub.f32 1.0, %v3150_v8  ;;  %v1618_v40 = vmul.f32 %v6490_v47, %v6756_v28  ;;  %vm3213_vm13 = vcmp.ge.f32.partialorder %v6748_v44, 0.0  ;;  %v1719_v23 = vmul.f32 %v6506_v31, %v6702_v30  ;;  %v6981_v31 = vld [vmem:[#allocation2 + $0x10b] sm:$0xff] }
 0x174   : > { %v3245_v58 = vsub.f32 0.0, %v3181_v7  ;;  %1519 = vst [vmem:[#allocation2 + $0x62] sm:$0xff] %v6960_v55  ;;  %v6971_v50 = vand.u32 2147483647, %v6952_v54  ;;  %v6975_v51 = vmul.f32 %v1408_v39, %v608_v35  ;;  %v979_v53 = vadd.f32 -0.28449672, %v947_v59 }
 0x175   : > { %v3246_v16 = vsub.f32 0.0, %v3182_v21  ;;  %v835_v2 = vmul.f32 1.0614054, %v6957_v3  ;;  %vm3214_vm14 = vcmp.ge.f32.partialorder %v6751_v37, 0.0  ;;  %v1619_v61 = vmul.f32 %v6490_v47, %v6773_v20  ;;  %11304 = vst [vmem:[#allocation15_spill] sm:$0xff] %v6981_v31 }
 0x176   : > { %v3277_v44 = vsel %vm3213_vm13, %v3181_v7, %v3245_v58  ;;  %v1178_v15 = vmul.f32 1.442695, %v1139_v1  ;;  %v2509_v41 = vmul.f32 0.5, %v6735_v14  ;;  %v1751_v57 = vadd.f32 %v1719_v23, %v1618_v40  ;;  %1543 = vst [vmem:[#allocation2 + $0x122] sm:$0xff] %v6975_v51 }
 0x177   : > { %v3278_v46 = vsel %vm3214_vm14, %v3182_v21, %v3246_v16  ;;  %v3309_v32 = vadd.f32 1.0, %v3277_v44  ;;  %v2138_v35 = vadd.f32 %v2106_v13, %v6704_v62  ;;  %v2510_v33 = vmul.f32 0.5, %v6738_v5  ;;  %v7005_v5 = vld [vmem:[#allocation2 + $0x6b] sm:$0xff] }
 0x178   : > { %v3310_v8 = vadd.f32 1.0, %v3278_v46  ;;  %v690_v37 = vmul.f32 0.3275911, %v6971_v50  ;;  %v1820_v47 = vmul.f32 %v6515_v6, %v6981_v31  ;;  %v1011_v59 = vmul.f32 %v6895_v18, %v979_v53 }
 0x179   : > { %v6988_v24 = vmul.f32 %v3309_v32, %v2509_v41  ;;  %v867_v14 = vadd.f32 -1.4531521, %v835_v2  ;;  %v1752_v39 = vadd.f32 %v6849_v12, %v1619_v61  ;;  %v2122_v62 = vmul.f32 %v6630_v29, %v6981_v31  ;;  %v11307_v2 = vld [vmem:[#allocation20_spill] sm:$0xff] }
 0x17a   : > { %v6993_v7 = vmul.f32 %v3310_v8, %v2510_v33  ;;  %5646 = vpow2.f32 %v1178_v15  ;;  %v7003_v6 = vadd.f32 %v1820_v47, %v1751_v57  ;;  %v1837_v12 = vadd.f32 %v6867_v48, %v1736_v49  ;;  %v7040_v33 = vpop.f32.mrb[10].mxu0 }
 0x17b   : > { %11305 = vst [vmem:[#allocation13_spill] sm:$0xff] %v6988_v24  ;;  %3373 = vst [vmem:[%s6998_s23] sm:$0xff] %v6988_v24  ;;  %v7007_v13 = vld [vmem:[#allocation2 + $0x61] sm:$0xff]  ;;  %v7009_v1 = vld [vmem:[#allocation2 + $0x69] sm:$0xff]  ;;  %v2139_v21 = vadd.f32 %v6882_v38, %v6707_v17  ;;  %v1123_v40 = vsub.f32 0.0, %v6871_v0  ;;  %v7019_v58 = vadd.f32 %v2122_v62, %v6795_v45  ;;  %v2008_v23 = vmul.f32 %v6600_v25, %v6758_v34 }
 0x17c   : > { %11306 = vst [vmem:[#allocation18_spill] sm:$0xff] %v6993_v7  ;;  %3405 = vst [vmem:[#allocation2 + $0x32] sm:$0xff] %v6988_v24  ;;  %v2310_v16 = vmul.f32 %v6636_v60, %v6758_v34  ;;  %v722_v53 = vadd.f32 1.0, %v690_v37  ;;  %v1906_v48 = vmul.f32 %v6552_v26, %v7007_v13  ;;  %v1907_v17 = vmul.f32 %v6552_v26, %v7009_v1 }
 0x17d   : > { %3374 = vst [vmem:[%s6998_s23 + $0x10] sm:$0xff] %v6993_v7  ;;  %3406 = vst [vmem:[#allocation2 + $0x3a] sm:$0xff] %v6993_v7  ;;  %v1043_v38 = vadd.f32 0.2548296, %v1011_v59  ;;  %v899_v49 = vmul.f32 %v6957_v3, %v867_v14  ;;  %v2411_v45 = vmul.f32 %v6664_v4, %v7005_v5  ;;  %v2208_v44 = vmul.f32 %v11307_v2, %v7007_v13  ;;  %v7044_v59 = vld [vmem:[#allocation2 + $0x121] sm:$0xff] }
 0x17e   : > { %v2209_v61 = vmul.f32 %v11307_v2, %v7009_v1  ;;  %v1853_v15 = vadd.f32 %v6891_v42, %v1752_v39  ;;  %v1938_v41 = vadd.f32 %v1906_v48, %v1836_v11  ;;  %v1939_v46 = vadd.f32 %v1907_v17, %v1837_v12  ;;  %11308 = vst [vmem:[#allocation14_spill] sm:$0xff] %v7040_v33  ;;  %v7046_v14 = vld [vmem:[#allocation2 + $0x63] sm:$0xff]  ;;  %v11312_v17 = vld [vmem:[#allocation9_spill] sm:$0xff] }
 0x17f   : > { %v2007_v32 = vmul.f32 %v6600_v25, %v6960_v55  ;;  %v1155_v57 = vmul.f32 %v1123_v40, %v6871_v0  ;;  %v2240_v8 = vadd.f32 %v2208_v44, %v2138_v35  ;;  %v2309_v47 = vmul.f32 %v6636_v60, %v6960_v55  ;;  %v11310_v40 = vld [vmem:[#allocation7_spill] sm:$0xff]  ;;  %v11313_v44 = vld [vmem:[#allocation10_spill] sm:$0xff] }
 0x180   : > { %v2241_v37 = vadd.f32 %v2209_v61, %v2139_v21  ;;  %5648 = vrcp.f32 %v722_v53  ;;  %v7050_v11 = vadd.f32 %v2008_v23, %v1939_v46  ;;  %v1075_v39 = vmul.f32 %v6895_v18, %v1043_v38 }
 0x181   : > { %v7048_v42 = vadd.f32 %v2007_v32, %v1938_v41  ;;  %v931_v62 = vadd.f32 1.4214138, %v899_v49  ;;  %v2341_v12 = vadd.f32 %v2309_v47, %v2240_v8  ;;  %v2155_v21 = vadd.f32 %v6899_v27, %v6807_v19  ;;  %v7079_v32 = vld [vmem:[#allocation2 + $0x129] sm:$0xff] }
 0x182   : > { %v2342_v35 = vadd.f32 %v2310_v16, %v2241_v37  ;;  %v7059_v48 = vadd.f32 %v6931_v52, %v11310_v40  ;;  %v3580_v18 = vmul.f32 %v11313_v44, %v6988_v24  ;;  %v1922_v16 = vmul.f32 %v6552_v26, %v7044_v59  ;;  %v11316_v47 = vld [vmem:[#allocation11_spill] sm:$0xff] }
 0x183   : > { %v7053_v0 = vld [vmem:[#allocation2 + $0x30] sm:$0xff]  ;;  %v1210_v19 = vmul.f32 1.442695, %v1155_v57  ;;  %v3581_v41 = vmul.f32 %v11313_v44, %v6993_v7  ;;  %v2410_v46 = vmul.f32 %v6664_v4, %v7046_v14  ;;  %v1106_v8 = vsub.f32 0.0, %v6971_v50 }
 0x184   : > { %11309 = vst [vmem:[#allocation6_spill] sm:$0xff] %v7053_v0  ;;  %v7061_v53 = vld [vmem:[#allocation2 + $0x38] sm:$0xff]  ;;  %v3479_v23 = vmul.f32 %v11312_v17, %v7053_v0  ;;  %v5647_v27 = vpop.eup %5646  ;;  %v963_v57 = vmul.f32 %v6957_v3, %v931_v62  ;;  %v2443_v44 = vadd.f32 %v2411_v45, %v2342_v35  ;;  %v1954_v0 = vadd.f32 %v1922_v16, %v7003_v6 }
 0x185   : > { %11311 = vst [vmem:[#allocation19_spill] sm:$0xff] %v7061_v53  ;;  %v7067_v38 = vld [vmem:[#allocation2 + $0x34] sm:$0xff]  ;;  %v7069_v49 = vld [vmem:[#allocation2 + $0x3c] sm:$0xff]  ;;  %v3480_v61 = vmul.f32 %v11312_v17, %v7061_v53  ;;  %v1235_v33 = vmul.f32 %v5647_v27, %v1075_v39  ;;  %v2442_v24 = vadd.f32 %v2410_v46, %v2341_v12  ;;  %v1923_v53 = vmul.f32 %v6552_v26, %v7079_v32 }
 0x186   : > { %11314 = vst [vmem:[#allocation17_spill] sm:$0xff] %v7067_v38  ;;  %11315 = vst [vmem:[#allocation20_spill] sm:$0xff] %v7069_v49  ;;  %v3612_v37 = vadd.f32 %v3580_v18, %v3479_v23  ;;  %v3681_v40 = vmul.f32 %v11316_v47, %v7067_v38  ;;  %v3682_v17 = vmul.f32 %v11316_v47, %v7069_v49  ;;  %v11319_v39 = vld [vmem:[#allocation21_spill] sm:$0xff]  ;;  %v7103_v45 = vmul.f32 0.70710677, %v7059_v48  ;;  %v7135_v47 = vld [vmem:[#allocation2 + $0x12b] sm:$0xff] }
 0x187   : > { %v3613_v31 = vadd.f32 %v3581_v41, %v3480_v61  ;;  %v2023_v23 = vmul.f32 %v6600_v25, %v6975_v51  ;;  %v7097_v62 = vadd.f32 %v11319_v39, %v2442_v24  ;;  %v7100_v27 = vadd.f32 %v11319_v39, %v2443_v44  ;;  %v11321_v24 = vld [vmem:[#allocation23_spill] sm:$0xff] }
 0x188   : > { %v7087_v7 = vadd.f32 %v3681_v40, %v3612_v37  ;;  %v2024_v12 = vmul.f32 %v6600_v25, %v6926_v10  ;;  %v1955_v26 = vadd.f32 %v1923_v53, %v1853_v15  ;;  %v1267_v6 = vsub.f32 1.0, %v1235_v33  ;;  %v7128_v53 = vld [vmem:[#allocation2 + $0x123] sm:$0xff]  ;;  %11324 = vst [vmem:[#allocation23_spill] sm:$0xff] %v7135_v47 }
 0x189   : > { %v7094_v18 = vadd.f32 %v3682_v17, %v3613_v31  ;;  %v7107_v35 = vadd.f32 %v2023_v23, %v1954_v0  ;;  %v7112_v31 = vmul.f32 0.70710677, %v7097_v62  ;;  %vm1299_vm15 = vcmp.ge.f32.partialorder %v11321_v24, 0.0  ;;  %11323 = vst [vmem:[#allocation21_spill] sm:$0xff] %v7128_v53 }
 0x18a   : > { %11317 = vst [vmem:[#allocation7_spill] sm:$0xff] %v7087_v7  ;;  %v7109_v16 = vpop.eup %5648  ;;  %v995_v61 = vadd.f32 -0.28449672, %v963_v57  ;;  %5650 = vpow2.f32 %v1210_v19  ;;  %v7116_v41 = vmul.f32 0.70710677, %v7100_v27  ;;  %v7118_v46 = vadd.f32 %v2024_v12, %v1955_v26 }
 0x18b   : > { %11318 = vst [vmem:[#allocation9_spill] sm:$0xff] %v7094_v18  ;;  %11320 = vst [vmem:[#allocation10_spill] sm:$0xff] %v7107_v35  ;;  %v2224_v25 = vmul.f32 %v11307_v2, %v7044_v59  ;;  %v1138_v15 = vmul.f32 %v1106_v8, %v6971_v50  ;;  %v2326_v33 = vmul.f32 %v6636_v60, %v6926_v10  ;;  %v7126_v0 = vand.u32 2147483647, %v7112_v31 }
 0x18c   : > { %11322 = vst [vmem:[#allocation11_spill] sm:$0xff] %v7118_v46  ;;  %v2225_v19 = vmul.f32 %v11307_v2, %v7079_v32  ;;  %v7133_v37 = vand.u32 2147483647, %v7103_v45  ;;  %v7138_v40 = vand.u32 2147483647, %v7116_v41  ;;  %v2325_v8 = vmul.f32 %v6636_v60, %v6975_v51 }
 0x18d   : > { %v2256_v50 = vadd.f32 %v2224_v25, %v7019_v58  ;;  %v1331_v57 = vsub.f32 0.0, %v1267_v6  ;;  %v2607_v17 = vmul.f32 0.3275911, %v7126_v0  ;;  %v1027_v23 = vmul.f32 %v6957_v3, %v995_v61  ;;  %v7151_v25 = vpop.f32.mrb[10].mxu1 }
 0x18e   : > { %v2257_v44 = vadd.f32 %v2225_v19, %v2155_v21  ;;  %v818_v12 = vmul.f32 1.0614054, %v7109_v16  ;;  %v2608_v26 = vmul.f32 0.3275911, %v7138_v40  ;;  %v2426_v7 = vmul.f32 %v6664_v4, %v7128_v53  ;;  %11325 = vst [vmem:[#allocation38_spill] sm:$0xff] %v7151_v25 }
 0x18f   : > { %v2357_v18 = vadd.f32 %v2325_v8, %v2256_v50  ;;  %v1363_v58 = vsel %vm1299_vm15, %v1267_v6, %v1331_v57  ;;  %v2427_v60 = vmul.f32 %v6664_v4, %v7135_v47  ;;  %v2639_v49 = vadd.f32 1.0, %v2607_v17  ;;  %v11326_v6 = vld [vmem:[#allocation22_spill] sm:$0xff] }
 0x190   : > { %v2358_v21 = vadd.f32 %v2326_v33, %v2257_v44  ;;  %v1395_v19 = vadd.f32 1.0, %v1363_v58  ;;  %v2640_v61 = vadd.f32 1.0, %v2608_v26  ;;  %v1059_v46 = vadd.f32 0.2548296, %v1027_v23 }
 0x191   : > { %v2458_v38 = vadd.f32 %v2426_v7, %v2357_v18  ;;  %v706_v35 = vmul.f32 0.3275911, %v7133_v37  ;;  %5652 = vrcp.f32 %v2639_v49  ;;  %v850_v24 = vadd.f32 -1.4531521, %v818_v12 }
 0x192   : > { %v2459_v50 = vadd.f32 %v2427_v60, %v2358_v21  ;;  %v7157_v8 = vmul.f32 %v1395_v19, %v6938_v36  ;;  %v7161_v57 = vmul.f32 %v6630_v29, %v11326_v6  ;;  %5654 = vrcp.f32 %v2640_v61 }
 0x193   : > { %v7164_v17 = vadd.f32 %v11319_v39, %v2458_v38  ;;  %v1091_v33 = vmul.f32 %v6957_v3, %v1059_v46  ;;  %v7169_v18 = vmul.f32 %v11307_v2, %v6638_v63  ;;  %v7173_v36 = vmul.f32 %v11307_v2, %v6699_v43  ;;  %v7186_v3 = vld [vmem:[%s11068_s3 + $0x1] ss:$0 sm:$0xff]  ;;  %v7193_v43 = vld [vmem:[%s11068_s3 + $0x2] ss:$0 sm:$0xff] }
 0x194   : > { %11327 = vst [vmem:[#allocation22_spill] sm:$0xff] %v7161_v57  ;;  %v5651_v7 = vpop.eup %5650  ;;  %v7177_v49 = vmul.f32 %v6664_v4, %v11326_v6  ;;  %v7180_v44 = vadd.f32 %v11319_v39, %v2459_v50  ;;  %1523 = vst [vmem:[#allocation2 + $0x82] sm:$0xff] %v7157_v8  ;;  %v1706_v63 = vmul.f32 %v7186_v3, %v6758_v34  ;;  %v738_v38 = vadd.f32 1.0, %v706_v35  ;;  %v11331_v57 = vld [vmem:[#allocation8_spill] sm:$0xff] }
 0x195   : > { %11328 = vst [vmem:[#allocation39_spill] sm:$0xff] %v7169_v18  ;;  %11329 = vst [vmem:[#allocation40_spill] sm:$0xff] %v7173_v36  ;;  %v7197_v4 = vmul.f32 %v7193_v43, %v7005_v5  ;;  %v7200_v2 = vmul.f32 0.70710677, %v7164_v17  ;;  %v1251_v46 = vmul.f32 %v5651_v7, %v1091_v33  ;;  %v882_v23 = vmul.f32 %v7109_v16, %v850_v24 }
 0x196   : > { %11330 = vst [vmem:[#allocation41_spill] sm:$0xff] %v7177_v49  ;;  %v7203_v39 = vmul.f32 0.70710677, %v7180_v44  ;;  %v1176_v34 = vmul.f32 1.442695, %v1138_v15  ;;  %v7208_v12 = vmul.f32 %v6630_v29, %v7005_v5  ;;  %v611_v58 = vmul.f32 0.5, %v6833_v9 }
 0x197   : > { %v2591_v26 = vand.u32 2147483647, %v7200_v2  ;;  %vm1315_vm0 = vcmp.ge.f32.partialorder %v6853_v56, 0.0  ;;  %v3023_v60 = vsub.f32 0.0, %v7126_v0  ;;  %v1283_v21 = vsub.f32 1.0, %v1251_v46 }
 0x198   : > { %v7215_v35 = vand.u32 2147483647, %v7203_v39  ;;  %v914_v19 = vadd.f32 1.4214138, %v882_v23  ;;  %v3024_v61 = vsub.f32 0.0, %v7138_v40  ;;  %v7219_v50 = vmul.f32 0.5, %v6935_v22 }
 0x199   : > { %v2623_v15 = vmul.f32 0.3275911, %v2591_v26  ;;  %5656 = vrcp.f32 %v738_v38  ;;  %v7224_v9 = vld [vmem:[%s11068_s3] ss:$0 sm:$0xff]  ;;  %v1347_v6 = vsub.f32 0.0, %v1283_v21  ;;  %v1705_v33 = vmul.f32 %v7186_v3, %v6960_v55 }
 0x19a   : > { %v1604_v5 = vmul.f32 %v7224_v9, %v7007_v13  ;;  %v2624_v24 = vmul.f32 0.3275911, %v7215_v35  ;;  %5658 = vpow2.f32 %v1176_v34  ;;  %v946_v22 = vmul.f32 %v7109_v16, %v914_v19 }
 0x19b   : > { %v2655_v7 = vadd.f32 1.0, %v2623_v15  ;;  %v7233_v38 = vmul.f32 0.5, %v7059_v48  ;;  %v7235_v46 = vpop.eup %5652  ;;  %v3055_v23 = vmul.f32 %v3023_v60, %v7126_v0  ;;  %v1122_v13 = vsub.f32 0.0, %v7133_v37 }
 0x19c   : > { %v2656_v49 = vadd.f32 1.0, %v2624_v24  ;;  %v7241_v36 = vadd.f32 %v6931_v52, %v11331_v57  ;;  %v7243_v34 = vpop.eup %5654  ;;  %v1605_v55 = vmul.f32 %v7224_v9, %v7009_v1  ;;  %v2735_v19 = vmul.f32 1.0614054, %v7235_v46 }
 0x19d   : > { %v3056_v48 = vmul.f32 %v3024_v61, %v7138_v40  ;;  %5660 = vrcp.f32 %v2655_v7  ;;  %v1737_v15 = vadd.f32 %v1705_v33, %v1604_v5  ;;  %v2736_v0 = vmul.f32 1.0614054, %v7243_v34 }
 0x19e   : > { %5662 = vrcp.f32 %v2656_v49  ;;  %v1379_v60 = vsel %vm1315_vm0, %v1283_v21, %v1347_v6  ;;  %v2767_v24 = vadd.f32 -1.4531521, %v2735_v19  ;;  %v3039_v57 = vsub.f32 0.0, %v2591_v26 }
 0x19f   : > { %v1411_v18 = vadd.f32 1.0, %v1379_v60  ;;  %v978_v25 = vadd.f32 -0.28449672, %v946_v22  ;;  %v1806_v53 = vmul.f32 %v7193_v43, %v7046_v14  ;;  %v2108_v1 = vmul.f32 %v6630_v29, %v7046_v14 }
 0x1a0   : > { %v2768_v47 = vadd.f32 -1.4531521, %v2736_v0  ;;  %v3089_v40 = vmul.f32 1.442695, %v3055_v23  ;;  %v2799_v61 = vmul.f32 %v7235_v46, %v2767_v24  ;;  %v3091_v5 = vmul.f32 1.442695, %v3056_v48 }
 0x1a1   : > { %v7257_v33 = vmul.f32 %v1411_v18, %v611_v58  ;;  %v1010_v56 = vmul.f32 %v7109_v16, %v978_v25  ;;  %v7260_v49 = vadd.f32 %v1706_v63, %v1605_v55  ;;  %v3040_v6 = vsub.f32 0.0, %v7215_v35 }
 0x1a2   : > { %v2800_v21 = vmul.f32 %v7243_v34, %v2768_v47  ;;  %v7265_v7 = vmul.f32 0.70710677, %v7241_v36  ;;  %v7269_v29 = vadd.f32 %v1806_v53, %v1737_v15  ;;  %v7272_v14 = vadd.f32 %v2108_v1, %v7048_v42  ;;  %v11332_v1 = vld [vmem:[#allocation12_spill] sm:$0xff] }
 0x1a3   : > { %v7267_v22 = vpop.eup %5656  ;;  %v2831_v18 = vadd.f32 1.4214138, %v2799_v61  ;;  %v3071_v58 = vmul.f32 %v3039_v57, %v2591_v26  ;;  %1547 = vst [vmem:[#allocation2 + $0x142] sm:$0xff] %v7257_v33  ;;  %5664 = vpow2.f32 %v3089_v40  ;;  %v1042_v47 = vadd.f32 0.2548296, %v1010_v56 }
 0x1a4   : > { %v5659_v25 = vpop.eup %5658  ;;  %v2832_v63 = vadd.f32 1.4214138, %v2800_v21  ;;  %v834_v23 = vmul.f32 1.0614054, %v7267_v22  ;;  %5666 = vpow2.f32 %v3091_v5  ;;  %vm1298_vm1 = vcmp.ge.f32.partialorder %v6952_v54, 0.0 }
 0x1a5   : > { %v2863_v55 = vmul.f32 %v7235_v46, %v2831_v18  ;;  %v1154_v53 = vmul.f32 %v1122_v13, %v7133_v37  ;;  %v7280_v42 = vand.u32 2147483647, %v7265_v7  ;;  %v3072_v19 = vmul.f32 %v3040_v6, %v7215_v35 }
 0x1a6   : > { %v2864_v26 = vmul.f32 %v7243_v34, %v2832_v63  ;;  %v1074_v48 = vmul.f32 %v7109_v16, %v1042_v47  ;;  %v866_v15 = vadd.f32 -1.4531521, %v834_v23  ;;  %v3121_v24 = vmul.f32 1.442695, %v3071_v58  ;;  %v7296_v16 = vpop.f32.mrb[11].mxu0 }
 0x1a7   : > { %v7285_v0 = vpop.eup %5660  ;;  %v2895_v60 = vadd.f32 -0.28449672, %v2863_v55  ;;  %v693_v57 = vmul.f32 0.3275911, %v7280_v42  ;;  %v7290_v40 = vadd.f32 %v6931_v52, %v11332_v1  ;;  %11333 = vst [vmem:[#allocation8_spill] sm:$0xff] %v7296_v16  ;;  %vm3215_vm2 = vcmp.ge.f32.partialorder %v7112_v31, 0.0 }
 0x1a8   : > { %v7292_v37 = vpop.eup %5662  ;;  %v2896_v13 = vadd.f32 -0.28449672, %v2864_v26  ;;  %v2751_v61 = vmul.f32 1.0614054, %v7285_v0  ;;  %v1234_v5 = vmul.f32 %v5659_v25, %v1074_v48  ;;  %v898_v35 = vmul.f32 %v7267_v22, %v866_v15 }
 0x1a9   : > { %v2927_v56 = vmul.f32 %v7235_v46, %v2895_v60  ;;  %v2752_v21 = vmul.f32 1.0614054, %v7292_v37  ;;  %v1208_v6 = vmul.f32 1.442695, %v1154_v53  ;;  %v725_v18 = vadd.f32 1.0, %v693_v57 }
 0x1aa   : > { %v2928_v58 = vmul.f32 %v7243_v34, %v2896_v13  ;;  %v2783_v63 = vadd.f32 -1.4531521, %v2751_v61  ;;  %v1266_v47 = vsub.f32 1.0, %v1234_v5  ;;  %v930_v23 = vadd.f32 1.4214138, %v898_v35 }
 0x1ab   : > { %v2959_v55 = vadd.f32 0.2548296, %v2927_v56  ;;  %v2784_v26 = vadd.f32 -1.4531521, %v2752_v21  ;;  %5668 = vpow2.f32 %v3121_v24  ;;  %v3123_v1 = vmul.f32 1.442695, %v3072_v19 }
 0x1ac   : > { %v2960_v25 = vadd.f32 0.2548296, %v2928_v58  ;;  %v2815_v48 = vmul.f32 %v7285_v0, %v2783_v63  ;;  %v1330_v15 = vsub.f32 0.0, %v1266_v47  ;;  %v7303_v16 = vmul.f32 0.70710677, %v7290_v40 }
 0x1ad   : > { %v2991_v60 = vmul.f32 %v7235_v46, %v2959_v55  ;;  %v2816_v53 = vmul.f32 %v7292_v37, %v2784_v26  ;;  %v962_v57 = vmul.f32 %v7267_v22, %v930_v23  ;;  %5670 = vrcp.f32 %v725_v18  ;;  %v5665_v13 = vpop.eup %5664 }
 0x1ae   : > { %v2992_v61 = vmul.f32 %v7243_v34, %v2960_v25  ;;  %v2847_v5 = vadd.f32 1.4214138, %v2815_v48  ;;  %v1362_v19 = vsel %vm1298_vm1, %v1266_v47, %v1330_v15  ;;  %5672 = vpow2.f32 %v1208_v6  ;;  %v5667_v24 = vpop.eup %5666 }
 0x1af   : > { %v3151_v35 = vmul.f32 %v5665_v13, %v2991_v60  ;;  %v2848_v56 = vadd.f32 1.4214138, %v2816_v53  ;;  %v1394_v21 = vadd.f32 1.0, %v1362_v19  ;;  %v994_v58 = vadd.f32 -0.28449672, %v962_v57 }
 0x1b0   : > { %v3152_v63 = vmul.f32 %v5667_v24, %v2992_v61  ;;  %v2879_v46 = vmul.f32 %v7285_v0, %v2847_v5  ;;  %5674 = vpow2.f32 %v3123_v1  ;;  %v7313_v23 = vand.u32 2147483647, %v7303_v16 }
 0x1b1   : > { %v3183_v18 = vsub.f32 1.0, %v3151_v35  ;;  %v2880_v34 = vmul.f32 %v7292_v37, %v2848_v56  ;;  %v7317_v55 = vmul.f32 %v1394_v21, %v7219_v50  ;;  %v1026_v54 = vmul.f32 %v7267_v22, %v994_v58 }
 0x1b2   : > { %v2511_v6 = vmul.f32 0.5, %v7097_v62  ;;  %v3184_v47 = vsub.f32 1.0, %v3152_v63  ;;  %v2911_v26 = vadd.f32 -0.28449672, %v2879_v46  ;;  %v709_v25 = vmul.f32 0.3275911, %v7313_v23 }
 0x1b3   : > { %v2512_v48 = vmul.f32 0.5, %v7100_v27  ;;  %v3247_v1 = vsub.f32 0.0, %v3183_v18  ;;  %v2912_v15 = vadd.f32 -0.28449672, %v2880_v34  ;;  %1522 = vst [vmem:[#allocation2 + $0x7a] sm:$0xff] %v7317_v55  ;;  %vm3216_vm3 = vcmp.ge.f32.partialorder %v7116_v41, 0.0 }
 0x1b4   : > { %v3248_v50 = vsub.f32 0.0, %v3184_v47  ;;  %v2943_v60 = vmul.f32 %v7285_v0, %v2911_v26  ;;  %v1058_v53 = vadd.f32 0.2548296, %v1026_v54  ;;  %v7331_v27 = vld [vmem:[%s11068_s3 + $0x5] ss:$0 sm:$0xff]  ;;  %v741_v61 = vadd.f32 1.0, %v709_v25 }
 0x1b5   : > { %v5669_v57 = vpop.eup %5668  ;;  %v3279_v62 = vsel %vm3215_vm2, %v3183_v18, %v3247_v1  ;;  %v2944_v13 = vmul.f32 %v7292_v37, %v2912_v15  ;;  %11334 = vst [vmem:[#allocation12_spill] sm:$0xff] %v7331_v27  ;;  %v2010_v31 = vmul.f32 %v7331_v27, %v7157_v8  ;;  %v7339_v21 = vmul.f32 0.5, %v7164_v17  ;;  %v7345_v54 = vld [vmem:[#allocation2 + $0x83] sm:$0xff] }
 0x1b6   : > { %v3280_v5 = vsel %vm3216_vm3, %v3184_v47, %v3248_v50  ;;  %v3311_v19 = vadd.f32 1.0, %v3279_v62  ;;  %v2975_v41 = vadd.f32 0.2548296, %v2943_v60  ;;  %v1090_v24 = vmul.f32 %v7267_v22, %v1058_v53  ;;  %v7350_v22 = vld [vmem:[%s11068_s3 + $0x9] ss:$0 sm:$0xff]  ;;  %v7354_v47 = vpop.f32.mrb[11].mxu1 }
 0x1b7   : > { %v7336_v35 = vpop.eup %5670  ;;  %v3312_v56 = vadd.f32 1.0, %v3280_v5  ;;  %v2976_v58 = vadd.f32 0.2548296, %v2944_v13  ;;  %5676 = vrcp.f32 %v741_v61  ;;  %v7342_v18 = vmul.f32 0.5, %v7180_v44  ;;  %11335 = vst [vmem:[#allocation42_spill] sm:$0xff] %v7350_v22  ;;  %11336 = vst [vmem:[#allocation43_spill] sm:$0xff] %v7354_v47 }
 0x1b8   : > { %v5673_v63 = vpop.eup %5672  ;;  %v3343_v46 = vmul.f32 %v3311_v19, %v2511_v6  ;;  %v3007_v34 = vmul.f32 %v7285_v0, %v2975_v41  ;;  %v2312_v17 = vmul.f32 %v7350_v22, %v7157_v8  ;;  %v821_v25 = vmul.f32 1.0614054, %v7336_v35  ;;  %v7374_v53 = vld [vmem:[%s11068_s3 + $0xa] ss:$0 sm:$0xff]  ;;  %v7395_v19 = vld [vmem:[%s11068_s3 + $0x8] ss:$0 sm:$0xff] }
 0x1b9   : > { %v3344_v26 = vmul.f32 %v3312_v56, %v2512_v48  ;;  %v3008_v6 = vmul.f32 %v7292_v37, %v2976_v58  ;;  %v1250_v44 = vmul.f32 %v5673_v63, %v1090_v24  ;;  %vm3231_vm4 = vcmp.ge.f32.partialorder %v7200_v2, 0.0  ;;  %11340 = vst [vmem:[#allocation47_spill] sm:$0xff] %v7395_v19 }
 0x1ba   : > { %v5675_v0 = vpop.eup %5674  ;;  %3375 = vst [vmem:[%s6998_s23 + $0x20] sm:$0xff] %v3343_v46  ;;  %3407 = vst [vmem:[#allocation2 + $0x4a] sm:$0xff] %v3343_v46  ;;  %v3167_v1 = vmul.f32 %v5669_v57, %v3007_v34  ;;  %v7360_v15 = vld [vmem:[#allocation2 + $0x79] sm:$0xff]  ;;  %v7362_v50 = vld [vmem:[#allocation2 + $0x81] sm:$0xff]  ;;  %v1839_v60 = vadd.f32 %v7197_v4, %v7260_v49  ;;  %v2141_v48 = vadd.f32 %v7208_v12, %v7050_v11  ;;  %vm1314_vm5 = vcmp.ge.f32.partialorder %v7103_v45, 0.0 }
 0x1bb   : > { %11337 = vst [vmem:[#allocation44_spill] sm:$0xff] %v7362_v50  ;;  %3376 = vst [vmem:[%s6998_s23 + $0x30] sm:$0xff] %v3344_v26  ;;  %v3168_v37 = vmul.f32 %v5675_v0, %v3008_v6  ;;  %vm3232_vm6 = vcmp.ge.f32.partialorder %v7203_v39, 0.0  ;;  %v2413_v57 = vmul.f32 %v7374_v53, %v7345_v54  ;;  %v1109_v4 = vsub.f32 0.0, %v7280_v42  ;;  %v7379_v62 = vld [vmem:[#allocation2 + $0x7b] sm:$0xff] }
 0x1bc   : > { %3408 = vst [vmem:[#allocation2 + $0x52] sm:$0xff] %v3344_v26  ;;  %v3199_v49 = vsub.f32 1.0, %v3167_v1  ;;  %11338 = vst [vmem:[#allocation45_spill] sm:$0xff] %v7379_v62  ;;  %v7384_v11 = vld [vmem:[%s11068_s3 + $0x4] ss:$0 sm:$0xff]  ;;  %v2009_v61 = vmul.f32 %v7331_v27, %v7317_v55  ;;  %v2210_v41 = vmul.f32 %v7395_v19, %v7360_v15  ;;  %v1282_v24 = vsub.f32 1.0, %v1250_v44 }
 0x1bd   : > { %11339 = vst [vmem:[#allocation46_spill] sm:$0xff] %v7384_v11  ;;  %v1908_v12 = vmul.f32 %v7384_v11, %v7360_v15  ;;  %v1909_v13 = vmul.f32 %v7384_v11, %v7362_v50  ;;  %v3200_v5 = vsub.f32 1.0, %v3168_v37  ;;  %v853_v56 = vadd.f32 -1.4531521, %v821_v25  ;;  %v7437_v45 = vld [vmem:[%s11069_s4] ss:$0 sm:$0xff] }
 0x1be   : > { %v3263_v58 = vsub.f32 0.0, %v3199_v49  ;;  %v2211_v34 = vmul.f32 %v7395_v19, %v7362_v50  ;;  %v2242_v6 = vadd.f32 %v2210_v41, %v7272_v14  ;;  %v2311_v0 = vmul.f32 %v7350_v22, %v7317_v55  ;;  %11343 = vst [vmem:[#allocation50_spill] sm:$0xff] %v7437_v45 }
 0x1bf   : > { %v1940_v63 = vadd.f32 %v1908_v12, %v7269_v29  ;;  %v1941_v46 = vadd.f32 %v1909_v13, %v1839_v60  ;;  %v3264_v26 = vsub.f32 0.0, %v3200_v5  ;;  %v2412_v1 = vmul.f32 %v7374_v53, %v7379_v62 }
 0x1c0   : > { %v3295_v44 = vsel %vm3231_vm4, %v3199_v49, %v3263_v58  ;;  %v2243_v29 = vadd.f32 %v2211_v34, %v2141_v48  ;;  %v2343_v13 = vadd.f32 %v2311_v0, %v2242_v6  ;;  %v1346_v41 = vsub.f32 0.0, %v1282_v24 }
 0x1c1   : > { %v7409_v25 = vadd.f32 %v2009_v61, %v1940_v63  ;;  %v7411_v37 = vadd.f32 %v2010_v31, %v1941_v46  ;;  %v7413_v60 = vpop.eup %5676  ;;  %v3296_v12 = vsel %vm3232_vm6, %v3200_v5, %v3264_v26  ;;  %v3327_v14 = vadd.f32 1.0, %v3295_v44  ;;  %v5979_v63 = vld [vmem:[#allocation2 + $0x112] sm:$0xff] }
 0x1c2   : > { %v3328_v47 = vadd.f32 1.0, %v3296_v12  ;;  %v2344_v50 = vadd.f32 %v2312_v17, %v2243_v29  ;;  %v885_v62 = vmul.f32 %v7336_v35, %v853_v56  ;;  %v1141_v2 = vmul.f32 %v1109_v4, %v7280_v42 }
 0x1c3   : > { %11341 = vst [vmem:[#allocation48_spill] sm:$0xff] %v7411_v37  ;;  %v7420_v49 = vmul.f32 %v3327_v14, %v7339_v21  ;;  %v2444_v31 = vadd.f32 %v2412_v1, %v2343_v13  ;;  %v1378_v48 = vsel %vm1314_vm5, %v1282_v24, %v1346_v41  ;;  %v837_v39 = vmul.f32 1.0614054, %v7413_v60  ;;  %v11346_v24 = vld [vmem:[#allocation36_spill] sm:$0xff]  ;;  %v11351_v13 = vld [vmem:[#allocation23_spill] sm:$0xff] }
 0x1c4   : > { %v7426_v61 = vmul.f32 %v3328_v47, %v7342_v18  ;;  %v2445_v5 = vadd.f32 %v2413_v57, %v2344_v50  ;;  %v1410_v58 = vadd.f32 1.0, %v1378_v48  ;;  %v917_v17 = vadd.f32 1.4214138, %v885_v62  ;;  %v11344_v18 = vld [vmem:[#allocation16_spill] sm:$0xff] }
 0x1c5   : > { %v7429_v56 = vmul.f32 %v5979_v63, %v7350_v22  ;;  %3391 = vst [vmem:[%s6998_s23 + $0x120] sm:$0xff] %v7420_v49  ;;  %3423 = vst [vmem:[#allocation2 + $0x10a] sm:$0xff] %v7420_v49  ;;  %v7440_v42 = vadd.f32 %v7437_v45, %v2444_v31  ;;  %v869_v21 = vadd.f32 -1.4531521, %v837_v39  ;;  %v7444_v47 = vadd.f32 %v6931_v52, %v11344_v18 }
 0x1c6   : > { %3392 = vst [vmem:[%s6998_s23 + $0x130] sm:$0xff] %v7426_v61  ;;  %3424 = vst [vmem:[#allocation2 + $0x112] sm:$0xff] %v7426_v61  ;;  %v7450_v50 = vadd.f32 %v7437_v45, %v2445_v5  ;;  %v7453_v57 = vmul.f32 %v1410_v58, %v7233_v38  ;;  %v949_v4 = vmul.f32 %v7336_v35, %v917_v17  ;;  %v1125_v62 = vsub.f32 0.0, %v7313_v23 }
 0x1c7   : > { %11342 = vst [vmem:[#allocation49_spill] sm:$0xff] %v7429_v56  ;;  %v7459_v46 = vmul.f32 %v7374_v53, %v11346_v24  ;;  %v7463_v52 = vmul.f32 %v7350_v22, %v6702_v30  ;;  %v1620_v34 = vmul.f32 %v7224_v9, %v7044_v59  ;;  %v7468_v26 = vmul.f32 0.70710677, %v7440_v42 }
 0x1c8   : > { %11345 = vst [vmem:[#allocation16_spill] sm:$0xff] %v7453_v57  ;;  %v7472_v38 = vmul.f32 %v7395_v19, %v6756_v28  ;;  %v1621_v6 = vmul.f32 %v7224_v9, %v7079_v32  ;;  %v7477_v0 = vmul.f32 0.70710677, %v7450_v50  ;;  %1546 = vst [vmem:[#allocation2 + $0x13a] sm:$0xff] %v7453_v57  ;;  %v1182_v30 = vmul.f32 1.442695, %v1141_v2 }
 0x1c9   : > { %11347 = vst [vmem:[#allocation36_spill] sm:$0xff] %v7459_v46  ;;  %11348 = vst [vmem:[#allocation51_spill] sm:$0xff] %v7463_v52  ;;  %v1721_v1 = vmul.f32 %v7186_v3, %v6975_v51  ;;  %v7483_v59 = vand.u32 2147483647, %v7468_v26  ;;  %v981_v44 = vadd.f32 -0.28449672, %v949_v4  ;;  %v901_v29 = vmul.f32 %v7413_v60, %v869_v21 }
 0x1ca   : > { %11349 = vst [vmem:[#allocation52_spill] sm:$0xff] %v7472_v38  ;;  %v1722_v28 = vmul.f32 %v7186_v3, %v6926_v10  ;;  %v7489_v32 = vand.u32 2147483647, %v7477_v0  ;;  %v1157_v12 = vmul.f32 %v1125_v62, %v7313_v23  ;;  %v7493_v14 = vmul.f32 0.70710677, %v7444_v47  ;;  %v11352_v23 = vld [vmem:[#allocation21_spill] sm:$0xff] }
 0x1cb   : > { %v7497_v51 = vmul.f32 %v7395_v19, %v6773_v20  ;;  %v1823_v41 = vmul.f32 %v7193_v43, %v11351_v13  ;;  %v1753_v2 = vadd.f32 %v1721_v1, %v1620_v34  ;;  %v2609_v31 = vmul.f32 0.3275911, %v7483_v59  ;;  %v7505_v10 = vld [vmem:[%s11068_s3 + $0x10] ss:$0 sm:$0xff]  ;;  %v7513_v20 = vld [vmem:[%s11068_s3 + $0x6] ss:$0 sm:$0xff] }
 0x1cc   : > { %v1754_v48 = vadd.f32 %v1722_v28, %v1621_v6  ;;  %v1822_v39 = vmul.f32 %v7193_v43, %v11352_v23  ;;  %v2610_v5 = vmul.f32 0.3275911, %v7489_v32  ;;  %5678 = vpow2.f32 %v1182_v30  ;;  %v7520_v4 = vld [vmem:[#allocation2 + $0x143] sm:$0xff]  ;;  %v7557_v52 = vpop.f32.mrb[12].mxu0 }
 0x1cd   : > { %11350 = vst [vmem:[#allocation53_spill] sm:$0xff] %v7497_v51  ;;  %v2124_v58 = vmul.f32 %v7513_v20, %v11352_v23  ;;  %v2641_v17 = vadd.f32 1.0, %v2609_v31  ;;  %v1013_v63 = vmul.f32 %v7336_v35, %v981_v44  ;;  %v933_v21 = vadd.f32 1.4214138, %v901_v29  ;;  %v11353_v6 = vld [vmem:[#allocation6_spill] sm:$0xff] }
 0x1ce   : > { %v2125_v18 = vmul.f32 %v7513_v20, %v11351_v13  ;;  %v2642_v62 = vadd.f32 1.0, %v2610_v5  ;;  %v1214_v24 = vmul.f32 1.442695, %v1157_v12  ;;  %v7523_v34 = vand.u32 2147483647, %v7493_v14  ;;  %v11354_v28 = vld [vmem:[#allocation10_spill] sm:$0xff] }
 0x1cf   : > { %v3779_v30 = vmul.f32 %v7505_v10, %v11353_v6  ;;  %v1854_v1 = vadd.f32 %v1822_v39, %v1753_v2  ;;  %v2156_v23 = vadd.f32 %v2124_v58, %v11354_v28  ;;  %5680 = vrcp.f32 %v2641_v17  ;;  %v7528_v31 = vld [vmem:[#allocation2 + $0x139] sm:$0xff]  ;;  %v7530_v44 = vld [vmem:[#allocation2 + $0x141] sm:$0xff]  ;;  %11358 = vst [vmem:[#allocation6_spill] sm:$0xff] %v7557_v52  ;;  %v7562_v51 = vld [vmem:[%s11068_s3 + $0x11] ss:$0 sm:$0xff] }
 0x1d0   : > { %11355 = vst [vmem:[#allocation23_spill] sm:$0xff] %v7528_v31  ;;  %11356 = vst [vmem:[#allocation21_spill] sm:$0xff] %v7530_v44  ;;  %v2026_v29 = vmul.f32 %v7331_v27, %v7257_v33  ;;  %5682 = vrcp.f32 %v2642_v62  ;;  %v1855_v13 = vadd.f32 %v1823_v41, %v1754_v48  ;;  %v11357_v12 = vld [vmem:[#allocation11_spill] sm:$0xff]  ;;  %v2328_v46 = vmul.f32 %v7350_v22, %v7257_v33  ;;  %v7545_v48 = vld [vmem:[#allocation2 + $0x13b] sm:$0xff] }
 0x1d1   : > { %v2157_v5 = vadd.f32 %v2125_v18, %v11357_v12  ;;  %v2429_v2 = vmul.f32 %v7374_v53, %v7520_v4  ;;  %v1045_v39 = vadd.f32 0.2548296, %v1013_v63  ;;  %v965_v58 = vmul.f32 %v7413_v60, %v933_v21 }
 0x1d2   : > { %v1924_v17 = vmul.f32 %v7384_v11, %v7528_v31  ;;  %v1925_v6 = vmul.f32 %v7384_v11, %v7530_v44  ;;  %5684 = vpow2.f32 %v1214_v24  ;;  %v692_v41 = vmul.f32 0.3275911, %v7523_v34 }
 0x1d3   : > { %v2025_v18 = vmul.f32 %v7331_v27, %v7453_v57  ;;  %v2226_v62 = vmul.f32 %v7395_v19, %v7528_v31  ;;  %v2227_v63 = vmul.f32 %v7395_v19, %v7530_v44  ;;  %v2327_v21 = vmul.f32 %v7350_v22, %v7453_v57  ;;  %v11361_v31 = vld [vmem:[#allocation19_spill] sm:$0xff] }
 0x1d4   : > { %v3025_v28 = vsub.f32 0.0, %v7483_v59  ;;  %v3026_v24 = vsub.f32 0.0, %v7489_v32  ;;  %v1956_v12 = vadd.f32 %v1924_v17, %v1854_v1  ;;  %v1957_v56 = vadd.f32 %v1925_v6, %v1855_v13 }
 0x1d5   : > { %v2258_v38 = vadd.f32 %v2226_v62, %v2156_v23  ;;  %v2259_v11 = vadd.f32 %v2227_v63, %v2157_v5  ;;  %v1077_v19 = vmul.f32 %v7336_v35, %v1045_v39  ;;  %v997_v27 = vadd.f32 -0.28449672, %v965_v58  ;;  %v11362_v5 = vld [vmem:[#allocation13_spill] sm:$0xff]  ;;  %v7586_v62 = vpop.f32.mrb[12].mxu1 }
 0x1d6   : > { %v5679_v37 = vpop.eup %5678  ;;  %v7565_v22 = vadd.f32 %v2025_v18, %v1956_v12  ;;  %v7567_v57 = vadd.f32 %v2026_v29, %v1957_v56  ;;  %v2428_v1 = vmul.f32 %v7374_v53, %v7545_v48  ;;  %v724_v13 = vadd.f32 1.0, %v692_v41  ;;  %11365 = vst [vmem:[#allocation19_spill] sm:$0xff] %v7586_v62 }
 0x1d7   : > { %v2359_v17 = vadd.f32 %v2327_v21, %v2258_v38  ;;  %v2360_v6 = vadd.f32 %v2328_v46, %v2259_v11  ;;  %v1237_v52 = vmul.f32 %v5679_v37, %v1077_v19  ;;  %v1029_v44 = vmul.f32 %v7413_v60, %v997_v27  ;;  %v11363_v19 = vld [vmem:[#allocation26_spill] sm:$0xff] }
 0x1d8   : > { %11359 = vst [vmem:[#allocation10_spill] sm:$0xff] %v7565_v22  ;;  %11360 = vst [vmem:[#allocation11_spill] sm:$0xff] %v7567_v57  ;;  %v3780_v23 = vmul.f32 %v7505_v10, %v11361_v31  ;;  %v3880_v35 = vmul.f32 %v7562_v51, %v11362_v5  ;;  %v3057_v39 = vmul.f32 %v3025_v28, %v7483_v59  ;;  %v11364_v37 = vld [vmem:[#allocation18_spill] sm:$0xff]  ;;  %5686 = vrcp.f32 %v724_v13  ;;  %v11366_v28 = vld [vmem:[#allocation27_spill] sm:$0xff] }
 0x1d9   : > { %v3058_v56 = vmul.f32 %v3026_v24, %v7489_v32  ;;  %v7578_v29 = vpop.eup %5680  ;;  %v2460_v58 = vadd.f32 %v2428_v1, %v2359_v17  ;;  %v2461_v18 = vadd.f32 %v2429_v2, %v2360_v6  ;;  %v1269_v41 = vsub.f32 1.0, %v1237_v52  ;;  %v11378_v57 = vld [vmem:[#allocation44_spill] sm:$0xff] }
 0x1da   : > { %v1061_v38 = vadd.f32 0.2548296, %v1029_v44  ;;  %v7580_v11 = vpop.eup %5682  ;;  %v3811_v27 = vadd.f32 %v3779_v30, %v11363_v19  ;;  %v3881_v46 = vmul.f32 %v7562_v51, %v11364_v37  ;;  %v2737_v31 = vmul.f32 1.0614054, %v7578_v29  ;;  %v7616_v19 = vld [vmem:[%s11067_s2] ss:$0 sm:$0xff] }
 0x1db   : > { %v2738_v59 = vmul.f32 1.0614054, %v7580_v11  ;;  %v7590_v32 = vadd.f32 %v7437_v45, %v2460_v58  ;;  %v7593_v52 = vadd.f32 %v7437_v45, %v2461_v18  ;;  %v1333_v44 = vsub.f32 0.0, %v1269_v41 }
 0x1dc   : > { %v5685_v2 = vpop.eup %5684  ;;  %v2769_v63 = vadd.f32 -1.4531521, %v2737_v31  ;;  %v3093_v30 = vmul.f32 1.442695, %v3057_v39  ;;  %vm1301_vm7 = vcmp.ge.f32.partialorder %v7265_v7, 0.0  ;;  %v1093_v21 = vmul.f32 %v7413_v60, %v1061_v38 }
 0x1dd   : > { %v3812_v24 = vadd.f32 %v3780_v23, %v11366_v28  ;;  %v2770_v12 = vadd.f32 -1.4531521, %v2738_v59  ;;  %v3095_v1 = vmul.f32 1.442695, %v3058_v56  ;;  %v7599_v13 = vmul.f32 0.70710677, %v7590_v32 }
 0x1de   : > { %v2801_v17 = vmul.f32 %v7578_v29, %v2769_v63  ;;  %v7603_v6 = vmul.f32 0.70710677, %v7593_v52  ;;  %v1365_v5 = vsel %vm1301_vm7, %v1269_v41, %v1333_v44  ;;  %v1253_v58 = vmul.f32 %v5685_v2, %v1093_v21  ;;  %v11367_v41 = vld [vmem:[#allocation37_spill] sm:$0xff]  ;;  %v7628_v44 = vld [vmem:[%s11068_s3 + $0x12] ss:$0 sm:$0xff] }
 0x1df   : > { %v2802_v39 = vmul.f32 %v7580_v11, %v2770_v12  ;;  %v7607_v7 = vand.u32 2147483647, %v7599_v13  ;;  %v597_v60 = vmul.f32 0.5, %v7241_v36  ;;  %v1397_v23 = vadd.f32 1.0, %v1365_v5  ;;  %v11368_v12 = vld [vmem:[#allocation15_spill] sm:$0xff] }
 0x1e0   : > { %v2833_v18 = vadd.f32 1.4214138, %v2801_v17  ;;  %v7611_v56 = vand.u32 2147483647, %v7603_v6  ;;  %v1285_v38 = vsub.f32 1.0, %v1253_v58  ;;  %v7620_v37 = vadd.f32 %v7616_v19, %v11367_v41  ;;  %v11371_v41 = vld [vmem:[#allocation20_spill] sm:$0xff] }
 0x1e1   : > { %v2834_v31 = vadd.f32 1.4214138, %v2802_v39  ;;  %5688 = vpow2.f32 %v3093_v30  ;;  %v2625_v59 = vmul.f32 0.3275911, %v7607_v7  ;;  %v7623_v36 = vmul.f32 %v1397_v23, %v597_v60 }
 0x1e2   : > { %v2865_v2 = vmul.f32 %v7578_v29, %v2833_v18  ;;  %5690 = vpow2.f32 %v3095_v1  ;;  %v2626_v63 = vmul.f32 0.3275911, %v7611_v56  ;;  %v1349_v21 = vsub.f32 0.0, %v1285_v38  ;;  %v7638_v58 = vpop.eup %5686  ;;  %v11370_v18 = vld [vmem:[#allocation17_spill] sm:$0xff] }
 0x1e3   : > { %v3912_v28 = vadd.f32 %v3880_v35, %v3811_v27  ;;  %v7634_v17 = vmul.f32 %v7374_v53, %v11368_v12  ;;  %v2866_v30 = vmul.f32 %v7580_v11, %v2834_v31  ;;  %v2657_v5 = vadd.f32 1.0, %v2625_v59  ;;  %1526 = vst [vmem:[#allocation2 + $0x9a] sm:$0xff] %v7623_v36 }
 0x1e4   : > { %v3913_v39 = vadd.f32 %v3881_v46, %v3812_v24  ;;  %v2897_v60 = vadd.f32 -0.28449672, %v2865_v2  ;;  %v2658_v23 = vadd.f32 1.0, %v2626_v63  ;;  %v7641_v1 = vmul.f32 0.70710677, %v7620_v37 }
 0x1e5   : > { %11369 = vst [vmem:[#allocation13_spill] sm:$0xff] %v7634_v17  ;;  %v3981_v35 = vmul.f32 %v7628_v44, %v11370_v18  ;;  %v2898_v27 = vadd.f32 -0.28449672, %v2866_v30  ;;  %5692 = vrcp.f32 %v2657_v5  ;;  %vm1317_vm8 = vcmp.ge.f32.partialorder %v7303_v16, 0.0 }
 0x1e6   : > { %v3982_v31 = vmul.f32 %v7628_v44, %v11371_v41  ;;  %v2929_v59 = vmul.f32 %v7578_v29, %v2897_v60  ;;  %5694 = vrcp.f32 %v2658_v23  ;;  %v1381_v12 = vsel %vm1317_vm8, %v1285_v38, %v1349_v21 }
 0x1e7   : > { %v2930_v46 = vmul.f32 %v7580_v11, %v2898_v27  ;;  %v613_v24 = vmul.f32 0.5, %v7290_v40  ;;  %v1413_v2 = vadd.f32 1.0, %v1381_v12  ;;  %v820_v63 = vmul.f32 1.0614054, %v7638_v58  ;;  %v7665_v40 = vpop.f32.mrb[13].mxu0 }
 0x1e8   : > { %v7652_v17 = vadd.f32 %v3981_v35, %v3912_v28  ;;  %v7654_v30 = vadd.f32 %v3982_v31, %v3913_v39  ;;  %v2961_v5 = vadd.f32 0.2548296, %v2929_v59  ;;  %v7657_v16 = vand.u32 2147483647, %v7641_v1  ;;  %11373 = vst [vmem:[#allocation18_spill] sm:$0xff] %v7665_v40  ;;  %v11374_v35 = vld [vmem:[#allocation14_spill] sm:$0xff] }
 0x1e9   : > { %v7661_v60 = vmul.f32 %v7186_v3, %v7157_v8  ;;  %v2962_v38 = vadd.f32 0.2548296, %v2930_v46  ;;  %v7663_v21 = vmul.f32 %v1413_v2, %v613_v24  ;;  %v852_v23 = vadd.f32 -1.4531521, %v820_v63 }
 0x1ea   : > { %v7669_v28 = vmul.f32 %v7193_v43, %v7345_v54  ;;  %v2993_v39 = vmul.f32 %v7578_v29, %v2961_v5  ;;  %v708_v18 = vmul.f32 0.3275911, %v7657_v16  ;;  %v7675_v27 = vadd.f32 %v7616_v19, %v11374_v35 }
 0x1eb   : > { %11372 = vst [vmem:[#allocation26_spill] sm:$0xff] %v7663_v21  ;;  %v5689_v8 = vpop.eup %5688  ;;  %v7679_v41 = vmul.f32 %v7513_v20, %v7345_v54  ;;  %v7683_v31 = vmul.f32 %v7186_v3, %v7257_v33  ;;  %v2994_v59 = vmul.f32 %v7580_v11, %v2962_v38  ;;  %1550 = vst [vmem:[#allocation2 + $0x15a] sm:$0xff] %v7663_v21  ;;  %v7688_v29 = vmul.f32 0.5, %v7444_v47 }
 0x1ec   : > { %11375 = vst [vmem:[#allocation27_spill] sm:$0xff] %v7675_v27  ;;  %v5691_v12 = vpop.eup %5690  ;;  %v7692_v46 = vmul.f32 %v7193_v43, %v7520_v4  ;;  %v1606_v54 = vmul.f32 %v7224_v9, %v7360_v15  ;;  %v1707_v24 = vmul.f32 %v7186_v3, %v7317_v55  ;;  %v3153_v33 = vmul.f32 %v5689_v8, %v2993_v39 }
 0x1ed   : > { %v3154_v2 = vmul.f32 %v5691_v12, %v2994_v59  ;;  %v884_v11 = vmul.f32 %v7638_v58, %v852_v23  ;;  %v1108_v63 = vsub.f32 0.0, %v7523_v34  ;;  %v740_v5 = vadd.f32 1.0, %v708_v18 }
 0x1ee   : > { %11376 = vst [vmem:[#allocation37_spill] sm:$0xff] %v7692_v46  ;;  %v2513_v47 = vmul.f32 0.5, %v7440_v42  ;;  %v3185_v38 = vsub.f32 1.0, %v3153_v33  ;;  %v3041_v35 = vsub.f32 0.0, %v7607_v7  ;;  %v7703_v40 = vmul.f32 0.70710677, %v7675_v27 }
 0x1ef   : > { %v7705_v62 = vpop.eup %5692  ;;  %v3186_v15 = vsub.f32 1.0, %v3154_v2  ;;  %v3042_v3 = vsub.f32 0.0, %v7611_v56  ;;  %v916_v55 = vadd.f32 1.4214138, %v884_v11  ;;  %5696 = vrcp.f32 %v740_v5 }
 0x1f0   : > { %11377 = vst [vmem:[#allocation15_spill] sm:$0xff] %v7703_v40  ;;  %v7708_v39 = vpop.eup %5694  ;;  %vm3217_vm9 = vcmp.ge.f32.partialorder %v7468_v26, 0.0  ;;  %vm3218_vm10 = vcmp.ge.f32.partialorder %v7477_v0, 0.0  ;;  %v3249_v42 = vsub.f32 0.0, %v3185_v38  ;;  %v2753_v23 = vmul.f32 1.0614054, %v7705_v62 }
 0x1f1   : > { %v3250_v18 = vsub.f32 0.0, %v3186_v15  ;;  %v2754_v8 = vmul.f32 1.0614054, %v7708_v39  ;;  %v948_v59 = vmul.f32 %v7638_v58, %v916_v55  ;;  %v1140_v12 = vmul.f32 %v1108_v63, %v7523_v34 }
 0x1f2   : > { %v3281_v33 = vsel %vm3217_vm9, %v3185_v38, %v3249_v42  ;;  %v2785_v2 = vadd.f32 -1.4531521, %v2753_v23  ;;  %v3073_v11 = vmul.f32 %v3041_v35, %v7607_v7  ;;  %v7718_v5 = vand.u32 2147483647, %v7703_v40 }
 0x1f3   : > { %v3282_v26 = vsel %vm3218_vm10, %v3186_v15, %v3250_v18  ;;  %v3313_v27 = vadd.f32 1.0, %v3281_v33  ;;  %v2786_v0 = vadd.f32 -1.4531521, %v2754_v8  ;;  %v3074_v21 = vmul.f32 %v3042_v3, %v7611_v56 }
 0x1f4   : > { %v1607_v46 = vmul.f32 %v7224_v9, %v11378_v57  ;;  %v2514_v55 = vmul.f32 0.5, %v7450_v50  ;;  %v3314_v22 = vadd.f32 1.0, %v3282_v26  ;;  %v2817_v34 = vmul.f32 %v7705_v62, %v2785_v2 }
 0x1f5   : > { %v3345_v63 = vmul.f32 %v3313_v27, %v2513_v47  ;;  %v2818_v7 = vmul.f32 %v7708_v39, %v2786_v0  ;;  %v980_v38 = vadd.f32 -0.28449672, %v948_v59  ;;  %v1180_v35 = vmul.f32 1.442695, %v1140_v12  ;;  %v11380_v27 = vld [vmem:[#allocation45_spill] sm:$0xff] }
 0x1f6   : > { %v3346_v15 = vmul.f32 %v3314_v22, %v2514_v55  ;;  %v2849_v42 = vadd.f32 1.4214138, %v2817_v34  ;;  %v3125_v23 = vmul.f32 1.442695, %v3073_v11  ;;  %v695_v18 = vmul.f32 0.3275911, %v7718_v5 }
 0x1f7   : > { %v7729_v56 = vmul.f32 %v7513_v20, %v7520_v4  ;;  %v1739_v9 = vadd.f32 %v1707_v24, %v1606_v54  ;;  %3377 = vst [vmem:[%s6998_s23 + $0x40] sm:$0xff] %v3345_v63  ;;  %3409 = vst [vmem:[#allocation2 + $0x62] sm:$0xff] %v3345_v63  ;;  %v2850_v50 = vadd.f32 1.4214138, %v2818_v7  ;;  %v3127_v57 = vmul.f32 1.442695, %v3074_v21 }
 0x1f8   : > { %v1808_v47 = vmul.f32 %v7193_v43, %v11380_v27  ;;  %v7736_v3 = vmul.f32 %v7513_v20, %v11380_v27  ;;  %3378 = vst [vmem:[%s6998_s23 + $0x50] sm:$0xff] %v3346_v15  ;;  %3410 = vst [vmem:[#allocation2 + $0x6a] sm:$0xff] %v3346_v15  ;;  %v2881_v22 = vmul.f32 %v7705_v62, %v2849_v42  ;;  %v1124_v8 = vsub.f32 0.0, %v7657_v16  ;;  %v7749_v21 = vld [vmem:[%s11068_s3 + $0x15] ss:$0 sm:$0xff]  ;;  %v11382_v55 = vld [vmem:[#allocation38_spill] sm:$0xff] }
 0x1f9   : > { %11379 = vst [vmem:[#allocation17_spill] sm:$0xff] %v7729_v56  ;;  %v7741_v4 = vpop.eup %5696  ;;  %v7744_v54 = vadd.f32 %v7661_v60, %v1607_v46  ;;  %11381 = vst [vmem:[#allocation20_spill] sm:$0xff] %v7749_v21  ;;  %v2882_v43 = vmul.f32 %v7708_v39, %v2850_v50  ;;  %v1012_v24 = vmul.f32 %v7638_v58, %v980_v38  ;;  %5698 = vpow2.f32 %v1180_v35  ;;  %v7767_v7 = vld [vmem:[%s11068_s3 + $0xd] ss:$0 sm:$0xff]  ;;  %v5427_v50 = vld [vmem:[%s11068_s3 + $0x14] ss:$0 sm:$0xff] }
 0x1fa   : > { %v2913_v59 = vadd.f32 -0.28449672, %v2881_v22  ;;  %5700 = vpow2.f32 %v3125_v23  ;;  %v836_v12 = vmul.f32 1.0614054, %v7741_v4  ;;  %v727_v33 = vadd.f32 1.0, %v695_v18  ;;  %v7797_v56 = vpop.f32.mrb[13].mxu1 }
 0x1fb   : > { %v7754_v2 = vadd.f32 %v1808_v47, %v1739_v9  ;;  %v2914_v11 = vadd.f32 -0.28449672, %v2882_v43  ;;  %5702 = vpow2.f32 %v3127_v57  ;;  %v1044_v60 = vadd.f32 0.2548296, %v1012_v24  ;;  %v7782_v47 = vld [vmem:[%s11068_s3 + $0xc] ss:$0 sm:$0xff] }
 0x1fc   : > { %v2945_v46 = vmul.f32 %v7705_v62, %v2913_v59  ;;  %v868_v26 = vadd.f32 -1.4531521, %v836_v12  ;;  %v7758_v0 = vmul.f32 %v1124_v8, %v7657_v16  ;;  %v7762_v34 = vadd.f32 %v7616_v19, %v11382_v55  ;;  %11385 = vst [vmem:[#allocation44_spill] sm:$0xff] %v7797_v56 }
 0x1fd   : > { %v3584_v38 = vmul.f32 %v7767_v7, %v3345_v63  ;;  %v3884_v35 = vmul.f32 %v7562_v51, %v3345_v63  ;;  %v4184_v42 = vmul.f32 %v7749_v21, %v3345_v63  ;;  %v2946_v23 = vmul.f32 %v7708_v39, %v2914_v11  ;;  %v7793_v11 = vld [vmem:[%s11068_s3 + $0xe] ss:$0 sm:$0xff] }
 0x1fe   : > { %11383 = vst [vmem:[#allocation14_spill] sm:$0xff] %v7762_v34  ;;  %v3447_v18 = vld [vmem:[#allocation2 + $0x60] sm:$0xff]  ;;  %v3585_v16 = vmul.f32 %v7767_v7, %v3346_v15  ;;  %v3885_v9 = vmul.f32 %v7562_v51, %v3346_v15  ;;  %v4185_v57 = vmul.f32 %v7749_v21, %v3346_v15  ;;  %5704 = vrcp.f32 %v727_v33  ;;  %v11384_v21 = vld [vmem:[#allocation7_spill] sm:$0xff] }
 0x1ff   : > { %v3448_v27 = vld [vmem:[#allocation2 + $0x68] sm:$0xff]  ;;  %v3483_v63 = vmul.f32 %v7782_v47, %v3447_v18  ;;  %v3783_v8 = vmul.f32 %v7505_v10, %v3447_v18  ;;  %v4083_v43 = vmul.f32 %v5427_v50, %v3447_v18  ;;  %v1076_v51 = vmul.f32 %v7638_v58, %v1044_v60  ;;  %v11386_v60 = vld [vmem:[#allocation9_spill] sm:$0xff] }
 0x200   : > { %v3649_v22 = vld [vmem:[#allocation2 + $0x64] sm:$0xff]  ;;  %v3484_v24 = vmul.f32 %v7782_v47, %v3448_v27  ;;  %v3784_v59 = vmul.f32 %v7505_v10, %v3448_v27  ;;  %v2977_v15 = vadd.f32 0.2548296, %v2945_v46  ;;  %v900_v12 = vmul.f32 %v7741_v4, %v868_v26  ;;  %v7807_v45 = vld [vmem:[#allocation2 + $0x6c] sm:$0xff] }
 0x201   : > { %v3616_v33 = vadd.f32 %v3584_v38, %v3483_v63  ;;  %v3685_v55 = vmul.f32 %v7793_v11, %v3649_v22  ;;  %v3815_v40 = vadd.f32 %v3783_v8, %v11384_v21  ;;  %v2978_v18 = vadd.f32 0.2548296, %v2946_v23  ;;  %v5431_v38 = vld [vmem:[%s11068_s3 + $0x16] ss:$0 sm:$0xff] }
 0x202   : > { %v7799_v58 = vadd.f32 %v3585_v16, %v3484_v24  ;;  %v3816_v10 = vadd.f32 %v3784_v59, %v11386_v60  ;;  %v4084_v46 = vmul.f32 %v5427_v50, %v3448_v27  ;;  %v4115_v26 = vadd.f32 %v4083_v43, %v7652_v17 }
 0x203   : > { %vm1300_vm11 = vcmp.ge.f32.partialorder %v7493_v14, 0.0  ;;  %v5699_v63 = vpop.eup %5698  ;;  %v7809_v21 = vadd.f32 %v3685_v55, %v3616_v33  ;;  %v3916_v23 = vadd.f32 %v3884_v35, %v3815_v40  ;;  %v3985_v16 = vmul.f32 %v7628_v44, %v3649_v22  ;;  %v5432_v33 = vld [vmem:[%s11069_s4 + $0x1] ss:$0 sm:$0xff] }
 0x204   : > { %v4285_v8 = vmul.f32 %v5431_v38, %v3649_v22  ;;  %v5701_v24 = vpop.eup %5700  ;;  %v7812_v59 = vadd.f32 %v3885_v9, %v3816_v10  ;;  %v4116_v17 = vadd.f32 %v4084_v46, %v7654_v30  ;;  %v4216_v50 = vadd.f32 %v4184_v42, %v4115_v26 }
 0x205   : > { %11387 = vst [vmem:[#allocation45_spill] sm:$0xff] %v7809_v21  ;;  %v3009_v27 = vmul.f32 %v7705_v62, %v2977_v15  ;;  %v5703_v43 = vpop.eup %5702  ;;  %v7816_v60 = vadd.f32 %v3985_v16, %v3916_v23  ;;  %v3010_v40 = vmul.f32 %v7708_v39, %v2978_v18  ;;  %v1236_v35 = vmul.f32 %v5699_v63, %v1076_v51 }
 0x206   : > { %11388 = vst [vmem:[#allocation38_spill] sm:$0xff] %v7812_v59  ;;  %v932_v55 = vadd.f32 1.4214138, %v900_v12  ;;  %v4217_v22 = vadd.f32 %v4185_v57, %v4116_v17  ;;  %v4286_v9 = vmul.f32 %v5431_v38, %v7807_v45  ;;  %v4317_v10 = vadd.f32 %v4285_v8, %v4216_v50  ;;  %v3461_v50 = vld [vmem:[#allocation2 + $0x108] sm:$0xff] }
 0x207   : > { %11389 = vst [vmem:[#allocation7_spill] sm:$0xff] %v7816_v60  ;;  %v3169_v21 = vmul.f32 %v5701_v24, %v3009_v27  ;;  %v3170_v30 = vmul.f32 %v5703_v43, %v3010_v40  ;;  %v1268_v42 = vsub.f32 1.0, %v1236_v35  ;;  %v7825_v15 = vmul.f32 0.70710677, %v7762_v34  ;;  %v11399_v60 = vld [vmem:[#allocation48_spill] sm:$0xff] }
 0x208   : > { %v964_v62 = vmul.f32 %v7741_v4, %v932_v55  ;;  %v7827_v46 = vpop.eup %5704  ;;  %v4318_v26 = vadd.f32 %v4286_v9, %v4217_v22  ;;  %v7829_v23 = vadd.f32 %v5432_v33, %v4317_v10  ;;  %v1212_v51 = vmul.f32 1.442695, %v7758_v0 }
 0x209   : > { %11390 = vst [vmem:[#allocation9_spill] sm:$0xff] %v7825_v15  ;;  %v3201_v39 = vsub.f32 1.0, %v3169_v21  ;;  %v2529_v57 = vmul.f32 0.5, %v7590_v32  ;;  %v2530_v12 = vmul.f32 0.5, %v7593_v52  ;;  %v3202_v18 = vsub.f32 1.0, %v3170_v30 }
 0x20a   : > { %v1332_v38 = vsub.f32 0.0, %v1268_v42  ;;  %v7834_v63 = vadd.f32 %v5432_v33, %v4318_v26  ;;  %v7837_v16 = vmul.f32 0.70710677, %v7829_v23  ;;  %v996_v24 = vadd.f32 -0.28449672, %v964_v62 }
 0x20b   : > { %v3265_v8 = vsub.f32 0.0, %v3201_v39  ;;  %vm3233_vm12 = vcmp.ge.f32.partialorder %v7599_v13, 0.0  ;;  %v3266_v17 = vsub.f32 0.0, %v3202_v18  ;;  %v7843_v0 = vand.u32 2147483647, %v7825_v15 }
 0x20c   : > { %v1364_v21 = vsel %vm1300_vm11, %v1268_v42, %v1332_v38  ;;  %v7846_v32 = vmul.f32 0.70710677, %v7834_v63  ;;  %v4450_v52 = vand.u32 2147483647, %v7837_v16  ;;  %vm3234_vm13 = vcmp.ge.f32.partialorder %v7603_v6, 0.0 }
 0x20d   : > { %5706 = vpow2.f32 %v1212_v51  ;;  %v3297_v27 = vsel %vm3233_vm12, %v3201_v39, %v3265_v8  ;;  %v3298_v43 = vsel %vm3234_vm13, %v3202_v18, %v3266_v17  ;;  %v1396_v33 = vadd.f32 1.0, %v1364_v21  ;;  %v3462_v39 = vld [vmem:[#allocation2 + $0x110] sm:$0xff] }
 0x20e   : > { %v1111_v13 = vsub.f32 0.0, %v7718_v5  ;;  %v7852_v14 = vand.u32 2147483647, %v7846_v32  ;;  %v4482_v40 = vmul.f32 0.3275911, %v4450_v52  ;;  %v1028_v35 = vmul.f32 %v7741_v4, %v996_v24  ;;  %v3663_v18 = vld [vmem:[#allocation2 + $0x10c] sm:$0xff] }
 0x20f   : > { %v823_v55 = vmul.f32 1.0614054, %v7827_v46  ;;  %v3329_v22 = vadd.f32 1.0, %v3297_v27  ;;  %v3330_v9 = vadd.f32 1.0, %v3298_v43  ;;  %v7857_v10 = vmul.f32 %v1396_v33, %v7688_v29  ;;  %v3664_v8 = vld [vmem:[#allocation2 + $0x114] sm:$0xff] }
 0x210   : > { %v711_v6 = vmul.f32 0.3275911, %v7843_v0  ;;  %v3598_v30 = vmul.f32 %v7767_v7, %v7420_v49  ;;  %v7864_v42 = vadd.f32 %v7736_v3, %v7409_v25  ;;  %v4483_v62 = vmul.f32 0.3275911, %v7852_v14  ;;  %v7899_v33 = vld [vmem:[%s11068_s3 + $0x1] ss:$0 sm:$0xff] }
 0x211   : > { %v4514_v26 = vadd.f32 1.0, %v4482_v40  ;;  %v3497_v51 = vmul.f32 %v7782_v47, %v3461_v50  ;;  %v7868_v29 = vmul.f32 %v3329_v22, %v2529_v57  ;;  %v7870_v38 = vmul.f32 %v3330_v9, %v2530_v12  ;;  %1525 = vst [vmem:[#allocation2 + $0x92] sm:$0xff] %v7857_v10  ;;  %v7881_v57 = vld [vmem:[%s11068_s3] ss:$0 sm:$0xff]  ;;  %v11394_v12 = vld [vmem:[#allocation23_spill] sm:$0xff]  ;;  %v11395_v50 = vld [vmem:[#allocation21_spill] sm:$0xff] }
 0x212   : > { %v1143_v49 = vmul.f32 %v1111_v13, %v7718_v5  ;;  %v4515_v25 = vadd.f32 1.0, %v4483_v62  ;;  %v1060_v3 = vadd.f32 0.2548296, %v1028_v35  ;;  %v855_v24 = vadd.f32 -1.4531521, %v823_v55  ;;  %11393 = vst [vmem:[#allocation56_spill] sm:$0xff] %v7881_v57 }
 0x213   : > { %11391 = vst [vmem:[#allocation54_spill] sm:$0xff] %v7868_v29  ;;  %11392 = vst [vmem:[#allocation55_spill] sm:$0xff] %v7870_v38  ;;  %5708 = vrcp.f32 %v4514_v26  ;;  %v7876_v17 = vmul.f32 %v7767_v7, %v7426_v61  ;;  %v1622_v21 = vmul.f32 %v7881_v57, %v11394_v12  ;;  %v1623_v5 = vmul.f32 %v7881_v57, %v11395_v50  ;;  %v11396_v13 = vld [vmem:[#allocation16_spill] sm:$0xff]  ;;  %v7914_v9 = vld [vmem:[%s11068_s3 + $0x2] ss:$0 sm:$0xff] }
 0x214   : > { %3393 = vst [vmem:[%s6998_s23 + $0x140] sm:$0xff] %v7868_v29  ;;  %3394 = vst [vmem:[%s6998_s23 + $0x150] sm:$0xff] %v7870_v38  ;;  %v743_v61 = vadd.f32 1.0, %v711_v6  ;;  %v7894_v27 = vmul.f32 %v7782_v47, %v3462_v39  ;;  %5710 = vrcp.f32 %v4515_v25  ;;  %v4898_v43 = vsub.f32 0.0, %v4450_v52 }
 0x215   : > { %3425 = vst [vmem:[#allocation2 + $0x122] sm:$0xff] %v7868_v29  ;;  %3426 = vst [vmem:[#allocation2 + $0x12a] sm:$0xff] %v7870_v38  ;;  %v1723_v40 = vmul.f32 %v7899_v33, %v11396_v13  ;;  %v7903_v35 = vadd.f32 %v3598_v30, %v3497_v51  ;;  %v7906_v55 = vmul.f32 %v7793_v11, %v3663_v18  ;;  %v4899_v26 = vsub.f32 0.0, %v7852_v14  ;;  %v7921_v30 = vld [vmem:[#allocation2 + $0x9b] sm:$0xff] }
 0x216   : > { %v7909_v22 = vmul.f32 %v7793_v11, %v3664_v8  ;;  %11398 = vst [vmem:[#allocation21_spill] sm:$0xff] %v7914_v9  ;;  %v7918_v6 = vmul.f32 %v7914_v9, %v7545_v48  ;;  %v1092_v39 = vmul.f32 %v7741_v4, %v1060_v3  ;;  %v887_v51 = vmul.f32 %v7827_v46, %v855_v24 }
 0x217   : > { %v5707_v62 = vpop.eup %5706  ;;  %v1186_v18 = vmul.f32 1.442695, %v1143_v49  ;;  %v7925_v8 = vadd.f32 %v1723_v40, %v1622_v21  ;;  %v7928_v25 = vadd.f32 %v7683_v31, %v1623_v5  ;;  %v7932_v12 = vmul.f32 %v7513_v20, %v7545_v48  ;;  %v11400_v49 = vld [vmem:[#allocation12_spill] sm:$0xff]  ;;  %v11401_v31 = vld [vmem:[#allocation42_spill] sm:$0xff] }
 0x218   : > { %11397 = vst [vmem:[#allocation23_spill] sm:$0xff] %v7909_v22  ;;  %5712 = vrcp.f32 %v743_v61  ;;  %v4930_v50 = vmul.f32 %v4898_v43, %v4450_v52  ;;  %v1841_v13 = vadd.f32 %v7669_v28, %v7744_v54  ;;  %v2143_v4 = vadd.f32 %v7679_v41, %v11399_v60  ;;  %v7947_v48 = vld [vmem:[#allocation2 + $0x91] sm:$0xff]  ;;  %v7949_v52 = vld [vmem:[#allocation2 + $0x99] sm:$0xff]  ;;  %v11408_v22 = vld [vmem:[#allocation47_spill] sm:$0xff] }
 0x219   : > { %v7939_v3 = vmul.f32 0.5, %v7620_v37  ;;  %v2012_v24 = vmul.f32 %v11400_v49, %v7623_v36  ;;  %v2314_v21 = vmul.f32 %v11401_v31, %v7623_v36  ;;  %v2415_v20 = vmul.f32 %v7374_v53, %v7921_v30  ;;  %11402 = vst [vmem:[#allocation16_spill] sm:$0xff] %v7947_v48  ;;  %11403 = vst [vmem:[#allocation48_spill] sm:$0xff] %v7949_v52  ;;  %v11404_v28 = vld [vmem:[#allocation8_spill] sm:$0xff] }
 0x21a   : > { %v7953_v54 = vadd.f32 %v7616_v19, %v11404_v28  ;;  %v4931_v37 = vmul.f32 %v4899_v26, %v7852_v14  ;;  %v1252_v61 = vmul.f32 %v5707_v62, %v1092_v39  ;;  %v919_v43 = vadd.f32 1.4214138, %v887_v51  ;;  %v11406_v62 = vld [vmem:[#allocation46_spill] sm:$0xff] }
 0x21b   : > { %5714 = vpow2.f32 %v1186_v18  ;;  %v3600_v57 = vmul.f32 %v7767_v7, %v7868_v29  ;;  %v3601_v28 = vmul.f32 %v7767_v7, %v7870_v38  ;;  %vm1316_vm14 = vcmp.ge.f32.partialorder %v7641_v1, 0.0 }
 0x21c   : > { %v7956_v41 = vld [vmem:[#allocation2 + $0x120] sm:$0xff]  ;;  %v3464_v60 = vld [vmem:[#allocation2 + $0x128] sm:$0xff]  ;;  %v4962_v26 = vmul.f32 1.442695, %v4930_v50  ;;  %v1910_v39 = vmul.f32 %v11406_v62, %v7947_v48  ;;  %v1911_v51 = vmul.f32 %v11406_v62, %v7949_v52  ;;  %v4964_v29 = vmul.f32 1.442695, %v4931_v37 }
 0x21d   : > { %11405 = vst [vmem:[#allocation12_spill] sm:$0xff] %v7956_v41  ;;  %v3665_v5 = vld [vmem:[#allocation2 + $0x124] sm:$0xff]  ;;  %v3499_v40 = vmul.f32 %v7782_v47, %v7956_v41  ;;  %v3500_v56 = vmul.f32 %v7782_v47, %v3464_v60  ;;  %v7966_v14 = vpop.eup %5708  ;;  %v2011_v47 = vmul.f32 %v11400_v49, %v7857_v10  ;;  %v7980_v50 = vld [vmem:[#allocation2 + $0x93] sm:$0xff]  ;;  %v2212_v15 = vmul.f32 %v11408_v22, %v7947_v48 }
 0x21e   : > { %v4610_v18 = vmul.f32 1.0614054, %v7966_v14  ;;  %v3701_v7 = vmul.f32 %v7793_v11, %v3665_v5  ;;  %v7978_v38 = vpop.eup %5710  ;;  %11407 = vst [vmem:[#allocation42_spill] sm:$0xff] %v7980_v50  ;;  %v1284_v34 = vsub.f32 1.0, %v1252_v61  ;;  %v951_v62 = vmul.f32 %v7827_v46, %v919_v43 }
 0x21f   : > { %v3632_v60 = vadd.f32 %v3600_v57, %v3499_v40  ;;  %v7975_v41 = vadd.f32 %v3601_v28, %v3500_v56  ;;  %v4611_v49 = vmul.f32 1.0614054, %v7978_v38  ;;  %v2213_v56 = vmul.f32 %v11408_v22, %v7949_v52 }
 0x220   : > { %v4642_v59 = vadd.f32 -1.4531521, %v4610_v18  ;;  %v1942_v57 = vadd.f32 %v1910_v39, %v7754_v2  ;;  %v1943_v5 = vadd.f32 %v1911_v51, %v1841_v13  ;;  %v2244_v37 = vadd.f32 %v2212_v15, %v7864_v42 }
 0x221   : > { %v7986_v9 = vadd.f32 %v3701_v7, %v3632_v60  ;;  %v2313_v40 = vmul.f32 %v11401_v31, %v7857_v10  ;;  %v4643_v61 = vadd.f32 -1.4531521, %v4611_v49  ;;  %v2245_v48 = vadd.f32 %v2213_v56, %v2143_v4  ;;  %v11412_v56 = vld [vmem:[#allocation50_spill] sm:$0xff] }
 0x222   : > { %v7994_v28 = vpop.eup %5712  ;;  %v4674_v43 = vmul.f32 %v7966_v14, %v4642_v59  ;;  %v2414_v18 = vmul.f32 %v7374_v53, %v7980_v50  ;;  %v7999_v60 = vadd.f32 %v2011_v47, %v1942_v57  ;;  %v8001_v22 = vadd.f32 %v2012_v24, %v1943_v5 }
 0x223   : > { %11409 = vst [vmem:[#allocation8_spill] sm:$0xff] %v7986_v9  ;;  %v2345_v2 = vadd.f32 %v2313_v40, %v2244_v37  ;;  %v1348_v13 = vsub.f32 0.0, %v1284_v34  ;;  %v4675_v15 = vmul.f32 %v7978_v38, %v4643_v61  ;;  %v2346_v39 = vadd.f32 %v2314_v21, %v2245_v48 }
 0x224   : > { %11410 = vst [vmem:[#allocation46_spill] sm:$0xff] %v7999_v60  ;;  %11411 = vst [vmem:[#allocation47_spill] sm:$0xff] %v8001_v22  ;;  %v4706_v42 = vadd.f32 1.4214138, %v4674_v43  ;;  %v983_v31 = vadd.f32 -0.28449672, %v951_v62  ;;  %5716 = vpow2.f32 %v4962_v26 }
 0x225   : > { %v5715_v51 = vpop.eup %5714  ;;  %v2446_v7 = vadd.f32 %v2414_v18, %v2345_v2  ;;  %v1380_v59 = vsel %vm1316_vm14, %v1284_v34, %v1348_v13  ;;  %v839_v4 = vmul.f32 1.0614054, %v7994_v28  ;;  %v4707_v53 = vadd.f32 1.4214138, %v4675_v15  ;;  %v11415_v43 = vld [vmem:[#allocation10_spill] sm:$0xff] }
 0x226   : > { %v4738_v47 = vmul.f32 %v7966_v14, %v4706_v42  ;;  %v2447_v24 = vadd.f32 %v2415_v20, %v2346_v39  ;;  %v1412_v49 = vadd.f32 1.0, %v1380_v59  ;;  %5718 = vpow2.f32 %v4964_v29  ;;  %v8048_v39 = vld [vmem:[#allocation2 + $0x15b] sm:$0xff] }
 0x227   : > { %v8009_v57 = vadd.f32 %v11412_v56, %v2446_v7  ;;  %v1015_v21 = vmul.f32 %v7827_v46, %v983_v31  ;;  %v8013_v48 = vmul.f32 0.70710677, %v7953_v54  ;;  %v4739_v26 = vmul.f32 %v7978_v38, %v4707_v53  ;;  %v11417_v7 = vld [vmem:[#allocation11_spill] sm:$0xff]  ;;  %v11418_v59 = vld [vmem:[#allocation17_spill] sm:$0xff]  ;;  %v11420_v53 = vld [vmem:[#allocation26_spill] sm:$0xff] }
 0x228   : > { %v4770_v1 = vadd.f32 -0.28449672, %v4738_v47  ;;  %v8017_v34 = vadd.f32 %v11412_v56, %v2447_v24  ;;  %v8020_v62 = vmul.f32 %v1412_v49, %v7939_v3  ;;  %v8024_v29 = vadd.f32 %v7918_v6, %v7925_v8  ;;  %v11416_v8 = vld [vmem:[#allocation37_spill] sm:$0xff] }
 0x229   : > { %11413 = vst [vmem:[#allocation50_spill] sm:$0xff] %v8013_v48  ;;  %v8027_v20 = vmul.f32 0.70710677, %v8009_v57  ;;  %v1047_v5 = vadd.f32 0.2548296, %v1015_v21  ;;  %v8032_v18 = vadd.f32 %v7932_v12, %v11415_v43  ;;  %v1857_v3 = vadd.f32 %v11416_v8, %v7928_v25 }
 0x22a   : > { %11414 = vst [vmem:[#allocation57_spill] sm:$0xff] %v8020_v62  ;;  %v871_v37 = vadd.f32 -1.4531521, %v839_v4  ;;  %v4771_v40 = vadd.f32 -0.28449672, %v4739_v26  ;;  %v4802_v61 = vmul.f32 %v7966_v14, %v4770_v1  ;;  %1549 = vst [vmem:[#allocation2 + $0x152] sm:$0xff] %v8020_v62  ;;  %v8055_v4 = vadd.f32 %v11418_v59, %v11417_v7 }
 0x22b   : > { %v8035_v2 = vmul.f32 0.70710677, %v8017_v34  ;;  %v8039_v6 = vand.u32 2147483647, %v8027_v20  ;;  %v1127_v13 = vsub.f32 0.0, %v7843_v0  ;;  %v1079_v49 = vmul.f32 %v7827_v46, %v1047_v5 }
 0x22c   : > { %v8045_v15 = vand.u32 2147483647, %v8013_v48  ;;  %v4803_v42 = vmul.f32 %v7978_v38, %v4771_v40  ;;  %v4834_v12 = vadd.f32 0.2548296, %v4802_v61  ;;  %v8060_v25 = vld [vmem:[%s11068_s3 + $0x5] ss:$0 sm:$0xff]  ;;  %v903_v56 = vmul.f32 %v7994_v28, %v871_v37 }
 0x22d   : > { %v8051_v31 = vand.u32 2147483647, %v8035_v2  ;;  %11419 = vst [vmem:[#allocation10_spill] sm:$0xff] %v8060_v25  ;;  %v2028_v47 = vmul.f32 %v8060_v25, %v11420_v53  ;;  %v2611_v24 = vmul.f32 0.3275911, %v8039_v6  ;;  %v1159_v37 = vmul.f32 %v1127_v13, %v7843_v0 }
 0x22e   : > { %v4835_v21 = vadd.f32 0.2548296, %v4803_v42  ;;  %v4866_v26 = vmul.f32 %v7966_v14, %v4834_v12  ;;  %v8071_v1 = vld [vmem:[%s11068_s3 + $0x9] ss:$0 sm:$0xff]  ;;  %v5717_v43 = vpop.eup %5716  ;;  %v8081_v46 = vld [vmem:[%s11068_s3 + $0xa] ss:$0 sm:$0xff]  ;;  %v1239_v50 = vmul.f32 %v5715_v51, %v1079_v49 }
 0x22f   : > { %11421 = vst [vmem:[#allocation37_spill] sm:$0xff] %v8071_v1  ;;  %v8075_v40 = vmul.f32 %v8071_v1, %v11420_v53  ;;  %v2612_v61 = vmul.f32 0.3275911, %v8051_v31  ;;  %v8085_v14 = vmul.f32 %v8081_v46, %v8048_v39  ;;  %v2643_v5 = vadd.f32 1.0, %v2611_v24 }
 0x230   : > { %v694_v8 = vmul.f32 0.3275911, %v8045_v15  ;;  %v4386_v42 = vmul.f32 0.5, %v7829_v23  ;;  %v4867_v12 = vmul.f32 %v7978_v38, %v4835_v21  ;;  %v5026_v7 = vmul.f32 %v5717_v43, %v4866_v26  ;;  %v5719_v9 = vpop.eup %5718  ;;  %v8097_v23 = vpop.f32.mrb[14].mxu0 }
 0x231   : > { %v2644_v59 = vadd.f32 1.0, %v2612_v61  ;;  %v4387_v22 = vmul.f32 0.5, %v7834_v63  ;;  %5720 = vrcp.f32 %v2643_v5  ;;  %v8092_v60 = vld [vmem:[#allocation2 + $0x151] sm:$0xff]  ;;  %v935_v52 = vadd.f32 1.4214138, %v903_v56  ;;  %v8095_v0 = vld [vmem:[#allocation2 + $0x159] sm:$0xff] }
 0x232   : > { %v5027_v48 = vmul.f32 %v5719_v9, %v4867_v12  ;;  %v5058_v24 = vsub.f32 1.0, %v5026_v7  ;;  %vm5090_vm15 = vcmp.ge.f32.partialorder %v7837_v16, 0.0  ;;  %11422 = vst [vmem:[#allocation11_spill] sm:$0xff] %v8095_v0  ;;  %11423 = vst [vmem:[#allocation17_spill] sm:$0xff] %v8097_v23  ;;  %vm5091_vm0 = vcmp.ge.f32.partialorder %v7846_v32, 0.0  ;;  %v11424_v63 = vld [vmem:[#allocation15_spill] sm:$0xff] }
 0x233   : > { %5722 = vrcp.f32 %v2644_v59  ;;  %v2027_v38 = vmul.f32 %v8060_v25, %v8020_v62  ;;  %vm1303_vm1 = vcmp.ge.f32.partialorder %v11424_v63, 0.0  ;;  %v1218_v13 = vmul.f32 1.442695, %v1159_v37  ;;  %v8107_v56 = vld [vmem:[%s11068_s3 + $0x4] ss:$0 sm:$0xff] }
 0x234   : > { %v726_v21 = vadd.f32 1.0, %v694_v8  ;;  %v5059_v51 = vsub.f32 1.0, %v5027_v48  ;;  %v5122_v49 = vsub.f32 0.0, %v5058_v24  ;;  %v3027_v9 = vsub.f32 0.0, %v8039_v6  ;;  %11425 = vst [vmem:[#allocation26_spill] sm:$0xff] %v8107_v56 }
 0x235   : > { %v1926_v26 = vmul.f32 %v8107_v56, %v8092_v60  ;;  %v1927_v61 = vmul.f32 %v8107_v56, %v8095_v0  ;;  %v2329_v43 = vmul.f32 %v8071_v1, %v8020_v62  ;;  %v1271_v5 = vsub.f32 1.0, %v1239_v50  ;;  %v8122_v7 = vld [vmem:[%s11068_s3 + $0x8] ss:$0 sm:$0xff]  ;;  %v8127_v50 = vld [vmem:[#allocation2 + $0x153] sm:$0xff] }
 0x236   : > { %v967_v48 = vmul.f32 %v7994_v28, %v935_v52  ;;  %v5123_v37 = vsub.f32 0.0, %v5059_v51  ;;  %v5154_v8 = vsel %vm5090_vm15, %v5058_v24, %v5122_v49  ;;  %v2228_v59 = vmul.f32 %v8122_v7, %v8092_v60 }
 0x237   : > { %v1958_v12 = vadd.f32 %v1926_v26, %v8024_v29  ;;  %v5186_v23 = vadd.f32 1.0, %v5154_v8  ;;  %v3028_v56 = vsub.f32 0.0, %v8051_v31  ;;  %v1959_v52 = vadd.f32 %v1927_v61, %v1857_v3 }
 0x238   : > { %v2229_v16 = vmul.f32 %v8122_v7, %v8095_v0  ;;  %v5155_v29 = vsel %vm5091_vm0, %v5059_v51, %v5123_v37  ;;  %v3059_v24 = vmul.f32 %v3027_v9, %v8039_v6  ;;  %v2260_v26 = vadd.f32 %v2228_v59, %v8032_v18  ;;  %v8170_v37 = vpop.f32.mrb[14].mxu1 }
 0x239   : > { %v8134_v49 = vadd.f32 %v2027_v38, %v1958_v12  ;;  %v5187_v1 = vadd.f32 1.0, %v5155_v29  ;;  %v5218_v8 = vmul.f32 %v5186_v23, %v4386_v42  ;;  %v8137_v25 = vadd.f32 %v2028_v47, %v1959_v52  ;;  %11427 = vst [vmem:[#allocation15_spill] sm:$0xff] %v8170_v37 }
 0x23a   : > { %v2261_v62 = vadd.f32 %v2229_v16, %v8055_v4  ;;  %v2361_v3 = vadd.f32 %v2329_v43, %v2260_v26  ;;  %v2430_v61 = vmul.f32 %v8081_v46, %v8127_v50  ;;  %v1335_v0 = vsub.f32 0.0, %v1271_v5 }
 0x23b   : > { %v999_v32 = vadd.f32 -0.28449672, %v967_v48  ;;  %v8142_v51 = vpop.eup %5720  ;;  %v5219_v6 = vmul.f32 %v5187_v1, %v4387_v22  ;;  %5250 = vst [vmem:[%s6998_s23 + $0x8] sm:$0xff] %v5218_v8  ;;  %v3060_v38 = vmul.f32 %v3028_v56, %v8051_v31  ;;  %5724 = vpow2.f32 %v1218_v13  ;;  %v11426_v1 = vld [vmem:[#allocation27_spill] sm:$0xff] }
 0x23c   : > { %v2362_v18 = vadd.f32 %v8075_v40, %v2261_v62  ;;  %v2739_v4 = vmul.f32 1.0614054, %v8142_v51  ;;  %v2462_v42 = vadd.f32 %v2430_v61, %v2361_v3  ;;  %v1367_v23 = vsel %vm1303_vm1, %v1271_v5, %v1335_v0  ;;  %v8160_v40 = vld [vmem:[%s11069_s4] ss:$0 sm:$0xff]  ;;  %v11428_v3 = vld [vmem:[#allocation43_spill] sm:$0xff] }
 0x23d   : > { %v8147_v47 = vpop.eup %5722  ;;  %v1031_v9 = vmul.f32 %v7994_v28, %v999_v32  ;;  %5251 = vst [vmem:[%s6998_s23 + $0x18] sm:$0xff] %v5219_v6  ;;  %v599_v31 = vmul.f32 0.5, %v11426_v1  ;;  %v1399_v56 = vadd.f32 1.0, %v1367_v23  ;;  %5726 = vrcp.f32 %v726_v21 }
 0x23e   : > { %v2740_v43 = vmul.f32 1.0614054, %v8147_v47  ;;  %v2463_v22 = vadd.f32 %v8085_v14, %v2362_v18  ;;  %v2771_v62 = vadd.f32 -1.4531521, %v2739_v4  ;;  %v8163_v13 = vadd.f32 %v8160_v40, %v2462_v42 }
 0x23f   : > { %v1063_v0 = vadd.f32 0.2548296, %v1031_v9  ;;  %v3097_v5 = vmul.f32 1.442695, %v3059_v24  ;;  %v8168_v14 = vmul.f32 %v1399_v56, %v599_v31  ;;  %v8174_v12 = vadd.f32 %v7876_v17, %v7894_v27  ;;  %v11430_v9 = vld [vmem:[#allocation21_spill] sm:$0xff] }
 0x240   : > { %v2772_v63 = vadd.f32 -1.4531521, %v2740_v43  ;;  %v8166_v48 = vadd.f32 %v8160_v40, %v2463_v22  ;;  %v2803_v59 = vmul.f32 %v8142_v51, %v2771_v62  ;;  %v3099_v52 = vmul.f32 1.442695, %v3060_v38 }
 0x241   : > { %v8178_v16 = vmul.f32 0.70710677, %v8163_v13  ;;  %v8182_v21 = vadd.f32 %v7906_v55, %v7903_v35  ;;  %v8186_v29 = vmul.f32 %v7899_v33, %v7623_v36  ;;  %1529 = vst [vmem:[#allocation2 + $0xb2] sm:$0xff] %v8168_v14  ;;  %v1095_v8 = vmul.f32 %v7994_v28, %v1063_v0 }
 0x242   : > { %v2804_v24 = vmul.f32 %v8147_v47, %v2772_v63  ;;  %v8190_v26 = vmul.f32 0.70710677, %v8166_v48  ;;  %v2835_v17 = vadd.f32 1.4214138, %v2803_v59  ;;  %v8197_v35 = vadd.f32 %v7616_v19, %v11428_v3 }
 0x243   : > { %v2595_v27 = vand.u32 2147483647, %v8178_v16  ;;  %v3686_v36 = vmul.f32 %v7793_v11, %v7807_v45  ;;  %5728 = vpow2.f32 %v3097_v5  ;;  %v3986_v32 = vmul.f32 %v7628_v44, %v7807_v45  ;;  %v8217_v44 = vld [vmem:[%s11068_s3 + $0x6] ss:$0 sm:$0xff]  ;;  %v3666_v5 = vld [vmem:[#allocation2 + $0x12c] sm:$0xff] }
 0x244   : > { %v2836_v55 = vadd.f32 1.4214138, %v2804_v24  ;;  %v2596_v61 = vand.u32 2147483647, %v8190_v26  ;;  %v2867_v6 = vmul.f32 %v8142_v51, %v2835_v17  ;;  %5730 = vpow2.f32 %v3099_v52 }
 0x245   : > { %v2627_v38 = vmul.f32 0.3275911, %v2595_v27  ;;  %v5725_v18 = vpop.eup %5724  ;;  %v1110_v42 = vsub.f32 0.0, %v8045_v15  ;;  %v8208_v23 = vadd.f32 %v3686_v36, %v7799_v58  ;;  %v8212_v43 = vmul.f32 %v11430_v9, %v7921_v30  ;;  %v11431_v58 = vld [vmem:[#allocation38_spill] sm:$0xff] }
 0x246   : > { %v2868_v28 = vmul.f32 %v8147_v47, %v2836_v55  ;;  %v2628_v4 = vmul.f32 0.3275911, %v2596_v61  ;;  %v2899_v22 = vadd.f32 -0.28449672, %v2867_v6  ;;  %v1255_v45 = vmul.f32 %v5725_v18, %v1095_v8  ;;  %v11433_v55 = vld [vmem:[#allocation14_spill] sm:$0xff]  ;;  %v11434_v6 = vld [vmem:[#allocation9_spill] sm:$0xff] }
 0x247   : > { %11429 = vst [vmem:[#allocation27_spill] sm:$0xff] %v8208_v23  ;;  %v2659_v1 = vadd.f32 1.0, %v2627_v38  ;;  %v8221_v31 = vmul.f32 %v8217_v44, %v7921_v30  ;;  %v8224_v0 = vadd.f32 %v3986_v32, %v11431_v58  ;;  %v8226_v63 = vpop.eup %5726  ;;  %v8230_v24 = vmul.f32 0.70710677, %v8197_v35 }
 0x248   : > { %v2900_v56 = vadd.f32 -0.28449672, %v2868_v28  ;;  %v2660_v62 = vadd.f32 1.0, %v2628_v4  ;;  %v2931_v59 = vmul.f32 %v8142_v51, %v2899_v22  ;;  %v1287_v52 = vsub.f32 1.0, %v1255_v45 }
 0x249   : > { %11432 = vst [vmem:[#allocation43_spill] sm:$0xff] %v8224_v0  ;;  %5732 = vrcp.f32 %v2659_v1  ;;  %v8234_v17 = vmul.f32 %v7899_v33, %v11420_v53  ;;  %v1142_v8 = vmul.f32 %v1110_v42, %v8045_v15  ;;  %v3043_v36 = vsub.f32 0.0, %v2595_v27 }
 0x24a   : > { %v2932_v30 = vmul.f32 %v8147_v47, %v2900_v56  ;;  %5734 = vrcp.f32 %v2660_v62  ;;  %v2963_v3 = vadd.f32 0.2548296, %v2931_v59  ;;  %v615_v32 = vmul.f32 0.5, %v11433_v55 }
 0x24b   : > { %vm1319_vm2 = vcmp.ge.f32.partialorder %v11434_v6, 0.0  ;;  %v3702_v38 = vmul.f32 %v7793_v11, %v3666_v5  ;;  %v1351_v28 = vsub.f32 0.0, %v1287_v52  ;;  %v822_v4 = vmul.f32 1.0614054, %v8226_v63 }
 0x24c   : > { %v2964_v18 = vadd.f32 0.2548296, %v2932_v30  ;;  %v2515_v53 = vmul.f32 0.5, %v8009_v57  ;;  %v2995_v22 = vmul.f32 %v8142_v51, %v2963_v3  ;;  %v3044_v1 = vsub.f32 0.0, %v2596_v61  ;;  %v11436_v3 = vld [vmem:[#allocation6_spill] sm:$0xff] }
 0x24d   : > { %v8245_v45 = vand.u32 2147483647, %v8230_v24  ;;  %v5729_v15 = vpop.eup %5728  ;;  %v1383_v56 = vsel %vm1319_vm2, %v1287_v52, %v1351_v28  ;;  %v854_v62 = vadd.f32 -1.4531521, %v822_v4  ;;  %v1184_v58 = vmul.f32 1.442695, %v1142_v8 }
 0x24e   : > { %v2996_v42 = vmul.f32 %v8147_v47, %v2964_v18  ;;  %v5731_v59 = vpop.eup %5730  ;;  %v3155_v11 = vmul.f32 %v5729_v15, %v2995_v22  ;;  %v3075_v5 = vmul.f32 %v3043_v36, %v2595_v27  ;;  %v1415_v30 = vadd.f32 1.0, %v1383_v56 }
 0x24f   : > { %v710_v55 = vmul.f32 0.3275911, %v8245_v45  ;;  %v886_v57 = vmul.f32 %v8226_v63, %v854_v62  ;;  %v8251_v51 = vadd.f32 %v3702_v38, %v7975_v41  ;;  %v8255_v37 = vadd.f32 %v7616_v19, %v11436_v3  ;;  %v11438_v3 = vld [vmem:[#allocation23_spill] sm:$0xff] }
 0x250   : > { %v3156_v6 = vmul.f32 %v5731_v59, %v2996_v42  ;;  %v3187_v47 = vsub.f32 1.0, %v3155_v11  ;;  %v3076_v52 = vmul.f32 %v3044_v1, %v2596_v61  ;;  %v8257_v18 = vmul.f32 %v1415_v30, %v615_v32  ;;  %v8275_v59 = vpop.f32.mrb[15].mxu0 }
 0x251   : > { %11435 = vst [vmem:[#allocation21_spill] sm:$0xff] %v8251_v51  ;;  %v742_v8 = vadd.f32 1.0, %v710_v55  ;;  %vm3219_vm3 = vcmp.ge.f32.partialorder %v8027_v20, 0.0  ;;  %v918_v27 = vadd.f32 1.4214138, %v886_v57  ;;  %vm3220_vm4 = vcmp.ge.f32.partialorder %v8035_v2, 0.0 }
 0x252   : > { %v3188_v28 = vsub.f32 1.0, %v3156_v6  ;;  %v8261_v36 = vmul.f32 0.70710677, %v8255_v37  ;;  %v3251_v41 = vsub.f32 0.0, %v3187_v47  ;;  %v3129_v38 = vmul.f32 1.442695, %v3075_v5 }
 0x253   : > { %v8263_v4 = vpop.eup %5732  ;;  %1553 = vst [vmem:[#allocation2 + $0x172] sm:$0xff] %v8257_v18  ;;  %5736 = vpow2.f32 %v1184_v58  ;;  %v950_v20 = vmul.f32 %v8226_v63, %v918_v27  ;;  %v3131_v15 = vmul.f32 1.442695, %v3076_v52  ;;  %11437 = vst [vmem:[#allocation38_spill] sm:$0xff] %v8275_v59  ;;  %v2516_v11 = vmul.f32 0.5, %v8017_v34 }
 0x254   : > { %v8267_v19 = vpop.eup %5734  ;;  %v3252_v61 = vsub.f32 0.0, %v3188_v28  ;;  %v2755_v32 = vmul.f32 1.0614054, %v8263_v4  ;;  %5738 = vrcp.f32 %v742_v8  ;;  %v3283_v22 = vsel %vm3219_vm3, %v3187_v47, %v3251_v41 }
 0x255   : > { %v2756_v1 = vmul.f32 1.0614054, %v8267_v19  ;;  %v8273_v42 = vand.u32 2147483647, %v8261_v36  ;;  %v3315_v56 = vadd.f32 1.0, %v3283_v22  ;;  %v8282_v47 = vadd.f32 %v11438_v3, %v8174_v12  ;;  %v11447_v3 = vld [vmem:[#allocation55_spill] sm:$0xff] }
 0x256   : > { %v3284_v2 = vsel %vm3220_vm4, %v3188_v28, %v3252_v61  ;;  %v2787_v62 = vadd.f32 -1.4531521, %v2755_v32  ;;  %v982_v58 = vadd.f32 -0.28449672, %v950_v20  ;;  %v8287_v8 = vmul.f32 %v11430_v9, %v8048_v39  ;;  %v8294_v12 = vld [vmem:[%s11067_s2] ss:$0 sm:$0xff] }
 0x257   : > { %v3316_v5 = vadd.f32 1.0, %v3284_v2  ;;  %v2788_v30 = vadd.f32 -1.4531521, %v2756_v1  ;;  %v697_v55 = vmul.f32 0.3275911, %v8273_v42  ;;  %v3347_v6 = vmul.f32 %v3315_v56, %v2515_v53  ;;  %v11439_v61 = vld [vmem:[#allocation19_spill] sm:$0xff] }
 0x258   : > { %v2819_v57 = vmul.f32 %v8263_v4, %v2787_v62  ;;  %v1014_v52 = vmul.f32 %v8226_v63, %v982_v58  ;;  %5740 = vpow2.f32 %v3129_v38  ;;  %v8298_v32 = vadd.f32 %v8294_v12, %v11439_v61 }
 0x259   : > { %v3348_v28 = vmul.f32 %v3316_v5, %v2516_v11  ;;  %v2820_v34 = vmul.f32 %v8267_v19, %v2788_v30  ;;  %v729_v27 = vadd.f32 1.0, %v697_v55  ;;  %3379 = vst [vmem:[%s6998_s23 + $0x60] sm:$0xff] %v3347_v6  ;;  %3411 = vst [vmem:[#allocation2 + $0x7a] sm:$0xff] %v3347_v6  ;;  %v8302_v20 = vmul.f32 %v8217_v44, %v8048_v39  ;;  %v11441_v11 = vld [vmem:[#allocation50_spill] sm:$0xff] }
 0x25a   : > { %v2851_v53 = vadd.f32 1.4214138, %v2819_v57  ;;  %v1046_v41 = vadd.f32 0.2548296, %v1014_v52  ;;  %11440 = vst [vmem:[#allocation14_spill] sm:$0xff] %v8298_v32  ;;  %5742 = vpow2.f32 %v3131_v15  ;;  %v598_v38 = vmul.f32 0.5, %v7953_v54 }
 0x25b   : > { %3380 = vst [vmem:[%s6998_s23 + $0x70] sm:$0xff] %v3348_v28  ;;  %3412 = vst [vmem:[#allocation2 + $0x82] sm:$0xff] %v3348_v28  ;;  %v2852_v22 = vadd.f32 1.4214138, %v2820_v34  ;;  %v1126_v56 = vsub.f32 0.0, %v8245_v45  ;;  %5744 = vrcp.f32 %v729_v27  ;;  %v1709_v58 = vmul.f32 %v7899_v33, %v7857_v10  ;;  %v11445_v6 = vld [vmem:[#allocation18_spill] sm:$0xff] }
 0x25c   : > { %v2883_v1 = vmul.f32 %v8263_v4, %v2851_v53  ;;  %v1078_v2 = vmul.f32 %v8226_v63, %v1046_v41  ;;  %vm1302_vm5 = vcmp.ge.f32.partialorder %v11441_v11, 0.0  ;;  %v8314_v5 = vmul.f32 0.70710677, %v8298_v32  ;;  %v8321_v54 = vld [vmem:[%s11068_s3 + $0x11] ss:$0 sm:$0xff]  ;;  %v11443_v63 = vld [vmem:[#allocation54_spill] sm:$0xff] }
 0x25d   : > { %v5737_v62 = vpop.eup %5736  ;;  %v2884_v39 = vmul.f32 %v8267_v19, %v2852_v22  ;;  %v8325_v30 = vmul.f32 %v8321_v54, %v11443_v63  ;;  %v8329_v57 = vadd.f32 %v8294_v12, %v11445_v6  ;;  %v8333_v52 = vmul.f32 %v8321_v54, %v11447_v3  ;;  %v11449_v53 = vld [vmem:[#allocation20_spill] sm:$0xff] }
 0x25e   : > { %11442 = vst [vmem:[#allocation9_spill] sm:$0xff] %v8314_v5  ;;  %v8316_v15 = vpop.eup %5738  ;;  %v2915_v55 = vadd.f32 -0.28449672, %v2883_v1  ;;  %v1238_v10 = vmul.f32 %v5737_v62, %v1078_v2  ;;  %v8337_v27 = vand.u32 2147483647, %v8314_v5  ;;  %v8341_v41 = vmul.f32 %v11449_v53, %v11443_v63 }
 0x25f   : > { %11444 = vst [vmem:[#allocation6_spill] sm:$0xff] %v8325_v30  ;;  %11446 = vst [vmem:[#allocation23_spill] sm:$0xff] %v8329_v57  ;;  %v2916_v28 = vadd.f32 -0.28449672, %v2884_v39  ;;  %v838_v34 = vmul.f32 1.0614054, %v8316_v15  ;;  %v1158_v1 = vmul.f32 %v1126_v56, %v8245_v45  ;;  %v8347_v2 = vmul.f32 %v11449_v53, %v11447_v3 }
 0x260   : > { %11448 = vst [vmem:[#allocation19_spill] sm:$0xff] %v8333_v52  ;;  %11450 = vst [vmem:[#allocation50_spill] sm:$0xff] %v8341_v41  ;;  %v2947_v61 = vmul.f32 %v8263_v4, %v2915_v55  ;;  %v1270_v22 = vsub.f32 1.0, %v1238_v10  ;;  %v713_v6 = vmul.f32 0.3275911, %v8337_v27  ;;  %v11452_v52 = vld [vmem:[#allocation16_spill] sm:$0xff] }
 0x261   : > { %11451 = vst [vmem:[#allocation54_spill] sm:$0xff] %v8347_v2  ;;  %v2948_v62 = vmul.f32 %v8267_v19, %v2916_v28  ;;  %v870_v39 = vadd.f32 -1.4531521, %v838_v34  ;;  %v11453_v30 = vld [vmem:[#allocation56_spill] sm:$0xff]  ;;  %v8354_v41 = vmul.f32 0.70710677, %v8329_v57 }
 0x262   : > { %v1608_v51 = vmul.f32 %v11453_v30, %v11452_v52  ;;  %v2979_v59 = vadd.f32 0.2548296, %v2947_v61  ;;  %v1334_v63 = vsub.f32 0.0, %v1270_v22  ;;  %v11455_v55 = vld [vmem:[#allocation48_spill] sm:$0xff]  ;;  %v745_v3 = vadd.f32 1.0, %v713_v6  ;;  %v5741_v53 = vpop.eup %5740 }
 0x263   : > { %11454 = vst [vmem:[#allocation18_spill] sm:$0xff] %v8354_v41  ;;  %v1609_v45 = vmul.f32 %v11453_v30, %v11455_v55  ;;  %v2980_v56 = vadd.f32 0.2548296, %v2948_v62  ;;  %v902_v10 = vmul.f32 %v8316_v15, %v870_v39  ;;  %v1216_v2 = vmul.f32 1.442695, %v1158_v1 }
 0x264   : > { %v3011_v28 = vmul.f32 %v8263_v4, %v2979_v59  ;;  %v1366_v34 = vsel %vm1302_vm5, %v1270_v22, %v1334_v63  ;;  %v8363_v52 = vand.u32 2147483647, %v8354_v41  ;;  %v5743_v61 = vpop.eup %5742  ;;  %5746 = vrcp.f32 %v745_v3  ;;  %v11456_v63 = vld [vmem:[#allocation42_spill] sm:$0xff] }
 0x265   : > { %v3012_v0 = vmul.f32 %v8267_v19, %v2980_v56  ;;  %v1398_v23 = vadd.f32 1.0, %v1366_v34  ;;  %v934_v57 = vadd.f32 1.4214138, %v902_v10  ;;  %v8366_v62 = vpop.eup %5744  ;;  %v1741_v39 = vadd.f32 %v1709_v58, %v1608_v51 }
 0x266   : > { %v3171_v6 = vmul.f32 %v5741_v53, %v3011_v28  ;;  %v1113_v55 = vsub.f32 0.0, %v8273_v42  ;;  %v696_v4 = vmul.f32 0.3275911, %v8363_v52  ;;  %v825_v1 = vmul.f32 1.0614054, %v8366_v62 }
 0x267   : > { %v3172_v59 = vmul.f32 %v5743_v61, %v3012_v0  ;;  %v8370_v11 = vmul.f32 %v1398_v23, %v598_v38  ;;  %v966_v22 = vmul.f32 %v8316_v15, %v934_v57  ;;  %v1810_v19 = vmul.f32 %v11430_v9, %v11456_v63 }
 0x268   : > { %v3203_v56 = vsub.f32 1.0, %v3171_v6  ;;  %v8377_v10 = vmul.f32 0.5, %v8197_v35  ;;  %v728_v51 = vadd.f32 1.0, %v696_v4  ;;  %v1742_v58 = vadd.f32 %v8186_v29, %v1609_v45  ;;  %v11457_v4 = vld [vmem:[#allocation46_spill] sm:$0xff] }
 0x269   : > { %v2112_v3 = vmul.f32 %v8217_v44, %v11456_v63  ;;  %v3204_v0 = vsub.f32 1.0, %v3172_v59  ;;  %1528 = vst [vmem:[#allocation2 + $0xaa] sm:$0xff] %v8370_v11  ;;  %5748 = vpow2.f32 %v1216_v2  ;;  %v1842_v23 = vadd.f32 %v1810_v19, %v1741_v39  ;;  %v11459_v63 = vld [vmem:[#allocation57_spill] sm:$0xff] }
 0x26a   : > { %v3267_v38 = vsub.f32 0.0, %v3203_v56  ;;  %v998_v57 = vadd.f32 -0.28449672, %v966_v22  ;;  %v857_v53 = vadd.f32 -1.4531521, %v825_v1  ;;  %vm3235_vm6 = vcmp.ge.f32.partialorder %v8178_v16, 0.0 }
 0x26b   : > { %v3268_v28 = vsub.f32 0.0, %v3204_v0  ;;  %v1145_v35 = vmul.f32 %v1113_v55, %v8273_v42  ;;  %5750 = vrcp.f32 %v728_v51  ;;  %vm3236_vm7 = vcmp.ge.f32.partialorder %v8190_v26, 0.0  ;;  %v8391_v22 = vld [vmem:[#allocation2 + $0xb3] sm:$0xff]  ;;  %v11460_v51 = vld [vmem:[#allocation10_spill] sm:$0xff] }
 0x26c   : > { %v3299_v29 = vsel %vm3235_vm6, %v3203_v56, %v3267_v38  ;;  %v1030_v45 = vmul.f32 %v8316_v15, %v998_v57  ;;  %v889_v34 = vmul.f32 %v8366_v62, %v857_v53  ;;  %v2531_v61 = vmul.f32 0.5, %v8163_v13  ;;  %11458 = vst [vmem:[#allocation55_spill] sm:$0xff] %v8391_v22  ;;  %v11463_v53 = vld [vmem:[#allocation37_spill] sm:$0xff] }
 0x26d   : > { %v2532_v2 = vmul.f32 0.5, %v8166_v48  ;;  %v3300_v39 = vsel %vm3236_vm7, %v3204_v0, %v3268_v28  ;;  %v3331_v6 = vadd.f32 1.0, %v3299_v29  ;;  %v2144_v59 = vadd.f32 %v2112_v3, %v11457_v4 }
 0x26e   : > { %v3332_v16 = vadd.f32 1.0, %v3300_v39  ;;  %v1062_v42 = vadd.f32 0.2548296, %v1030_v45  ;;  %v921_v55 = vadd.f32 1.4214138, %v889_v34  ;;  %v8393_v26 = vpop.eup %5746  ;;  %v8397_v1 = vmul.f32 %v11453_v30, %v8092_v60  ;;  %v11465_v34 = vld [vmem:[#allocation26_spill] sm:$0xff] }
 0x26f   : > { %v8401_v13 = vmul.f32 %v7899_v33, %v11459_v63  ;;  %v3363_v48 = vmul.f32 %v3331_v6, %v2531_v61  ;;  %v1190_v19 = vmul.f32 1.442695, %v1145_v35  ;;  %v2014_v3 = vmul.f32 %v11460_v51, %v8168_v14  ;;  %v11464_v35 = vld [vmem:[#allocation47_spill] sm:$0xff] }
 0x270   : > { %v3364_v56 = vmul.f32 %v3332_v16, %v2532_v2  ;;  %v8405_v0 = vld [vmem:[#allocation2 + $0xa9] sm:$0xff]  ;;  %v8407_v38 = vld [vmem:[#allocation2 + $0xb1] sm:$0xff]  ;;  %v1843_v57 = vadd.f32 %v8212_v43, %v1742_v58  ;;  %v1094_v60 = vmul.f32 %v8316_v15, %v1062_v42  ;;  %v2316_v33 = vmul.f32 %v11463_v53, %v8168_v14 }
 0x271   : > { %11461 = vst [vmem:[#allocation20_spill] sm:$0xff] %v8405_v0  ;;  %11462 = vst [vmem:[#allocation16_spill] sm:$0xff] %v8407_v38  ;;  %v2417_v28 = vmul.f32 %v8081_v46, %v8391_v22  ;;  %v2145_v29 = vadd.f32 %v8221_v31, %v11464_v35  ;;  %v953_v45 = vmul.f32 %v8366_v62, %v921_v55  ;;  %vm1318_vm8 = vcmp.ge.f32.partialorder %v8230_v24, 0.0  ;;  %v8431_v6 = vld [vmem:[#allocation2 + $0xab] sm:$0xff] }
 0x272   : > { %3395 = vst [vmem:[%s6998_s23 + $0x160] sm:$0xff] %v3363_v48  ;;  %3427 = vst [vmem:[#allocation2 + $0x13a] sm:$0xff] %v3363_v48  ;;  %v1912_v43 = vmul.f32 %v11465_v34, %v8405_v0  ;;  %v1913_v15 = vmul.f32 %v11465_v34, %v8407_v38  ;;  %v841_v58 = vmul.f32 1.0614054, %v8393_v26  ;;  %v2214_v2 = vmul.f32 %v8122_v7, %v8405_v0 }
 0x273   : > { %3396 = vst [vmem:[%s6998_s23 + $0x170] sm:$0xff] %v3364_v56  ;;  %3428 = vst [vmem:[#allocation2 + $0x142] sm:$0xff] %v3364_v56  ;;  %v5749_v61 = vpop.eup %5748  ;;  %v2215_v31 = vmul.f32 %v8122_v7, %v8407_v38  ;;  %5752 = vpow2.f32 %v1190_v19  ;;  %v1129_v39 = vsub.f32 0.0, %v8337_v27  ;;  %v2013_v42 = vmul.f32 %v11460_v51, %v8370_v11 }
 0x274   : > { %v1944_v4 = vadd.f32 %v1912_v43, %v1842_v23  ;;  %v1945_v16 = vadd.f32 %v1913_v15, %v1843_v57  ;;  %v1254_v55 = vmul.f32 %v5749_v61, %v1094_v60  ;;  %v2246_v35 = vadd.f32 %v2214_v2, %v2144_v59 }
 0x275   : > { %v8435_v63 = vpop.eup %5750  ;;  %v2247_v41 = vadd.f32 %v2215_v31, %v2145_v29  ;;  %v2315_v0 = vmul.f32 %v11463_v53, %v8370_v11  ;;  %v985_v32 = vadd.f32 -0.28449672, %v953_v45  ;;  %v873_v22 = vadd.f32 -1.4531521, %v841_v58  ;;  %v11466_v45 = vld [vmem:[#allocation44_spill] sm:$0xff] }
 0x276   : > { %v8439_v38 = vadd.f32 %v2013_v42, %v1944_v4  ;;  %v8441_v19 = vadd.f32 %v2014_v3, %v1945_v16  ;;  %v1286_v5 = vsub.f32 1.0, %v1254_v55  ;;  %v2416_v43 = vmul.f32 %v8081_v46, %v8431_v6 }
 0x277   : > { %v2347_v23 = vadd.f32 %v2315_v0, %v2246_v35  ;;  %v2348_v57 = vadd.f32 %v2316_v33, %v2247_v41  ;;  %v1017_v60 = vmul.f32 %v8366_v62, %v985_v32  ;;  %v905_v29 = vmul.f32 %v8393_v26, %v873_v22  ;;  %v8455_v41 = vld [vmem:[%s11068_s3 + $0x10] ss:$0 sm:$0xff] }
 0x278   : > { %v1350_v59 = vsub.f32 0.0, %v1286_v5  ;;  %v824_v61 = vmul.f32 1.0614054, %v8435_v63  ;;  %v8450_v2 = vadd.f32 %v8294_v12, %v11466_v45  ;;  %11467 = vst [vmem:[#allocation56_spill] sm:$0xff] %v8455_v41  ;;  %v3902_v22 = vmul.f32 %v8321_v54, %v3363_v48 }
 0x279   : > { %v3765_v15 = vld [vmem:[#allocation2 + $0x138] sm:$0xff]  ;;  %v2448_v33 = vadd.f32 %v2416_v43, %v2347_v23  ;;  %v2449_v32 = vadd.f32 %v2417_v28, %v2348_v57  ;;  %v1049_v58 = vadd.f32 0.2548296, %v1017_v60  ;;  %v1161_v16 = vmul.f32 %v1129_v39, %v8337_v27 }
 0x27a   : > { %v3766_v3 = vld [vmem:[#allocation2 + $0x140] sm:$0xff]  ;;  %v3801_v0 = vmul.f32 %v8455_v41, %v3765_v15  ;;  %v1382_v4 = vsel %vm1318_vm8, %v1286_v5, %v1350_v59  ;;  %v3903_v57 = vmul.f32 %v8321_v54, %v3364_v56  ;;  %v937_v43 = vadd.f32 1.4214138, %v905_v29  ;;  %v11468_v5 = vld [vmem:[#allocation11_spill] sm:$0xff] }
 0x27b   : > { %v3802_v31 = vmul.f32 %v8455_v41, %v3766_v3  ;;  %v8465_v55 = vadd.f32 %v8160_v40, %v2448_v33  ;;  %v8468_v35 = vadd.f32 %v8160_v40, %v2449_v32  ;;  %v1414_v23 = vadd.f32 1.0, %v1382_v4 }
 0x27c   : > { %v3833_v42 = vadd.f32 %v3801_v0, %v8182_v21  ;;  %v1081_v48 = vmul.f32 %v8366_v62, %v1049_v58  ;;  %v1625_v27 = vmul.f32 %v11453_v30, %v11468_v5  ;;  %v856_v60 = vadd.f32 -1.4531521, %v824_v61 }
 0x27d   : > { %v3834_v28 = vadd.f32 %v3802_v31, %v8282_v47  ;;  %v5753_v24 = vpop.eup %5752  ;;  %v8478_v21 = vmul.f32 0.70710677, %v8465_v55  ;;  %v8483_v59 = vmul.f32 0.70710677, %v8468_v35  ;;  %v8486_v47 = vmul.f32 %v1414_v23, %v8377_v10 }
 0x27e   : > { %v8475_v39 = vadd.f32 %v3902_v22, %v3833_v42  ;;  %v1241_v62 = vmul.f32 %v5753_v24, %v1081_v48  ;;  %v969_v30 = vmul.f32 %v8393_v26, %v937_v43  ;;  %v1222_v29 = vmul.f32 1.442695, %v1161_v16 }
 0x27f   : > { %v8480_v15 = vadd.f32 %v3903_v57, %v3834_v28  ;;  %v8489_v56 = vand.u32 2147483647, %v8478_v21  ;;  %v1112_v45 = vsub.f32 0.0, %v8363_v52  ;;  %v1757_v61 = vadd.f32 %v8401_v13, %v8397_v1  ;;  %1552 = vst [vmem:[#allocation2 + $0x16a] sm:$0xff] %v8486_v47  ;;  %v11471_v28 = vld [vmem:[#allocation12_spill] sm:$0xff] }
 0x280   : > { %11469 = vst [vmem:[#allocation48_spill] sm:$0xff] %v8475_v39  ;;  %v1826_v3 = vmul.f32 %v11430_v9, %v8127_v50  ;;  %v8498_v0 = vand.u32 2147483647, %v8483_v59  ;;  %v8502_v10 = vmul.f32 0.70710677, %v8450_v2  ;;  %v1758_v33 = vadd.f32 %v8234_v17, %v1625_v27 }
 0x281   : > { %11470 = vst [vmem:[#allocation42_spill] sm:$0xff] %v8480_v15  ;;  %v2128_v32 = vmul.f32 %v8217_v44, %v8127_v50  ;;  %v2613_v58 = vmul.f32 0.3275911, %v8489_v56  ;;  %v1273_v31 = vsub.f32 1.0, %v1241_v62  ;;  %vm1305_vm9 = vcmp.ge.f32.partialorder %v8261_v36, 0.0 }
 0x282   : > { %v2614_v1 = vmul.f32 0.3275911, %v8498_v0  ;;  %v1001_v9 = vadd.f32 -0.28449672, %v969_v30  ;;  %v888_v13 = vmul.f32 %v8435_v63, %v856_v60  ;;  %5754 = vpow2.f32 %v1222_v29 }
 0x283   : > { %v2645_v22 = vadd.f32 1.0, %v2613_v58  ;;  %v1337_v4 = vsub.f32 0.0, %v1273_v31  ;;  %v1144_v16 = vmul.f32 %v1112_v45, %v8363_v52  ;;  %v8514_v50 = vand.u32 2147483647, %v8502_v10 }
 0x284   : > { %v2646_v42 = vadd.f32 1.0, %v2614_v1  ;;  %v1033_v17 = vmul.f32 %v8393_v26, %v1001_v9  ;;  %v920_v23 = vadd.f32 1.4214138, %v888_v13  ;;  %v8518_v57 = vmul.f32 %v8455_v41, %v11471_v28  ;;  %v8551_v9 = vld [vmem:[#allocation2 + $0x173] sm:$0xff] }
 0x285   : > { %v1858_v36 = vadd.f32 %v1826_v3, %v1757_v61  ;;  %5756 = vrcp.f32 %v2645_v22  ;;  %v1369_v48 = vsel %vm1305_vm9, %v1273_v31, %v1337_v4  ;;  %v2160_v43 = vadd.f32 %v2128_v32, %v8134_v49 }
 0x286   : > { %11472 = vst [vmem:[#allocation46_spill] sm:$0xff] %v8518_v57  ;;  %5758 = vrcp.f32 %v2646_v42  ;;  %v1859_v24 = vadd.f32 %v8287_v8, %v1758_v33  ;;  %v2161_v52 = vadd.f32 %v8302_v20, %v8137_v25  ;;  %v2030_v5 = vmul.f32 %v11460_v51, %v8257_v18  ;;  %v8528_v60 = vld [vmem:[#allocation2 + $0x169] sm:$0xff]  ;;  %v8530_v62 = vld [vmem:[#allocation2 + $0x171] sm:$0xff] }
 0x287   : > { %v2332_v27 = vmul.f32 %v11463_v53, %v8257_v18  ;;  %v601_v30 = vmul.f32 0.5, %v8255_v37  ;;  %v1401_v29 = vadd.f32 1.0, %v1369_v48  ;;  %v1065_v49 = vadd.f32 0.2548296, %v1033_v17  ;;  %v8545_v58 = vld [vmem:[#allocation2 + $0x16b] sm:$0xff] }
 0x288   : > { %v952_v45 = vmul.f32 %v8435_v63, %v920_v23  ;;  %v1188_v8 = vmul.f32 1.442695, %v1144_v16  ;;  %v712_v61 = vmul.f32 0.3275911, %v8514_v50  ;;  %v1928_v25 = vmul.f32 %v11465_v34, %v8528_v60 }
 0x289   : > { %v1929_v20 = vmul.f32 %v11465_v34, %v8530_v62  ;;  %v2029_v3 = vmul.f32 %v11460_v51, %v8486_v47  ;;  %v2230_v33 = vmul.f32 %v8122_v7, %v8528_v60  ;;  %v3029_v37 = vsub.f32 0.0, %v8489_v56 }
 0x28a   : > { %v3030_v32 = vsub.f32 0.0, %v8498_v0  ;;  %v2231_v31 = vmul.f32 %v8122_v7, %v8530_v62  ;;  %v2331_v1 = vmul.f32 %v11463_v53, %v8486_v47  ;;  %v1960_v34 = vadd.f32 %v1928_v25, %v1858_v36 }
 0x28b   : > { %v1961_v13 = vadd.f32 %v1929_v20, %v1859_v24  ;;  %v2262_v51 = vadd.f32 %v2230_v33, %v2160_v43  ;;  %v8553_v22 = vmul.f32 %v1401_v29, %v601_v30  ;;  %v1097_v16 = vmul.f32 %v8393_v26, %v1065_v49 }
 0x28c   : > { %v2263_v4 = vadd.f32 %v2231_v31, %v2161_v52  ;;  %v984_v42 = vadd.f32 -0.28449672, %v952_v45  ;;  %v744_v17 = vadd.f32 1.0, %v712_v61  ;;  %v5755_v23 = vpop.eup %5754  ;;  %v8556_v28 = vadd.f32 %v2029_v3, %v1960_v34  ;;  %v8567_v52 = vld [vmem:[#allocation2 + $0x128] sm:$0xff]  ;;  %v8596_v31 = vld [vmem:[%s11068_s3 + $0x2] ss:$0 sm:$0xff] }
 0x28d   : > { %11473 = vst [vmem:[#allocation57_spill] sm:$0xff] %v8553_v22  ;;  %v8558_v48 = vadd.f32 %v2030_v5, %v1961_v13  ;;  %v2363_v7 = vadd.f32 %v2331_v1, %v2262_v51  ;;  %v2432_v53 = vmul.f32 %v8081_v46, %v8545_v58  ;;  %1532 = vst [vmem:[#allocation2 + $0xca] sm:$0xff] %v8553_v22  ;;  %5760 = vpow2.f32 %v1188_v8  ;;  %v11478_v1 = vld [vmem:[#allocation55_spill] sm:$0xff] }
 0x28e   : > { %v2433_v36 = vmul.f32 %v8081_v46, %v8551_v9  ;;  %v2364_v43 = vadd.f32 %v2332_v27, %v2263_v4  ;;  %v1257_v24 = vmul.f32 %v5755_v23, %v1097_v16  ;;  %11475 = vst [vmem:[#allocation37_spill] sm:$0xff] %v8567_v52  ;;  %v8571_v5 = vmul.f32 %v8567_v52, %v8455_v41 }
 0x28f   : > { %11474 = vst [vmem:[#allocation10_spill] sm:$0xff] %v8558_v48  ;;  %v8565_v26 = vpop.eup %5756  ;;  %v3061_v30 = vmul.f32 %v3029_v37, %v8489_v56  ;;  %v2464_v29 = vadd.f32 %v2432_v53, %v2363_v7  ;;  %v1016_v49 = vmul.f32 %v8435_v63, %v984_v42  ;;  %v3062_v27 = vmul.f32 %v3030_v32, %v8498_v0  ;;  %v8586_v56 = vld [vmem:[%s11068_s3 + $0x1] ss:$0 sm:$0xff]  ;;  %v11479_v42 = vld [vmem:[#allocation9_spill] sm:$0xff] }
 0x290   : > { %11476 = vst [vmem:[#allocation47_spill] sm:$0xff] %v8571_v5  ;;  %v8575_v45 = vpop.eup %5758  ;;  %v2741_v46 = vmul.f32 1.0614054, %v8565_v26  ;;  %v2465_v8 = vadd.f32 %v2433_v36, %v2364_v43  ;;  %v1289_v61 = vsub.f32 1.0, %v1257_v24  ;;  %5762 = vrcp.f32 %v744_v17  ;;  %11477 = vst [vmem:[#allocation26_spill] sm:$0xff] %v8586_v56 }
 0x291   : > { %v2742_v25 = vmul.f32 1.0614054, %v8575_v45  ;;  %v8581_v20 = vadd.f32 %v8160_v40, %v2464_v29  ;;  %v1048_v3 = vadd.f32 0.2548296, %v1016_v49  ;;  %v1712_v33 = vmul.f32 %v8586_v56, %v8168_v14 }
 0x292   : > { %v2773_v37 = vadd.f32 -1.4531521, %v2741_v46  ;;  %v8591_v0 = vadd.f32 %v8160_v40, %v2465_v8  ;;  %v1353_v32 = vsub.f32 0.0, %v1289_v61  ;;  %v8600_v34 = vmul.f32 %v8596_v31, %v11478_v1  ;;  %v11480_v46 = vld [vmem:[#allocation14_spill] sm:$0xff] }
 0x293   : > { %v2774_v13 = vadd.f32 -1.4531521, %v2742_v25  ;;  %v3101_v51 = vmul.f32 1.442695, %v3061_v30  ;;  %v8603_v4 = vmul.f32 0.70710677, %v8581_v20  ;;  %v1080_v53 = vmul.f32 %v8435_v63, %v1048_v3 }
 0x294   : > { %v2805_v14 = vmul.f32 %v8565_v26, %v2773_v37  ;;  %v3103_v16 = vmul.f32 1.442695, %v3062_v27  ;;  %v8607_v40 = vmul.f32 0.70710677, %v8591_v0  ;;  %vm1321_vm10 = vcmp.ge.f32.partialorder %v11479_v42, 0.0 }
 0x295   : > { %v2806_v17 = vmul.f32 %v8575_v45, %v2774_v13  ;;  %v8612_v23 = vand.u32 2147483647, %v8603_v4  ;;  %v1385_v7 = vsel %vm1321_vm10, %v1289_v61, %v1353_v32  ;;  %v8617_v36 = vmul.f32 %v8217_v44, %v11478_v1  ;;  %v11481_v32 = vld [vmem:[#allocation17_spill] sm:$0xff]  ;;  %v8638_v13 = vld [vmem:[%s11068_s3] ss:$0 sm:$0xff] }
 0x296   : > { %v8621_v43 = vmul.f32 %v8586_v56, %v8257_v18  ;;  %v2837_v24 = vadd.f32 1.4214138, %v2805_v14  ;;  %v8624_v30 = vand.u32 2147483647, %v8607_v40  ;;  %5764 = vpow2.f32 %v3101_v51  ;;  %v11482_v51 = vld [vmem:[#allocation20_spill] sm:$0xff] }
 0x297   : > { %v2838_v29 = vadd.f32 1.4214138, %v2806_v17  ;;  %v2629_v49 = vmul.f32 0.3275911, %v8612_v23  ;;  %v617_v27 = vmul.f32 0.5, %v11480_v46  ;;  %v5761_v8 = vpop.eup %5760  ;;  %5766 = vpow2.f32 %v3103_v16 }
 0x298   : > { %v2869_v63 = vmul.f32 %v8565_v26, %v2837_v24  ;;  %v2630_v61 = vmul.f32 0.3275911, %v8624_v30  ;;  %v1417_v25 = vadd.f32 1.0, %v1385_v7  ;;  %v1240_v37 = vmul.f32 %v5761_v8, %v1080_v53  ;;  %v11483_v24 = vld [vmem:[#allocation16_spill] sm:$0xff] }
 0x299   : > { %v2870_v18 = vmul.f32 %v8575_v45, %v2838_v29  ;;  %v2661_v3 = vadd.f32 1.0, %v2629_v49  ;;  %v8633_v1 = vadd.f32 %v8294_v12, %v11481_v32  ;;  %v1610_v14 = vmul.f32 %v8638_v13, %v11482_v51 }
 0x29a   : > { %v2901_v16 = vadd.f32 -0.28449672, %v2869_v63  ;;  %v2662_v42 = vadd.f32 1.0, %v2630_v61  ;;  %v8642_v17 = vmul.f32 %v1417_v25, %v617_v27  ;;  %v8644_v7 = vpop.eup %5762  ;;  %v1611_v53 = vmul.f32 %v8638_v13, %v11483_v24  ;;  %v11485_v25 = vld [vmem:[#allocation23_spill] sm:$0xff]  ;;  %v11487_v24 = vld [vmem:[#allocation18_spill] sm:$0xff] }
 0x29b   : > { %v2902_v29 = vadd.f32 -0.28449672, %v2870_v18  ;;  %5768 = vrcp.f32 %v2661_v3  ;;  %v1272_v49 = vsub.f32 1.0, %v1240_v37  ;;  %v8650_v46 = vmul.f32 %v8596_v31, %v8551_v9 }
 0x29c   : > { %v1711_v8 = vmul.f32 %v8586_v56, %v8370_v11  ;;  %v2933_v63 = vmul.f32 %v8565_v26, %v2901_v16  ;;  %5770 = vrcp.f32 %v2662_v42  ;;  %1556 = vst [vmem:[#allocation2 + $0x18a] sm:$0xff] %v8642_v17  ;;  %v8658_v27 = vmul.f32 %v8217_v44, %v8551_v9 }
 0x29d   : > { %v2934_v61 = vmul.f32 %v8575_v45, %v2902_v29  ;;  %v600_v18 = vmul.f32 0.5, %v11485_v25  ;;  %v8663_v3 = vmul.f32 0.70710677, %v8633_v1  ;;  %v1336_v51 = vsub.f32 0.0, %v1272_v49 }
 0x29e   : > { %11484 = vst [vmem:[#allocation44_spill] sm:$0xff] %v8658_v27  ;;  %v1743_v37 = vadd.f32 %v1711_v8, %v1610_v14  ;;  %v2965_v32 = vadd.f32 0.2548296, %v2933_v63  ;;  %v840_v11 = vmul.f32 1.0614054, %v8644_v7  ;;  %v1744_v16 = vadd.f32 %v1712_v33, %v1611_v53 }
 0x29f   : > { %11486 = vst [vmem:[#allocation11_spill] sm:$0xff] %v8663_v3  ;;  %v2966_v42 = vadd.f32 0.2548296, %v2934_v61  ;;  %vm1304_vm11 = vcmp.ge.f32.partialorder %v11487_v24, 0.0  ;;  %v1128_v5 = vsub.f32 0.0, %v8514_v50  ;;  %v1812_v9 = vmul.f32 %v8596_v31, %v8431_v6 }
 0x2a0   : > { %v2997_v29 = vmul.f32 %v8565_v26, %v2965_v32  ;;  %v1368_v25 = vsel %vm1304_vm11, %v1272_v49, %v1336_v51  ;;  %v872_v57 = vadd.f32 -1.4531521, %v840_v11  ;;  %v5765_v15 = vpop.eup %5764  ;;  %v2114_v14 = vmul.f32 %v8217_v44, %v8431_v6 }
 0x2a1   : > { %v2998_v8 = vmul.f32 %v8575_v45, %v2966_v42  ;;  %v3045_v33 = vsub.f32 0.0, %v8612_v23  ;;  %v1400_v53 = vadd.f32 1.0, %v1368_v25  ;;  %v5767_v63 = vpop.eup %5766  ;;  %v8675_v61 = vadd.f32 %v1812_v9, %v1743_v37 }
 0x2a2   : > { %v3157_v24 = vmul.f32 %v5765_v15, %v2997_v29  ;;  %v3046_v39 = vsub.f32 0.0, %v8624_v30  ;;  %v8679_v52 = vand.u32 2147483647, %v8663_v3  ;;  %v8682_v26 = vadd.f32 %v2114_v14, %v8439_v38 }
 0x2a3   : > { %v3158_v49 = vmul.f32 %v5767_v63, %v2998_v8  ;;  %v8684_v32 = vmul.f32 %v1400_v53, %v600_v18  ;;  %v8687_v44 = vadd.f32 %v8600_v34, %v1744_v16  ;;  %v2517_v6 = vmul.f32 0.5, %v8465_v55 }
 0x2a4   : > { %v3189_v45 = vsub.f32 1.0, %v3157_v24  ;;  %v904_v37 = vmul.f32 %v8644_v7, %v872_v57  ;;  %v1160_v15 = vmul.f32 %v1128_v5, %v8514_v50  ;;  %v2518_v11 = vmul.f32 0.5, %v8468_v35 }
 0x2a5   : > { %11488 = vst [vmem:[#allocation12_spill] sm:$0xff] %v8684_v32  ;;  %v8692_v51 = vpop.eup %5768  ;;  %v3190_v42 = vsub.f32 1.0, %v3158_v49  ;;  %vm3221_vm12 = vcmp.ge.f32.partialorder %v8478_v21, 0.0  ;;  %v3077_v38 = vmul.f32 %v3045_v33, %v8612_v23  ;;  %1531 = vst [vmem:[#allocation2 + $0xc2] sm:$0xff] %v8684_v32  ;;  %vm3222_vm13 = vcmp.ge.f32.partialorder %v8483_v59, 0.0  ;;  %v8719_v49 = vld [vmem:[#allocation2 + $0xcb] sm:$0xff] }
 0x2a6   : > { %v8698_v34 = vpop.eup %5770  ;;  %v3253_v55 = vsub.f32 0.0, %v3189_v45  ;;  %v2757_v57 = vmul.f32 1.0614054, %v8692_v51  ;;  %v3078_v50 = vmul.f32 %v3046_v39, %v8624_v30  ;;  %v8705_v35 = vmul.f32 %v8586_v56, %v8486_v47  ;;  %11489 = vst [vmem:[#allocation55_spill] sm:$0xff] %v8719_v49 }
 0x2a7   : > { %v3254_v5 = vsub.f32 0.0, %v3190_v42  ;;  %v2758_v21 = vmul.f32 1.0614054, %v8698_v34  ;;  %v699_v23 = vmul.f32 0.3275911, %v8679_v52  ;;  %v8712_v47 = vadd.f32 %v8617_v36, %v8441_v19 }
 0x2a8   : > { %v3285_v18 = vsel %vm3221_vm12, %v3189_v45, %v3253_v55  ;;  %v2789_v16 = vadd.f32 -1.4531521, %v2757_v57  ;;  %v936_v9 = vadd.f32 1.4214138, %v904_v37  ;;  %v1220_v29 = vmul.f32 1.442695, %v1160_v15 }
 0x2a9   : > { %v3286_v25 = vsel %vm3222_vm13, %v3190_v42, %v3254_v5  ;;  %v3317_v59 = vadd.f32 1.0, %v3285_v18  ;;  %v2790_v14 = vadd.f32 -1.4531521, %v2758_v21  ;;  %v3133_v8 = vmul.f32 1.442695, %v3077_v38 }
 0x2aa   : > { %v3318_v33 = vadd.f32 1.0, %v3286_v25  ;;  %v2821_v39 = vmul.f32 %v8692_v51, %v2789_v16  ;;  %v3135_v30 = vmul.f32 1.442695, %v3078_v50  ;;  %v8716_v63 = vmul.f32 %v8638_v13, %v8528_v60  ;;  %v8726_v60 = vld [vmem:[%s11068_s3 + $0x5] ss:$0 sm:$0xff] }
 0x2ab   : > { %v3349_v53 = vmul.f32 %v3317_v59, %v2517_v6  ;;  %v2822_v24 = vmul.f32 %v8698_v34, %v2790_v14  ;;  %v731_v45 = vadd.f32 1.0, %v699_v23  ;;  %v968_v42 = vmul.f32 %v8644_v7, %v936_v9  ;;  %v8733_v6 = vld [vmem:[%s11068_s3 + $0x9] ss:$0 sm:$0xff]  ;;  %v8751_v5 = vld [vmem:[%s11068_s3 + $0xa] ss:$0 sm:$0xff] }
 0x2ac   : > { %v3350_v37 = vmul.f32 %v3318_v33, %v2518_v11  ;;  %v2853_v15 = vadd.f32 1.4214138, %v2821_v39  ;;  %5772 = vpow2.f32 %v1220_v29  ;;  %v2016_v36 = vmul.f32 %v8726_v60, %v8553_v22  ;;  %v8739_v38 = vld [vmem:[#allocation2 + $0xc1] sm:$0xff]  ;;  %v8741_v55 = vld [vmem:[#allocation2 + $0xc9] sm:$0xff]  ;;  %11492 = vst [vmem:[#allocation17_spill] sm:$0xff] %v8751_v5 }
 0x2ad   : > { %3381 = vst [vmem:[%s6998_s23 + $0x80] sm:$0xff] %v3349_v53  ;;  %3413 = vst [vmem:[#allocation2 + $0x92] sm:$0xff] %v3349_v53  ;;  %v2854_v19 = vadd.f32 1.4214138, %v2822_v24  ;;  %5774 = vpow2.f32 %v3133_v8  ;;  %v8737_v11 = vmul.f32 %v8733_v6, %v8553_v22  ;;  %v8745_v57 = vmul.f32 0.5, %v8581_v20 }
 0x2ae   : > { %11490 = vst [vmem:[#allocation9_spill] sm:$0xff] %v8739_v38  ;;  %11491 = vst [vmem:[#allocation14_spill] sm:$0xff] %v8741_v55  ;;  %v2885_v50 = vmul.f32 %v8692_v51, %v2853_v15  ;;  %5776 = vpow2.f32 %v3135_v30  ;;  %v8755_v21 = vmul.f32 %v8751_v5, %v8719_v49  ;;  %v2015_v18 = vmul.f32 %v8726_v60, %v8684_v32  ;;  %v8767_v9 = vld [vmem:[%s11068_s3 + $0x4] ss:$0 sm:$0xff]  ;;  %v8778_v14 = vld [vmem:[%s11068_s3 + $0xd] ss:$0 sm:$0xff] }
 0x2af   : > { %3382 = vst [vmem:[%s6998_s23 + $0x90] sm:$0xff] %v3350_v37  ;;  %3414 = vst [vmem:[#allocation2 + $0x9a] sm:$0xff] %v3350_v37  ;;  %v2886_v23 = vmul.f32 %v8698_v34, %v2854_v19  ;;  %v8762_v20 = vmul.f32 %v8733_v6, %v8684_v32  ;;  %5778 = vrcp.f32 %v731_v45  ;;  %v1914_v29 = vmul.f32 %v8767_v9, %v8739_v38  ;;  %v8785_v39 = vld [vmem:[%s11068_s3 + $0x15] ss:$0 sm:$0xff]  ;;  %v8789_v15 = vld [vmem:[#allocation2 + $0xc3] sm:$0xff] }
 0x2b0   : > { %v2917_v16 = vadd.f32 -0.28449672, %v2885_v50  ;;  %11493 = vst [vmem:[#allocation20_spill] sm:$0xff] %v8767_v9  ;;  %v1915_v25 = vmul.f32 %v8767_v9, %v8741_v55  ;;  %v8773_v59 = vadd.f32 -0.28449672, %v968_v42  ;;  %11494 = vst [vmem:[#allocation16_spill] sm:$0xff] %v8778_v14  ;;  %v3588_v8 = vmul.f32 %v8778_v14, %v3349_v53 }
 0x2b1   : > { %v3888_v33 = vmul.f32 %v8321_v54, %v3349_v53  ;;  %11495 = vst [vmem:[#allocation23_spill] sm:$0xff] %v8785_v39  ;;  %v4188_v30 = vmul.f32 %v8785_v39, %v3349_v53  ;;  %v2918_v24 = vadd.f32 -0.28449672, %v2886_v23  ;;  %11496 = vst [vmem:[#allocation18_spill] sm:$0xff] %v8789_v15  ;;  %v1946_v42 = vadd.f32 %v1914_v29, %v8675_v61  ;;  %v8796_v50 = vld [vmem:[%s11068_s3 + $0x8] ss:$0 sm:$0xff] }
 0x2b2   : > { %v2949_v45 = vmul.f32 %v8692_v51, %v2917_v16  ;;  %v1947_v19 = vadd.f32 %v1915_v25, %v8687_v44  ;;  %11497 = vst [vmem:[#allocation58_spill] sm:$0xff] %v8796_v50  ;;  %v2216_v49 = vmul.f32 %v8796_v50, %v8739_v38  ;;  %v3589_v22 = vmul.f32 %v8778_v14, %v3350_v37  ;;  %v8814_v14 = vld [vmem:[%s11068_s3 + $0xc] ss:$0 sm:$0xff]  ;;  %v8834_v38 = vld [vmem:[%s11068_s3 + $0xe] ss:$0 sm:$0xff] }
 0x2b3   : > { %v3889_v53 = vmul.f32 %v8321_v54, %v3350_v37  ;;  %v4189_v23 = vmul.f32 %v8785_v39, %v3350_v37  ;;  %v2950_v16 = vmul.f32 %v8698_v34, %v2918_v24  ;;  %v8804_v61 = vadd.f32 %v2015_v18, %v1946_v42  ;;  %11500 = vst [vmem:[#allocation61_spill] sm:$0xff] %v8814_v14 }
 0x2b4   : > { %v3451_v56 = vld [vmem:[#allocation2 + $0x90] sm:$0xff]  ;;  %v8806_v44 = vadd.f32 %v2016_v36, %v1947_v19  ;;  %v2217_v29 = vmul.f32 %v8796_v50, %v8741_v55  ;;  %v2248_v25 = vadd.f32 %v2216_v49, %v8682_v26  ;;  %v2418_v26 = vmul.f32 %v8751_v5, %v8789_v15  ;;  %v11501_v50 = vld [vmem:[#allocation45_spill] sm:$0xff] }
 0x2b5   : > { %11498 = vst [vmem:[#allocation59_spill] sm:$0xff] %v8804_v61  ;;  %v3487_v54 = vmul.f32 %v8814_v14, %v3451_v56  ;;  %v3787_v24 = vmul.f32 %v8455_v41, %v3451_v56  ;;  %v8821_v36 = vld [vmem:[%s11068_s3 + $0x14] ss:$0 sm:$0xff]  ;;  %v2982_v9 = vadd.f32 0.2548296, %v2950_v16  ;;  %vm3237_vm14 = vcmp.ge.f32.partialorder %v8603_v4, 0.0 }
 0x2b6   : > { %11499 = vst [vmem:[#allocation60_spill] sm:$0xff] %v8806_v44  ;;  %v3452_v32 = vld [vmem:[#allocation2 + $0x98] sm:$0xff]  ;;  %v4087_v18 = vmul.f32 %v8821_v36, %v3451_v56  ;;  %v8826_v49 = vpop.eup %5772  ;;  %v2981_v44 = vadd.f32 0.2548296, %v2949_v45  ;;  %v2249_v61 = vadd.f32 %v2217_v29, %v8712_v47  ;;  %v11503_v45 = vld [vmem:[#allocation27_spill] sm:$0xff]  ;;  %vm3238_vm15 = vcmp.ge.f32.partialorder %v8607_v40, 0.0 }
 0x2b7   : > { %v3653_v37 = vld [vmem:[#allocation2 + $0x94] sm:$0xff]  ;;  %v3488_v42 = vmul.f32 %v8814_v14, %v3452_v32  ;;  %v3788_v19 = vmul.f32 %v8455_v41, %v3452_v32  ;;  %v5775_v39 = vpop.eup %5774  ;;  %v3620_v55 = vadd.f32 %v3588_v8, %v3487_v54  ;;  %v3819_v15 = vadd.f32 %v3787_v24, %v11501_v50  ;;  %v8840_v14 = vld [vmem:[#allocation2 + $0x9c] sm:$0xff]  ;;  %v11504_v8 = vld [vmem:[#allocation7_spill] sm:$0xff] }
 0x2b8   : > { %v3689_v56 = vmul.f32 %v8834_v38, %v3653_v37  ;;  %v5777_v3 = vpop.eup %5776  ;;  %v4088_v47 = vmul.f32 %v8821_v36, %v3452_v32  ;;  %v4119_v29 = vadd.f32 %v4087_v18, %v11504_v8  ;;  %v8852_v50 = vld [vmem:[%s11068_s3 + $0x12] ss:$0 sm:$0xff]  ;;  %v8858_v16 = vld [vmem:[%s11068_s3 + $0x16] ss:$0 sm:$0xff]  ;;  %v11507_v18 = vld [vmem:[#allocation43_spill] sm:$0xff]  ;;  %vm1320_vm0 = vcmp.ge.f32.partialorder %v8502_v10, 0.0 }
 0x2b9   : > { %v8838_v5 = vadd.f32 %v3589_v22, %v3488_v42  ;;  %v3820_v41 = vadd.f32 %v3788_v19, %v11503_v45  ;;  %v8845_v54 = vpop.eup %5778  ;;  %v3920_v48 = vadd.f32 %v3888_v33, %v3819_v15  ;;  %v3989_v22 = vmul.f32 %v8852_v50, %v3653_v37 }
 0x2ba   : > { %v8847_v27 = vadd.f32 %v3689_v56, %v3620_v55  ;;  %v4289_v32 = vmul.f32 %v8858_v16, %v3653_v37  ;;  %v4120_v55 = vadd.f32 %v4088_v47, %v11507_v18  ;;  %v4220_v42 = vadd.f32 %v4188_v30, %v4119_v29  ;;  %v11509_v47 = vld [vmem:[#allocation15_spill] sm:$0xff] }
 0x2bb   : > { %11502 = vst [vmem:[#allocation45_spill] sm:$0xff] %v8838_v5  ;;  %v8861_v24 = vadd.f32 %v3889_v53, %v3820_v41  ;;  %v3013_v33 = vmul.f32 %v8692_v51, %v2981_v44  ;;  %v8865_v15 = vadd.f32 %v3989_v22, %v3920_v48  ;;  %v4290_v19 = vmul.f32 %v8858_v16, %v8840_v14 }
 0x2bc   : > { %11505 = vst [vmem:[#allocation27_spill] sm:$0xff] %v8847_v27  ;;  %v3014_v56 = vmul.f32 %v8698_v34, %v2982_v9  ;;  %v2349_v45 = vadd.f32 %v8762_v20, %v2248_v25  ;;  %v4221_v8 = vadd.f32 %v4189_v23, %v4120_v55  ;;  %v4321_v27 = vadd.f32 %v4289_v32, %v4220_v42  ;;  %v6015_v34 = vld [vmem:[%s11069_s4 + $0x1] ss:$0 sm:$0xff] }
 0x2bd   : > { %11506 = vst [vmem:[#allocation7_spill] sm:$0xff] %v8861_v24  ;;  %11508 = vst [vmem:[#allocation43_spill] sm:$0xff] %v8865_v15  ;;  %v3173_v5 = vmul.f32 %v5775_v39, %v3013_v33  ;;  %v2350_v41 = vadd.f32 %v8737_v11, %v2249_v61  ;;  %v2534_v53 = vmul.f32 0.5, %v8591_v0  ;;  %v8875_v48 = vadd.f32 %v8294_v12, %v11509_v47  ;;  %v8887_v0 = vld [vmem:[%s11069_s4] ss:$0 sm:$0xff] }
 0x2be   : > { %v3174_v37 = vmul.f32 %v5777_v3, %v3014_v56  ;;  %v2450_v30 = vadd.f32 %v2418_v26, %v2349_v45  ;;  %v4322_v51 = vadd.f32 %v4290_v19, %v4221_v8  ;;  %v8880_v9 = vadd.f32 %v6015_v34, %v4321_v27 }
 0x2bf   : > { %v3205_v20 = vsub.f32 1.0, %v3173_v5  ;;  %v2451_v39 = vadd.f32 %v8755_v21, %v2350_v41  ;;  %v1032_v3 = vmul.f32 %v8644_v7, %v8773_v59  ;;  %v1115_v25 = vsub.f32 0.0, %v8679_v52 }
 0x2c0   : > { %v3206_v23 = vsub.f32 1.0, %v3174_v37  ;;  %v8890_v12 = vadd.f32 %v8887_v0, %v2450_v30  ;;  %v8894_v11 = vadd.f32 %v6015_v34, %v4322_v51  ;;  %v8897_v27 = vmul.f32 0.70710677, %v8880_v9 }
 0x2c1   : > { %v3269_v5 = vsub.f32 0.0, %v3205_v20  ;;  %v8901_v61 = vadd.f32 %v8887_v0, %v2451_v39  ;;  %v1627_v29 = vmul.f32 %v8638_v13, %v8530_v62  ;;  %v8914_v40 = vmul.f32 0.70710677, %v8875_v48 }
 0x2c2   : > { %v3270_v21 = vsub.f32 0.0, %v3206_v23  ;;  %v8904_v44 = vmul.f32 0.70710677, %v8890_v12  ;;  %v8908_v26 = vmul.f32 0.70710677, %v8894_v11  ;;  %v1759_v19 = vadd.f32 %v8705_v35, %v8716_v63 }
 0x2c3   : > { %v4454_v59 = vand.u32 2147483647, %v8897_v27  ;;  %v3301_v22 = vsel %vm3237_vm14, %v3205_v20, %v3269_v5  ;;  %v8919_v18 = vmul.f32 0.70710677, %v8901_v61  ;;  %v1064_v55 = vadd.f32 0.2548296, %v1032_v3 }
 0x2c4   : > { %v3302_v32 = vsel %vm3238_vm15, %v3206_v23, %v3270_v21  ;;  %v4455_v42 = vand.u32 2147483647, %v8908_v26  ;;  %v827_v56 = vmul.f32 1.0614054, %v8845_v54  ;;  %v3333_v62 = vadd.f32 1.0, %v3301_v22 }
 0x2c5   : > { %v4486_v33 = vmul.f32 0.3275911, %v4454_v59  ;;  %v3334_v45 = vadd.f32 1.0, %v3302_v32  ;;  %v8926_v8 = vand.u32 2147483647, %v8904_v44  ;;  %v1147_v30 = vmul.f32 %v1115_v25, %v8679_v52 }
 0x2c6   : > { %v8929_v4 = vand.u32 2147483647, %v8919_v18  ;;  %v4487_v41 = vmul.f32 0.3275911, %v4455_v42  ;;  %v8933_v47 = vand.u32 2147483647, %v8914_v40  ;;  %v8936_v35 = vmul.f32 %v3333_v62, %v8745_v57 }
 0x2c7   : > { %v4518_v37 = vadd.f32 1.0, %v4486_v33  ;;  %v8938_v63 = vmul.f32 %v3334_v45, %v2534_v53  ;;  %v2615_v51 = vmul.f32 0.3275911, %v8926_v8  ;;  %v1096_v39 = vmul.f32 %v8644_v7, %v1064_v55  ;;  %v8958_v7 = vld [vmem:[%s11068_s3 + $0x6] ss:$0 sm:$0xff] }
 0x2c8   : > { %11510 = vst [vmem:[#allocation15_spill] sm:$0xff] %v8936_v35  ;;  %v2616_v34 = vmul.f32 0.3275911, %v8929_v4  ;;  %v4519_v20 = vadd.f32 1.0, %v4487_v41  ;;  %v859_v23 = vadd.f32 -1.4531521, %v827_v56  ;;  %v1760_v52 = vadd.f32 %v8621_v43, %v1627_v29 }
 0x2c9   : > { %11511 = vst [vmem:[#allocation62_spill] sm:$0xff] %v8938_v63  ;;  %5780 = vrcp.f32 %v4518_v37  ;;  %v4902_v3 = vsub.f32 0.0, %v4454_v59  ;;  %v1828_v5 = vmul.f32 %v8596_v31, %v8545_v58  ;;  %3397 = vst [vmem:[%s6998_s23 + $0x180] sm:$0xff] %v8936_v35  ;;  %v8953_v57 = vmul.f32 0.5, %v8450_v2  ;;  %v11513_v41 = vld [vmem:[#allocation44_spill] sm:$0xff] }
 0x2ca   : > { %3398 = vst [vmem:[%s6998_s23 + $0x190] sm:$0xff] %v8938_v63  ;;  %3429 = vst [vmem:[#allocation2 + $0x152] sm:$0xff] %v8936_v35  ;;  %5782 = vrcp.f32 %v4519_v20  ;;  %v2130_v43 = vmul.f32 %v8958_v7, %v8545_v58  ;;  %v2647_v53 = vadd.f32 1.0, %v2615_v51  ;;  %v2648_v21 = vadd.f32 1.0, %v2616_v34 }
 0x2cb   : > { %3430 = vst [vmem:[#allocation2 + $0x15a] sm:$0xff] %v8938_v63  ;;  %v8962_v25 = vadd.f32 %v1828_v5, %v1759_v19  ;;  %v8966_v29 = vmul.f32 0.5, %v8633_v1  ;;  %v715_v2 = vmul.f32 0.3275911, %v8933_v47  ;;  %v1256_v32 = vmul.f32 %v8826_v49, %v1096_v39  ;;  %v11512_v49 = vld [vmem:[#allocation10_spill] sm:$0xff]  ;;  %v11517_v5 = vld [vmem:[#allocation56_spill] sm:$0xff] }
 0x2cc   : > { %v8970_v22 = vadd.f32 %v2130_v43, %v8556_v28  ;;  %v891_v55 = vmul.f32 %v8845_v54, %v859_v23  ;;  %v1194_v33 = vmul.f32 1.442695, %v1147_v30  ;;  %v4903_v58 = vsub.f32 0.0, %v4455_v42  ;;  %v11514_v30 = vld [vmem:[#allocation38_spill] sm:$0xff] }
 0x2cd   : > { %v4934_v56 = vmul.f32 %v4902_v3, %v4454_v59  ;;  %5784 = vrcp.f32 %v2647_v53  ;;  %v8975_v19 = vadd.f32 %v8650_v46, %v1760_v52  ;;  %v8979_v1 = vmul.f32 %v8726_v60, %v8642_v17  ;;  %v6018_v46 = vld [vmem:[%s11067_s2] ss:$0 sm:$0xff] }
 0x2ce   : > { %5786 = vrcp.f32 %v2648_v21  ;;  %v1288_v62 = vsub.f32 1.0, %v1256_v32  ;;  %v923_v45 = vadd.f32 1.4214138, %v891_v55  ;;  %v8983_v28 = vmul.f32 %v8733_v6, %v8642_v17  ;;  %v9012_v32 = vld [vmem:[%s11068_s3 + $0x11] ss:$0 sm:$0xff] }
 0x2cf   : > { %v8987_v37 = vadd.f32 %v11513_v41, %v11512_v49  ;;  %v747_v59 = vadd.f32 1.0, %v715_v2  ;;  %v8993_v51 = vadd.f32 %v6018_v46, %v11514_v30  ;;  %5788 = vpow2.f32 %v1194_v33  ;;  %11519 = vst [vmem:[#allocation56_spill] sm:$0xff] %v9012_v32  ;;  %v11521_v41 = vld [vmem:[#allocation21_spill] sm:$0xff] }
 0x2d0   : > { %v1352_v39 = vsub.f32 0.0, %v1288_v62  ;;  %v955_v17 = vmul.f32 %v8845_v54, %v923_v45  ;;  %v1131_v23 = vsub.f32 0.0, %v8933_v47  ;;  %v4935_v3 = vmul.f32 %v4903_v58, %v4455_v42  ;;  %v11520_v45 = vld [vmem:[#allocation8_spill] sm:$0xff] }
 0x2d1   : > { %v8995_v34 = vld [vmem:[#allocation2 + $0x150] sm:$0xff]  ;;  %v4970_v52 = vmul.f32 1.442695, %v4934_v56  ;;  %v3904_v55 = vmul.f32 %v9012_v32, %v8936_v35  ;;  %v3905_v42 = vmul.f32 %v9012_v32, %v8938_v63  ;;  %v3031_v33 = vsub.f32 0.0, %v8926_v8 }
 0x2d2   : > { %11515 = vst [vmem:[#allocation10_spill] sm:$0xff] %v8995_v34  ;;  %v8997_v20 = vld [vmem:[#allocation2 + $0x158] sm:$0xff]  ;;  %v3803_v43 = vmul.f32 %v11517_v5, %v8995_v34  ;;  %v3032_v58 = vsub.f32 0.0, %v8929_v4  ;;  %5790 = vrcp.f32 %v747_v59  ;;  %v1384_v15 = vsel %vm1320_vm0, %v1288_v62, %v1352_v39  ;;  %v1795_v59 = vld [vmem:[#allocation2 + $0x18b] sm:$0xff] }
 0x2d3   : > { %11516 = vst [vmem:[#allocation44_spill] sm:$0xff] %v8997_v20  ;;  %v3804_v53 = vmul.f32 %v11517_v5, %v8997_v20  ;;  %v9005_v21 = vld [vmem:[#allocation2 + $0x154] sm:$0xff]  ;;  %v9007_v2 = vpop.eup %5780  ;;  %v987_v32 = vadd.f32 -0.28449672, %v955_v17  ;;  %v9030_v24 = vmul.f32 0.70710677, %v8993_v51  ;;  %5792 = vpow2.f32 %v4970_v52 }
 0x2d4   : > { %11518 = vst [vmem:[#allocation38_spill] sm:$0xff] %v9005_v21  ;;  %v4614_v56 = vmul.f32 1.0614054, %v9007_v2  ;;  %v3835_v49 = vadd.f32 %v3803_v43, %v11520_v45  ;;  %v9023_v30 = vpop.eup %5782  ;;  %v4005_v5 = vmul.f32 %v8852_v50, %v9005_v21  ;;  %v3063_v45 = vmul.f32 %v3031_v33, %v8926_v8 }
 0x2d5   : > { %v3836_v46 = vadd.f32 %v3804_v53, %v11521_v41  ;;  %11522 = vst [vmem:[#allocation8_spill] sm:$0xff] %v9030_v24  ;;  %v4615_v20 = vmul.f32 1.0614054, %v9023_v30  ;;  %v4972_v53 = vmul.f32 1.442695, %v4935_v3  ;;  %v1416_v41 = vadd.f32 1.0, %v1384_v15 }
 0x2d6   : > { %v4646_v34 = vadd.f32 -1.4531521, %v4614_v56  ;;  %v3936_v63 = vadd.f32 %v3904_v55, %v3835_v49  ;;  %v1019_v21 = vmul.f32 %v8845_v54, %v987_v32  ;;  %v3064_v17 = vmul.f32 %v3032_v58, %v8929_v4 }
 0x2d7   : > { %v9033_v43 = vadd.f32 %v3905_v42, %v3836_v46  ;;  %v9037_v35 = vpop.eup %5784  ;;  %v4647_v10 = vadd.f32 -1.4531521, %v4615_v20  ;;  %v9047_v3 = vmul.f32 %v1416_v41, %v8953_v57  ;;  %v9050_v15 = vand.u32 2147483647, %v9030_v24  ;;  %v11525_v42 = vld [vmem:[#allocation17_spill] sm:$0xff] }
 0x2d8   : > { %v4678_v62 = vmul.f32 %v9007_v2, %v4646_v34  ;;  %v9040_v39 = vadd.f32 %v4005_v5, %v3936_v63  ;;  %v9043_v56 = vpop.eup %5786  ;;  %v2743_v55 = vmul.f32 1.0614054, %v9037_v35  ;;  %v1051_v8 = vadd.f32 0.2548296, %v1019_v21 }
 0x2d9   : > { %11523 = vst [vmem:[#allocation21_spill] sm:$0xff] %v9033_v43  ;;  %v4679_v32 = vmul.f32 %v9023_v30, %v4647_v10  ;;  %v9054_v34 = vmul.f32 %v11525_v42, %v1795_v59  ;;  %v2744_v63 = vmul.f32 1.0614054, %v9043_v56  ;;  %v5789_v4 = vpop.eup %5788  ;;  %v3105_v58 = vmul.f32 1.442695, %v3063_v45  ;;  %1555 = vst [vmem:[#allocation2 + $0x182] sm:$0xff] %v9047_v3 }
 0x2da   : > { %11524 = vst [vmem:[#allocation63_spill] sm:$0xff] %v9040_v39  ;;  %v4710_v20 = vadd.f32 1.4214138, %v4678_v62  ;;  %v2775_v33 = vadd.f32 -1.4531521, %v2743_v55  ;;  %v1163_v57 = vmul.f32 %v1131_v23, %v8933_v47  ;;  %v1083_v5 = vmul.f32 %v8845_v54, %v1051_v8 }
 0x2db   : > { %v4711_v21 = vadd.f32 1.4214138, %v4679_v32  ;;  %v2776_v46 = vadd.f32 -1.4531521, %v2744_v63  ;;  %5794 = vpow2.f32 %v4972_v53  ;;  %v3107_v41 = vmul.f32 1.442695, %v3064_v17 }
 0x2dc   : > { %v4742_v49 = vmul.f32 %v9007_v2, %v4710_v20  ;;  %v2807_v59 = vmul.f32 %v9037_v35, %v2775_v33  ;;  %v698_v10 = vmul.f32 0.3275911, %v9050_v15  ;;  %v9063_v62 = vpop.eup %5790  ;;  %v9066_v52 = vmul.f32 0.5, %v8880_v9 }
 0x2dd   : > { %v4743_v45 = vmul.f32 %v9023_v30, %v4711_v21  ;;  %v2808_v23 = vmul.f32 %v9043_v56, %v2776_v46  ;;  %v9071_v55 = vmul.f32 0.5, %v8890_v12  ;;  %v9073_v53 = vmul.f32 %v5789_v4, %v1083_v5 }
 0x2de   : > { %v4774_v47 = vadd.f32 -0.28449672, %v4742_v49  ;;  %v2839_v54 = vadd.f32 1.4214138, %v2807_v59  ;;  %v1226_v8 = vmul.f32 1.442695, %v1163_v57  ;;  %5796 = vpow2.f32 %v3105_v58 }
 0x2df   : > { %v4775_v17 = vadd.f32 -0.28449672, %v4743_v45  ;;  %v2840_v20 = vadd.f32 1.4214138, %v2808_v23  ;;  %5798 = vpow2.f32 %v3107_v41  ;;  %v843_v63 = vmul.f32 1.0614054, %v9063_v62 }
 0x2e0   : > { %v4806_v32 = vmul.f32 %v9007_v2, %v4774_v47  ;;  %v2871_v9 = vmul.f32 %v9037_v35, %v2839_v54  ;;  %v730_v33 = vadd.f32 1.0, %v698_v10  ;;  %v9079_v21 = vmul.f32 0.5, %v8894_v11  ;;  %v1592_v57 = vld [vmem:[#allocation2 + $0x181] sm:$0xff]  ;;  %v1593_v46 = vld [vmem:[#allocation2 + $0x189] sm:$0xff]  ;;  %v5793_v54 = vpop.eup %5792 }
 0x2e1   : > { %v4807_v12 = vmul.f32 %v9023_v30, %v4775_v17  ;;  %v2872_v4 = vmul.f32 %v9043_v56, %v2840_v20  ;;  %vm5094_vm1 = vcmp.ge.f32.partialorder %v8897_v27, 0.0  ;;  %v2031_v58 = vmul.f32 %v8726_v60, %v9047_v3  ;;  %v11526_v41 = vld [vmem:[#allocation11_spill] sm:$0xff]  ;;  %v11527_v47 = vld [vmem:[#allocation20_spill] sm:$0xff] }
 0x2e2   : > { %v4838_v49 = vadd.f32 0.2548296, %v4806_v32  ;;  %v2903_v5 = vadd.f32 -0.28449672, %v2871_v9  ;;  %v1275_v59 = vsub.f32 1.0, %v9073_v53  ;;  %vm1307_vm2 = vcmp.ge.f32.partialorder %v11526_v41, 0.0 }
 0x2e3   : > { %5800 = vpow2.f32 %v1226_v8  ;;  %v4839_v11 = vadd.f32 0.2548296, %v4807_v12  ;;  %v2904_v45 = vadd.f32 -0.28449672, %v2872_v4  ;;  %v1930_v23 = vmul.f32 %v11527_v47, %v1592_v57 }
 0x2e4   : > { %v4870_v10 = vmul.f32 %v9007_v2, %v4838_v49  ;;  %vm5095_vm3 = vcmp.ge.f32.partialorder %v8908_v26, 0.0  ;;  %v2935_v17 = vmul.f32 %v9037_v35, %v2903_v5  ;;  %v1931_v32 = vmul.f32 %v11527_v47, %v1593_v46 }
 0x2e5   : > { %v875_v20 = vadd.f32 -1.4531521, %v843_v63  ;;  %5802 = vrcp.f32 %v730_v33  ;;  %v4871_v53 = vmul.f32 %v9023_v30, %v4839_v11  ;;  %v2936_v8 = vmul.f32 %v9043_v56, %v2904_v45  ;;  %v5795_v2 = vpop.eup %5794  ;;  %v1794_v63 = vld [vmem:[#allocation2 + $0x183] sm:$0xff]  ;;  %v9102_v33 = vpop.f32.mrb[15].mxu1 }
 0x2e6   : > { %v5030_v9 = vmul.f32 %v5793_v54, %v4870_v10  ;;  %v1962_v12 = vadd.f32 %v1930_v23, %v8962_v25  ;;  %v2967_v49 = vadd.f32 0.2548296, %v2935_v17  ;;  %v1963_v4 = vadd.f32 %v1931_v32, %v8975_v19  ;;  %11529 = vst [vmem:[#allocation11_spill] sm:$0xff] %v9102_v33  ;;  %v11531_v11 = vld [vmem:[#allocation58_spill] sm:$0xff] }
 0x2e7   : > { %v2333_v39 = vmul.f32 %v8733_v6, %v9047_v3  ;;  %v1339_v43 = vsub.f32 0.0, %v1275_v59  ;;  %v5031_v5 = vmul.f32 %v5795_v2, %v4871_v53  ;;  %v2968_v47 = vadd.f32 0.2548296, %v2936_v8 }
 0x2e8   : > { %v5062_v24 = vsub.f32 1.0, %v5030_v9  ;;  %vm3223_vm4 = vcmp.ge.f32.partialorder %v8904_v44, 0.0  ;;  %v9100_v30 = vadd.f32 %v2031_v58, %v1962_v12  ;;  %v2999_v25 = vmul.f32 %v9037_v35, %v2967_v49  ;;  %v5797_v45 = vpop.eup %5796 }
 0x2e9   : > { %vm3224_vm5 = vcmp.ge.f32.partialorder %v8919_v18, 0.0  ;;  %v9107_v19 = vadd.f32 %v8979_v1, %v1963_v4  ;;  %v2232_v3 = vmul.f32 %v11531_v11, %v1592_v57  ;;  %v2233_v10 = vmul.f32 %v11531_v11, %v1593_v46  ;;  %v5799_v32 = vpop.eup %5798 }
 0x2ea   : > { %11528 = vst [vmem:[#allocation17_spill] sm:$0xff] %v9100_v30  ;;  %v5063_v23 = vsub.f32 1.0, %v5031_v5  ;;  %v5126_v54 = vsub.f32 0.0, %v5062_v24  ;;  %v3000_v17 = vmul.f32 %v9043_v56, %v2968_v47  ;;  %v907_v58 = vmul.f32 %v9063_v62, %v875_v20 }
 0x2eb   : > { %11530 = vst [vmem:[#allocation64_spill] sm:$0xff] %v9107_v19  ;;  %v3159_v53 = vmul.f32 %v5797_v45, %v2999_v25  ;;  %v2264_v35 = vadd.f32 %v2232_v3, %v8970_v22  ;;  %v2265_v9 = vadd.f32 %v2233_v10, %v8987_v37  ;;  %v2434_v1 = vmul.f32 %v11525_v42, %v1794_v63 }
 0x2ec   : > { %v5127_v8 = vsub.f32 0.0, %v5063_v23  ;;  %v5158_v57 = vsel %vm5094_vm1, %v5062_v24, %v5126_v54  ;;  %v3160_v46 = vmul.f32 %v5799_v32, %v3000_v17  ;;  %v1371_v12 = vsel %vm1307_vm2, %v1275_v59, %v1339_v43 }
 0x2ed   : > { %v9120_v2 = vpop.eup %5800  ;;  %v5190_v56 = vadd.f32 1.0, %v5158_v57  ;;  %v3191_v47 = vsub.f32 1.0, %v3159_v53  ;;  %v2365_v20 = vadd.f32 %v2333_v39, %v2264_v35  ;;  %v2366_v22 = vadd.f32 %v8983_v28, %v2265_v9  ;;  %v6022_v53 = vld [vmem:[#allocation2 + $0x120] sm:$0xff] }
 0x2ee   : > { %v5159_v37 = vsel %vm5095_vm3, %v5063_v23, %v5127_v8  ;;  %v3192_v49 = vsub.f32 1.0, %v3160_v46  ;;  %v1403_v4 = vadd.f32 1.0, %v1371_v12  ;;  %v939_v5 = vadd.f32 1.4214138, %v907_v58  ;;  %v6020_v23 = vld [vmem:[#allocation2 + $0x124] sm:$0xff]  ;;  %v6021_v58 = vld [vmem:[#allocation2 + $0x12c] sm:$0xff] }
 0x2ef   : > { %v9125_v27 = vpop.eup %5802  ;;  %v5191_v24 = vadd.f32 1.0, %v5159_v37  ;;  %v5222_v41 = vmul.f32 %v5190_v56, %v9066_v52  ;;  %v3255_v43 = vsub.f32 0.0, %v3191_v47  ;;  %v2466_v59 = vadd.f32 %v2434_v1, %v2365_v20  ;;  %v11535_v56 = vld [vmem:[#allocation37_spill] sm:$0xff] }
 0x2f0   : > { %v3256_v63 = vsub.f32 0.0, %v3192_v49  ;;  %v2467_v39 = vadd.f32 %v9054_v34, %v2366_v22  ;;  %v9130_v25 = vmul.f32 %v1403_v4, %v8966_v29  ;;  %v1114_v26 = vsub.f32 0.0, %v9050_v15  ;;  %v11539_v4 = vld [vmem:[#allocation9_spill] sm:$0xff] }
 0x2f1   : > { %v5223_v28 = vmul.f32 %v5191_v24, %v9079_v21  ;;  %5254 = vst [vmem:[%s6998_s23 + $0x48] sm:$0xff] %v5222_v41  ;;  %v3287_v3 = vsel %vm3223_vm4, %v3191_v47, %v3255_v43  ;;  %v9138_v10 = vadd.f32 %v8887_v0, %v2466_v59  ;;  %v971_v52 = vmul.f32 %v9063_v62, %v939_v5  ;;  %v11540_v43 = vld [vmem:[#allocation12_spill] sm:$0xff]  ;;  %v11541_v59 = vld [vmem:[#allocation26_spill] sm:$0xff] }
 0x2f2   : > { %v3288_v45 = vsel %vm3224_vm5, %v3192_v49, %v3256_v63  ;;  %v3319_v34 = vadd.f32 1.0, %v3287_v3  ;;  %v9144_v29 = vadd.f32 %v8887_v0, %v2467_v39  ;;  %1535 = vst [vmem:[#allocation2 + $0xe2] sm:$0xff] %v9130_v25  ;;  %v826_v21 = vmul.f32 1.0614054, %v9125_v27  ;;  %v3968_v49 = vld [vmem:[#allocation2 + $0x144] sm:$0xff] }
 0x2f3   : > { %v9149_v44 = vmul.f32 %v6020_v23, %v8852_v50  ;;  %5255 = vst [vmem:[%s6998_s23 + $0x58] sm:$0xff] %v5223_v28  ;;  %v2520_v54 = vmul.f32 0.5, %v8901_v61  ;;  %v3320_v17 = vadd.f32 1.0, %v3288_v45  ;;  %v9154_v18 = vmul.f32 0.70710677, %v9138_v10  ;;  %v3967_v61 = vld [vmem:[#allocation2 + $0x13c] sm:$0xff] }
 0x2f4   : > { %v9157_v32 = vmul.f32 %v6021_v58, %v8852_v50  ;;  %v9160_v35 = vmul.f32 %v6022_v53, %v8821_v36  ;;  %v3351_v9 = vmul.f32 %v3319_v34, %v9071_v55  ;;  %v9164_v1 = vmul.f32 0.70710677, %v9144_v29  ;;  %v11542_v28 = vld [vmem:[#allocation14_spill] sm:$0xff] }
 0x2f5   : > { %11532 = vst [vmem:[#allocation58_spill] sm:$0xff] %v9149_v44  ;;  %v3352_v8 = vmul.f32 %v3320_v17, %v2520_v54  ;;  %v9167_v57 = vand.u32 2147483647, %v9154_v18  ;;  %v1003_v46 = vadd.f32 -0.28449672, %v971_v52  ;;  %v1146_v12 = vmul.f32 %v1114_v26, %v9050_v15  ;;  %v11545_v17 = vld [vmem:[#allocation57_spill] sm:$0xff] }
 0x2f6   : > { %11533 = vst [vmem:[#allocation65_spill] sm:$0xff] %v9157_v32  ;;  %11534 = vst [vmem:[#allocation66_spill] sm:$0xff] %v9160_v35  ;;  %v9172_v47 = vmul.f32 %v8821_v36, %v11535_v56  ;;  %v9175_v20 = vmul.f32 %v6020_v23, %v8858_v16  ;;  %v9179_v55 = vand.u32 2147483647, %v9164_v1  ;;  %v858_v22 = vadd.f32 -1.4531521, %v826_v21 }
 0x2f7   : > { %3383 = vst [vmem:[%s6998_s23 + $0xa0] sm:$0xff] %v3351_v9  ;;  %3415 = vst [vmem:[#allocation2 + $0xaa] sm:$0xff] %v3351_v9  ;;  %v9182_v37 = vmul.f32 %v6021_v58, %v8858_v16  ;;  %v1612_v15 = vmul.f32 %v8638_v13, %v11539_v4  ;;  %v2631_v5 = vmul.f32 0.3275911, %v9167_v57  ;;  %v1035_v24 = vmul.f32 %v9063_v62, %v1003_v46  ;;  %v11543_v23 = vld [vmem:[#allocation48_spill] sm:$0xff]  ;;  %v11546_v9 = vld [vmem:[#allocation55_spill] sm:$0xff] }
 0x2f8   : > { %11536 = vst [vmem:[#allocation37_spill] sm:$0xff] %v9172_v47  ;;  %11537 = vst [vmem:[#allocation67_spill] sm:$0xff] %v9175_v20  ;;  %v4003_v41 = vmul.f32 %v8852_v50, %v3967_v61  ;;  %v1713_v63 = vmul.f32 %v11541_v59, %v11540_v43  ;;  %v2632_v39 = vmul.f32 0.3275911, %v9179_v55  ;;  %v890_v26 = vmul.f32 %v9125_v27, %v858_v22  ;;  %v11549_v4 = vld [vmem:[#allocation18_spill] sm:$0xff] }
 0x2f9   : > { %11538 = vst [vmem:[#allocation68_spill] sm:$0xff] %v9182_v37  ;;  %3384 = vst [vmem:[%s6998_s23 + $0xb0] sm:$0xff] %v3352_v8  ;;  %v1613_v3 = vmul.f32 %v8638_v13, %v11542_v28  ;;  %v2663_v52 = vadd.f32 1.0, %v2631_v5  ;;  %v1067_v45 = vadd.f32 0.2548296, %v1035_v24  ;;  %v4004_v21 = vmul.f32 %v8852_v50, %v3968_v49  ;;  %v11575_v37 = vld [vmem:[#allocation16_spill] sm:$0xff] }
 0x2fa   : > { %3416 = vst [vmem:[#allocation2 + $0xb2] sm:$0xff] %v3352_v8  ;;  %v1192_v34 = vmul.f32 1.442695, %v1146_v12  ;;  %v9198_v54 = vadd.f32 %v4003_v41, %v11543_v23  ;;  %v1714_v58 = vmul.f32 %v11541_v59, %v11545_v17  ;;  %v2664_v53 = vadd.f32 1.0, %v2632_v39  ;;  %v11547_v12 = vld [vmem:[#allocation42_spill] sm:$0xff] }
 0x2fb   : > { %v1815_v61 = vmul.f32 %v8596_v31, %v11546_v9  ;;  %v1745_v8 = vadd.f32 %v1713_v63, %v1612_v15  ;;  %5804 = vrcp.f32 %v2663_v52  ;;  %v1099_v46 = vmul.f32 %v9063_v62, %v1067_v45  ;;  %v11554_v45 = vld [vmem:[#allocation62_spill] sm:$0xff] }
 0x2fc   : > { %11544 = vst [vmem:[#allocation9_spill] sm:$0xff] %v9198_v54  ;;  %v2117_v13 = vmul.f32 %v8958_v7, %v11546_v9  ;;  %5806 = vrcp.f32 %v2664_v53  ;;  %v9208_v56 = vadd.f32 %v4004_v21, %v11547_v12  ;;  %v922_v22 = vadd.f32 1.4214138, %v890_v26  ;;  %v11550_v26 = vld [vmem:[#allocation15_spill] sm:$0xff] }
 0x2fd   : > { %v1746_v49 = vadd.f32 %v1714_v58, %v1613_v3  ;;  %v1814_v5 = vmul.f32 %v8596_v31, %v11549_v4  ;;  %v1259_v24 = vmul.f32 %v9120_v2, %v1099_v46  ;;  %5808 = vpow2.f32 %v1192_v34  ;;  %v3970_v2 = vld [vmem:[#allocation2 + $0x15c] sm:$0xff]  ;;  %v11558_v58 = vld [vmem:[#allocation44_spill] sm:$0xff] }
 0x2fe   : > { %11548 = vst [vmem:[#allocation12_spill] sm:$0xff] %v9208_v56  ;;  %v2116_v15 = vmul.f32 %v8958_v7, %v11549_v4  ;;  %v619_v62 = vmul.f32 0.5, %v8875_v48  ;;  %v9217_v41 = vmul.f32 0.5, %v8993_v51  ;;  %v954_v43 = vmul.f32 %v9125_v27, %v922_v22  ;;  %v11551_v48 = vld [vmem:[#allocation23_spill] sm:$0xff]  ;;  %v11560_v46 = vld [vmem:[#allocation38_spill] sm:$0xff] }
 0x2ff   : > { %v3690_v59 = vmul.f32 %v8834_v38, %v8840_v14  ;;  %v9222_v63 = vadd.f32 %v1814_v5, %v1745_v8  ;;  %v1291_v39 = vsub.f32 1.0, %v1259_v24  ;;  %vm1323_vm6 = vcmp.ge.f32.partialorder %v8914_v40, 0.0  ;;  %v11553_v51 = vld [vmem:[#allocation59_spill] sm:$0xff]  ;;  %v9271_v5 = vld [vmem:[%s11068_s3 + $0x1] ss:$0 sm:$0xff]  ;;  %v9279_v40 = vld [vmem:[#allocation2 + $0x50] sm:$0xff] }
 0x300   : > { %v9227_v31 = vmul.f32 %v8852_v50, %v8840_v14  ;;  %v9231_v28 = vmul.f32 %v11551_v48, %v11550_v26  ;;  %v9234_v3 = vadd.f32 %v2116_v15, %v11553_v51  ;;  %v986_v52 = vadd.f32 -0.28449672, %v954_v43  ;;  %v11556_v14 = vld [vmem:[#allocation10_spill] sm:$0xff]  ;;  %v9277_v43 = vld [vmem:[#allocation2 + $0x48] sm:$0xff]  ;;  %v11564_v26 = vld [vmem:[#allocation8_spill] sm:$0xff] }
 0x301   : > { %v9238_v34 = vmul.f32 %v11551_v48, %v11554_v45  ;;  %v3047_v21 = vsub.f32 0.0, %v9167_v57  ;;  %v1355_v23 = vsub.f32 0.0, %v1291_v39  ;;  %v9241_v17 = vadd.f32 %v1815_v61, %v1746_v49  ;;  %v11563_v49 = vld [vmem:[#allocation60_spill] sm:$0xff]  ;;  %v9292_v48 = vld [vmem:[#allocation2 + $0x78] sm:$0xff]  ;;  %v9294_v51 = vld [vmem:[#allocation2 + $0x80] sm:$0xff] }
 0x302   : > { %11552 = vst [vmem:[#allocation26_spill] sm:$0xff] %v9231_v28  ;;  %v9245_v50 = vmul.f32 %v8821_v36, %v11556_v14  ;;  %v9249_v53 = vmul.f32 %v8821_v36, %v11558_v58  ;;  %v3048_v9 = vsub.f32 0.0, %v9179_v55  ;;  %v1018_v8 = vmul.f32 %v9125_v27, %v986_v52  ;;  %11565 = vst [vmem:[#allocation18_spill] sm:$0xff] %v9292_v48  ;;  %v11567_v52 = vld [vmem:[#allocation45_spill] sm:$0xff]  ;;  %v9338_v30 = vld [vmem:[#allocation2 + $0xaa] sm:$0xff] }
 0x303   : > { %11555 = vst [vmem:[#allocation14_spill] sm:$0xff] %v9238_v34  ;;  %v9255_v12 = vmul.f32 %v8858_v16, %v11560_v46  ;;  %v9258_v22 = vmul.f32 %v8858_v16, %v3970_v2  ;;  %v1387_v61 = vsel %vm1323_vm6, %v1291_v39, %v1355_v23  ;;  %v9263_v4 = vadd.f32 %v2117_v13, %v11563_v49  ;;  %v9368_v56 = vld [vmem:[#allocation2 + $0x4c] sm:$0xff] }
 0x304   : > { %11557 = vst [vmem:[#allocation48_spill] sm:$0xff] %v9245_v50  ;;  %11559 = vst [vmem:[#allocation57_spill] sm:$0xff] %v9249_v53  ;;  %v9266_v36 = vmul.f32 0.5, %v9138_v10  ;;  %v9275_v24 = vmul.f32 %v9271_v5, %v9130_v25  ;;  %v1419_v16 = vadd.f32 1.0, %v1387_v61  ;;  %v1050_v15 = vadd.f32 0.2548296, %v1018_v8 }
 0x305   : > { %11561 = vst [vmem:[#allocation55_spill] sm:$0xff] %v9255_v12  ;;  %11562 = vst [vmem:[#allocation42_spill] sm:$0xff] %v9258_v22  ;;  %v9281_v13 = vpop.eup %5804  ;;  %v9284_v10 = vmul.f32 0.5, %v9144_v29  ;;  %v3079_v39 = vmul.f32 %v3047_v21, %v9167_v57  ;;  %v9289_v2 = vmul.f32 %v8726_v60, %v9130_v25  ;;  %vm1306_vm7 = vcmp.ge.f32.partialorder %v11564_v26, 0.0  ;;  %v1781_v57 = vld [vmem:[#allocation2 + $0xe3] sm:$0xff]  ;;  %v9343_v12 = vld [vmem:[#allocation2 + $0xb2] sm:$0xff] }
 0x306   : > { %11566 = vst [vmem:[#allocation15_spill] sm:$0xff] %v9294_v51  ;;  %v9297_v45 = vadd.f32 %v3690_v59, %v11567_v52  ;;  %v9299_v23 = vpop.eup %5806  ;;  %v2759_v29 = vmul.f32 1.0614054, %v9281_v13  ;;  %v3080_v14 = vmul.f32 %v3048_v9, %v9179_v55  ;;  %v1451_v21 = vmul.f32 %v1419_v16, %v619_v62  ;;  %v11569_v59 = vld [vmem:[#allocation61_spill] sm:$0xff]  ;;  %v9313_v52 = vld [vmem:[#allocation2 + $0x4a] sm:$0xff]  ;;  %11572 = vst [vmem:[#allocation10_spill] sm:$0xff] %v9338_v30 }
 0x307   : > { %v1082_v60 = vmul.f32 %v9125_v27, %v1050_v15  ;;  %v5809_v58 = vpop.eup %5808  ;;  %v2760_v8 = vmul.f32 1.0614054, %v9299_v23  ;;  %v9307_v46 = vmul.f32 %v8733_v6, %v9130_v25  ;;  %v3481_v61 = vmul.f32 %v11569_v59, %v9277_v43  ;;  %v9315_v9 = vld [vmem:[#allocation2 + $0xa8] sm:$0xff]  ;;  %v9321_v25 = vld [vmem:[#allocation2 + $0x52] sm:$0xff]  ;;  %v9323_v16 = vld [vmem:[#allocation2 + $0x7a] sm:$0xff]  ;;  %11574 = vst [vmem:[#allocation38_spill] sm:$0xff] %v9343_v12 }
 0x308   : > { %11568 = vst [vmem:[#allocation23_spill] sm:$0xff] %v9297_v45  ;;  %v3482_v49 = vmul.f32 %v11569_v59, %v9279_v40  ;;  %v2791_v55 = vadd.f32 -1.4531521, %v2759_v29  ;;  %1559 = vst [vmem:[#allocation2 + $0x1a2] sm:$0xff] %v1451_v21  ;;  %v3485_v27 = vmul.f32 %v11569_v59, %v9292_v48  ;;  %v3486_v6 = vmul.f32 %v11569_v59, %v9294_v51  ;;  %v9328_v29 = vld [vmem:[%s11068_s3 + $0x2] ss:$0 sm:$0xff] }
 0x309   : > { %v1242_v62 = vmul.f32 %v5809_v58, %v1082_v60  ;;  %11570 = vst [vmem:[#allocation59_spill] sm:$0xff] %v9315_v9  ;;  %v2792_v15 = vadd.f32 -1.4531521, %v2760_v8  ;;  %v3137_v19 = vmul.f32 1.442695, %v3079_v39  ;;  %v9331_v21 = vmul.f32 %v9328_v29, %v1781_v57  ;;  %v9336_v58 = vld [vmem:[#allocation2 + $0x82] sm:$0xff] }
 0x30a   : > { %v9334_v60 = vmul.f32 %v8958_v7, %v1781_v57  ;;  %11571 = vst [vmem:[#allocation62_spill] sm:$0xff] %v9336_v58  ;;  %v2823_v33 = vmul.f32 %v9281_v13, %v2791_v55  ;;  %v3139_v22 = vmul.f32 1.442695, %v3080_v14  ;;  %v9341_v39 = vld [vmem:[#allocation2 + $0xb0] sm:$0xff]  ;;  %v3582_v20 = vmul.f32 %v11575_v37, %v9313_v52 }
 0x30b   : > { %v1274_v8 = vsub.f32 1.0, %v1242_v62  ;;  %11573 = vst [vmem:[#allocation44_spill] sm:$0xff] %v9341_v39  ;;  %v2824_v34 = vmul.f32 %v9299_v23, %v2792_v15  ;;  %v3489_v28 = vmul.f32 %v11569_v59, %v9315_v9  ;;  %v3583_v53 = vmul.f32 %v11575_v37, %v9321_v25  ;;  %v9379_v26 = vld [vmem:[#allocation2 + $0xb4] sm:$0xff] }
 0x30c   : > { %v3586_v55 = vmul.f32 %v11575_v37, %v9323_v16  ;;  %v2855_v14 = vadd.f32 1.4214138, %v2823_v33  ;;  %v3587_v50 = vmul.f32 %v11575_v37, %v9336_v58  ;;  %v3590_v47 = vmul.f32 %v11575_v37, %v9338_v30  ;;  %v9373_v58 = vld [vmem:[#allocation2 + $0x7c] sm:$0xff]  ;;  %11577 = vst [vmem:[#allocation8_spill] sm:$0xff] %v9379_v26 }
 0x30d   : > { %v1338_v62 = vsub.f32 0.0, %v1274_v8  ;;  %v2856_v35 = vadd.f32 1.4214138, %v2824_v34  ;;  %5810 = vpow2.f32 %v3137_v19  ;;  %v3490_v15 = vmul.f32 %v11569_v59, %v9341_v39  ;;  %v9371_v59 = vld [vmem:[#allocation2 + $0x54] sm:$0xff] }
 0x30e   : > { %v3591_v32 = vmul.f32 %v11575_v37, %v9343_v12  ;;  %v2887_v44 = vmul.f32 %v9281_v13, %v2855_v14  ;;  %5812 = vpow2.f32 %v3139_v22  ;;  %v9364_v33 = vmul.f32 %v11525_v42, %v1781_v57  ;;  %v9375_v37 = vld [vmem:[#allocation2 + $0x84] sm:$0xff]  ;;  %v9377_v12 = vld [vmem:[#allocation2 + $0xac] sm:$0xff] }
 0x30f   : > { %v1370_v45 = vsel %vm1306_vm7, %v1274_v8, %v1338_v62  ;;  %v2888_v34 = vmul.f32 %v9299_v23, %v2856_v35  ;;  %v3614_v54 = vadd.f32 %v3582_v20, %v3481_v61  ;;  %v3615_v30 = vadd.f32 %v3583_v53, %v3482_v49  ;;  %11576 = vst [vmem:[#allocation60_spill] sm:$0xff] %v9377_v12  ;;  %v9403_v62 = vld [vmem:[%s11068_s3 + $0x10] ss:$0 sm:$0xff] }
 0x310   : > { %v1402_v19 = vadd.f32 1.0, %v1370_v45  ;;  %v2919_v22 = vadd.f32 -0.28449672, %v2887_v44  ;;  %v3618_v14 = vadd.f32 %v3586_v55, %v3485_v27  ;;  %v3619_v42 = vadd.f32 %v3587_v50, %v3486_v6  ;;  %v9398_v55 = vld [vmem:[#allocation2 + $0x108] sm:$0xff]  ;;  %11579 = vst [vmem:[#allocation61_spill] sm:$0xff] %v9403_v62 }
 0x311   : > { %v3622_v57 = vadd.f32 %v3590_v47, %v3489_v28  ;;  %v2920_v8 = vadd.f32 -0.28449672, %v2888_v34  ;;  %v3623_v45 = vadd.f32 %v3591_v32, %v3490_v15  ;;  %v3683_v20 = vmul.f32 %v8834_v38, %v9368_v56  ;;  %11578 = vst [vmem:[#allocation45_spill] sm:$0xff] %v9398_v55 }
 0x312   : > { %v1434_v35 = vmul.f32 %v1402_v19, %v9217_v41  ;;  %v2951_v53 = vmul.f32 %v9281_v13, %v2919_v22  ;;  %v3684_v61 = vmul.f32 %v8834_v38, %v9371_v59  ;;  %v3687_v44 = vmul.f32 %v8834_v38, %v9373_v58  ;;  %v9408_v19 = vld [vmem:[#allocation2 + $0x110] sm:$0xff] }
 0x313   : > { %v3688_v47 = vmul.f32 %v8834_v38, %v9375_v37  ;;  %v2952_v28 = vmul.f32 %v9299_v23, %v2920_v8  ;;  %v3691_v32 = vmul.f32 %v8834_v38, %v9377_v12  ;;  %v3692_v41 = vmul.f32 %v8834_v38, %v9379_v26  ;;  %11580 = vst [vmem:[#allocation16_spill] sm:$0xff] %v9408_v19 }
 0x314   : > { %1534 = vst [vmem:[#allocation2 + $0xda] sm:$0xff] %v1434_v35  ;;  %v3715_v50 = vadd.f32 %v3683_v20, %v3614_v54  ;;  %v2983_v49 = vadd.f32 0.2548296, %v2951_v53  ;;  %v3716_v27 = vadd.f32 %v3684_v61, %v3615_v30  ;;  %v9396_v6 = vadd.f32 %v3687_v44, %v3618_v14 }
 0x315   : > { %v3781_v15 = vmul.f32 %v9403_v62, %v9277_v43  ;;  %v2984_v34 = vadd.f32 0.2548296, %v2952_v28  ;;  %vm3239_vm8 = vcmp.ge.f32.partialorder %v9154_v18, 0.0  ;;  %v3782_v38 = vmul.f32 %v9403_v62, %v9279_v40 }
 0x316   : > { %v3785_v30 = vmul.f32 %v9403_v62, %v9292_v48  ;;  %v3786_v54 = vmul.f32 %v9403_v62, %v9294_v51  ;;  %v3015_v22 = vmul.f32 %v9281_v13, %v2983_v49  ;;  %vm3240_vm9 = vcmp.ge.f32.partialorder %v9164_v1, 0.0 }
 0x317   : > { %v9418_v14 = vadd.f32 %v3688_v47, %v3619_v42  ;;  %v9420_v43 = vadd.f32 %v3691_v32, %v3622_v57  ;;  %v9422_v8 = vadd.f32 %v3692_v41, %v3623_v45  ;;  %v5811_v20 = vpop.eup %5810  ;;  %v3016_v53 = vmul.f32 %v9299_v23, %v2984_v34  ;;  %v11585_v45 = vld [vmem:[#allocation24_spill] sm:$0xff]  ;;  %v11586_v23 = vld [vmem:[#allocation7_spill] sm:$0xff]  ;;  %v11588_v41 = vld [vmem:[#allocation25_spill] sm:$0xff] }
 0x318   : > { %v3789_v40 = vmul.f32 %v9403_v62, %v9315_v9  ;;  %v9429_v61 = vmul.f32 %v9403_v62, %v9341_v39  ;;  %v9433_v13 = vmul.f32 %v9403_v62, %v9398_v55  ;;  %v5813_v42 = vpop.eup %5812  ;;  %v3175_v44 = vmul.f32 %v5811_v20, %v3015_v22 }
 0x319   : > { %11581 = vst [vmem:[#allocation69_spill] sm:$0xff] %v9420_v43  ;;  %11582 = vst [vmem:[#allocation70_spill] sm:$0xff] %v9422_v8  ;;  %v9437_v57 = vmul.f32 %v9403_v62, %v9408_v19  ;;  %v9440_v47 = vadd.f32 %v3781_v15, %v11585_v45  ;;  %v9444_v28 = vadd.f32 %v9227_v31, %v11586_v23  ;;  %v6026_v15 = vld [vmem:[%s11068_s3 + $0x5] ss:$0 sm:$0xff]  ;;  %v6029_v23 = vld [vmem:[%s11068_s3 + $0x4] ss:$0 sm:$0xff] }
 0x31a   : > { %11583 = vst [vmem:[#allocation71_spill] sm:$0xff] %v9433_v13  ;;  %v3176_v32 = vmul.f32 %v5813_v42, %v3016_v53  ;;  %v9447_v49 = vadd.f32 %v3782_v38, %v11588_v41  ;;  %v9449_v34 = vadd.f32 %v3785_v30, %v3715_v50  ;;  %v9451_v13 = vadd.f32 %v3786_v54, %v3716_v27  ;;  %v6027_v38 = vld [vmem:[%s11068_s3 + $0x9] ss:$0 sm:$0xff]  ;;  %v6028_v27 = vld [vmem:[%s11068_s3] ss:$0 sm:$0xff] }
 0x31b   : > { %11584 = vst [vmem:[#allocation72_spill] sm:$0xff] %v9437_v57  ;;  %11587 = vst [vmem:[#allocation24_spill] sm:$0xff] %v9444_v28  ;;  %v3207_v22 = vsub.f32 1.0, %v3175_v44  ;;  %v1578_v20 = vld [vmem:[#allocation2 + $0xd9] sm:$0xff]  ;;  %v1579_v8 = vld [vmem:[#allocation2 + $0xe1] sm:$0xff]  ;;  %v1715_v57 = vmul.f32 %v9271_v5, %v1434_v35  ;;  %v2017_v31 = vmul.f32 %v6026_v15, %v1434_v35  ;;  %v2319_v53 = vmul.f32 %v6027_v38, %v1434_v35 }
 0x31c   : > { %v1780_v43 = vld [vmem:[#allocation2 + $0xdb] sm:$0xff]  ;;  %v3208_v50 = vsub.f32 1.0, %v3176_v32  ;;  %v1614_v30 = vmul.f32 %v6028_v27, %v1578_v20  ;;  %v1615_v54 = vmul.f32 %v6028_v27, %v1579_v8  ;;  %v11589_v44 = vld [vmem:[#allocation20_spill] sm:$0xff]  ;;  %v1917_v41 = vmul.f32 %v6029_v23, %v1579_v8 }
 0x31d   : > { %v1816_v5 = vmul.f32 %v9328_v29, %v1780_v43  ;;  %v3271_v42 = vsub.f32 0.0, %v3207_v22  ;;  %v1916_v45 = vmul.f32 %v11589_v44, %v1578_v20  ;;  %v2118_v15 = vmul.f32 %v8958_v7, %v1780_v43 }
 0x31e   : > { %v3272_v35 = vsub.f32 0.0, %v3208_v50  ;;  %v1747_v32 = vadd.f32 %v1715_v57, %v1614_v30  ;;  %v1748_v38 = vadd.f32 %v9275_v24, %v1615_v54  ;;  %v2218_v28 = vmul.f32 %v11531_v11, %v1578_v20 }
 0x31f   : > { %v3303_v27 = vsel %vm3239_vm8, %v3207_v22, %v3271_v42  ;;  %v1948_v29 = vadd.f32 %v1916_v45, %v9222_v63  ;;  %v1949_v44 = vadd.f32 %v1917_v41, %v9241_v17  ;;  %v2219_v19 = vmul.f32 %v11531_v11, %v1579_v8  ;;  %v11590_v17 = vld [vmem:[#allocation34_spill] sm:$0xff]  ;;  %v11591_v11 = vld [vmem:[#allocation35_spill] sm:$0xff]  ;;  %v11593_v42 = vld [vmem:[#allocation28_spill] sm:$0xff] }
 0x320   : > { %v3304_v23 = vsel %vm3240_vm9, %v3208_v50, %v3272_v35  ;;  %v3335_v7 = vadd.f32 1.0, %v3303_v27  ;;  %v1848_v55 = vadd.f32 %v1816_v5, %v1747_v32  ;;  %v1849_v57 = vadd.f32 %v9331_v21, %v1748_v38  ;;  %v11596_v41 = vld [vmem:[#allocation22_spill] sm:$0xff]  ;;  %v11598_v35 = vld [vmem:[#allocation56_spill] sm:$0xff] }
 0x321   : > { %v3336_v24 = vadd.f32 1.0, %v3304_v23  ;;  %v2049_v30 = vadd.f32 %v2017_v31, %v1948_v29  ;;  %v2050_v20 = vadd.f32 %v9289_v2, %v1949_v44  ;;  %v2250_v18 = vadd.f32 %v2218_v28, %v9234_v3  ;;  %v11592_v2 = vld [vmem:[#allocation30_spill] sm:$0xff]  ;;  %v11599_v38 = vld [vmem:[#allocation32_spill] sm:$0xff]  ;;  %v11600_v29 = vld [vmem:[#allocation29_spill] sm:$0xff] }
 0x322   : > { %v3367_v63 = vmul.f32 %v3335_v7, %v9266_v36  ;;  %v1950_v22 = vadd.f32 %v11590_v17, %v1848_v55  ;;  %v1951_v8 = vadd.f32 %v11591_v11, %v1849_v57  ;;  %v2251_v1 = vadd.f32 %v2219_v19, %v9263_v4  ;;  %v11594_v4 = vld [vmem:[#allocation39_spill] sm:$0xff]  ;;  %v11602_v7 = vld [vmem:[#allocation53_spill] sm:$0xff] }
 0x323   : > { %v3368_v50 = vmul.f32 %v3336_v24, %v9284_v10  ;;  %v2150_v54 = vadd.f32 %v2118_v15, %v2049_v30  ;;  %v2151_v21 = vadd.f32 %v9334_v60, %v2050_v20  ;;  %v2351_v5 = vadd.f32 %v2319_v53, %v2250_v18  ;;  %v11595_v10 = vld [vmem:[#allocation40_spill] sm:$0xff]  ;;  %v6030_v60 = vld [vmem:[%s11068_s3 + $0xa] ss:$0 sm:$0xff]  ;;  %v11604_v20 = vld [vmem:[#allocation33_spill] sm:$0xff] }
 0x324   : > { %3399 = vst [vmem:[%s6998_s23 + $0x1a0] sm:$0xff] %v3367_v63  ;;  %3431 = vst [vmem:[#allocation2 + $0x16a] sm:$0xff] %v3367_v63  ;;  %v2051_v31 = vadd.f32 %v11592_v2, %v1950_v22  ;;  %v2052_v3 = vadd.f32 %v11593_v42, %v1951_v8  ;;  %v2352_v36 = vadd.f32 %v9307_v46, %v2251_v1  ;;  %v11597_v15 = vld [vmem:[#allocation31_spill] sm:$0xff]  ;;  %v11606_v22 = vld [vmem:[#allocation62_spill] sm:$0xff] }
 0x325   : > { %v9492_v55 = vadd.f32 %v3789_v40, %v9396_v6  ;;  %3400 = vst [vmem:[%s6998_s23 + $0x1b0] sm:$0xff] %v3368_v50  ;;  %3432 = vst [vmem:[#allocation2 + $0x172] sm:$0xff] %v3368_v50  ;;  %v2252_v19 = vadd.f32 %v11594_v4, %v2150_v54  ;;  %v2253_v28 = vadd.f32 %v11595_v10, %v2151_v21  ;;  %v11607_v8 = vld [vmem:[#allocation51_spill] sm:$0xff]  ;;  %v11608_v54 = vld [vmem:[#allocation49_spill] sm:$0xff] }
 0x326   : > { %v2420_v53 = vmul.f32 %v6030_v60, %v1780_v43  ;;  %v9502_v45 = vadd.f32 %v9429_v61, %v9418_v14  ;;  %v2152_v46 = vadd.f32 %v11596_v41, %v2051_v31  ;;  %v2153_v6 = vadd.f32 %v11597_v15, %v2052_v3  ;;  %v11601_v14 = vld [vmem:[#allocation52_spill] sm:$0xff]  ;;  %v11610_v2 = vld [vmem:[#allocation10_spill] sm:$0xff]  ;;  %v11613_v41 = vld [vmem:[#allocation13_spill] sm:$0xff] }
 0x327   : > { %v2453_v40 = vadd.f32 %v9364_v33, %v2352_v36  ;;  %v9509_v32 = vmul.f32 %v11598_v35, %v9313_v52  ;;  %v2353_v27 = vadd.f32 %v11599_v38, %v2252_v19  ;;  %v2354_v44 = vadd.f32 %v11600_v29, %v2253_v28  ;;  %v11603_v33 = vld [vmem:[#allocation41_spill] sm:$0xff]  ;;  %v11611_v19 = vld [vmem:[#allocation38_spill] sm:$0xff]  ;;  %v9564_v60 = vld [vmem:[%s11068_s3 + $0x14] ss:$0 sm:$0xff] }
 0x328   : > { %v2452_v23 = vadd.f32 %v2420_v53, %v2351_v5  ;;  %v9515_v43 = vmul.f32 %v11598_v35, %v9321_v25  ;;  %v2254_v61 = vadd.f32 %v11601_v14, %v2152_v46  ;;  %v2255_v57 = vadd.f32 %v11602_v7, %v2153_v6  ;;  %v9531_v25 = vld [vmem:[#allocation2 + $0x10a] sm:$0xff]  ;;  %v9542_v5 = vld [vmem:[#allocation2 + $0x112] sm:$0xff]  ;;  %11612 = vst [vmem:[#allocation20_spill] sm:$0xff] %v9564_v60 }
 0x329   : > { %v9520_v24 = vadd.f32 %v8887_v0, %v2453_v40  ;;  %v9524_v52 = vmul.f32 %v11598_v35, %v9323_v16  ;;  %v2454_v30 = vadd.f32 %v11603_v33, %v2353_v27  ;;  %v2455_v18 = vadd.f32 %v11604_v20, %v2354_v44  ;;  %11605 = vst [vmem:[#allocation7_spill] sm:$0xff] %v9531_v25  ;;  %v11614_v15 = vld [vmem:[#allocation36_spill] sm:$0xff] }
 0x32a   : > { %v9529_v17 = vadd.f32 %v8887_v0, %v2452_v23  ;;  %v9535_v11 = vmul.f32 %v11598_v35, %v11606_v22  ;;  %v2355_v1 = vadd.f32 %v11607_v8, %v2254_v61  ;;  %v2356_v21 = vadd.f32 %v11608_v54, %v2255_v57  ;;  %11609 = vst [vmem:[#allocation25_spill] sm:$0xff] %v9542_v5  ;;  %v9577_v38 = vld [vmem:[%s11068_s3 + $0x15] ss:$0 sm:$0xff]  ;;  %v11618_v61 = vld [vmem:[#allocation9_spill] sm:$0xff]  ;;  %v6033_v57 = vld [vmem:[%s11069_s4] ss:$0 sm:$0xff] }
 0x32b   : > { %v9540_v16 = vmul.f32 0.70710677, %v9520_v24  ;;  %v9546_v31 = vmul.f32 %v11598_v35, %v11610_v2  ;;  %v4069_v42 = vld [vmem:[#allocation2 + $0x168] sm:$0xff]  ;;  %v9549_v3 = vadd.f32 %v8887_v0, %v2454_v30  ;;  %v9552_v36 = vadd.f32 %v8887_v0, %v2455_v18  ;;  %11616 = vst [vmem:[#allocation35_spill] sm:$0xff] %v9577_v38  ;;  %v11619_v20 = vld [vmem:[#allocation12_spill] sm:$0xff] }
 0x32c   : > { %v9555_v4 = vmul.f32 0.70710677, %v9529_v17  ;;  %v9559_v10 = vmul.f32 %v11598_v35, %v11611_v19  ;;  %v4070_v28 = vld [vmem:[#allocation2 + $0x170] sm:$0xff]  ;;  %v4105_v53 = vmul.f32 %v9564_v60, %v4069_v42  ;;  %v2456_v46 = vadd.f32 %v11613_v41, %v2355_v1 }
 0x32d   : > { %v2457_v0 = vadd.f32 %v11614_v15, %v2356_v21  ;;  %v9571_v6 = vmul.f32 %v11598_v35, %v9531_v25  ;;  %v4106_v40 = vmul.f32 %v9564_v60, %v4070_v28  ;;  %v4206_v27 = vmul.f32 %v9577_v38, %v3367_v63  ;;  %v4271_v44 = vld [vmem:[#allocation2 + $0x16c] sm:$0xff]  ;;  %v4272_v23 = vld [vmem:[#allocation2 + $0x174] sm:$0xff] }
 0x32e   : > { %v4207_v29 = vmul.f32 %v9577_v38, %v3368_v50  ;;  %v9583_v14 = vmul.f32 %v11598_v35, %v9542_v5  ;;  %v4137_v7 = vadd.f32 %v4105_v53, %v11618_v61  ;;  %v9589_v33 = vadd.f32 %v6033_v57, %v2456_v46  ;;  %v9605_v1 = vld [vmem:[%s11068_s3 + $0x16] ss:$0 sm:$0xff] }
 0x32f   : > { %11615 = vst [vmem:[#allocation34_spill] sm:$0xff] %v9571_v6  ;;  %v9591_v30 = vadd.f32 %v6033_v57, %v2457_v0  ;;  %v2586_v63 = vand.u32 2147483647, %v9540_v16  ;;  %v4138_v50 = vadd.f32 %v4106_v40, %v11619_v20  ;;  %v9596_v18 = vmul.f32 0.70710677, %v9549_v3  ;;  %11620 = vst [vmem:[#allocation28_spill] sm:$0xff] %v9605_v1 }
 0x330   : > { %11617 = vst [vmem:[#allocation30_spill] sm:$0xff] %v9583_v14  ;;  %v9599_v35 = vmul.f32 0.70710677, %v9552_v36  ;;  %v2585_v22 = vand.u32 2147483647, %v9555_v4  ;;  %v4238_v8 = vadd.f32 %v4206_v27, %v4137_v7  ;;  %v4307_v54 = vmul.f32 %v9605_v1, %v4271_v44 }
 0x331   : > { %v4308_v21 = vmul.f32 %v9605_v1, %v4272_v23  ;;  %v9610_v2 = vmul.f32 0.70710677, %v9589_v33  ;;  %v4239_v42 = vadd.f32 %v4207_v29, %v4138_v50  ;;  %v9613_v19 = vmul.f32 0.70710677, %v9591_v30  ;;  %v9622_v29 = vld [vmem:[%s11069_s4 + $0x1] ss:$0 sm:$0xff] }
 0x332   : > { %v2587_v28 = vand.u32 2147483647, %v9596_v18  ;;  %v2588_v53 = vand.u32 2147483647, %v9599_v35  ;;  %v4339_v41 = vadd.f32 %v4307_v54, %v4238_v8  ;;  %v2617_v15 = vmul.f32 0.3275911, %v2585_v22 }
 0x333   : > { %v2589_v46 = vand.u32 2147483647, %v9610_v2  ;;  %v2618_v0 = vmul.f32 0.3275911, %v2586_v63  ;;  %v4340_v40 = vadd.f32 %v4308_v21, %v4239_v42  ;;  %v2590_v27 = vand.u32 2147483647, %v9613_v19 }
 0x334   : > { %v2619_v44 = vmul.f32 0.3275911, %v2587_v28  ;;  %v2620_v23 = vmul.f32 0.3275911, %v2588_v53  ;;  %11621 = vst [vmem:[#allocation39_spill] sm:$0xff] %v9622_v29  ;;  %v9625_v61 = vadd.f32 %v9622_v29, %v4339_v41  ;;  %v2649_v57 = vadd.f32 1.0, %v2617_v15 }
 0x335   : > { %v2621_v7 = vmul.f32 0.3275911, %v2589_v46  ;;  %v2650_v20 = vadd.f32 1.0, %v2618_v0  ;;  %v9628_v50 = vadd.f32 %v9622_v29, %v4340_v40  ;;  %v2622_v8 = vmul.f32 0.3275911, %v2590_v27 }
 0x336   : > { %v2651_v54 = vadd.f32 1.0, %v2619_v44  ;;  %v2652_v21 = vadd.f32 1.0, %v2620_v23  ;;  %v9631_v42 = vmul.f32 0.70710677, %v9625_v61  ;;  %5814 = vrcp.f32 %v2649_v57 }
 0x337   : > { %v2653_v1 = vadd.f32 1.0, %v2621_v7  ;;  %v9635_v5 = vadd.f32 %v9509_v32, %v9440_v47  ;;  %v9638_v41 = vmul.f32 0.70710677, %v9628_v50  ;;  %v2654_v15 = vadd.f32 1.0, %v2622_v8 }
 0x338   : > { %5816 = vrcp.f32 %v2650_v20  ;;  %v9642_v0 = vadd.f32 %v9515_v43, %v9447_v49  ;;  %v4472_v40 = vand.u32 2147483647, %v9631_v42  ;;  %v9646_v44 = vmul.f32 0.5, %v9529_v17 }
 0x339   : > { %11622 = vst [vmem:[#allocation40_spill] sm:$0xff] %v9635_v5  ;;  %v9649_v23 = vmul.f32 0.5, %v9520_v24  ;;  %5818 = vrcp.f32 %v2651_v54  ;;  %v4473_v47 = vand.u32 2147483647, %v9638_v41  ;;  %v3033_v32 = vsub.f32 0.0, %v2585_v22 }
 0x33a   : > { %11623 = vst [vmem:[#allocation22_spill] sm:$0xff] %v9642_v0  ;;  %5820 = vrcp.f32 %v2652_v21  ;;  %v3034_v7 = vsub.f32 0.0, %v2586_v63  ;;  %v4504_v57 = vmul.f32 0.3275911, %v4472_v40  ;;  %v4920_v20 = vsub.f32 0.0, %v4472_v40 }
 0x33b   : > { %5822 = vrcp.f32 %v2653_v1  ;;  %v3035_v8 = vsub.f32 0.0, %v2587_v28  ;;  %v4505_v49 = vmul.f32 0.3275911, %v4473_v47  ;;  %v4921_v43 = vsub.f32 0.0, %v4473_v47 }
 0x33c   : > { %5824 = vrcp.f32 %v2654_v15  ;;  %v3036_v29 = vsub.f32 0.0, %v2588_v53  ;;  %v4536_v25 = vadd.f32 1.0, %v4504_v57  ;;  %v4952_v17 = vmul.f32 %v4920_v20, %v4472_v40 }
 0x33d   : > { %v3037_v14 = vsub.f32 0.0, %v2589_v46  ;;  %v3038_v6 = vsub.f32 0.0, %v2590_v27  ;;  %v4537_v24 = vadd.f32 1.0, %v4505_v49  ;;  %v4953_v38 = vmul.f32 %v4921_v43, %v4473_v47 }
 0x33e   : > { %v3065_v54 = vmul.f32 %v3033_v32, %v2585_v22  ;;  %v3066_v62 = vmul.f32 %v3034_v7, %v2586_v63  ;;  %5826 = vrcp.f32 %v4536_v25  ;;  %v5006_v21 = vmul.f32 1.442695, %v4952_v17 }
 0x33f   : > { %v3067_v39 = vmul.f32 %v3035_v8, %v2587_v28  ;;  %v3068_v9 = vmul.f32 %v3036_v29, %v2588_v53  ;;  %5828 = vrcp.f32 %v4537_v24  ;;  %v5008_v51 = vmul.f32 1.442695, %v4953_v38 }
 0x340   : > { %v9653_v1 = vmul.f32 0.5, %v9549_v3  ;;  %v3069_v60 = vmul.f32 %v3037_v14, %v2589_v46  ;;  %v9655_v15 = vpop.eup %5814  ;;  %v9658_v40 = vmul.f32 0.5, %v9552_v36  ;;  %v3070_v57 = vmul.f32 %v3038_v6, %v2590_v27 }
 0x341   : > { %v3109_v20 = vmul.f32 1.442695, %v3065_v54  ;;  %v3111_v47 = vmul.f32 1.442695, %v3066_v62  ;;  %5830 = vpow2.f32 %v5006_v21  ;;  %v9663_v25 = vmul.f32 0.5, %v9589_v33 }
 0x342   : > { %v9660_v22 = vpop.eup %5816  ;;  %v2745_v38 = vmul.f32 1.0614054, %v9655_v15  ;;  %v3113_v63 = vmul.f32 1.442695, %v3067_v39  ;;  %5832 = vpow2.f32 %v5008_v51  ;;  %v9669_v14 = vmul.f32 0.5, %v9591_v30 }
 0x343   : > { %v9666_v3 = vpop.eup %5818  ;;  %v2746_v36 = vmul.f32 1.0614054, %v9660_v22  ;;  %v3115_v6 = vmul.f32 1.442695, %v3068_v9  ;;  %5834 = vpow2.f32 %v3109_v20  ;;  %v3117_v33 = vmul.f32 1.442695, %v3069_v60 }
 0x344   : > { %v9672_v28 = vpop.eup %5820  ;;  %v2747_v62 = vmul.f32 1.0614054, %v9666_v3  ;;  %v2777_v53 = vadd.f32 -1.4531521, %v2745_v38  ;;  %5836 = vpow2.f32 %v3111_v47  ;;  %v3119_v51 = vmul.f32 1.442695, %v3070_v57 }
 0x345   : > { %v9675_v46 = vpop.eup %5822  ;;  %v2748_v39 = vmul.f32 1.0614054, %v9672_v28  ;;  %v2778_v27 = vadd.f32 -1.4531521, %v2746_v36  ;;  %5838 = vpow2.f32 %v3113_v63  ;;  %vm3225_vm10 = vcmp.ge.f32.partialorder %v9555_v4, 0.0 }
 0x346   : > { %v9678_v29 = vpop.eup %5824  ;;  %v2749_v30 = vmul.f32 1.0614054, %v9675_v46  ;;  %v2779_v32 = vadd.f32 -1.4531521, %v2747_v62  ;;  %v2809_v9 = vmul.f32 %v9655_v15, %v2777_v53  ;;  %5840 = vpow2.f32 %v3115_v6 }
 0x347   : > { %v2750_v7 = vmul.f32 1.0614054, %v9678_v29  ;;  %v2780_v8 = vadd.f32 -1.4531521, %v2748_v39  ;;  %v2810_v60 = vmul.f32 %v9660_v22, %v2778_v27  ;;  %5842 = vpow2.f32 %v3117_v33 }
 0x348   : > { %v2781_v49 = vadd.f32 -1.4531521, %v2749_v30  ;;  %v2811_v43 = vmul.f32 %v9666_v3, %v2779_v32  ;;  %v2841_v17 = vadd.f32 1.4214138, %v2809_v9  ;;  %v9685_v24 = vpop.eup %5826  ;;  %5844 = vpow2.f32 %v3119_v51 }
 0x349   : > { %v2782_v54 = vadd.f32 -1.4531521, %v2750_v7  ;;  %v2812_v21 = vmul.f32 %v9672_v28, %v2780_v8  ;;  %v2842_v57 = vadd.f32 1.4214138, %v2810_v60  ;;  %v9688_v20 = vpop.eup %5828  ;;  %v4632_v47 = vmul.f32 1.0614054, %v9685_v24 }
 0x34a   : > { %v2813_v38 = vmul.f32 %v9675_v46, %v2781_v49  ;;  %v2843_v63 = vadd.f32 1.4214138, %v2811_v43  ;;  %v2873_v36 = vmul.f32 %v9655_v15, %v2841_v17  ;;  %v4633_v6 = vmul.f32 1.0614054, %v9688_v20 }
 0x34b   : > { %v2814_v62 = vmul.f32 %v9678_v29, %v2782_v54  ;;  %v2844_v53 = vadd.f32 1.4214138, %v2812_v21  ;;  %v2874_v33 = vmul.f32 %v9660_v22, %v2842_v57  ;;  %v9696_v39 = vpop.eup %5830  ;;  %v4664_v27 = vadd.f32 -1.4531521, %v4632_v47 }
 0x34c   : > { %v2845_v51 = vadd.f32 1.4214138, %v2813_v38  ;;  %v2875_v30 = vmul.f32 %v9666_v3, %v2843_v63  ;;  %v2905_v32 = vadd.f32 -0.28449672, %v2873_v36  ;;  %v9699_v9 = vpop.eup %5832  ;;  %v4665_v7 = vadd.f32 -1.4531521, %v4633_v6 }
 0x34d   : > { %v2846_v8 = vadd.f32 1.4214138, %v2814_v62  ;;  %v2876_v60 = vmul.f32 %v9672_v28, %v2844_v53  ;;  %v2906_v49 = vadd.f32 -0.28449672, %v2874_v33  ;;  %v5835_v43 = vpop.eup %5834  ;;  %v4696_v17 = vmul.f32 %v9685_v24, %v4664_v27 }
 0x34e   : > { %v2877_v54 = vmul.f32 %v9675_v46, %v2845_v51  ;;  %v2907_v21 = vadd.f32 -0.28449672, %v2875_v30  ;;  %v2937_v57 = vmul.f32 %v9655_v15, %v2905_v32  ;;  %v5837_v47 = vpop.eup %5836  ;;  %v4697_v38 = vmul.f32 %v9688_v20, %v4665_v7 }
 0x34f   : > { %v2878_v63 = vmul.f32 %v9678_v29, %v2846_v8  ;;  %v2908_v36 = vadd.f32 -0.28449672, %v2876_v60  ;;  %v2938_v6 = vmul.f32 %v9660_v22, %v2906_v49  ;;  %v5839_v62 = vpop.eup %5838  ;;  %v4728_v48 = vadd.f32 1.4214138, %v4696_v17 }
 0x350   : > { %v2909_v53 = vadd.f32 -0.28449672, %v2877_v54  ;;  %v2939_v33 = vmul.f32 %v9666_v3, %v2907_v21  ;;  %v2969_v0 = vadd.f32 0.2548296, %v2937_v57  ;;  %v5841_v27 = vpop.eup %5840  ;;  %v4729_v5 = vadd.f32 1.4214138, %v4697_v38 }
 0x351   : > { %v2910_v51 = vadd.f32 -0.28449672, %v2878_v63  ;;  %v2940_v30 = vmul.f32 %v9672_v28, %v2908_v36  ;;  %v2970_v32 = vadd.f32 0.2548296, %v2938_v6  ;;  %v5843_v26 = vpop.eup %5842  ;;  %v4760_v7 = vmul.f32 %v9685_v24, %v4728_v48 }
 0x352   : > { %v2941_v8 = vmul.f32 %v9675_v46, %v2909_v53  ;;  %v2971_v60 = vadd.f32 0.2548296, %v2939_v33  ;;  %v3001_v49 = vmul.f32 %v9655_v15, %v2969_v0  ;;  %v5845_v12 = vpop.eup %5844  ;;  %v4761_v17 = vmul.f32 %v9688_v20, %v4729_v5 }
 0x353   : > { %v2942_v54 = vmul.f32 %v9678_v29, %v2910_v51  ;;  %v2972_v21 = vadd.f32 0.2548296, %v2940_v30  ;;  %v3002_v57 = vmul.f32 %v9660_v22, %v2970_v32  ;;  %vm3226_vm11 = vcmp.ge.f32.partialorder %v9540_v16, 0.0 }
 0x354   : > { %v4792_v38 = vadd.f32 -0.28449672, %v4760_v7  ;;  %v2973_v63 = vadd.f32 0.2548296, %v2941_v8  ;;  %v3003_v48 = vmul.f32 %v9666_v3, %v2971_v60  ;;  %v3161_v36 = vmul.f32 %v5835_v43, %v3001_v49 }
 0x355   : > { %vm3227_vm12 = vcmp.ge.f32.partialorder %v9596_v18, 0.0  ;;  %vm3228_vm13 = vcmp.ge.f32.partialorder %v9599_v35, 0.0  ;;  %v4793_v0 = vadd.f32 -0.28449672, %v4761_v17  ;;  %v2974_v5 = vadd.f32 0.2548296, %v2942_v54 }
 0x356   : > { %v3004_v15 = vmul.f32 %v9672_v28, %v2972_v21  ;;  %v3162_v6 = vmul.f32 %v5837_v47, %v3002_v57  ;;  %v4824_v22 = vmul.f32 %v9685_v24, %v4792_v38  ;;  %v3005_v53 = vmul.f32 %v9675_v46, %v2973_v63 }
 0x357   : > { %v3163_v33 = vmul.f32 %v5839_v62, %v3003_v48  ;;  %v3193_v51 = vsub.f32 1.0, %v3161_v36  ;;  %v4825_v30 = vmul.f32 %v9688_v20, %v4793_v0  ;;  %v3006_v3 = vmul.f32 %v9678_v29, %v2974_v5 }
 0x358   : > { %v3164_v43 = vmul.f32 %v5841_v27, %v3004_v15  ;;  %v3194_v32 = vsub.f32 1.0, %v3162_v6  ;;  %v4856_v7 = vadd.f32 0.2548296, %v4824_v22  ;;  %v3165_v8 = vmul.f32 %v5843_v26, %v3005_v53 }
 0x359   : > { %v3195_v60 = vsub.f32 1.0, %v3163_v33  ;;  %vm3229_vm14 = vcmp.ge.f32.partialorder %v9610_v2, 0.0  ;;  %v4857_v49 = vadd.f32 0.2548296, %v4825_v30  ;;  %vm5112_vm15 = vcmp.ge.f32.partialorder %v9631_v42, 0.0 }
 0x35a   : > { %v3166_v28 = vmul.f32 %v5845_v12, %v3006_v3  ;;  %v3196_v47 = vsub.f32 1.0, %v3164_v43  ;;  %vm3230_vm0 = vcmp.ge.f32.partialorder %v9613_v19, 0.0  ;;  %v4888_v46 = vmul.f32 %v9685_v24, %v4856_v7  ;;  %v9792_v43 = vld [vmem:[#allocation2 + $0x10c] sm:$0xff] }
 0x35b   : > { %v3197_v62 = vsub.f32 1.0, %v3165_v8  ;;  %v3257_v17 = vsub.f32 0.0, %v3193_v51  ;;  %v3258_v54 = vsub.f32 0.0, %v3194_v32  ;;  %v4889_v29 = vmul.f32 %v9688_v20, %v4857_v49  ;;  %11624 = vst [vmem:[#allocation31_spill] sm:$0xff] %v9792_v43  ;;  %v11626_v8 = vld [vmem:[#allocation60_spill] sm:$0xff] }
 0x35c   : > { %v3198_v27 = vsub.f32 1.0, %v3166_v28  ;;  %v3259_v21 = vsub.f32 0.0, %v3195_v60  ;;  %v3260_v26 = vsub.f32 0.0, %v3196_v47  ;;  %v5048_v57 = vmul.f32 %v9696_v39, %v4888_v46  ;;  %v11628_v49 = vld [vmem:[#allocation40_spill] sm:$0xff] }
 0x35d   : > { %v3261_v38 = vsub.f32 0.0, %v3197_v62  ;;  %v3289_v63 = vsel %vm3225_vm10, %v3193_v51, %v3257_v17  ;;  %v3290_v12 = vsel %vm3226_vm11, %v3194_v32, %v3258_v54  ;;  %v5049_v48 = vmul.f32 %v9699_v9, %v4889_v29  ;;  %v9801_v32 = vld [vmem:[%s11068_s3 + $0x12] ss:$0 sm:$0xff]  ;;  %v11632_v29 = vld [vmem:[#allocation18_spill] sm:$0xff] }
 0x35e   : > { %v3262_v24 = vsub.f32 0.0, %v3198_v27  ;;  %v3291_v36 = vsel %vm3227_vm12, %v3195_v60, %v3259_v21  ;;  %v3292_v20 = vsel %vm3228_vm13, %v3196_v47, %v3260_v26  ;;  %v5080_v0 = vsub.f32 1.0, %v5048_v57  ;;  %v11634_v26 = vld [vmem:[#allocation15_spill] sm:$0xff] }
 0x35f   : > { %v3293_v39 = vsel %vm3229_vm14, %v3197_v62, %v3261_v38  ;;  %v3321_v5 = vadd.f32 1.0, %v3289_v63  ;;  %v3322_v15 = vadd.f32 1.0, %v3290_v12  ;;  %v5081_v4 = vsub.f32 1.0, %v5049_v48  ;;  %v11635_v38 = vld [vmem:[#allocation59_spill] sm:$0xff] }
 0x360   : > { %v3294_v16 = vsel %vm3230_vm0, %v3198_v27, %v3262_v24  ;;  %v3323_v6 = vadd.f32 1.0, %v3291_v36  ;;  %v3324_v9 = vadd.f32 1.0, %v3292_v20  ;;  %v5144_v22 = vsub.f32 0.0, %v5080_v0  ;;  %v11633_v27 = vld [vmem:[#allocation20_spill] sm:$0xff]  ;;  %v6037_v24 = vld [vmem:[%s11068_s3 + $0xc] ss:$0 sm:$0xff] }
 0x361   : > { %v3325_v53 = vadd.f32 1.0, %v3293_v39  ;;  %v3326_v18 = vadd.f32 1.0, %v3294_v16  ;;  %v9746_v35 = vmul.f32 %v3321_v5, %v9646_v44  ;;  %v5145_v2 = vsub.f32 0.0, %v5081_v4  ;;  %v6038_v20 = vld [vmem:[%s11068_s3 + $0xd] ss:$0 sm:$0xff]  ;;  %v11636_v5 = vld [vmem:[#allocation44_spill] sm:$0xff] }
 0x362   : > { %v9749_v33 = vmul.f32 %v3322_v15, %v9649_v23  ;;  %v9752_v51 = vmul.f32 %v3323_v6, %v9653_v1  ;;  %v9755_v19 = vmul.f32 %v3324_v9, %v9658_v40  ;;  %vm5113_vm1 = vcmp.ge.f32.partialorder %v9638_v41, 0.0 }
 0x363   : > { %v5176_v30 = vsel %vm5112_vm15, %v5080_v0, %v5144_v22  ;;  %v9761_v3 = vmul.f32 %v3325_v53, %v9663_v25  ;;  %v9764_v44 = vmul.f32 %v3326_v18, %v9669_v14  ;;  %3385 = vst [vmem:[%s6998_s23 + $0xc0] sm:$0xff] %v9746_v35  ;;  %3417 = vst [vmem:[#allocation2 + $0xc2] sm:$0xff] %v9746_v35  ;;  %v4408_v23 = vmul.f32 0.5, %v9625_v61 }
 0x364   : > { %v5177_v1 = vsel %vm5113_vm1, %v5081_v4, %v5145_v2  ;;  %v5208_v40 = vadd.f32 1.0, %v5176_v30  ;;  %3386 = vst [vmem:[%s6998_s23 + $0xd0] sm:$0xff] %v9749_v33  ;;  %3387 = vst [vmem:[%s6998_s23 + $0xe0] sm:$0xff] %v9752_v51  ;;  %v3918_v42 = vadd.f32 %v9524_v52, %v9449_v34  ;;  %v4409_v41 = vmul.f32 0.5, %v9628_v50  ;;  %v9794_v34 = vld [vmem:[#allocation2 + $0x114] sm:$0xff] }
 0x365   : > { %3388 = vst [vmem:[%s6998_s23 + $0xf0] sm:$0xff] %v9755_v19  ;;  %3418 = vst [vmem:[#allocation2 + $0xca] sm:$0xff] %v9749_v33  ;;  %v5209_v61 = vadd.f32 1.0, %v5177_v1  ;;  %v3919_v25 = vadd.f32 %v9535_v11, %v9451_v13  ;;  %v3922_v14 = vadd.f32 %v9546_v31, %v9492_v55  ;;  %v3923_v50 = vadd.f32 %v9559_v10, %v9502_v45  ;;  %v11627_v10 = vld [vmem:[#allocation8_spill] sm:$0xff] }
 0x366   : > { %3419 = vst [vmem:[#allocation2 + $0xda] sm:$0xff] %v9752_v51  ;;  %3420 = vst [vmem:[#allocation2 + $0xe2] sm:$0xff] %v9755_v19  ;;  %v5240_v52 = vmul.f32 %v5208_v40, %v4408_v23  ;;  %v3983_v13 = vmul.f32 %v9801_v32, %v9368_v56  ;;  %v3984_v55 = vmul.f32 %v9801_v32, %v9371_v59 }
 0x367   : > { %3389 = vst [vmem:[%s6998_s23 + $0x100] sm:$0xff] %v9761_v3  ;;  %3390 = vst [vmem:[%s6998_s23 + $0x110] sm:$0xff] %v9764_v44  ;;  %v5241_v11 = vmul.f32 %v5209_v61, %v4409_v41  ;;  %v3987_v31 = vmul.f32 %v9801_v32, %v9373_v58  ;;  %v3988_v7 = vmul.f32 %v9801_v32, %v9375_v37  ;;  %v11629_v37 = vld [vmem:[#allocation22_spill] sm:$0xff] }
 0x368   : > { %3421 = vst [vmem:[#allocation2 + $0xf2] sm:$0xff] %v9761_v3  ;;  %3422 = vst [vmem:[#allocation2 + $0xfa] sm:$0xff] %v9764_v44  ;;  %v3991_v45 = vmul.f32 %v9801_v32, %v11626_v8  ;;  %v3992_v60 = vmul.f32 %v9801_v32, %v11627_v10  ;;  %v9818_v56 = vmul.f32 %v9801_v32, %v9792_v43 }
 0x369   : > { %11625 = vst [vmem:[#allocation56_spill] sm:$0xff] %v9794_v34  ;;  %5272 = vst [vmem:[%s6998_s23 + $0x168] sm:$0xff] %v5240_v52  ;;  %v9822_v59 = vmul.f32 %v9801_v32, %v9794_v34  ;;  %v9825_v58 = vadd.f32 %v3983_v13, %v11628_v49  ;;  %v9829_v28 = vadd.f32 %v3984_v55, %v11629_v37  ;;  %v11642_v52 = vld [vmem:[#allocation61_spill] sm:$0xff]  ;;  %v6040_v49 = vld [vmem:[%s11068_s3 + $0x11] ss:$0 sm:$0xff] }
 0x36a   : > { %5273 = vst [vmem:[%s6998_s23 + $0x178] sm:$0xff] %v5241_v11  ;;  %v9831_v47 = vadd.f32 %v3987_v31, %v3918_v42  ;;  %v9833_v46 = vadd.f32 %v3988_v7, %v3919_v25  ;;  %v9835_v62 = vadd.f32 %v3991_v45, %v3922_v14  ;;  %v9837_v17 = vld [vmem:[#allocation2 + $0xc0] sm:$0xff]  ;;  %v9839_v54 = vadd.f32 %v3992_v60, %v3923_v50  ;;  %v6039_v31 = vld [vmem:[%s11068_s3 + $0xe] ss:$0 sm:$0xff] }
 0x36b   : > { %v9843_v21 = vmul.f32 %v11633_v27, %v11632_v29  ;;  %v9847_v57 = vmul.f32 %v11633_v27, %v11634_v26  ;;  %v9851_v63 = vmul.f32 %v11633_v27, %v11635_v38  ;;  %v3491_v36 = vmul.f32 %v6037_v24, %v9837_v17  ;;  %v11646_v34 = vld [vmem:[#allocation47_spill] sm:$0xff] }
 0x36c   : > { %11630 = vst [vmem:[#allocation32_spill] sm:$0xff] %v9835_v62  ;;  %11631 = vst [vmem:[#allocation29_spill] sm:$0xff] %v9839_v54  ;;  %v9853_v12 = vld [vmem:[#allocation2 + $0xc8] sm:$0xff]  ;;  %v3592_v0 = vmul.f32 %v6038_v20, %v9746_v35  ;;  %v3593_v39 = vmul.f32 %v6038_v20, %v9749_v33  ;;  %v9868_v15 = vmul.f32 %v11633_v27, %v11636_v5 }
 0x36d   : > { %v9855_v48 = vld [vmem:[#allocation2 + $0xd8] sm:$0xff]  ;;  %v3492_v6 = vmul.f32 %v6037_v24, %v9853_v12  ;;  %v3594_v9 = vmul.f32 %v6038_v20, %v9752_v51  ;;  %v3595_v22 = vmul.f32 %v6038_v20, %v9755_v19  ;;  %v3596_v53 = vmul.f32 %v6038_v20, %v9761_v3  ;;  %v9878_v18 = vld [vmem:[#allocation2 + $0xc4] sm:$0xff]  ;;  %v9885_v42 = vld [vmem:[#allocation2 + $0xcc] sm:$0xff] }
 0x36e   : > { %11637 = vst [vmem:[#allocation52_spill] sm:$0xff] %v9868_v15  ;;  %11638 = vst [vmem:[#allocation53_spill] sm:$0xff] %v9878_v18  ;;  %v9880_v2 = vld [vmem:[#allocation2 + $0xe0] sm:$0xff]  ;;  %v3597_v1 = vmul.f32 %v6038_v20, %v9764_v44  ;;  %v3624_v40 = vadd.f32 %v3592_v0, %v3491_v36  ;;  %v3493_v41 = vmul.f32 %v6037_v24, %v9855_v48 }
 0x36f   : > { %v9870_v4 = vld [vmem:[#allocation2 + $0xf0] sm:$0xff]  ;;  %v9872_v16 = vld [vmem:[#allocation2 + $0xf8] sm:$0xff]  ;;  %11639 = vst [vmem:[#allocation41_spill] sm:$0xff] %v9885_v42  ;;  %v3625_v61 = vadd.f32 %v3593_v39, %v3492_v6  ;;  %v3791_v50 = vmul.f32 %v11642_v52, %v9837_v17  ;;  %v3792_v13 = vmul.f32 %v11642_v52, %v9853_v12  ;;  %v3693_v7 = vmul.f32 %v6039_v31, %v9878_v18 }
 0x370   : > { %v3495_v30 = vmul.f32 %v6037_v24, %v9870_v4  ;;  %v3496_v23 = vmul.f32 %v6037_v24, %v9872_v16  ;;  %v9888_v25 = vld [vmem:[#allocation2 + $0xf4] sm:$0xff]  ;;  %v9890_v14 = vld [vmem:[#allocation2 + $0xfc] sm:$0xff]  ;;  %v3694_v8 = vmul.f32 %v6039_v31, %v9885_v42  ;;  %v3494_v45 = vmul.f32 %v6037_v24, %v9880_v2 }
 0x371   : > { %11640 = vst [vmem:[#allocation33_spill] sm:$0xff] %v9888_v25  ;;  %11641 = vst [vmem:[#allocation62_spill] sm:$0xff] %v9890_v14  ;;  %v3697_v10 = vmul.f32 %v6039_v31, %v9888_v25  ;;  %v3698_v60 = vmul.f32 %v6039_v31, %v9890_v14  ;;  %v3892_v37 = vmul.f32 %v6040_v49, %v9746_v35  ;;  %v9908_v29 = vld [vmem:[#allocation2 + $0xdc] sm:$0xff] }
 0x372   : > { %v3628_v55 = vadd.f32 %v3596_v53, %v3495_v30  ;;  %v3629_v11 = vadd.f32 %v3597_v1, %v3496_v23  ;;  %v3725_v26 = vadd.f32 %v3693_v7, %v3624_v40  ;;  %v3726_v38 = vadd.f32 %v3694_v8, %v3625_v61  ;;  %v9916_v53 = vld [vmem:[#allocation2 + $0xe4] sm:$0xff] }
 0x373   : > { %v3893_v36 = vmul.f32 %v6040_v49, %v9749_v33  ;;  %v3896_v20 = vmul.f32 %v6040_v49, %v9761_v3  ;;  %v3795_v39 = vmul.f32 %v11642_v52, %v9870_v4  ;;  %v3796_v5 = vmul.f32 %v11642_v52, %v9872_v16  ;;  %v11643_v30 = vld [vmem:[#allocation27_spill] sm:$0xff] }
 0x374   : > { %v3729_v0 = vadd.f32 %v3697_v10, %v3628_v55  ;;  %v3730_v24 = vadd.f32 %v3698_v60, %v3629_v11  ;;  %v3626_v6 = vadd.f32 %v3594_v9, %v3493_v41  ;;  %v3823_v23 = vadd.f32 %v3791_v50, %v11643_v30  ;;  %v11644_v1 = vld [vmem:[#allocation23_spill] sm:$0xff]  ;;  %v11645_v10 = vld [vmem:[#allocation46_spill] sm:$0xff]  ;;  %v4065_v9 = vld [vmem:[#allocation2 + $0x138] sm:$0xff] }
 0x375   : > { %v3824_v40 = vadd.f32 %v3792_v13, %v11644_v1  ;;  %v3897_v61 = vmul.f32 %v6040_v49, %v9764_v44  ;;  %v3627_v7 = vadd.f32 %v3595_v22, %v3494_v45  ;;  %v3695_v8 = vmul.f32 %v6039_v31, %v9908_v29  ;;  %v4066_v41 = vld [vmem:[#allocation2 + $0x140] sm:$0xff] }
 0x376   : > { %v3827_v55 = vadd.f32 %v3795_v39, %v3725_v26  ;;  %v3828_v11 = vadd.f32 %v3796_v5, %v3726_v38  ;;  %v3831_v60 = vadd.f32 %v11645_v10, %v3729_v0  ;;  %v3832_v43 = vadd.f32 %v11646_v34, %v3730_v24  ;;  %v11647_v26 = vld [vmem:[#allocation6_spill] sm:$0xff]  ;;  %v11648_v0 = vld [vmem:[#allocation19_spill] sm:$0xff]  ;;  %v11649_v34 = vld [vmem:[#allocation45_spill] sm:$0xff] }
 0x377   : > { %v3924_v54 = vadd.f32 %v3892_v37, %v3823_v23  ;;  %v3925_v62 = vadd.f32 %v3893_v36, %v3824_v40  ;;  %v3696_v15 = vmul.f32 %v6039_v31, %v9916_v53  ;;  %v3793_v50 = vmul.f32 %v11642_v52, %v9855_v48  ;;  %v11650_v36 = vld [vmem:[#allocation16_spill] sm:$0xff]  ;;  %v11651_v23 = vld [vmem:[#allocation69_spill] sm:$0xff] }
 0x378   : > { %v3928_v13 = vadd.f32 %v3896_v20, %v3827_v55  ;;  %v3929_v30 = vadd.f32 %v3897_v61, %v3828_v11  ;;  %v3727_v22 = vadd.f32 %v3695_v8, %v3626_v6  ;;  %v3794_v45 = vmul.f32 %v11642_v52, %v9880_v2  ;;  %v11652_v61 = vld [vmem:[#allocation35_spill] sm:$0xff] }
 0x379   : > { %v3932_v38 = vadd.f32 %v11647_v26, %v3831_v60  ;;  %v3933_v39 = vadd.f32 %v11648_v0, %v3832_v43  ;;  %v9933_v37 = vmul.f32 %v11633_v27, %v11649_v34  ;;  %v9937_v31 = vmul.f32 %v11633_v27, %v11650_v36  ;;  %v11654_v11 = vld [vmem:[#allocation71_spill] sm:$0xff]  ;;  %v11655_v60 = vld [vmem:[#allocation72_spill] sm:$0xff]  ;;  %v11656_v0 = vld [vmem:[#allocation58_spill] sm:$0xff] }
 0x37a   : > { %v9940_v24 = vmul.f32 %v11633_v27, %v4065_v9  ;;  %v9943_v20 = vmul.f32 %v11633_v27, %v4066_v41  ;;  %v3728_v5 = vadd.f32 %v3696_v15, %v3627_v7  ;;  %v3894_v52 = vmul.f32 %v6040_v49, %v9752_v51  ;;  %v11653_v15 = vld [vmem:[#allocation70_spill] sm:$0xff]  ;;  %v11657_v36 = vld [vmem:[#allocation65_spill] sm:$0xff] }
 0x37b   : > { %v3895_v6 = vmul.f32 %v6040_v49, %v9755_v19  ;;  %v9949_v43 = vadd.f32 %v9843_v21, %v9825_v58  ;;  %v3825_v1 = vadd.f32 %v3793_v50, %v11651_v23  ;;  %v4091_v40 = vmul.f32 %v11633_v27, %v9837_v17 }
 0x37c   : > { %v4192_v8 = vmul.f32 %v11652_v61, %v9746_v35  ;;  %v4193_v55 = vmul.f32 %v11652_v61, %v9749_v33  ;;  %v3826_v7 = vadd.f32 %v3794_v45, %v11653_v15  ;;  %v3829_v10 = vadd.f32 %v11654_v11, %v3727_v22  ;;  %v11658_v11 = vld [vmem:[#allocation34_spill] sm:$0xff] }
 0x37d   : > { %v3997_v49 = vmul.f32 %v9801_v32, %v9888_v25  ;;  %v3998_v58 = vmul.f32 %v9801_v32, %v9890_v14  ;;  %v3993_v21 = vmul.f32 %v9801_v32, %v9878_v18  ;;  %v3994_v17 = vmul.f32 %v9801_v32, %v9885_v42  ;;  %v11660_v42 = vld [vmem:[#allocation24_spill] sm:$0xff] }
 0x37e   : > { %v4092_v35 = vmul.f32 %v11633_v27, %v9853_v12  ;;  %v4095_v33 = vmul.f32 %v11633_v27, %v9870_v4  ;;  %v3830_v9 = vadd.f32 %v11655_v60, %v3728_v5  ;;  %v4096_v22 = vmul.f32 %v11633_v27, %v9872_v16  ;;  %v11659_v12 = vld [vmem:[#allocation43_spill] sm:$0xff]  ;;  %v11661_v16 = vld [vmem:[#allocation30_spill] sm:$0xff] }
 0x37f   : > { %v4029_v41 = vadd.f32 %v3997_v49, %v3928_v13  ;;  %v4030_v50 = vadd.f32 %v3998_v58, %v3929_v30  ;;  %v4025_v45 = vadd.f32 %v3993_v21, %v3924_v54  ;;  %v4026_v26 = vadd.f32 %v3994_v17, %v3925_v62 }
 0x380   : > { %v4033_v34 = vadd.f32 %v11656_v0, %v3932_v38  ;;  %v4034_v23 = vadd.f32 %v11657_v36, %v3933_v39  ;;  %v3926_v15 = vadd.f32 %v3894_v52, %v3825_v1  ;;  %v3930_v14 = vadd.f32 %v11658_v11, %v3829_v10  ;;  %v11662_v38 = vld [vmem:[#allocation66_spill] sm:$0xff]  ;;  %v11663_v52 = vld [vmem:[#allocation37_spill] sm:$0xff]  ;;  %v11664_v10 = vld [vmem:[#allocation48_spill] sm:$0xff] }
 0x381   : > { %v4123_v25 = vadd.f32 %v4091_v40, %v11659_v12  ;;  %v4124_v4 = vadd.f32 %v4092_v35, %v11660_v42  ;;  %v3927_v18 = vadd.f32 %v3895_v6, %v3826_v7  ;;  %v4127_v5 = vadd.f32 %v4095_v33, %v4025_v45  ;;  %v11665_v6 = vld [vmem:[#allocation57_spill] sm:$0xff]  ;;  %v6042_v0 = vld [vmem:[#allocation2 + $0x82] sm:$0xff] }
 0x382   : > { %v4128_v13 = vadd.f32 %v4096_v22, %v4026_v26  ;;  %v4196_v30 = vmul.f32 %v11652_v61, %v9761_v3  ;;  %v3931_v54 = vadd.f32 %v11661_v16, %v3830_v9  ;;  %v3995_v62 = vmul.f32 %v9801_v32, %v9908_v29  ;;  %v4166_v22 = vld [vmem:[#allocation2 + $0x13a] sm:$0xff]  ;;  %v4167_v11 = vld [vmem:[#allocation2 + $0x142] sm:$0xff]  ;;  %v6044_v12 = vld [vmem:[#allocation2 + $0xb2] sm:$0xff] }
 0x383   : > { %v4131_v39 = vadd.f32 %v11662_v38, %v4029_v41  ;;  %v4132_v1 = vadd.f32 %v11663_v52, %v4030_v50  ;;  %v3996_v40 = vmul.f32 %v9801_v32, %v9916_v53  ;;  %v4135_v42 = vadd.f32 %v11664_v10, %v4033_v34  ;;  %v11666_v41 = vld [vmem:[#allocation50_spill] sm:$0xff]  ;;  %v11672_v36 = vld [vmem:[#allocation29_spill] sm:$0xff] }
 0x384   : > { %v4136_v7 = vadd.f32 %v11665_v6, %v4034_v23  ;;  %v4197_v49 = vmul.f32 %v11652_v61, %v9764_v44  ;;  %v4027_v3 = vadd.f32 %v3995_v62, %v3926_v15  ;;  %v4031_v58 = vadd.f32 %v9818_v56, %v3930_v14  ;;  %v11667_v56 = vld [vmem:[#allocation54_spill] sm:$0xff] }
 0x385   : > { %v9994_v21 = vadd.f32 %v4192_v8, %v4123_v25  ;;  %v9996_v17 = vadd.f32 %v4193_v55, %v4124_v4  ;;  %v4093_v35 = vmul.f32 %v11633_v27, %v9855_v48  ;;  %v4094_v32 = vmul.f32 %v11633_v27, %v9880_v2  ;;  %v11668_v27 = vld [vmem:[#allocation26_spill] sm:$0xff] }
 0x386   : > { %v10002_v33 = vadd.f32 %v4196_v30, %v4127_v5  ;;  %v10004_v60 = vadd.f32 %v4197_v49, %v4128_v13  ;;  %v4028_v9 = vadd.f32 %v3996_v40, %v3927_v18  ;;  %v4032_v44 = vadd.f32 %v9822_v59, %v3931_v54  ;;  %v11669_v8 = vld [vmem:[#allocation14_spill] sm:$0xff]  ;;  %v11670_v59 = vld [vmem:[#allocation52_spill] sm:$0xff]  ;;  %v11673_v54 = vld [vmem:[#allocation7_spill] sm:$0xff] }
 0x387   : > { %v10008_v50 = vadd.f32 %v11666_v41, %v4131_v39  ;;  %v10011_v25 = vadd.f32 %v11667_v56, %v4132_v1  ;;  %v4118_v14 = vadd.f32 %v9847_v57, %v9829_v28  ;;  %v4121_v48 = vadd.f32 %v9851_v63, %v9831_v47  ;;  %v6041_v45 = vld [vmem:[#allocation2 + $0x7a] sm:$0xff]  ;;  %v6043_v28 = vld [vmem:[#allocation2 + $0xaa] sm:$0xff] }
 0x388   : > { %v10018_v2 = vadd.f32 %v11668_v27, %v4135_v42  ;;  %v10021_v55 = vadd.f32 %v11669_v8, %v4136_v7  ;;  %v4122_v18 = vadd.f32 %v11670_v59, %v9833_v46  ;;  %v4186_v26 = vmul.f32 %v6041_v45, %v11652_v61  ;;  %v11671_v47 = vld [vmem:[#allocation32_spill] sm:$0xff]  ;;  %v4267_v7 = vld [vmem:[#allocation2 + $0x13c] sm:$0xff] }
 0x389   : > { %v4187_v34 = vmul.f32 %v6042_v0, %v11652_v61  ;;  %v4190_v57 = vmul.f32 %v6043_v28, %v11652_v61  ;;  %v4125_v63 = vadd.f32 %v4093_v35, %v11671_v47  ;;  %v4126_v23 = vadd.f32 %v4094_v32, %v11672_v36  ;;  %v6045_v49 = vld [vmem:[#allocation2 + $0x7c] sm:$0xff]  ;;  %v4268_v35 = vld [vmem:[#allocation2 + $0x144] sm:$0xff]  ;;  %v11681_v28 = vld [vmem:[#allocation56_spill] sm:$0xff] }
 0x38a   : > { %v4129_v15 = vadd.f32 %v9933_v37, %v4027_v3  ;;  %v4191_v46 = vmul.f32 %v6044_v12, %v11652_v61  ;;  %v4130_v4 = vadd.f32 %v9937_v31, %v4028_v9  ;;  %v4133_v5 = vadd.f32 %v9940_v24, %v4031_v58  ;;  %v11674_v37 = vld [vmem:[#allocation25_spill] sm:$0xff]  ;;  %v11675_v3 = vld [vmem:[#allocation28_spill] sm:$0xff]  ;;  %v6046_v32 = vld [vmem:[#allocation2 + $0x84] sm:$0xff] }
 0x38b   : > { %v4134_v13 = vadd.f32 %v9943_v20, %v4032_v44  ;;  %v4194_v30 = vmul.f32 %v11652_v61, %v9752_v51  ;;  %v4195_v16 = vmul.f32 %v11652_v61, %v9755_v19  ;;  %v4198_v62 = vmul.f32 %v11652_v61, %v11673_v54  ;;  %v6048_v44 = vld [vmem:[#allocation2 + $0xb4] sm:$0xff]  ;;  %v11679_v45 = vld [vmem:[#allocation62_spill] sm:$0xff]  ;;  %v11680_v0 = vld [vmem:[#allocation31_spill] sm:$0xff] }
 0x38c   : > { %v4199_v38 = vmul.f32 %v11652_v61, %v11674_v37  ;;  %v4202_v39 = vmul.f32 %v11652_v61, %v4166_v22  ;;  %v4203_v31 = vmul.f32 %v11652_v61, %v4167_v11  ;;  %v4218_v24 = vadd.f32 %v4186_v26, %v9949_v43  ;;  %v6047_v61 = vld [vmem:[#allocation2 + $0xac] sm:$0xff]  ;;  %v11676_v56 = vld [vmem:[#allocation53_spill] sm:$0xff] }
 0x38d   : > { %v4219_v52 = vadd.f32 %v4187_v34, %v4118_v14  ;;  %v4222_v20 = vadd.f32 %v4190_v57, %v4121_v48  ;;  %v4223_v1 = vadd.f32 %v4191_v46, %v4122_v18  ;;  %v4226_v40 = vadd.f32 %v4194_v30, %v4125_v63  ;;  %v11677_v48 = vld [vmem:[#allocation41_spill] sm:$0xff] }
 0x38e   : > { %v4227_v51 = vadd.f32 %v4195_v16, %v4126_v23  ;;  %v4230_v10 = vadd.f32 %v4198_v62, %v4129_v15  ;;  %v4231_v42 = vadd.f32 %v4199_v38, %v4130_v4  ;;  %v4234_v19 = vadd.f32 %v4202_v39, %v4133_v5  ;;  %v11678_v18 = vld [vmem:[#allocation33_spill] sm:$0xff]  ;;  %v11682_v16 = vld [vmem:[#allocation67_spill] sm:$0xff]  ;;  %v11683_v62 = vld [vmem:[#allocation68_spill] sm:$0xff] }
 0x38f   : > { %v4235_v6 = vadd.f32 %v4203_v31, %v4134_v13  ;;  %v4287_v58 = vmul.f32 %v6045_v49, %v11675_v3  ;;  %v4288_v9 = vmul.f32 %v6046_v32, %v11675_v3  ;;  %v4291_v43 = vmul.f32 %v6047_v61, %v11675_v3 }
 0x390   : > { %v4292_v41 = vmul.f32 %v6048_v44, %v11675_v3  ;;  %v4293_v14 = vmul.f32 %v11675_v3, %v11676_v56  ;;  %v4294_v27 = vmul.f32 %v11675_v3, %v11677_v48  ;;  %v4295_v8 = vmul.f32 %v11675_v3, %v9908_v29 }
 0x391   : > { %v4296_v59 = vmul.f32 %v11675_v3, %v9916_v53  ;;  %v4297_v22 = vmul.f32 %v11675_v3, %v11678_v18  ;;  %v4298_v26 = vmul.f32 %v11675_v3, %v11679_v45  ;;  %v4299_v34 = vmul.f32 %v11675_v3, %v11680_v0 }
 0x392   : > { %v4300_v57 = vmul.f32 %v11675_v3, %v11681_v28  ;;  %v4303_v47 = vmul.f32 %v11675_v3, %v4267_v7  ;;  %v4304_v63 = vmul.f32 %v11675_v3, %v4268_v35  ;;  %v4319_v29 = vadd.f32 %v4287_v58, %v4218_v24 }
 0x393   : > { %v4320_v36 = vadd.f32 %v4288_v9, %v4219_v52  ;;  %v4323_v23 = vadd.f32 %v4291_v43, %v4222_v20  ;;  %v4324_v53 = vadd.f32 %v4292_v41, %v4223_v1  ;;  %v4325_v15 = vadd.f32 %v4293_v14, %v9994_v21  ;;  %v11684_v21 = vld [vmem:[#allocation55_spill] sm:$0xff] }
 0x394   : > { %v4326_v11 = vadd.f32 %v4294_v27, %v9996_v17  ;;  %v4327_v12 = vadd.f32 %v4295_v8, %v4226_v40  ;;  %v4328_v46 = vadd.f32 %v4296_v59, %v4227_v51  ;;  %v4329_v4 = vadd.f32 %v4297_v22, %v10002_v33  ;;  %v11685_v17 = vld [vmem:[#allocation39_spill] sm:$0xff]  ;;  %v11686_v51 = vld [vmem:[#allocation42_spill] sm:$0xff] }
 0x395   : > { %v4330_v5 = vadd.f32 %v4298_v26, %v10004_v60  ;;  %v4331_v13 = vadd.f32 %v4299_v34, %v4230_v10  ;;  %v4332_v30 = vadd.f32 %v4300_v57, %v4231_v42  ;;  %v4333_v54 = vadd.f32 %v11682_v16, %v10008_v50 }
 0x396   : > { %v4334_v37 = vadd.f32 %v11683_v62, %v10011_v25  ;;  %v4335_v38 = vadd.f32 %v4303_v47, %v4234_v19  ;;  %v4336_v39 = vadd.f32 %v4304_v63, %v4235_v6  ;;  %v4337_v31 = vadd.f32 %v11684_v21, %v10018_v2 }
 0x397   : > { %v4356_v24 = vadd.f32 %v11685_v17, %v4319_v29  ;;  %v4357_v52 = vadd.f32 %v11685_v17, %v4320_v36  ;;  %v4360_v33 = vadd.f32 %v11685_v17, %v4323_v23  ;;  %v4361_v60 = vadd.f32 %v11685_v17, %v4324_v53 }
 0x398   : > { %v4362_v20 = vadd.f32 %v11685_v17, %v4325_v15  ;;  %v4363_v50 = vadd.f32 %v11685_v17, %v4326_v11  ;;  %v4364_v1 = vadd.f32 %v11685_v17, %v4327_v12  ;;  %v4365_v25 = vadd.f32 %v11685_v17, %v4328_v46 }
 0x399   : > { %v4366_v40 = vadd.f32 %v11685_v17, %v4329_v4  ;;  %v4367_v2 = vadd.f32 %v11685_v17, %v4330_v5  ;;  %v4338_v10 = vadd.f32 %v11686_v51, %v10021_v55  ;;  %v4368_v42 = vadd.f32 %v11685_v17, %v4331_v13 }
 0x39a   : > { %v4369_v19 = vadd.f32 %v11685_v17, %v4332_v30  ;;  %v4370_v6 = vadd.f32 %v11685_v17, %v4333_v54  ;;  %v4371_v7 = vadd.f32 %v11685_v17, %v4334_v37  ;;  %v4372_v49 = vadd.f32 %v11685_v17, %v4335_v38 }
 0x39b   : > { %v10095_v3 = vmul.f32 0.5, %v4356_v24  ;;  %v10097_v58 = vmul.f32 0.5, %v4357_v52  ;;  %v10099_v35 = vmul.f32 0.5, %v4360_v33  ;;  %v10101_v32 = vmul.f32 0.5, %v4361_v60 }
 0x39c   : > { %v10103_v9 = vmul.f32 0.5, %v4362_v20  ;;  %v10105_v55 = vmul.f32 0.5, %v4363_v50  ;;  %v10107_v61 = vmul.f32 0.5, %v4364_v1  ;;  %v10109_v43 = vmul.f32 0.5, %v4365_v25 }
 0x39d   : > { %11687 = vst [vmem:[#allocation51_spill] sm:$0xff] %v10095_v3  ;;  %11688 = vst [vmem:[#allocation49_spill] sm:$0xff] %v10097_v58  ;;  %v10111_v44 = vmul.f32 0.5, %v4366_v40  ;;  %v10113_v41 = vmul.f32 0.5, %v4367_v2  ;;  %v10115_v56 = vmul.f32 0.5, %v4368_v42  ;;  %v10117_v14 = vmul.f32 0.5, %v4369_v19 }
 0x39e   : > { %11689 = vst [vmem:[#allocation10_spill] sm:$0xff] %v10099_v35  ;;  %11690 = vst [vmem:[#allocation38_spill] sm:$0xff] %v10101_v32  ;;  %v10119_v48 = vmul.f32 0.5, %v4370_v6  ;;  %v10121_v27 = vmul.f32 0.70710677, %v4356_v24  ;;  %v4373_v8 = vadd.f32 %v11685_v17, %v4336_v39  ;;  %v4374_v45 = vadd.f32 %v11685_v17, %v4337_v31 }
 0x39f   : > { %11691 = vst [vmem:[#allocation13_spill] sm:$0xff] %v10103_v9  ;;  %11692 = vst [vmem:[#allocation36_spill] sm:$0xff] %v10105_v55  ;;  %v10124_v59 = vmul.f32 0.70710677, %v4357_v52  ;;  %v10126_v18 = vmul.f32 0.70710677, %v4360_v33  ;;  %v4375_v28 = vadd.f32 %v11685_v17, %v4338_v10 }
 0x3a0   : > { %11693 = vst [vmem:[#allocation9_spill] sm:$0xff] %v10107_v61  ;;  %11694 = vst [vmem:[#allocation12_spill] sm:$0xff] %v10109_v43  ;;  %v10128_v22 = vmul.f32 0.70710677, %v4361_v60  ;;  %v10131_v26 = vmul.f32 0.70710677, %v4362_v20 }
 0x3a1   : > { %11695 = vst [vmem:[#allocation60_spill] sm:$0xff] %v10111_v44  ;;  %11696 = vst [vmem:[#allocation8_spill] sm:$0xff] %v10113_v41  ;;  %v10133_v0 = vmul.f32 0.70710677, %v4363_v50  ;;  %v10135_v34 = vmul.f32 0.70710677, %v4364_v1 }
 0x3a2   : > { %11697 = vst [vmem:[#allocation40_spill] sm:$0xff] %v10115_v56  ;;  %11698 = vst [vmem:[#allocation22_spill] sm:$0xff] %v10117_v14  ;;  %v10138_v57 = vmul.f32 0.70710677, %v4365_v25  ;;  %v10140_v47 = vmul.f32 0.70710677, %v4366_v40 }
 0x3a3   : > { %11699 = vst [vmem:[#allocation18_spill] sm:$0xff] %v10119_v48  ;;  %11700 = vst [vmem:[#allocation20_spill] sm:$0xff] %v10121_v27  ;;  %v10142_v63 = vmul.f32 0.70710677, %v4367_v2  ;;  %v10144_v29 = vmul.f32 0.70710677, %v4368_v42 }
 0x3a4   : > { %11701 = vst [vmem:[#allocation15_spill] sm:$0xff] %v10124_v59  ;;  %11702 = vst [vmem:[#allocation59_spill] sm:$0xff] %v10126_v18  ;;  %v10146_v36 = vmul.f32 0.70710677, %v4369_v19  ;;  %v10148_v23 = vmul.f32 0.70710677, %v4370_v6 }
 0x3a5   : > { %11703 = vst [vmem:[#allocation44_spill] sm:$0xff] %v10128_v22  ;;  %11704 = vst [vmem:[#allocation61_spill] sm:$0xff] %v10131_v26  ;;  %v10150_v53 = vmul.f32 0.70710677, %v4371_v7  ;;  %v10152_v15 = vmul.f32 0.70710677, %v4372_v49 }
 0x3a6   : > { %11705 = vst [vmem:[#allocation27_spill] sm:$0xff] %v10133_v0  ;;  %11706 = vst [vmem:[#allocation23_spill] sm:$0xff] %v10135_v34  ;;  %v10155_v11 = vand.u32 2147483647, %v10121_v27  ;;  %v10157_v12 = vmul.f32 0.70710677, %v4373_v8 }
 0x3a7   : > { %11707 = vst [vmem:[#allocation46_spill] sm:$0xff] %v10138_v57  ;;  %11708 = vst [vmem:[#allocation47_spill] sm:$0xff] %v10140_v47  ;;  %v10159_v46 = vmul.f32 0.70710677, %v4374_v45  ;;  %v10162_v4 = vand.u32 2147483647, %v10124_v59 }
 0x3a8   : > { %11709 = vst [vmem:[#allocation6_spill] sm:$0xff] %v10142_v63  ;;  %11710 = vst [vmem:[#allocation19_spill] sm:$0xff] %v10144_v29  ;;  %v10164_v5 = vmul.f32 0.70710677, %v4375_v28  ;;  %v10167_v13 = vand.u32 2147483647, %v10126_v18 }
 0x3a9   : > { %11711 = vst [vmem:[#allocation45_spill] sm:$0xff] %v10146_v36  ;;  %11712 = vst [vmem:[#allocation16_spill] sm:$0xff] %v10148_v23  ;;  %v10170_v30 = vand.u32 2147483647, %v10128_v22  ;;  %v10173_v16 = vand.u32 2147483647, %v10131_v26 }
 0x3aa   : > { %11713 = vst [vmem:[#allocation69_spill] sm:$0xff] %v10150_v53  ;;  %11714 = vst [vmem:[#allocation35_spill] sm:$0xff] %v10152_v15  ;;  %v10176_v54 = vand.u32 2147483647, %v10133_v0  ;;  %v10179_v62 = vand.u32 2147483647, %v10135_v34 }
 0x3ab   : > { %11715 = vst [vmem:[#allocation70_spill] sm:$0xff] %v10157_v12  ;;  %11716 = vst [vmem:[#allocation71_spill] sm:$0xff] %v10159_v46  ;;  %v10182_v37 = vand.u32 2147483647, %v10138_v57  ;;  %v10185_v38 = vand.u32 2147483647, %v10140_v47 }
 0x3ac   : > { %11717 = vst [vmem:[#allocation72_spill] sm:$0xff] %v10164_v5  ;;  %v4484_v39 = vmul.f32 0.3275911, %v10155_v11  ;;  %v10189_v21 = vand.u32 2147483647, %v10142_v63  ;;  %v10209_v1 = vmul.f32 0.5, %v4371_v7 }
 0x3ad   : > { %v10192_v31 = vand.u32 2147483647, %v10144_v29  ;;  %v4485_v17 = vmul.f32 0.3275911, %v10162_v4  ;;  %v10196_v24 = vand.u32 2147483647, %v10146_v36 }
 0x3ae   : > { %v10199_v52 = vand.u32 2147483647, %v10148_v23  ;;  %v4488_v33 = vmul.f32 0.3275911, %v10167_v13  ;;  %v10203_v60 = vand.u32 2147483647, %v10150_v53 }
 0x3af   : > { %v10206_v20 = vand.u32 2147483647, %v10152_v15  ;;  %v4489_v50 = vmul.f32 0.3275911, %v10170_v30  ;;  %11718 = vst [vmem:[#allocation58_spill] sm:$0xff] %v10209_v1  ;;  %v4516_v2 = vadd.f32 1.0, %v4484_v39 }
 0x3b0   : > { %v10212_v25 = vand.u32 2147483647, %v10157_v12  ;;  %v4490_v40 = vmul.f32 0.3275911, %v10173_v16  ;;  %v10215_v51 = vmul.f32 0.5, %v4372_v49  ;;  %v4517_v19 = vadd.f32 1.0, %v4485_v17 }
 0x3b1   : > { %v10218_v10 = vand.u32 2147483647, %v10159_v46  ;;  %v4491_v42 = vmul.f32 0.3275911, %v10176_v54  ;;  %v10221_v6 = vmul.f32 0.5, %v4373_v8  ;;  %v4520_v1 = vadd.f32 1.0, %v4488_v33 }
 0x3b2   : > { %11719 = vst [vmem:[#allocation65_spill] sm:$0xff] %v10215_v51  ;;  %v10224_v48 = vand.u32 2147483647, %v10164_v5  ;;  %v4492_v7 = vmul.f32 0.3275911, %v10179_v62  ;;  %v10227_v14 = vmul.f32 0.5, %v4374_v45  ;;  %5846 = vrcp.f32 %v4516_v2 }
 0x3b3   : > { %11720 = vst [vmem:[#allocation34_spill] sm:$0xff] %v10221_v6  ;;  %v4493_v39 = vmul.f32 0.3275911, %v10182_v37  ;;  %v4494_v49 = vmul.f32 0.3275911, %v10185_v38  ;;  %v4521_v51 = vadd.f32 1.0, %v4489_v50  ;;  %5848 = vrcp.f32 %v4517_v19 }
 0x3b4   : > { %11721 = vst [vmem:[#allocation43_spill] sm:$0xff] %v10227_v14  ;;  %v4495_v56 = vmul.f32 0.3275911, %v10189_v21  ;;  %v4496_v41 = vmul.f32 0.3275911, %v10192_v31  ;;  %v4522_v17 = vadd.f32 1.0, %v4490_v40  ;;  %5850 = vrcp.f32 %v4520_v1 }
 0x3b5   : > { %v4497_v8 = vmul.f32 0.3275911, %v10196_v24  ;;  %v4498_v6 = vmul.f32 0.3275911, %v10199_v52  ;;  %v4523_v44 = vadd.f32 1.0, %v4491_v42  ;;  %v4524_v14 = vadd.f32 1.0, %v4492_v7 }
 0x3b6   : > { %v4499_v45 = vmul.f32 0.3275911, %v10203_v60  ;;  %v4500_v33 = vmul.f32 0.3275911, %v10206_v20  ;;  %v4501_v50 = vmul.f32 0.3275911, %v10212_v25  ;;  %5852 = vrcp.f32 %v4521_v51 }
 0x3b7   : > { %v4502_v43 = vmul.f32 0.3275911, %v10218_v10  ;;  %v4525_v61 = vadd.f32 1.0, %v4493_v39  ;;  %v10239_v40 = vmul.f32 0.5, %v4375_v28  ;;  %v4503_v2 = vmul.f32 0.3275911, %v10224_v48 }
 0x3b8   : > { %v4526_v55 = vadd.f32 1.0, %v4494_v49  ;;  %5854 = vrcp.f32 %v4522_v17  ;;  %v4527_v42 = vadd.f32 1.0, %v4495_v56  ;;  %v4528_v19 = vadd.f32 1.0, %v4496_v41  ;;  %v6049_v7 = vld [vmem:[%s11067_s2] ss:$0 sm:$0xff]  ;;  %v11723_v1 = vld [vmem:[#allocation11_spill] sm:$0xff] }
 0x3b9   : > { %11722 = vst [vmem:[#allocation24_spill] sm:$0xff] %v10239_v40  ;;  %5856 = vrcp.f32 %v4523_v44  ;;  %v10246_v9 = vadd.f32 %v6049_v7, %v11723_v1  ;;  %v4529_v32 = vadd.f32 1.0, %v4497_v8  ;;  %v4530_v35 = vadd.f32 1.0, %v4498_v6 }
 0x3ba   : > { %v4531_v39 = vadd.f32 1.0, %v4499_v45  ;;  %5858 = vrcp.f32 %v4524_v14  ;;  %v4532_v28 = vadd.f32 1.0, %v4500_v33  ;;  %v4533_v51 = vadd.f32 1.0, %v4501_v50 }
 0x3bb   : > { %11724 = vst [vmem:[#allocation30_spill] sm:$0xff] %v10246_v9  ;;  %v4534_v40 = vadd.f32 1.0, %v4502_v43  ;;  %5860 = vrcp.f32 %v4525_v61  ;;  %v4535_v49 = vadd.f32 1.0, %v4503_v2  ;;  %v4900_v41 = vsub.f32 0.0, %v10155_v11 }
 0x3bc   : > { %5862 = vrcp.f32 %v4526_v55  ;;  %v4901_v44 = vsub.f32 0.0, %v10162_v4  ;;  %v4904_v56 = vsub.f32 0.0, %v10167_v13  ;;  %v4905_v17 = vsub.f32 0.0, %v10170_v30  ;;  %v10253_v6 = vpop.eup %5846 }
 0x3bd   : > { %5864 = vrcp.f32 %v4527_v42  ;;  %v4906_v8 = vsub.f32 0.0, %v10173_v16  ;;  %v4907_v14 = vsub.f32 0.0, %v10176_v54  ;;  %v4908_v61 = vsub.f32 0.0, %v10179_v62  ;;  %v10258_v43 = vpop.eup %5848 }
 0x3be   : > { %5866 = vrcp.f32 %v4528_v19  ;;  %v4909_v55 = vsub.f32 0.0, %v10182_v37  ;;  %v4910_v45 = vsub.f32 0.0, %v10185_v38  ;;  %v4911_v33 = vsub.f32 0.0, %v10189_v21  ;;  %v10263_v2 = vpop.eup %5850 }
 0x3bf   : > { %5868 = vrcp.f32 %v4529_v32  ;;  %v4912_v50 = vsub.f32 0.0, %v10192_v31  ;;  %v4612_v42 = vmul.f32 1.0614054, %v10253_v6  ;;  %v4913_v19 = vsub.f32 0.0, %v10196_v24 }
 0x3c0   : > { %5870 = vrcp.f32 %v4530_v35  ;;  %v4914_v7 = vsub.f32 0.0, %v10199_v52  ;;  %v10268_v1 = vpop.eup %5852  ;;  %v4915_v32 = vsub.f32 0.0, %v10203_v60  ;;  %v4916_v58 = vsub.f32 0.0, %v10206_v20 }
 0x3c1   : > { %5872 = vrcp.f32 %v4531_v39  ;;  %v4917_v3 = vsub.f32 0.0, %v10212_v25  ;;  %v4918_v35 = vsub.f32 0.0, %v10218_v10  ;;  %v4919_v46 = vsub.f32 0.0, %v10224_v48 }
 0x3c2   : > { %v10273_v5 = vpop.eup %5854  ;;  %5874 = vrcp.f32 %v4532_v28  ;;  %v10278_v12 = vmul.f32 %v4900_v41, %v10155_v11  ;;  %v10283_v39 = vmul.f32 %v4901_v44, %v10162_v4  ;;  %v10286_v53 = vmul.f32 %v4904_v56, %v10167_v13 }
 0x3c3   : > { %v10280_v15 = vpop.eup %5856  ;;  %5876 = vrcp.f32 %v4533_v51  ;;  %v10289_v23 = vmul.f32 %v4905_v17, %v10170_v30  ;;  %v4613_v36 = vmul.f32 1.0614054, %v10258_v43  ;;  %v4616_v11 = vmul.f32 1.0614054, %v10263_v2 }
 0x3c4   : > { %v10291_v28 = vpop.eup %5858  ;;  %5878 = vrcp.f32 %v4534_v40  ;;  %v4644_v41 = vadd.f32 -1.4531521, %v4612_v42  ;;  %v4617_v4 = vmul.f32 1.0614054, %v10268_v1  ;;  %v10299_v51 = vmul.f32 %v4906_v8, %v10173_v16 }
 0x3c5   : > { %v10295_v29 = vpop.eup %5860  ;;  %5880 = vrcp.f32 %v4535_v49  ;;  %v10302_v13 = vmul.f32 %v4907_v14, %v10176_v54  ;;  %v4618_v40 = vmul.f32 1.0614054, %v10273_v5  ;;  %v10308_v44 = vmul.f32 %v4908_v61, %v10179_v62 }
 0x3c6   : > { %v10304_v30 = vpop.eup %5862  ;;  %v10311_v56 = vmul.f32 %v4909_v55, %v10182_v37  ;;  %v10314_v49 = vmul.f32 %v4910_v45, %v10185_v38  ;;  %v4619_v16 = vmul.f32 1.0614054, %v10280_v15  ;;  %v10320_v54 = vmul.f32 %v4911_v33, %v10189_v21 }
 0x3c7   : > { %v10316_v17 = vpop.eup %5864  ;;  %v10323_v8 = vmul.f32 %v4912_v50, %v10192_v31  ;;  %v10326_v14 = vmul.f32 %v4913_v19, %v10196_v24  ;;  %v4645_v37 = vadd.f32 -1.4531521, %v4613_v36  ;;  %v4648_v61 = vadd.f32 -1.4531521, %v4616_v11 }
 0x3c8   : > { %v10328_v62 = vpop.eup %5866  ;;  %v4676_v38 = vmul.f32 %v10253_v6, %v4644_v41  ;;  %v10332_v55 = vmul.f32 %v4914_v7, %v10199_v52  ;;  %v4620_v21 = vmul.f32 1.0614054, %v10291_v28  ;;  %v4621_v33 = vmul.f32 1.0614054, %v10295_v29 }
 0x3c9   : > { %11725 = vst [vmem:[#allocation66_spill] sm:$0xff] %v10326_v14  ;;  %v10334_v45 = vpop.eup %5868  ;;  %v4649_v31 = vadd.f32 -1.4531521, %v4617_v4  ;;  %v10339_v50 = vmul.f32 %v4915_v32, %v10203_v60  ;;  %v4622_v36 = vmul.f32 1.0614054, %v10304_v30  ;;  %v10346_v52 = vmul.f32 %v4916_v58, %v10206_v20 }
 0x3ca   : > { %11726 = vst [vmem:[#allocation37_spill] sm:$0xff] %v10332_v55  ;;  %v10341_v24 = vpop.eup %5870  ;;  %v4623_v42 = vmul.f32 1.0614054, %v10316_v17  ;;  %v4650_v19 = vadd.f32 -1.4531521, %v4618_v40  ;;  %v10353_v60 = vmul.f32 %v4917_v3, %v10212_v25  ;;  %v10360_v58 = vmul.f32 %v4918_v35, %v10218_v10 }
 0x3cb   : > { %11727 = vst [vmem:[#allocation48_spill] sm:$0xff] %v10339_v50  ;;  %11728 = vst [vmem:[#allocation57_spill] sm:$0xff] %v10346_v52  ;;  %v10348_v7 = vpop.eup %5872  ;;  %v4624_v11 = vmul.f32 1.0614054, %v10328_v62  ;;  %v4625_v41 = vmul.f32 1.0614054, %v10334_v45  ;;  %v10370_v18 = vmul.f32 %v4919_v46, %v10224_v48  ;;  %v4681_v27 = vmul.f32 %v10268_v1, %v4649_v31 }
 0x3cc   : > { %v4651_v4 = vadd.f32 -1.4531521, %v4619_v16  ;;  %11729 = vst [vmem:[#allocation50_spill] sm:$0xff] %v10353_v60  ;;  %v10355_v32 = vpop.eup %5874  ;;  %v4626_v63 = vmul.f32 1.0614054, %v10341_v24  ;;  %11730 = vst [vmem:[#allocation54_spill] sm:$0xff] %v10360_v58  ;;  %v4677_v16 = vmul.f32 %v10258_v43, %v4645_v37 }
 0x3cd   : > { %v4627_v47 = vmul.f32 1.0614054, %v10348_v7  ;;  %v4708_v40 = vadd.f32 1.4214138, %v4676_v38  ;;  %v10362_v20 = vpop.eup %5876  ;;  %v4628_v57 = vmul.f32 1.0614054, %v10355_v32 }
 0x3ce   : > { %v4652_v34 = vadd.f32 -1.4531521, %v4620_v21  ;;  %v4653_v0 = vadd.f32 -1.4531521, %v4621_v33  ;;  %v10366_v3 = vpop.eup %5878  ;;  %v4629_v25 = vmul.f32 1.0614054, %v10362_v20  ;;  %v4680_v21 = vmul.f32 %v10263_v2, %v4648_v61 }
 0x3cf   : > { %v4654_v26 = vadd.f32 -1.4531521, %v4622_v36  ;;  %v4655_v22 = vadd.f32 -1.4531521, %v4623_v42  ;;  %11731 = vst [vmem:[#allocation26_spill] sm:$0xff] %v10370_v18  ;;  %v10372_v38 = vpop.eup %5880  ;;  %v4682_v42 = vmul.f32 %v10273_v5, %v4650_v19  ;;  %v4683_v18 = vmul.f32 %v10280_v15, %v4651_v4 }
 0x3d0   : > { %v4630_v10 = vmul.f32 1.0614054, %v10366_v3  ;;  %v4656_v35 = vadd.f32 -1.4531521, %v4624_v11  ;;  %v4657_v59 = vadd.f32 -1.4531521, %v4625_v41  ;;  %v4684_v60 = vmul.f32 %v10291_v28, %v4652_v34 }
 0x3d1   : > { %v4631_v33 = vmul.f32 1.0614054, %v10372_v38  ;;  %v4658_v37 = vadd.f32 -1.4531521, %v4626_v63  ;;  %v4659_v9 = vadd.f32 -1.4531521, %v4627_v47  ;;  %v4685_v11 = vmul.f32 %v10295_v29, %v4653_v0 }
 0x3d2   : > { %v4660_v58 = vadd.f32 -1.4531521, %v4628_v57  ;;  %v4661_v36 = vadd.f32 -1.4531521, %v4629_v25  ;;  %v4709_v48 = vadd.f32 1.4214138, %v4677_v16  ;;  %v4686_v61 = vmul.f32 %v10304_v30, %v4654_v26 }
 0x3d3   : > { %v4662_v46 = vadd.f32 -1.4531521, %v4630_v10  ;;  %v4663_v41 = vadd.f32 -1.4531521, %v4631_v33  ;;  %v4687_v63 = vmul.f32 %v10316_v17, %v4655_v22  ;;  %v4688_v47 = vmul.f32 %v10328_v62, %v4656_v35 }
 0x3d4   : > { %v4689_v57 = vmul.f32 %v10334_v45, %v4657_v59  ;;  %v4690_v31 = vmul.f32 %v10341_v24, %v4658_v37  ;;  %v4691_v19 = vmul.f32 %v10348_v7, %v4659_v9  ;;  %v4712_v16 = vadd.f32 1.4214138, %v4680_v21 }
 0x3d5   : > { %v4692_v4 = vmul.f32 %v10355_v32, %v4660_v58  ;;  %v4693_v34 = vmul.f32 %v10362_v20, %v4661_v36  ;;  %v4713_v25 = vadd.f32 1.4214138, %v4681_v27  ;;  %v4714_v0 = vadd.f32 1.4214138, %v4682_v42 }
 0x3d6   : > { %v4694_v10 = vmul.f32 %v10366_v3, %v4662_v46  ;;  %v4715_v26 = vadd.f32 1.4214138, %v4683_v18  ;;  %v4716_v33 = vadd.f32 1.4214138, %v4684_v60  ;;  %v4717_v22 = vadd.f32 1.4214138, %v4685_v11 }
 0x3d7   : > { %v4695_v35 = vmul.f32 %v10372_v38, %v4663_v41  ;;  %v4718_v52 = vadd.f32 1.4214138, %v4686_v61  ;;  %v4719_v59 = vadd.f32 1.4214138, %v4687_v63  ;;  %v4720_v50 = vadd.f32 1.4214138, %v4688_v47 }
 0x3d8   : > { %v4721_v37 = vadd.f32 1.4214138, %v4689_v57  ;;  %v4722_v55 = vadd.f32 1.4214138, %v4690_v31  ;;  %v4723_v9 = vadd.f32 1.4214138, %v4691_v19  ;;  %v4740_v21 = vmul.f32 %v10253_v6, %v4708_v40 }
 0x3d9   : > { %v4724_v58 = vadd.f32 1.4214138, %v4692_v4  ;;  %v4725_v14 = vadd.f32 1.4214138, %v4693_v34  ;;  %v4741_v27 = vmul.f32 %v10258_v43, %v4709_v48  ;;  %v4744_v36 = vmul.f32 %v10263_v2, %v4712_v16 }
 0x3da   : > { %v4726_v42 = vadd.f32 1.4214138, %v4694_v10  ;;  %v4745_v18 = vmul.f32 %v10268_v1, %v4713_v25  ;;  %v4746_v60 = vmul.f32 %v10273_v5, %v4714_v0  ;;  %v4747_v46 = vmul.f32 %v10280_v15, %v4715_v26 }
 0x3db   : > { %v4727_v11 = vadd.f32 1.4214138, %v4695_v35  ;;  %v4748_v41 = vmul.f32 %v10291_v28, %v4716_v33  ;;  %v4749_v61 = vmul.f32 %v10295_v29, %v4717_v22  ;;  %v4750_v40 = vmul.f32 %v10304_v30, %v4718_v52 }
 0x3dc   : > { %v4751_v63 = vmul.f32 %v10316_v17, %v4719_v59  ;;  %v4752_v48 = vmul.f32 %v10328_v62, %v4720_v50  ;;  %v4753_v47 = vmul.f32 %v10334_v45, %v4721_v37  ;;  %v4772_v57 = vadd.f32 -0.28449672, %v4740_v21 }
 0x3dd   : > { %v4754_v31 = vmul.f32 %v10341_v24, %v4722_v55  ;;  %v4755_v19 = vmul.f32 %v10348_v7, %v4723_v9  ;;  %v4756_v16 = vmul.f32 %v10355_v32, %v4724_v58  ;;  %v4773_v4 = vadd.f32 -0.28449672, %v4741_v27 }
 0x3de   : > { %v4757_v34 = vmul.f32 %v10362_v20, %v4725_v14  ;;  %v4758_v25 = vmul.f32 %v10366_v3, %v4726_v42  ;;  %v4776_v0 = vadd.f32 -0.28449672, %v4744_v36  ;;  %v4777_v52 = vadd.f32 -0.28449672, %v4745_v18 }
 0x3df   : > { %v4759_v10 = vmul.f32 %v10372_v38, %v4727_v11  ;;  %v4778_v26 = vadd.f32 -0.28449672, %v4746_v60  ;;  %v4779_v50 = vadd.f32 -0.28449672, %v4747_v46  ;;  %v4780_v33 = vadd.f32 -0.28449672, %v4748_v41 }
 0x3e0   : > { %v4781_v22 = vadd.f32 -0.28449672, %v4749_v61  ;;  %v4782_v35 = vadd.f32 -0.28449672, %v4750_v40  ;;  %v4783_v59 = vadd.f32 -0.28449672, %v4751_v63  ;;  %v4804_v55 = vmul.f32 %v10253_v6, %v4772_v57 }
 0x3e1   : > { %v4784_v37 = vadd.f32 -0.28449672, %v4752_v48  ;;  %v4785_v9 = vadd.f32 -0.28449672, %v4753_v47  ;;  %v4786_v21 = vadd.f32 -0.28449672, %v4754_v31  ;;  %v4805_v58 = vmul.f32 %v10258_v43, %v4773_v4 }
 0x3e2   : > { %v4787_v14 = vadd.f32 -0.28449672, %v4755_v19  ;;  %v4788_v27 = vadd.f32 -0.28449672, %v4756_v16  ;;  %v4789_v42 = vadd.f32 -0.28449672, %v4757_v34  ;;  %v4808_v36 = vmul.f32 %v10263_v2, %v4776_v0 }
 0x3e3   : > { %v4790_v18 = vadd.f32 -0.28449672, %v4758_v25  ;;  %v4791_v11 = vadd.f32 -0.28449672, %v4759_v10  ;;  %v4809_v60 = vmul.f32 %v10268_v1, %v4777_v52  ;;  %v4810_v46 = vmul.f32 %v10273_v5, %v4778_v26 }
 0x3e4   : > { %v4811_v41 = vmul.f32 %v10280_v15, %v4779_v50  ;;  %v4812_v61 = vmul.f32 %v10291_v28, %v4780_v33  ;;  %v4813_v40 = vmul.f32 %v10295_v29, %v4781_v22  ;;  %v4814_v63 = vmul.f32 %v10304_v30, %v4782_v35 }
 0x3e5   : > { %v4815_v48 = vmul.f32 %v10316_v17, %v4783_v59  ;;  %v4816_v47 = vmul.f32 %v10328_v62, %v4784_v37  ;;  %v4817_v57 = vmul.f32 %v10334_v45, %v4785_v9  ;;  %v4818_v31 = vmul.f32 %v10341_v24, %v4786_v21 }
 0x3e6   : > { %v4819_v19 = vmul.f32 %v10348_v7, %v4787_v14  ;;  %v4820_v16 = vmul.f32 %v10355_v32, %v4788_v27  ;;  %v4836_v4 = vadd.f32 0.2548296, %v4804_v55  ;;  %v4837_v34 = vadd.f32 0.2548296, %v4805_v58 }
 0x3e7   : > { %v4821_v25 = vmul.f32 %v10362_v20, %v4789_v42  ;;  %v4840_v0 = vadd.f32 0.2548296, %v4808_v36  ;;  %v4841_v52 = vadd.f32 0.2548296, %v4809_v60  ;;  %v4842_v10 = vadd.f32 0.2548296, %v4810_v46 }
 0x3e8   : > { %v4822_v26 = vmul.f32 %v10366_v3, %v4790_v18  ;;  %v4843_v50 = vadd.f32 0.2548296, %v4811_v41  ;;  %v4844_v33 = vadd.f32 0.2548296, %v4812_v61  ;;  %v4845_v22 = vadd.f32 0.2548296, %v4813_v40 }
 0x3e9   : > { %v4823_v35 = vmul.f32 %v10372_v38, %v4791_v11  ;;  %v4846_v59 = vadd.f32 0.2548296, %v4814_v63  ;;  %v4847_v37 = vadd.f32 0.2548296, %v4815_v48  ;;  %v4848_v9 = vadd.f32 0.2548296, %v4816_v47 }
 0x3ea   : > { %v4849_v21 = vadd.f32 0.2548296, %v4817_v57  ;;  %v4850_v14 = vadd.f32 0.2548296, %v4818_v31  ;;  %v4851_v27 = vadd.f32 0.2548296, %v4819_v19  ;;  %v4868_v55 = vmul.f32 %v10253_v6, %v4836_v4 }
 0x3eb   : > { %v4852_v58 = vadd.f32 0.2548296, %v4820_v16  ;;  %v4869_v42 = vmul.f32 %v10258_v43, %v4837_v34  ;;  %v4966_v36 = vmul.f32 1.442695, %v10278_v12  ;;  %v4968_v18 = vmul.f32 1.442695, %v10283_v39 }
 0x3ec   : > { %v4853_v60 = vadd.f32 0.2548296, %v4821_v25  ;;  %v4872_v46 = vmul.f32 %v10263_v2, %v4840_v0  ;;  %v4974_v11 = vmul.f32 1.442695, %v10286_v53  ;;  %v4976_v41 = vmul.f32 1.442695, %v10289_v23 }
 0x3ed   : > { %v4854_v61 = vadd.f32 0.2548296, %v4822_v26  ;;  %v4855_v40 = vadd.f32 0.2548296, %v4823_v35  ;;  %5882 = vpow2.f32 %v4966_v36  ;;  %v4978_v63 = vmul.f32 1.442695, %v10299_v51 }
 0x3ee   : > { %v4873_v6 = vmul.f32 %v10268_v1, %v4841_v52  ;;  %v10438_v43 = vmul.f32 %v10273_v5, %v4842_v10  ;;  %5884 = vpow2.f32 %v4968_v18  ;;  %v4980_v12 = vmul.f32 1.442695, %v10302_v13  ;;  %v11735_v57 = vld [vmem:[#allocation57_spill] sm:$0xff]  ;;  %v11736_v31 = vld [vmem:[#allocation50_spill] sm:$0xff]  ;;  %v11739_v25 = vld [vmem:[#allocation20_spill] sm:$0xff] }
 0x3ef   : > { %v10442_v39 = vmul.f32 %v10280_v15, %v4843_v50  ;;  %v10445_v53 = vmul.f32 %v10291_v28, %v4844_v33  ;;  %5886 = vpow2.f32 %v4974_v11  ;;  %v4982_v23 = vmul.f32 1.442695, %v10308_v44  ;;  %v11737_v19 = vld [vmem:[#allocation54_spill] sm:$0xff]  ;;  %v11741_v26 = vld [vmem:[#allocation15_spill] sm:$0xff]  ;;  %v11743_v35 = vld [vmem:[#allocation44_spill] sm:$0xff] }
 0x3f0   : > { %v10449_v2 = vmul.f32 %v10295_v29, %v4845_v22  ;;  %v10452_v1 = vmul.f32 %v10304_v30, %v4846_v59  ;;  %5888 = vpow2.f32 %v4976_v41  ;;  %v4984_v5 = vmul.f32 1.442695, %v10311_v56  ;;  %v11738_v4 = vld [vmem:[#allocation26_spill] sm:$0xff]  ;;  %v11742_v50 = vld [vmem:[#allocation59_spill] sm:$0xff] }
 0x3f1   : > { %v10456_v51 = vmul.f32 %v10316_v17, %v4847_v37  ;;  %v10459_v15 = vmul.f32 %v10328_v62, %v4848_v9  ;;  %5890 = vpow2.f32 %v4978_v63  ;;  %v4986_v28 = vmul.f32 1.442695, %v10314_v49  ;;  %v11745_v36 = vld [vmem:[#allocation27_spill] sm:$0xff] }
 0x3f2   : > { %v10463_v13 = vmul.f32 %v10334_v45, %v4849_v21  ;;  %v10466_v29 = vmul.f32 %v10341_v24, %v4850_v14  ;;  %5892 = vpow2.f32 %v4980_v12  ;;  %v4988_v30 = vmul.f32 1.442695, %v10320_v54  ;;  %v11732_v45 = vld [vmem:[#allocation66_spill] sm:$0xff]  ;;  %v11744_v14 = vld [vmem:[#allocation61_spill] sm:$0xff]  ;;  %v11746_v41 = vld [vmem:[#allocation23_spill] sm:$0xff] }
 0x3f3   : > { %v10470_v44 = vmul.f32 %v10348_v7, %v4851_v27  ;;  %v10473_v56 = vmul.f32 %v10355_v32, %v4852_v58  ;;  %5894 = vpow2.f32 %v4982_v23  ;;  %v4990_v17 = vmul.f32 1.442695, %v10323_v8  ;;  %v11733_v7 = vld [vmem:[#allocation37_spill] sm:$0xff]  ;;  %v11734_v32 = vld [vmem:[#allocation48_spill] sm:$0xff] }
 0x3f4   : > { %v10477_v49 = vmul.f32 %v10362_v20, %v4853_v60  ;;  %v10480_v62 = vmul.f32 %v10366_v3, %v4854_v61  ;;  %5896 = vpow2.f32 %v4984_v5  ;;  %v4992_v24 = vmul.f32 1.442695, %v11732_v45 }
 0x3f5   : > { %v10484_v54 = vmul.f32 %v10372_v38, %v4855_v40  ;;  %5898 = vpow2.f32 %v4986_v28  ;;  %v4994_v48 = vmul.f32 1.442695, %v11733_v7  ;;  %v4996_v47 = vmul.f32 1.442695, %v11734_v32  ;;  %v11740_v38 = vld [vmem:[#allocation30_spill] sm:$0xff] }
 0x3f6   : > { %5900 = vpow2.f32 %v4988_v30  ;;  %v4998_v8 = vmul.f32 1.442695, %v11735_v57  ;;  %v5000_v20 = vmul.f32 1.442695, %v11736_v31  ;;  %v5002_v16 = vmul.f32 1.442695, %v11737_v19 }
 0x3f7   : > { %v5883_v3 = vpop.eup %5882  ;;  %5902 = vpow2.f32 %v4990_v17  ;;  %v5004_v34 = vmul.f32 1.442695, %v11738_v4  ;;  %vm5092_vm2 = vcmp.ge.f32.partialorder %v11739_v25, 0.0  ;;  %v10494_v0 = vmul.f32 0.70710677, %v11740_v38  ;;  %v11748_v30 = vld [vmem:[#allocation47_spill] sm:$0xff] }
 0x3f8   : > { %v5885_v52 = vpop.eup %5884  ;;  %5904 = vpow2.f32 %v4992_v24  ;;  %v5028_v10 = vmul.f32 %v5883_v3, %v4868_v55  ;;  %vm5093_vm3 = vcmp.ge.f32.partialorder %v11741_v26, 0.0  ;;  %vm5096_vm4 = vcmp.ge.f32.partialorder %v11742_v50, 0.0  ;;  %v11749_v7 = vld [vmem:[#allocation6_spill] sm:$0xff]  ;;  %v11752_v3 = vld [vmem:[#allocation16_spill] sm:$0xff] }
 0x3f9   : > { %v5887_v33 = vpop.eup %5886  ;;  %5906 = vpow2.f32 %v4994_v48  ;;  %v5029_v22 = vmul.f32 %v5885_v52, %v4869_v42  ;;  %vm5097_vm5 = vcmp.ge.f32.partialorder %v11743_v35, 0.0  ;;  %v10500_v59 = vand.u32 2147483647, %v10494_v0 }
 0x3fa   : > { %v5889_v37 = vpop.eup %5888  ;;  %5908 = vpow2.f32 %v4996_v47  ;;  %v5032_v9 = vmul.f32 %v5887_v33, %v4872_v46  ;;  %v5060_v21 = vsub.f32 1.0, %v5028_v10  ;;  %vm5098_vm6 = vcmp.ge.f32.partialorder %v11744_v14, 0.0  ;;  %v11753_v10 = vld [vmem:[#allocation69_spill] sm:$0xff] }
 0x3fb   : > { %v5891_v27 = vpop.eup %5890  ;;  %5910 = vpow2.f32 %v4998_v8  ;;  %v5033_v55 = vmul.f32 %v5889_v37, %v4873_v6  ;;  %v5061_v58 = vsub.f32 1.0, %v5029_v22  ;;  %vm5099_vm7 = vcmp.ge.f32.partialorder %v11745_v36, 0.0  ;;  %v11747_v6 = vld [vmem:[#allocation46_spill] sm:$0xff] }
 0x3fc   : > { %v10505_v18 = vmul.f32 0.3275911, %v10500_v59  ;;  %v5893_v42 = vpop.eup %5892  ;;  %5912 = vpow2.f32 %v5000_v20  ;;  %v5034_v60 = vmul.f32 %v5891_v27, %v10438_v43  ;;  %v5064_v11 = vsub.f32 1.0, %v5032_v9  ;;  %v11754_v9 = vld [vmem:[#allocation35_spill] sm:$0xff] }
 0x3fd   : > { %vm5100_vm8 = vcmp.ge.f32.partialorder %v11746_v41, 0.0  ;;  %v5124_v46 = vsub.f32 0.0, %v5060_v21  ;;  %v5895_v61 = vpop.eup %5894  ;;  %5914 = vpow2.f32 %v5002_v16  ;;  %v5035_v40 = vmul.f32 %v5893_v42, %v10442_v39  ;;  %v11751_v16 = vld [vmem:[#allocation45_spill] sm:$0xff] }
 0x3fe   : > { %v5065_v63 = vsub.f32 1.0, %v5033_v55  ;;  %vm5101_vm9 = vcmp.ge.f32.partialorder %v11747_v6, 0.0  ;;  %v5125_v12 = vsub.f32 0.0, %v5061_v58  ;;  %v5897_v23 = vpop.eup %5896  ;;  %5916 = vpow2.f32 %v5004_v34 }
 0x3ff   : > { %v5036_v5 = vmul.f32 %v5895_v61, %v10445_v53  ;;  %v5066_v28 = vsub.f32 1.0, %v5034_v60  ;;  %vm5102_vm10 = vcmp.ge.f32.partialorder %v11748_v30, 0.0  ;;  %v5128_v43 = vsub.f32 0.0, %v5064_v11  ;;  %v5899_v17 = vpop.eup %5898  ;;  %v11750_v53 = vld [vmem:[#allocation19_spill] sm:$0xff] }
 0x400   : > { %v5037_v45 = vmul.f32 %v5897_v23, %v10449_v2  ;;  %v5067_v24 = vsub.f32 1.0, %v5035_v40  ;;  %vm5103_vm11 = vcmp.ge.f32.partialorder %v11749_v7, 0.0  ;;  %v5129_v48 = vsub.f32 0.0, %v5065_v63  ;;  %v5901_v32 = vpop.eup %5900 }
 0x401   : > { %v10517_v39 = vsel %vm5092_vm2, %v5060_v21, %v5124_v46  ;;  %v5038_v47 = vmul.f32 %v5899_v17, %v10452_v1  ;;  %v5068_v57 = vsub.f32 1.0, %v5036_v5  ;;  %vm5104_vm12 = vcmp.ge.f32.partialorder %v11750_v53, 0.0  ;;  %v5903_v2 = vpop.eup %5902  ;;  %v11756_v46 = vld [vmem:[#allocation71_spill] sm:$0xff] }
 0x402   : > { %v5130_v8 = vsub.f32 0.0, %v5066_v28  ;;  %v10523_v31 = vsel %vm5093_vm3, %v5061_v58, %v5125_v12  ;;  %v5039_v20 = vmul.f32 %v5901_v32, %v10456_v51  ;;  %v5069_v19 = vsub.f32 1.0, %v5037_v45  ;;  %v5905_v34 = vpop.eup %5904  ;;  %v11755_v58 = vld [vmem:[#allocation70_spill] sm:$0xff]  ;;  %v11757_v12 = vld [vmem:[#allocation72_spill] sm:$0xff] }
 0x403   : > { %vm5105_vm13 = vcmp.ge.f32.partialorder %v11751_v16, 0.0  ;;  %vm5106_vm14 = vcmp.ge.f32.partialorder %v11752_v3, 0.0  ;;  %v5131_v4 = vsub.f32 0.0, %v5067_v24  ;;  %v5160_v1 = vsel %vm5096_vm4, %v5064_v11, %v5128_v43  ;;  %v5907_v51 = vpop.eup %5906 }
 0x404   : > { %v5040_v25 = vmul.f32 %v5903_v2, %v10459_v15  ;;  %v5070_v52 = vsub.f32 1.0, %v5038_v47  ;;  %vm5107_vm15 = vcmp.ge.f32.partialorder %v11753_v10, 0.0  ;;  %v5132_v26 = vsub.f32 0.0, %v5068_v57  ;;  %v5909_v27 = vpop.eup %5908 }
 0x405   : > { %v5161_v33 = vsel %vm5097_vm5, %v5065_v63, %v5129_v48  ;;  %v5041_v22 = vmul.f32 %v5905_v34, %v10463_v13  ;;  %v5071_v37 = vsub.f32 1.0, %v5039_v20  ;;  %vm5108_vm0 = vcmp.ge.f32.partialorder %v11754_v9, 0.0  ;;  %v5911_v60 = vpop.eup %5910 }
 0x406   : > { %v5133_v21 = vsub.f32 0.0, %v5069_v19  ;;  %v5162_v50 = vsel %vm5098_vm6, %v5066_v28, %v5130_v8  ;;  %v5042_v15 = vmul.f32 %v5907_v51, %v10466_v29  ;;  %v5072_v55 = vsub.f32 1.0, %v5040_v25  ;;  %v5913_v40 = vpop.eup %5912 }
 0x407   : > { %vm5109_vm1 = vcmp.ge.f32.partialorder %v11755_v58, 0.0  ;;  %v5134_v42 = vsub.f32 0.0, %v5070_v52  ;;  %v5163_v35 = vsel %vm5099_vm7, %v5067_v24, %v5131_v4  ;;  %v5043_v13 = vmul.f32 %v5909_v27, %v10470_v44  ;;  %v5915_v5 = vpop.eup %5914  ;;  %v11758_v58 = vld [vmem:[#allocation51_spill] sm:$0xff] }
 0x408   : > { %v5073_v11 = vsub.f32 1.0, %v5041_v22  ;;  %vm5110_vm2 = vcmp.ge.f32.partialorder %v11756_v46, 0.0  ;;  %v5135_v61 = vsub.f32 0.0, %v5071_v37  ;;  %v5164_v14 = vsel %vm5100_vm8, %v5068_v57, %v5132_v26  ;;  %v5917_v41 = vpop.eup %5916  ;;  %v11761_v46 = vld [vmem:[#allocation38_spill] sm:$0xff] }
 0x409   : > { %v5044_v29 = vmul.f32 %v5911_v60, %v10473_v56  ;;  %v5074_v63 = vsub.f32 1.0, %v5042_v15  ;;  %vm5111_vm3 = vcmp.ge.f32.partialorder %v11757_v12, 0.0  ;;  %v5136_v23 = vsub.f32 0.0, %v5072_v55  ;;  %v11764_v12 = vld [vmem:[#allocation9_spill] sm:$0xff] }
 0x40a   : > { %v5165_v36 = vsel %vm5101_vm9, %v5069_v19, %v5133_v21  ;;  %v5045_v44 = vmul.f32 %v5913_v40, %v10477_v49  ;;  %v5075_v28 = vsub.f32 1.0, %v5043_v13  ;;  %v5137_v43 = vsub.f32 0.0, %v5073_v11  ;;  %v11760_v13 = vld [vmem:[#allocation10_spill] sm:$0xff] }
 0x40b   : > { %v5166_v17 = vsel %vm5102_vm10, %v5070_v52, %v5134_v42  ;;  %v5046_v45 = vmul.f32 %v5915_v5, %v10480_v62  ;;  %v5076_v24 = vsub.f32 1.0, %v5044_v29  ;;  %v5138_v56 = vsub.f32 0.0, %v5074_v63  ;;  %v11763_v29 = vld [vmem:[#allocation36_spill] sm:$0xff] }
 0x40c   : > { %v5167_v48 = vsel %vm5103_vm11, %v5071_v37, %v5135_v61  ;;  %v5047_v32 = vmul.f32 %v5917_v41, %v10484_v54  ;;  %v5077_v6 = vsub.f32 1.0, %v5045_v44  ;;  %v5139_v47 = vsub.f32 0.0, %v5075_v28  ;;  %v11766_v44 = vld [vmem:[#allocation60_spill] sm:$0xff] }
 0x40d   : > { %v5168_v49 = vsel %vm5104_vm12, %v5072_v55, %v5136_v23  ;;  %v5078_v57 = vsub.f32 1.0, %v5046_v45  ;;  %v5140_v8 = vsub.f32 0.0, %v5076_v24  ;;  %v5169_v30 = vsel %vm5105_vm13, %v5073_v11, %v5137_v43  ;;  %v11767_v43 = vld [vmem:[#allocation8_spill] sm:$0xff] }
 0x40e   : > { %v5170_v62 = vsel %vm5106_vm14, %v5074_v63, %v5138_v56  ;;  %v5079_v2 = vsub.f32 1.0, %v5047_v32  ;;  %v5141_v20 = vsub.f32 0.0, %v5077_v6  ;;  %v5171_v7 = vsel %vm5107_vm15, %v5075_v28, %v5139_v47  ;;  %v11768_v41 = vld [vmem:[#allocation40_spill] sm:$0xff] }
 0x40f   : > { %v5188_v54 = vadd.f32 1.0, %v10517_v39  ;;  %v5142_v19 = vsub.f32 0.0, %v5078_v57  ;;  %v5172_v53 = vsel %vm5108_vm0, %v5076_v24, %v5140_v8  ;;  %v5189_v4 = vadd.f32 1.0, %v10523_v31  ;;  %v11769_v24 = vld [vmem:[#allocation22_spill] sm:$0xff] }
 0x410   : > { %v5192_v34 = vadd.f32 1.0, %v5160_v1  ;;  %v5143_v25 = vsub.f32 0.0, %v5079_v2  ;;  %v5173_v16 = vsel %vm5109_vm1, %v5077_v6, %v5141_v20  ;;  %v5193_v3 = vadd.f32 1.0, %v5161_v33  ;;  %v11771_v6 = vld [vmem:[#allocation58_spill] sm:$0xff]  ;;  %v11775_v20 = vld [vmem:[#allocation24_spill] sm:$0xff] }
 0x411   : > { %v5194_v52 = vadd.f32 1.0, %v5162_v50  ;;  %v5174_v26 = vsel %vm5110_vm2, %v5078_v57, %v5142_v19  ;;  %v5195_v10 = vadd.f32 1.0, %v5163_v35  ;;  %v5196_v51 = vadd.f32 1.0, %v5164_v14  ;;  %v11759_v35 = vld [vmem:[#allocation49_spill] sm:$0xff]  ;;  %v11773_v8 = vld [vmem:[#allocation34_spill] sm:$0xff] }
 0x412   : > { %v5197_v22 = vadd.f32 1.0, %v5165_v36  ;;  %v5175_v39 = vsel %vm5111_vm3, %v5079_v2, %v5143_v25  ;;  %v5198_v37 = vadd.f32 1.0, %v5166_v17  ;;  %v5199_v9 = vadd.f32 1.0, %v5167_v48  ;;  %v11762_v14 = vld [vmem:[#allocation13_spill] sm:$0xff]  ;;  %v11765_v36 = vld [vmem:[#allocation12_spill] sm:$0xff]  ;;  %v11770_v48 = vld [vmem:[#allocation18_spill] sm:$0xff] }
 0x413   : > { %v5200_v21 = vadd.f32 1.0, %v5168_v49  ;;  %v5201_v31 = vadd.f32 1.0, %v5169_v30  ;;  %v5202_v1 = vadd.f32 1.0, %v5170_v62  ;;  %v5203_v27 = vadd.f32 1.0, %v5171_v7  ;;  %v11772_v49 = vld [vmem:[#allocation65_spill] sm:$0xff]  ;;  %v11774_v62 = vld [vmem:[#allocation43_spill] sm:$0xff] }
 0x414   : > { %v5204_v15 = vadd.f32 1.0, %v5172_v53  ;;  %v5205_v55 = vadd.f32 1.0, %v5173_v16  ;;  %v5206_v33 = vadd.f32 1.0, %v5174_v26  ;;  %v5207_v50 = vadd.f32 1.0, %v5175_v39  ;;  %v10616_v53 = vld [vmem:[%s11068_s3 + $0x12] ss:$0 sm:$0xff] }
 0x415   : > { %v5220_v42 = vmul.f32 %v5188_v54, %v11758_v58  ;;  %v5221_v60 = vmul.f32 %v5189_v4, %v11759_v35  ;;  %v5224_v11 = vmul.f32 %v5192_v34, %v11760_v13  ;;  %v5225_v61 = vmul.f32 %v5193_v3, %v11761_v46  ;;  %v6051_v4 = vld [vmem:[#allocation2 + $0x15c] sm:$0xff] }
 0x416   : > { %v5226_v40 = vmul.f32 %v5194_v52, %v11762_v14  ;;  %v5227_v63 = vmul.f32 %v5195_v10, %v11763_v29  ;;  %v5228_v23 = vmul.f32 %v5196_v51, %v11764_v12  ;;  %v5229_v5 = vmul.f32 %v5197_v22, %v11765_v36  ;;  %v11776_v25 = vld [vmem:[#allocation21_spill] sm:$0xff]  ;;  %v6052_v58 = vld [vmem:[%s11068_s3] ss:$0 sm:$0xff]  ;;  %v6055_v46 = vld [vmem:[%s11068_s3 + $0x1] ss:$0 sm:$0xff] }
 0x417   : > { %v5230_v28 = vmul.f32 %v5198_v37, %v11766_v44  ;;  %5252 = vst [vmem:[%s6998_s23 + $0x28] sm:$0xff] %v5220_v42  ;;  %v5231_v17 = vmul.f32 %v5199_v9, %v11767_v43  ;;  %v5232_v45 = vmul.f32 %v5200_v21, %v11768_v41  ;;  %v5233_v56 = vmul.f32 %v5201_v31, %v11769_v24  ;;  %v6053_v42 = vld [vmem:[#allocation2 + $0x181] sm:$0xff]  ;;  %v6059_v12 = vld [vmem:[#allocation2 + $0x18b] sm:$0xff]  ;;  %v11777_v41 = vld [vmem:[#allocation17_spill] sm:$0xff] }
 0x418   : > { %v5234_v32 = vmul.f32 %v5202_v1, %v11770_v48  ;;  %5253 = vst [vmem:[%s6998_s23 + $0x38] sm:$0xff] %v5221_v60  ;;  %5256 = vst [vmem:[%s6998_s23 + $0x68] sm:$0xff] %v5224_v11  ;;  %v5235_v47 = vmul.f32 %v5203_v27, %v11771_v6  ;;  %v5236_v57 = vmul.f32 %v5204_v15, %v11772_v49  ;;  %v746_v54 = vadd.f32 1.0, %v10505_v18  ;;  %v6054_v60 = vld [vmem:[#allocation2 + $0x189] sm:$0xff]  ;;  %v6061_v44 = vld [vmem:[%s11068_s3 + $0x6] ss:$0 sm:$0xff] }
 0x419   : > { %5257 = vst [vmem:[%s6998_s23 + $0x78] sm:$0xff] %v5225_v61  ;;  %5258 = vst [vmem:[%s6998_s23 + $0x88] sm:$0xff] %v5226_v40  ;;  %v5237_v30 = vmul.f32 %v5205_v55, %v11773_v8  ;;  %v5238_v2 = vmul.f32 %v5206_v33, %v11774_v62  ;;  %v5239_v7 = vmul.f32 %v5207_v50, %v11775_v20  ;;  %v1130_v19 = vsub.f32 0.0, %v10500_v59  ;;  %v6056_v61 = vld [vmem:[#allocation2 + $0x18a] sm:$0xff]  ;;  %v6062_v49 = vld [vmem:[%s11068_s3 + $0x5] ss:$0 sm:$0xff] }
 0x41a   : > { %5259 = vst [vmem:[%s6998_s23 + $0x98] sm:$0xff] %v5227_v63  ;;  %5260 = vst [vmem:[%s6998_s23 + $0xa8] sm:$0xff] %v5228_v23  ;;  %5918 = vrcp.f32 %v746_v54  ;;  %v4006_v34 = vmul.f32 %v6051_v4, %v10616_v53  ;;  %vm1322_vm4 = vcmp.ge.f32.partialorder %v10494_v0, 0.0  ;;  %v1628_v35 = vmul.f32 %v6053_v42, %v6052_v58  ;;  %v6057_v0 = vld [vmem:[#allocation2 + $0x182] sm:$0xff]  ;;  %v11778_v6 = vld [vmem:[#allocation64_spill] sm:$0xff] }
 0x41b   : > { %5261 = vst [vmem:[%s6998_s23 + $0xb8] sm:$0xff] %v5229_v5  ;;  %5262 = vst [vmem:[%s6998_s23 + $0xc8] sm:$0xff] %v5230_v28  ;;  %v1162_v3 = vmul.f32 %v1130_v19, %v10500_v59  ;;  %v618_v59 = vmul.f32 0.5, %v11740_v38  ;;  %v1629_v13 = vmul.f32 %v6054_v60, %v6052_v58  ;;  %v1730_v14 = vmul.f32 %v6056_v61, %v6055_v46  ;;  %v6058_v63 = vld [vmem:[%s11068_s3 + $0x2] ss:$0 sm:$0xff]  ;;  %v6060_v36 = vld [vmem:[#allocation2 + $0x183] sm:$0xff] }
 0x41c   : > { %5263 = vst [vmem:[%s6998_s23 + $0xd8] sm:$0xff] %v5231_v17  ;;  %5264 = vst [vmem:[%s6998_s23 + $0xe8] sm:$0xff] %v5232_v45  ;;  %v10620_v16 = vadd.f32 %v4006_v34, %v11776_v25  ;;  %v1729_v40 = vmul.f32 %v6057_v0, %v6055_v46  ;;  %v1831_v23 = vmul.f32 %v6059_v12, %v6058_v63  ;;  %v2099_v24 = vld [vmem:[#allocation2 + $0x1a3] sm:$0xff]  ;;  %v2201_v54 = vld [vmem:[#allocation2 + $0x1b9] sm:$0xff] }
 0x41d   : > { %5265 = vst [vmem:[%s6998_s23 + $0xf8] sm:$0xff] %v5233_v56  ;;  %5266 = vst [vmem:[%s6998_s23 + $0x108] sm:$0xff] %v5234_v32  ;;  %v1224_v10 = vmul.f32 1.442695, %v1162_v3  ;;  %v1762_v29 = vadd.f32 %v1730_v14, %v1629_v13  ;;  %v1830_v5 = vmul.f32 %v6060_v36, %v6058_v63  ;;  %v2132_v28 = vmul.f32 %v6061_v44, %v6060_v36  ;;  %v6065_v19 = vld [vmem:[%s11068_s3 + $0x8] ss:$0 sm:$0xff] }
 0x41e   : > { %5267 = vst [vmem:[%s6998_s23 + $0x118] sm:$0xff] %v5235_v47  ;;  %5268 = vst [vmem:[%s6998_s23 + $0x128] sm:$0xff] %v5236_v57  ;;  %v1761_v38 = vadd.f32 %v1729_v40, %v1628_v35  ;;  %v2133_v43 = vmul.f32 %v6061_v44, %v6059_v12  ;;  %v6063_v57 = vld [vmem:[#allocation2 + $0x1a2] sm:$0xff]  ;;  %v2135_v34 = vmul.f32 %v6061_v44, %v2099_v24  ;;  %v6068_v63 = vld [vmem:[%s11069_s4] ss:$0 sm:$0xff] }
 0x41f   : > { %5269 = vst [vmem:[%s6998_s23 + $0x138] sm:$0xff] %v5237_v30  ;;  %5270 = vst [vmem:[%s6998_s23 + $0x148] sm:$0xff] %v5238_v2  ;;  %5920 = vpow2.f32 %v1224_v10  ;;  %v2164_v45 = vadd.f32 %v2132_v28, %v11777_v41  ;;  %v1863_v56 = vadd.f32 %v1831_v23, %v1762_v29  ;;  %v2034_v8 = vmul.f32 %v6063_v57, %v6062_v49  ;;  %v6064_v30 = vld [vmem:[%s11068_s3 + $0x4] ss:$0 sm:$0xff]  ;;  %v6066_v25 = vld [vmem:[%s11068_s3 + $0x9] ss:$0 sm:$0xff] }
 0x420   : > { %5271 = vst [vmem:[%s6998_s23 + $0x158] sm:$0xff] %v5239_v7  ;;  %v1862_v17 = vadd.f32 %v1830_v5, %v1761_v38  ;;  %v2165_v47 = vadd.f32 %v2133_v43, %v11778_v6  ;;  %v2200_v7 = vld [vmem:[#allocation2 + $0x1b1] sm:$0xff]  ;;  %v2403_v60 = vld [vmem:[#allocation2 + $0x1bb] sm:$0xff] }
 0x424   : > { %v5919_v18 = vpop.eup %5918 }
 0x425   : > { %v842_v52 = vmul.f32 1.0614054, %v5919_v18 }
 0x427   : > { %v874_v26 = vadd.f32 -1.4531521, %v842_v52 }
 0x429   : > { %v906_v51 = vmul.f32 %v5919_v18, %v874_v26  ;;  %v5921_v1 = vpop.eup %5920 }
 0x42b   : > { %v938_v22 = vadd.f32 1.4214138, %v906_v51 }
 0x42d   : > { %v970_v39 = vmul.f32 %v5919_v18, %v938_v22  ;;  %v10651_v22 = vld [vmem:[#allocation2 + $0x1b2] sm:$0xff] }
 0x42e   : > { %v2337_v42 = vmul.f32 %v6066_v25, %v10651_v22 }
 0x42f   : > { %v1002_v37 = vadd.f32 -0.28449672, %v970_v39 }
 0x431   : > { %v1034_v9 = vmul.f32 %v5919_v18, %v1002_v37 }
 0x433   : > { %v1066_v21 = vadd.f32 0.2548296, %v1034_v9  ;;  %v2236_v9 = vmul.f32 %v6065_v19, %v2200_v7 }
 0x435   : > { %v1098_v31 = vmul.f32 %v5919_v18, %v1066_v21  ;;  %v2336_v18 = vmul.f32 %v6066_v25, %v6063_v57  ;;  %v2237_v21 = vmul.f32 %v6065_v19, %v2201_v54 }
 0x437   : > { %v1258_v27 = vmul.f32 %v5921_v1, %v1098_v31  ;;  %v10653_v1 = vld [vmem:[#allocation2 + $0x1ba] sm:$0xff] }
 0x438   : > { %v2338_v46 = vmul.f32 %v6066_v25, %v10653_v1 }
 0x439   : > { %v1290_v15 = vsub.f32 1.0, %v1258_v27 }
 0x43b   : > { %v1354_v55 = vsub.f32 0.0, %v1290_v15 }
 0x43d   : > { %v1386_v33 = vsel %vm1322_vm4, %v1290_v15, %v1354_v55 }
 0x43e   : > { %v1418_v50 = vadd.f32 1.0, %v1386_v33  ;;  %v2402_v33 = vld [vmem:[#allocation2 + $0x1b3] sm:$0xff] }
 0x440   : > { %v1450_v11 = vmul.f32 %v1418_v50, %v618_v59  ;;  %v6067_v59 = vld [vmem:[%s11068_s3 + $0xa] ss:$0 sm:$0xff] }
 0x441   : > { %v2437_v58 = vmul.f32 %v6067_v59, %v2099_v24  ;;  %v2438_v14 = vmul.f32 %v6067_v59, %v2402_v33  ;;  %v2439_v29 = vmul.f32 %v6067_v59, %v2403_v60  ;;  %v3465_v60 = vld [vmem:[#allocation2 + $0x138] sm:$0xff] }
 0x442   : > { %1558 = vst [vmem:[#allocation2 + $0x19a] sm:$0xff] %v1450_v11  ;;  %v2033_v3 = vmul.f32 %v6062_v49, %v1450_v11  ;;  %v2335_v39 = vmul.f32 %v6066_v25, %v1450_v11 }
 0x449   : > { %v1896_v48 = vld [vmem:[#allocation2 + $0x199] sm:$0xff]  ;;  %v1897_v32 = vld [vmem:[#allocation2 + $0x1a1] sm:$0xff] }
 0x44a   : > { %v1932_v62 = vmul.f32 %v6064_v30, %v1896_v48  ;;  %v1933_v2 = vmul.f32 %v6064_v30, %v1897_v32  ;;  %v2098_v20 = vld [vmem:[#allocation2 + $0x19b] sm:$0xff]  ;;  %v2234_v4 = vmul.f32 %v6065_v19, %v1896_v48  ;;  %v2235_v52 = vmul.f32 %v6065_v19, %v1897_v32 }
 0x44b   : > { %v2134_v37 = vmul.f32 %v6061_v44, %v2098_v20  ;;  %v2436_v50 = vmul.f32 %v6067_v59, %v2098_v20 }
 0x44c   : > { %v1964_v26 = vadd.f32 %v1932_v62, %v1862_v17  ;;  %v1965_v10 = vadd.f32 %v1933_v2, %v1863_v56  ;;  %v2266_v51 = vadd.f32 %v2234_v4, %v2164_v45  ;;  %v2267_v31 = vadd.f32 %v2235_v52, %v2165_v47 }
 0x44e   : > { %v2065_v27 = vadd.f32 %v2033_v3, %v1964_v26  ;;  %v2066_v15 = vadd.f32 %v2034_v8, %v1965_v10  ;;  %v2367_v55 = vadd.f32 %v2335_v39, %v2266_v51  ;;  %v2368_v35 = vadd.f32 %v2336_v18, %v2267_v31 }
 0x450   : > { %v2166_v13 = vadd.f32 %v2134_v37, %v2065_v27  ;;  %v2167_v11 = vadd.f32 %v2135_v34, %v2066_v15  ;;  %v2468_v61 = vadd.f32 %v2436_v50, %v2367_v55  ;;  %v2469_v0 = vadd.f32 %v2437_v58, %v2368_v35 }
 0x452   : > { %v2268_v40 = vadd.f32 %v2236_v9, %v2166_v13  ;;  %v2269_v38 = vadd.f32 %v2237_v21, %v2167_v11  ;;  %v10663_v12 = vadd.f32 %v6068_v63, %v2468_v61  ;;  %v10665_v23 = vadd.f32 %v6068_v63, %v2469_v0  ;;  %v3466_v13 = vld [vmem:[#allocation2 + $0x140] sm:$0xff]  ;;  %v3468_v0 = vld [vmem:[#allocation2 + $0x158] sm:$0xff] }
 0x454   : > { %v2369_v36 = vadd.f32 %v2337_v42, %v2268_v40  ;;  %v2370_v5 = vadd.f32 %v2338_v46, %v2269_v38  ;;  %v10668_v44 = vmul.f32 0.70710677, %v10663_v12  ;;  %v10671_v28 = vmul.f32 0.70710677, %v10665_v23 }
 0x456   : > { %v2470_v43 = vadd.f32 %v2438_v14, %v2369_v36  ;;  %v2471_v17 = vadd.f32 %v2439_v29, %v2370_v5  ;;  %v2601_v41 = vand.u32 2147483647, %v10668_v44  ;;  %v2602_v45 = vand.u32 2147483647, %v10671_v28  ;;  %v3467_v14 = vld [vmem:[#allocation2 + $0x150] sm:$0xff] }
 0x457   : > { %vm3241_vm5 = vcmp.ge.f32.partialorder %v10668_v44, 0.0  ;;  %vm3242_vm6 = vcmp.ge.f32.partialorder %v10671_v28, 0.0 }
 0x458   : > { %v10675_v24 = vadd.f32 %v6068_v63, %v2470_v43  ;;  %v10677_v56 = vadd.f32 %v6068_v63, %v2471_v17  ;;  %v2633_v48 = vmul.f32 0.3275911, %v2601_v41  ;;  %v2634_v32 = vmul.f32 0.3275911, %v2602_v45  ;;  %v10704_v63 = vld [vmem:[#allocation2 + $0x168] sm:$0xff]  ;;  %v10707_v43 = vld [vmem:[#allocation2 + $0x170] sm:$0xff] }
 0x459   : > { %v3049_v54 = vsub.f32 0.0, %v2601_v41  ;;  %v3050_v19 = vsub.f32 0.0, %v2602_v45  ;;  %v6069_v17 = vld [vmem:[%s11068_s3 + $0xc] ss:$0 sm:$0xff] }
 0x45a   : > { %v10680_v6 = vmul.f32 0.70710677, %v10675_v24  ;;  %v10683_v47 = vmul.f32 0.70710677, %v10677_v56  ;;  %v2665_v49 = vadd.f32 1.0, %v2633_v48  ;;  %v2666_v57 = vadd.f32 1.0, %v2634_v32 }
 0x45b   : > { %v3081_v34 = vmul.f32 %v3049_v54, %v2601_v41  ;;  %v3082_v52 = vmul.f32 %v3050_v19, %v2602_v45  ;;  %v3501_v41 = vmul.f32 %v6069_v17, %v3465_v60  ;;  %v3502_v45 = vmul.f32 %v6069_v17, %v3466_v13  ;;  %v3569_v54 = vld [vmem:[#allocation2 + $0x15a] sm:$0xff] }
 0x45c   : > { %v2603_v8 = vand.u32 2147483647, %v10680_v6  ;;  %v2604_v30 = vand.u32 2147483647, %v10683_v47  ;;  %5922 = vrcp.f32 %v2665_v49  ;;  %v3503_v49 = vmul.f32 %v6069_v17, %v3467_v14 }
 0x45d   : > { %5924 = vrcp.f32 %v2666_v57  ;;  %v3141_v37 = vmul.f32 1.442695, %v3081_v34  ;;  %v3143_v27 = vmul.f32 1.442695, %v3082_v52  ;;  %v3504_v57 = vmul.f32 %v6069_v17, %v3468_v0  ;;  %v10719_v52 = vld [vmem:[#allocation2 + $0x172] sm:$0xff] }
 0x45e   : > { %v2635_v62 = vmul.f32 0.3275911, %v2603_v8  ;;  %v2636_v2 = vmul.f32 0.3275911, %v2604_v30  ;;  %v3051_v3 = vsub.f32 0.0, %v2603_v8  ;;  %v3052_v10 = vsub.f32 0.0, %v2604_v30 }
 0x45f   : > { %vm3243_vm7 = vcmp.ge.f32.partialorder %v10680_v6, 0.0  ;;  %vm3244_vm8 = vcmp.ge.f32.partialorder %v10683_v47, 0.0  ;;  %v2540_v47 = vmul.f32 0.5, %v10677_v56 }
 0x460   : > { %v2667_v20 = vadd.f32 1.0, %v2635_v62  ;;  %v2668_v7 = vadd.f32 1.0, %v2636_v2  ;;  %v3083_v31 = vmul.f32 %v3051_v3, %v2603_v8  ;;  %v3084_v59 = vmul.f32 %v3052_v10, %v2604_v30  ;;  %v3566_v8 = vld [vmem:[#allocation2 + $0x13a] sm:$0xff]  ;;  %v3567_v30 = vld [vmem:[#allocation2 + $0x142] sm:$0xff]  ;;  %v10717_v3 = vld [vmem:[#allocation2 + $0x16a] sm:$0xff] }
 0x462   : > { %5926 = vrcp.f32 %v2667_v20  ;;  %v3145_v61 = vmul.f32 1.442695, %v3083_v31  ;;  %v3147_v29 = vmul.f32 1.442695, %v3084_v59  ;;  %v3505_v20 = vmul.f32 %v6069_v17, %v10704_v63 }
 0x463   : > { %5928 = vrcp.f32 %v2668_v7  ;;  %v3568_v7 = vld [vmem:[#allocation2 + $0x152] sm:$0xff] }
 0x464   : > { %5930 = vpow2.f32 %v3141_v37 }
 0x465   : > { %5932 = vpow2.f32 %v3143_v27 }
 0x466   : > { %v10687_v4 = vpop.eup %5922  ;;  %5934 = vpow2.f32 %v3145_v61 }
 0x467   : > { %v10689_v25 = vpop.eup %5924  ;;  %v2761_v18 = vmul.f32 1.0614054, %v10687_v4  ;;  %5936 = vpow2.f32 %v3147_v29  ;;  %v3669_v29 = vld [vmem:[#allocation2 + $0x154] sm:$0xff] }
 0x468   : > { %v2762_v26 = vmul.f32 1.0614054, %v10689_v25 }
 0x469   : > { %v2793_v51 = vadd.f32 -1.4531521, %v2761_v18  ;;  %v3506_v18 = vmul.f32 %v6069_v17, %v10707_v43 }
 0x46a   : > { %v2794_v39 = vadd.f32 -1.4531521, %v2762_v26 }
 0x46b   : > { %v2825_v21 = vmul.f32 %v10687_v4, %v2793_v51  ;;  %v6070_v51 = vld [vmem:[%s11068_s3 + $0xd] ss:$0 sm:$0xff] }
 0x46c   : > { %v10693_v9 = vpop.eup %5926  ;;  %v2826_v33 = vmul.f32 %v10689_v25, %v2794_v39  ;;  %v3602_v39 = vmul.f32 %v6070_v51, %v3566_v8  ;;  %v3603_v37 = vmul.f32 %v6070_v51, %v3567_v30 }
 0x46d   : > { %v10696_v15 = vpop.eup %5928  ;;  %v2763_v55 = vmul.f32 1.0614054, %v10693_v9  ;;  %v2857_v58 = vadd.f32 1.4214138, %v2825_v21  ;;  %v3667_v21 = vld [vmem:[#allocation2 + $0x13c] sm:$0xff] }
 0x46e   : > { %v2764_v50 = vmul.f32 1.0614054, %v10696_v15  ;;  %v2858_v35 = vadd.f32 1.4214138, %v2826_v33  ;;  %v3605_v33 = vmul.f32 %v6070_v51, %v3569_v54  ;;  %v3634_v0 = vadd.f32 %v3602_v39, %v3501_v41 }
 0x46f   : > { %v2795_v42 = vadd.f32 -1.4531521, %v2763_v55  ;;  %v2889_v46 = vmul.f32 %v10687_v4, %v2857_v58  ;;  %v3604_v55 = vmul.f32 %v6070_v51, %v3568_v7  ;;  %v3606_v58 = vmul.f32 %v6070_v51, %v10717_v3 }
 0x470   : > { %v2796_v11 = vadd.f32 -1.4531521, %v2764_v50  ;;  %v2890_v38 = vmul.f32 %v10689_v25, %v2858_v35  ;;  %v5931_v35 = vpop.eup %5930 }
 0x471   : > { %v2827_v40 = vmul.f32 %v10693_v9, %v2795_v42  ;;  %v2921_v5 = vadd.f32 -0.28449672, %v2889_v46  ;;  %v3607_v42 = vmul.f32 %v6070_v51, %v10719_v52  ;;  %v5933_v61 = vpop.eup %5932  ;;  %v10737_v17 = vadd.f32 %v3604_v55, %v3503_v49 }
 0x472   : > { %v2828_v36 = vmul.f32 %v10696_v15, %v2796_v11  ;;  %v2922_v32 = vadd.f32 -0.28449672, %v2890_v38  ;;  %v10733_v11 = vld [vmem:[%s11068_s3 + $0xe] ss:$0 sm:$0xff]  ;;  %v3668_v38 = vld [vmem:[#allocation2 + $0x144] sm:$0xff]  ;;  %v3638_v8 = vadd.f32 %v3606_v58, %v3505_v20  ;;  %v2538_v55 = vmul.f32 0.5, %v10665_v23 }
 0x473   : > { %v2859_v48 = vadd.f32 1.4214138, %v2827_v40  ;;  %v2953_v2 = vmul.f32 %v10687_v4, %v2921_v5  ;;  %v3703_v46 = vmul.f32 %v10733_v11, %v3667_v21  ;;  %v3635_v40 = vadd.f32 %v3603_v37, %v3502_v45  ;;  %v5935_v45 = vpop.eup %5934  ;;  %v3672_v58 = vld [vmem:[#allocation2 + $0x174] sm:$0xff]  ;;  %v6073_v23 = vld [vmem:[%s11068_s3 + $0x11] ss:$0 sm:$0xff] }
 0x474   : > { %v2860_v62 = vadd.f32 1.4214138, %v2828_v36  ;;  %v2954_v34 = vmul.f32 %v10689_v25, %v2922_v32  ;;  %v10741_v30 = vadd.f32 %v3607_v42, %v3506_v18  ;;  %v3704_v7 = vmul.f32 %v10733_v11, %v3668_v38 }
 0x475   : > { %v2891_v19 = vmul.f32 %v10693_v9, %v2859_v48  ;;  %v2985_v10 = vadd.f32 0.2548296, %v2953_v2  ;;  %v3705_v41 = vmul.f32 %v10733_v11, %v3669_v29  ;;  %v3735_v49 = vadd.f32 %v3703_v46, %v3634_v0 }
 0x476   : > { %v2892_v26 = vmul.f32 %v10696_v15, %v2860_v62  ;;  %v2986_v27 = vadd.f32 0.2548296, %v2954_v34  ;;  %v5937_v34 = vpop.eup %5936  ;;  %v3736_v39 = vadd.f32 %v3704_v7, %v3635_v40  ;;  %v2537_v37 = vmul.f32 0.5, %v10663_v12  ;;  %v4278_v7 = vld [vmem:[#allocation2 + $0x1bc] sm:$0xff] }
 0x477   : > { %v2923_v31 = vadd.f32 -0.28449672, %v2891_v19  ;;  %v3017_v50 = vmul.f32 %v10687_v4, %v2985_v10  ;;  %v3906_v46 = vmul.f32 %v6073_v23, %v10717_v3  ;;  %v3708_v0 = vmul.f32 %v10733_v11, %v3672_v58 }
 0x478   : > { %v2924_v59 = vadd.f32 -0.28449672, %v2892_v26  ;;  %v3018_v13 = vmul.f32 %v10689_v25, %v2986_v27  ;;  %v10739_v25 = vadd.f32 %v3605_v33, %v3504_v57  ;;  %v10750_v57 = vld [vmem:[%s11068_s3 + $0x10] ss:$0 sm:$0xff]  ;;  %v3670_v26 = vld [vmem:[#allocation2 + $0x15c] sm:$0xff]  ;;  %v3737_v3 = vadd.f32 %v3705_v41, %v10737_v17 }
 0x479   : > { %v2955_v60 = vmul.f32 %v10693_v9, %v2923_v31  ;;  %v3177_v4 = vmul.f32 %v5931_v35, %v3017_v50  ;;  %v3805_v20 = vmul.f32 %v10750_v57, %v10704_v63  ;;  %v3806_v10 = vmul.f32 %v10750_v57, %v10707_v43  ;;  %v3671_v63 = vld [vmem:[#allocation2 + $0x16c] sm:$0xff]  ;;  %v6074_v17 = vld [vmem:[#allocation2] sm:$0xff] }
 0x47a   : > { %v2956_v14 = vmul.f32 %v10696_v15, %v2924_v59  ;;  %v3178_v5 = vmul.f32 %v5933_v61, %v3018_v13  ;;  %v3706_v59 = vmul.f32 %v10733_v11, %v3670_v26  ;;  %v3907_v61 = vmul.f32 %v6073_v23, %v10719_v52 }
 0x47b   : > { %v2987_v36 = vadd.f32 0.2548296, %v2955_v60  ;;  %v3209_v32 = vsub.f32 1.0, %v3177_v4  ;;  %v3837_v42 = vadd.f32 %v3805_v20, %v3735_v49  ;;  %v3838_v28 = vadd.f32 %v3806_v10, %v3736_v39 }
 0x47c   : > { %v2988_v48 = vadd.f32 0.2548296, %v2956_v14  ;;  %v3210_v2 = vsub.f32 1.0, %v3178_v5  ;;  %v3707_v60 = vmul.f32 %v10733_v11, %v3671_v63  ;;  %v2539_v14 = vmul.f32 0.5, %v10675_v24  ;;  %v4179_v24 = vld [vmem:[#allocation2 + $0x1d2] sm:$0xff] }
 0x47d   : > { %v3019_v62 = vmul.f32 %v10693_v9, %v2987_v36  ;;  %v3273_v19 = vsub.f32 0.0, %v3209_v32  ;;  %v3938_v38 = vadd.f32 %v3906_v46, %v3837_v42  ;;  %v3939_v29 = vadd.f32 %v3907_v61, %v3838_v28  ;;  %v4178_v36 = vld [vmem:[#allocation2 + $0x1ca] sm:$0xff] }
 0x47e   : > { %v3020_v54 = vmul.f32 %v10696_v15, %v2988_v48  ;;  %v3274_v18 = vsub.f32 0.0, %v3210_v2  ;;  %v3738_v52 = vadd.f32 %v3706_v59, %v10739_v25  ;;  %v10776_v48 = vadd.f32 %v3707_v60, %v3638_v8  ;;  %v6075_v25 = vld [vmem:[%s11068_s3 + $0x14] ss:$0 sm:$0xff] }
 0x47f   : > { %v3179_v9 = vmul.f32 %v5935_v45, %v3019_v62  ;;  %v3305_v51 = vsel %vm3241_vm5, %v3209_v32, %v3273_v19  ;;  %v4277_v32 = vld [vmem:[#allocation2 + $0x1b4] sm:$0xff]  ;;  %v10779_v11 = vadd.f32 %v3708_v0, %v10741_v30  ;;  %v4007_v56 = vmul.f32 %v10616_v53, %v3671_v63  ;;  %v4279_v45 = vld [vmem:[#allocation2 + $0x1cc] sm:$0xff] }
 0x480   : > { %v3180_v15 = vmul.f32 %v5937_v34, %v3020_v54  ;;  %v3306_v31 = vsel %vm3242_vm6, %v3210_v2, %v3274_v18  ;;  %v3337_v27 = vadd.f32 1.0, %v3305_v51  ;;  %v4008_v2 = vmul.f32 %v10616_v53, %v3672_v58  ;;  %v6076_v30 = vld [vmem:[%s11068_s3 + $0x15] ss:$0 sm:$0xff]  ;;  %v11779_v58 = vld [vmem:[#allocation63_spill] sm:$0xff] }
 0x481   : > { %v3211_v21 = vsub.f32 1.0, %v3179_v9  ;;  %v3338_v33 = vadd.f32 1.0, %v3306_v31  ;;  %v10787_v8 = vmul.f32 %v6075_v25, %v6074_v17  ;;  %v10793_v41 = vmul.f32 %v6076_v30, %v10651_v22  ;;  %v10806_v9 = vld [vmem:[%s11068_s3 + $0x16] ss:$0 sm:$0xff] }
 0x482   : > { %v3212_v44 = vsub.f32 1.0, %v3180_v15  ;;  %v3369_v43 = vmul.f32 %v3337_v27, %v2537_v37  ;;  %v10796_v54 = vmul.f32 %v6076_v30, %v10653_v1  ;;  %v10798_v19 = vmul.f32 %v6076_v30, %v4178_v36 }
 0x483   : > { %v3275_v50 = vsub.f32 0.0, %v3211_v21  ;;  %v3370_v35 = vmul.f32 %v3338_v33, %v2538_v55  ;;  %v4039_v49 = vadd.f32 %v4007_v56, %v3938_v38  ;;  %v4040_v20 = vadd.f32 %v4008_v2, %v3939_v29 }
 0x484   : > { %v3276_v12 = vsub.f32 0.0, %v3212_v44  ;;  %3401 = vst [vmem:[%s6998_s23 + $0x1c0] sm:$0xff] %v3369_v43  ;;  %3433 = vst [vmem:[#allocation2 + $0x182] sm:$0xff] %v3369_v43  ;;  %v10801_v34 = vmul.f32 %v6076_v30, %v4179_v24  ;;  %v10809_v18 = vmul.f32 %v10806_v9, %v4277_v32  ;;  %v3908_v26 = vmul.f32 %v6073_v23, %v3369_v43 }
 0x485   : > { %v3307_v13 = vsel %vm3243_vm7, %v3211_v21, %v3275_v50  ;;  %3402 = vst [vmem:[%s6998_s23 + $0x1d0] sm:$0xff] %v3370_v35  ;;  %3434 = vst [vmem:[#allocation2 + $0x18a] sm:$0xff] %v3370_v35  ;;  %v4208_v1 = vmul.f32 %v6076_v30, %v3369_v43  ;;  %v10812_v10 = vmul.f32 %v10806_v9, %v4278_v7 }
 0x486   : > { %v3308_v6 = vsel %vm3244_vm8, %v3212_v44, %v3276_v12  ;;  %v3339_v4 = vadd.f32 1.0, %v3307_v13  ;;  %v10815_v15 = vmul.f32 %v10806_v9, %v4279_v45  ;;  %v3909_v37 = vmul.f32 %v6073_v23, %v3370_v35 }
 0x487   : > { %v3340_v40 = vadd.f32 1.0, %v3308_v6  ;;  %v4209_v63 = vmul.f32 %v6076_v30, %v3370_v35 }
 0x488   : > { %v3371_v5 = vmul.f32 %v3339_v4, %v2539_v14 }
 0x489   : > { %v3372_v62 = vmul.f32 %v3340_v40, %v2540_v47 }
 0x48a   : > { %3403 = vst [vmem:[%s6998_s23 + $0x1e0] sm:$0xff] %v3371_v5  ;;  %3435 = vst [vmem:[#allocation2 + $0x19a] sm:$0xff] %v3371_v5  ;;  %v3910_v44 = vmul.f32 %v6073_v23, %v3371_v5  ;;  %v4210_v59 = vmul.f32 %v6076_v30, %v3371_v5 }
 0x48b   : > { %3404 = vst [vmem:[%s6998_s23 + $0x1f0] sm:$0xff] %v3372_v62  ;;  %3436 = vst [vmem:[#allocation2 + $0x1a2] sm:$0xff] %v3372_v62  ;;  %v3771_v22 = vld [vmem:[#allocation2 + $0x180] sm:$0xff]  ;;  %v3911_v43 = vmul.f32 %v6073_v23, %v3372_v62  ;;  %v4211_v28 = vmul.f32 %v6076_v30, %v3372_v62 }
 0x48c   : > { %v3772_v51 = vld [vmem:[#allocation2 + $0x188] sm:$0xff]  ;;  %v3807_v39 = vmul.f32 %v10750_v57, %v3771_v22  ;;  %v4107_v27 = vmul.f32 %v6075_v25, %v3771_v22 }
 0x48d   : > { %v3973_v21 = vld [vmem:[#allocation2 + $0x184] sm:$0xff]  ;;  %v3974_v31 = vld [vmem:[#allocation2 + $0x18c] sm:$0xff]  ;;  %v3808_v55 = vmul.f32 %v10750_v57, %v3772_v51  ;;  %v4108_v33 = vmul.f32 %v6075_v25, %v3772_v51 }
 0x48e   : > { %v3839_v50 = vadd.f32 %v3807_v39, %v3737_v3  ;;  %v4139_v42 = vadd.f32 %v4107_v27, %v11779_v58  ;;  %v4009_v60 = vmul.f32 %v10616_v53, %v3973_v21  ;;  %v4010_v13 = vmul.f32 %v10616_v53, %v3974_v31  ;;  %v4280_v39 = vld [vmem:[#allocation2 + $0x1d4] sm:$0xff] }
 0x48f   : > { %v3840_v12 = vadd.f32 %v3808_v55, %v3738_v52  ;;  %v4140_v46 = vadd.f32 %v4108_v33, %v10620_v16  ;;  %v4309_v6 = vmul.f32 %v10806_v9, %v3973_v21  ;;  %v4310_v4 = vmul.f32 %v10806_v9, %v3974_v31 }
 0x490   : > { %v3940_v14 = vadd.f32 %v3908_v26, %v3839_v50  ;;  %v4240_v35 = vadd.f32 %v4208_v1, %v4139_v42 }
 0x491   : > { %v3773_v61 = vld [vmem:[#allocation2 + $0x198] sm:$0xff]  ;;  %v3941_v47 = vadd.f32 %v3909_v37, %v3840_v12  ;;  %v4241_v36 = vadd.f32 %v4209_v63, %v4140_v46 }
 0x492   : > { %v3774_v0 = vld [vmem:[#allocation2 + $0x1a0] sm:$0xff]  ;;  %v3809_v23 = vmul.f32 %v10750_v57, %v3773_v61  ;;  %v4109_v29 = vmul.f32 %v6075_v25, %v3773_v61  ;;  %v4041_v52 = vadd.f32 %v4009_v60, %v3940_v14 }
 0x493   : > { %v3975_v40 = vld [vmem:[#allocation2 + $0x19c] sm:$0xff]  ;;  %v3976_v38 = vld [vmem:[#allocation2 + $0x1a4] sm:$0xff]  ;;  %v3810_v5 = vmul.f32 %v10750_v57, %v3774_v0  ;;  %v4042_v32 = vadd.f32 %v4010_v13, %v3941_v47  ;;  %v4110_v62 = vmul.f32 %v6075_v25, %v3774_v0  ;;  %v4342_v51 = vadd.f32 %v4310_v4, %v4241_v36 }
 0x494   : > { %v4011_v3 = vmul.f32 %v10616_v53, %v3975_v40  ;;  %v4012_v16 = vmul.f32 %v10616_v53, %v3976_v38  ;;  %v3841_v24 = vadd.f32 %v3809_v23, %v10776_v48  ;;  %v4141_v56 = vadd.f32 %v4109_v29, %v4039_v49 }
 0x495   : > { %v3842_v2 = vadd.f32 %v3810_v5, %v10779_v11  ;;  %v4143_v7 = vadd.f32 %v10787_v8, %v4041_v52  ;;  %v4311_v45 = vmul.f32 %v10806_v9, %v3975_v40  ;;  %v4312_v17 = vmul.f32 %v10806_v9, %v3976_v38 }
 0x496   : > { %v3942_v30 = vadd.f32 %v3910_v44, %v3841_v24  ;;  %v4142_v57 = vadd.f32 %v4110_v62, %v4040_v20  ;;  %v4144_v22 = vadd.f32 %v10787_v8, %v4042_v32  ;;  %v4242_v26 = vadd.f32 %v4210_v59, %v4141_v56  ;;  %v6078_v20 = vld [vmem:[%s11069_s4 + $0x1] ss:$0 sm:$0xff] }
 0x497   : > { %v3943_v53 = vadd.f32 %v3911_v43, %v3842_v2  ;;  %v4244_v1 = vadd.f32 %v10793_v41, %v4143_v7  ;;  %v4341_v48 = vadd.f32 %v4309_v6, %v4240_v35  ;;  %v10843_v63 = vadd.f32 %v6078_v20, %v4342_v51 }
 0x498   : > { %v4043_v25 = vadd.f32 %v4011_v3, %v3942_v30  ;;  %v4243_v49 = vadd.f32 %v4211_v28, %v4142_v57  ;;  %v4245_v11 = vadd.f32 %v10796_v54, %v4144_v22  ;;  %v4343_v37 = vadd.f32 %v4311_v45, %v4242_v26 }
 0x499   : > { %v4044_v21 = vadd.f32 %v4012_v16, %v3943_v53  ;;  %v4345_v31 = vadd.f32 %v10809_v18, %v4244_v1  ;;  %v10841_v27 = vadd.f32 %v6078_v20, %v4341_v48  ;;  %v4316_v59 = vmul.f32 %v10806_v9, %v4280_v39 }
 0x49a   : > { %v4145_v41 = vadd.f32 %v10787_v8, %v4043_v25  ;;  %v4344_v55 = vadd.f32 %v4312_v17, %v4243_v49  ;;  %v4346_v44 = vadd.f32 %v10812_v10, %v4245_v11  ;;  %v10847_v33 = vadd.f32 %v6078_v20, %v4343_v37 }
 0x49b   : > { %v4146_v54 = vadd.f32 %v10787_v8, %v4044_v21  ;;  %v10851_v18 = vadd.f32 %v6078_v20, %v4345_v31  ;;  %v10860_v28 = vmul.f32 0.70710677, %v10841_v27  ;;  %v10863_v10 = vmul.f32 0.70710677, %v10843_v63 }
 0x49c   : > { %v4246_v50 = vadd.f32 %v10798_v19, %v4145_v41  ;;  %v10854_v43 = vadd.f32 %v6078_v20, %v4344_v55  ;;  %v10856_v58 = vadd.f32 %v6078_v20, %v4346_v44  ;;  %v10867_v9 = vmul.f32 0.70710677, %v10847_v33 }
 0x49d   : > { %v4247_v42 = vadd.f32 %v10801_v34, %v4146_v54  ;;  %v10873_v60 = vmul.f32 0.70710677, %v10851_v18  ;;  %v4474_v46 = vand.u32 2147483647, %v10860_v28  ;;  %v4475_v61 = vand.u32 2147483647, %v10863_v10 }
 0x49e   : > { %v4347_v8 = vadd.f32 %v10815_v15, %v4246_v50  ;;  %v10870_v19 = vmul.f32 0.70710677, %v10854_v43  ;;  %v10876_v34 = vmul.f32 0.70710677, %v10856_v58  ;;  %v4476_v15 = vand.u32 2147483647, %v10867_v9 }
 0x49f   : > { %v4348_v12 = vadd.f32 %v4316_v59, %v4247_v42  ;;  %v4478_v6 = vand.u32 2147483647, %v10873_v60  ;;  %v4506_v23 = vmul.f32 0.3275911, %v4474_v46  ;;  %v4507_v40 = vmul.f32 0.3275911, %v4475_v61 }
 0x4a0   : > { %v10878_v13 = vadd.f32 %v6078_v20, %v4347_v8  ;;  %v4477_v35 = vand.u32 2147483647, %v10870_v19  ;;  %v4479_v4 = vand.u32 2147483647, %v10876_v34  ;;  %v4922_v38 = vsub.f32 0.0, %v4474_v46 }
 0x4a1   : > { %v10883_v14 = vadd.f32 %v6078_v20, %v4348_v12  ;;  %v4923_v29 = vsub.f32 0.0, %v4475_v61  ;;  %v4508_v5 = vmul.f32 0.3275911, %v4476_v15  ;;  %v4510_v52 = vmul.f32 0.3275911, %v4478_v6 }
 0x4a2   : > { %v10889_v0 = vmul.f32 0.70710677, %v10878_v13  ;;  %v4509_v3 = vmul.f32 0.3275911, %v4477_v35  ;;  %v4511_v24 = vmul.f32 0.3275911, %v4479_v4  ;;  %v4954_v53 = vmul.f32 %v4922_v38, %v4474_v46 }
 0x4a3   : > { %v10892_v47 = vmul.f32 0.70710677, %v10883_v14  ;;  %v4538_v62 = vadd.f32 1.0, %v4506_v23  ;;  %v4539_v56 = vadd.f32 1.0, %v4507_v40  ;;  %v4540_v2 = vadd.f32 1.0, %v4508_v5 }
 0x4a4   : > { %v4480_v36 = vand.u32 2147483647, %v10889_v0  ;;  %v4541_v45 = vadd.f32 1.0, %v4509_v3  ;;  %v4542_v17 = vadd.f32 1.0, %v4510_v52  ;;  %v4924_v30 = vsub.f32 0.0, %v4476_v15 }
 0x4a5   : > { %v4481_v16 = vand.u32 2147483647, %v10892_v47  ;;  %5938 = vrcp.f32 %v4538_v62  ;;  %v4925_v57 = vsub.f32 0.0, %v4477_v35  ;;  %v4543_v22 = vadd.f32 1.0, %v4511_v24 }
 0x4a6   : > { %v4512_v32 = vmul.f32 0.3275911, %v4480_v36  ;;  %5940 = vrcp.f32 %v4539_v56  ;;  %v4926_v26 = vsub.f32 0.0, %v4478_v6  ;;  %v4927_v48 = vsub.f32 0.0, %v4479_v4 }
 0x4a7   : > { %v4513_v7 = vmul.f32 0.3275911, %v4481_v16  ;;  %5942 = vrcp.f32 %v4540_v2  ;;  %v4955_v51 = vmul.f32 %v4923_v29, %v4475_v61  ;;  %v4928_v49 = vsub.f32 0.0, %v4480_v36 }
 0x4a8   : > { %v4544_v1 = vadd.f32 1.0, %v4512_v32  ;;  %5944 = vrcp.f32 %v4541_v45  ;;  %v4956_v11 = vmul.f32 %v4924_v30, %v4476_v15  ;;  %v4929_v39 = vsub.f32 0.0, %v4481_v16 }
 0x4a9   : > { %v4545_v25 = vadd.f32 1.0, %v4513_v7  ;;  %5946 = vrcp.f32 %v4542_v17  ;;  %v4957_v37 = vmul.f32 %v4925_v57, %v4477_v35  ;;  %v4958_v21 = vmul.f32 %v4926_v26, %v4478_v6 }
 0x4aa   : > { %5948 = vrcp.f32 %v4543_v22  ;;  %v5010_v31 = vmul.f32 1.442695, %v4954_v53  ;;  %v4959_v20 = vmul.f32 %v4927_v48, %v4479_v4  ;;  %v5012_v41 = vmul.f32 1.442695, %v4955_v51 }
 0x4ab   : > { %5950 = vrcp.f32 %v4544_v1  ;;  %v4960_v55 = vmul.f32 %v4928_v49, %v4480_v36  ;;  %v5014_v44 = vmul.f32 1.442695, %v4956_v11  ;;  %v4961_v54 = vmul.f32 %v4929_v39, %v4481_v16 }
 0x4ac   : > { %5952 = vrcp.f32 %v4545_v25  ;;  %v5016_v59 = vmul.f32 1.442695, %v4957_v37  ;;  %v10897_v50 = vmul.f32 0.5, %v10841_v27  ;;  %v5018_v42 = vmul.f32 1.442695, %v4958_v21 }
 0x4ad   : > { %5954 = vpow2.f32 %v5010_v31  ;;  %v10902_v12 = vmul.f32 0.5, %v10843_v63  ;;  %v10905_v46 = vmul.f32 0.5, %v10847_v33  ;;  %v5020_v61 = vmul.f32 1.442695, %v4959_v20 }
 0x4ae   : > { %5956 = vpow2.f32 %v5012_v41  ;;  %v10910_v35 = vmul.f32 0.5, %v10851_v18  ;;  %v5022_v6 = vmul.f32 1.442695, %v4960_v55  ;;  %v10916_v23 = vmul.f32 0.5, %v10854_v43 }
 0x4af   : > { %v10899_v8 = vpop.eup %5938  ;;  %5958 = vpow2.f32 %v5014_v44  ;;  %v5024_v33 = vmul.f32 1.442695, %v4961_v54  ;;  %v10922_v38 = vmul.f32 0.5, %v10856_v58  ;;  %v10928_v5 = vmul.f32 0.5, %v10878_v13 }
 0x4b0   : > { %v10907_v15 = vpop.eup %5940  ;;  %v4634_v27 = vmul.f32 1.0614054, %v10899_v8  ;;  %5960 = vpow2.f32 %v5016_v59  ;;  %vm5114_vm9 = vcmp.ge.f32.partialorder %v10860_v28, 0.0  ;;  %vm5115_vm10 = vcmp.ge.f32.partialorder %v10863_v10, 0.0 }
 0x4b1   : > { %v10913_v4 = vpop.eup %5942  ;;  %v4635_v63 = vmul.f32 1.0614054, %v10907_v15  ;;  %5962 = vpow2.f32 %v5018_v42  ;;  %vm5116_vm11 = vcmp.ge.f32.partialorder %v10867_v9, 0.0  ;;  %vm5117_vm12 = vcmp.ge.f32.partialorder %v10870_v19, 0.0 }
 0x4b2   : > { %v10919_v40 = vpop.eup %5944  ;;  %v4636_v18 = vmul.f32 1.0614054, %v10913_v4  ;;  %v4666_v29 = vadd.f32 -1.4531521, %v4634_v27  ;;  %5964 = vpow2.f32 %v5020_v61  ;;  %vm5118_vm13 = vcmp.ge.f32.partialorder %v10873_v60, 0.0 }
 0x4b3   : > { %v10925_v36 = vpop.eup %5946  ;;  %v4637_v43 = vmul.f32 1.0614054, %v10919_v40  ;;  %v4667_v3 = vadd.f32 -1.4531521, %v4635_v63  ;;  %5966 = vpow2.f32 %v5022_v6  ;;  %vm5119_vm14 = vcmp.ge.f32.partialorder %v10876_v34, 0.0 }
 0x4b4   : > { %v10931_v16 = vpop.eup %5948  ;;  %v4638_v52 = vmul.f32 1.0614054, %v10925_v36  ;;  %v4668_v24 = vadd.f32 -1.4531521, %v4636_v18  ;;  %v4698_v58 = vmul.f32 %v10899_v8, %v4666_v29  ;;  %5968 = vpow2.f32 %v5024_v33 }
 0x4b5   : > { %v10935_v32 = vpop.eup %5950  ;;  %v4639_v62 = vmul.f32 1.0614054, %v10931_v16  ;;  %v4669_v56 = vadd.f32 -1.4531521, %v4637_v43  ;;  %v4699_v13 = vmul.f32 %v10907_v15, %v4667_v3  ;;  %vm5120_vm15 = vcmp.ge.f32.partialorder %v10889_v0, 0.0 }
 0x4b6   : > { %v10939_v2 = vpop.eup %5952  ;;  %v4640_v7 = vmul.f32 1.0614054, %v10935_v32  ;;  %v4670_v45 = vadd.f32 -1.4531521, %v4638_v52  ;;  %v4700_v17 = vmul.f32 %v10913_v4, %v4668_v24  ;;  %v4730_v30 = vadd.f32 1.4214138, %v4698_v58 }
 0x4b7   : > { %v4641_v57 = vmul.f32 1.0614054, %v10939_v2  ;;  %v4671_v22 = vadd.f32 -1.4531521, %v4639_v62  ;;  %v4701_v26 = vmul.f32 %v10919_v40, %v4669_v56  ;;  %v4731_v53 = vadd.f32 1.4214138, %v4699_v13  ;;  %v5955_v1 = vpop.eup %5954 }
 0x4b8   : > { %v4672_v48 = vadd.f32 -1.4531521, %v4640_v7  ;;  %v4702_v51 = vmul.f32 %v10925_v36, %v4670_v45  ;;  %v4732_v25 = vadd.f32 1.4214138, %v4700_v17  ;;  %v4762_v49 = vmul.f32 %v10899_v8, %v4730_v30  ;;  %v5957_v11 = vpop.eup %5956 }
 0x4b9   : > { %v4673_v39 = vadd.f32 -1.4531521, %v4641_v57  ;;  %v4703_v37 = vmul.f32 %v10931_v16, %v4671_v22  ;;  %v4733_v21 = vadd.f32 1.4214138, %v4701_v26  ;;  %v4763_v31 = vmul.f32 %v10907_v15, %v4731_v53  ;;  %v5959_v20 = vpop.eup %5958 }
 0x4ba   : > { %v4704_v41 = vmul.f32 %v10935_v32, %v4672_v48  ;;  %v4734_v55 = vadd.f32 1.4214138, %v4702_v51  ;;  %v4764_v44 = vmul.f32 %v10913_v4, %v4732_v25  ;;  %v4794_v54 = vadd.f32 -0.28449672, %v4762_v49  ;;  %v5961_v59 = vpop.eup %5960 }
 0x4bb   : > { %v4705_v42 = vmul.f32 %v10939_v2, %v4673_v39  ;;  %v4735_v61 = vadd.f32 1.4214138, %v4703_v37  ;;  %v4765_v27 = vmul.f32 %v10919_v40, %v4733_v21  ;;  %v4795_v6 = vadd.f32 -0.28449672, %v4763_v31  ;;  %v5963_v63 = vpop.eup %5962 }
 0x4bc   : > { %v4736_v33 = vadd.f32 1.4214138, %v4704_v41  ;;  %v4766_v18 = vmul.f32 %v10925_v36, %v4734_v55  ;;  %v4796_v29 = vadd.f32 -0.28449672, %v4764_v44  ;;  %v4826_v43 = vmul.f32 %v10899_v8, %v4794_v54  ;;  %v5965_v3 = vpop.eup %5964 }
 0x4bd   : > { %v4737_v52 = vadd.f32 1.4214138, %v4705_v42  ;;  %v4767_v24 = vmul.f32 %v10931_v16, %v4735_v61  ;;  %v4797_v58 = vadd.f32 -0.28449672, %v4765_v27  ;;  %v4827_v62 = vmul.f32 %v10907_v15, %v4795_v6  ;;  %v5967_v56 = vpop.eup %5966 }
 0x4be   : > { %v4768_v13 = vmul.f32 %v10935_v32, %v4736_v33  ;;  %v4798_v7 = vadd.f32 -0.28449672, %v4766_v18  ;;  %v4828_v45 = vmul.f32 %v10913_v4, %v4796_v29  ;;  %v4858_v17 = vadd.f32 0.2548296, %v4826_v43  ;;  %v5969_v30 = vpop.eup %5968 }
 0x4bf   : > { %v4769_v57 = vmul.f32 %v10939_v2, %v4737_v52  ;;  %v4799_v22 = vadd.f32 -0.28449672, %v4767_v24  ;;  %v4829_v26 = vmul.f32 %v10919_v40, %v4797_v58  ;;  %v4859_v53 = vadd.f32 0.2548296, %v4827_v62 }
 0x4c0   : > { %v4800_v48 = vadd.f32 -0.28449672, %v4768_v13  ;;  %v4830_v51 = vmul.f32 %v10925_v36, %v4798_v7  ;;  %v4860_v25 = vadd.f32 0.2548296, %v4828_v45  ;;  %v4890_v49 = vmul.f32 %v10899_v8, %v4858_v17 }
 0x4c1   : > { %v4801_v39 = vadd.f32 -0.28449672, %v4769_v57  ;;  %v4831_v37 = vmul.f32 %v10931_v16, %v4799_v22  ;;  %v4861_v21 = vadd.f32 0.2548296, %v4829_v26  ;;  %v4891_v31 = vmul.f32 %v10907_v15, %v4859_v53 }
 0x4c2   : > { %v4832_v41 = vmul.f32 %v10935_v32, %v4800_v48  ;;  %v4862_v55 = vadd.f32 0.2548296, %v4830_v51  ;;  %v4892_v44 = vmul.f32 %v10913_v4, %v4860_v25  ;;  %v5050_v54 = vmul.f32 %v5955_v1, %v4890_v49 }
 0x4c3   : > { %v4833_v8 = vmul.f32 %v10939_v2, %v4801_v39  ;;  %v4863_v42 = vadd.f32 0.2548296, %v4831_v37  ;;  %v4893_v61 = vmul.f32 %v10919_v40, %v4861_v21  ;;  %v5051_v27 = vmul.f32 %v5957_v11, %v4891_v31 }
 0x4c4   : > { %v4864_v6 = vadd.f32 0.2548296, %v4832_v41  ;;  %v4894_v15 = vmul.f32 %v10925_v36, %v4862_v55  ;;  %v5052_v33 = vmul.f32 %v5959_v20, %v4892_v44  ;;  %v5082_v18 = vsub.f32 1.0, %v5050_v54 }
 0x4c5   : > { %v4865_v29 = vadd.f32 0.2548296, %v4833_v8  ;;  %v4895_v4 = vmul.f32 %v10931_v16, %v4863_v42  ;;  %v5053_v1 = vmul.f32 %v5961_v59, %v4893_v61  ;;  %v5083_v43 = vsub.f32 1.0, %v5051_v27 }
 0x4c6   : > { %v4896_v52 = vmul.f32 %v10935_v32, %v4864_v6  ;;  %v5054_v40 = vmul.f32 %v5963_v63, %v4894_v15  ;;  %v5084_v11 = vsub.f32 1.0, %v5052_v33  ;;  %vm5121_vm0 = vcmp.ge.f32.partialorder %v10892_v47, 0.0 }
 0x4c7   : > { %v5146_v24 = vsub.f32 0.0, %v5082_v18  ;;  %v4897_v36 = vmul.f32 %v10939_v2, %v4865_v29  ;;  %v5055_v20 = vmul.f32 %v5965_v3, %v4895_v4  ;;  %v5085_v58 = vsub.f32 1.0, %v5053_v1 }
 0x4c8   : > { %v5147_v62 = vsub.f32 0.0, %v5083_v43  ;;  %v5056_v13 = vmul.f32 %v5967_v56, %v4896_v52  ;;  %v5086_v7 = vsub.f32 1.0, %v5054_v40  ;;  %v5148_v45 = vsub.f32 0.0, %v5084_v11 }
 0x4c9   : > { %v5178_v16 = vsel %vm5114_vm9, %v5082_v18, %v5146_v24  ;;  %v5057_v59 = vmul.f32 %v5969_v30, %v4897_v36  ;;  %v5087_v17 = vsub.f32 1.0, %v5055_v20  ;;  %v5149_v57 = vsub.f32 0.0, %v5085_v58 }
 0x4ca   : > { %v5179_v32 = vsel %vm5115_vm10, %v5083_v43, %v5147_v62  ;;  %v5088_v63 = vsub.f32 1.0, %v5056_v13  ;;  %v5150_v22 = vsub.f32 0.0, %v5086_v7  ;;  %v5180_v2 = vsel %vm5116_vm11, %v5084_v11, %v5148_v45 }
 0x4cb   : > { %v5210_v3 = vadd.f32 1.0, %v5178_v16  ;;  %v5089_v26 = vsub.f32 1.0, %v5057_v59  ;;  %v5151_v56 = vsub.f32 0.0, %v5087_v17  ;;  %v5181_v28 = vsel %vm5117_vm12, %v5085_v58, %v5149_v57 }
 0x4cc   : > { %v5211_v53 = vadd.f32 1.0, %v5179_v32  ;;  %v5152_v30 = vsub.f32 0.0, %v5088_v63  ;;  %v5182_v48 = vsel %vm5118_vm13, %v5086_v7, %v5150_v22  ;;  %v5212_v10 = vadd.f32 1.0, %v5180_v2 }
 0x4cd   : > { %v5213_v51 = vadd.f32 1.0, %v5181_v28  ;;  %v5153_v25 = vsub.f32 0.0, %v5089_v26  ;;  %v5183_v9 = vsel %vm5119_vm14, %v5087_v17, %v5151_v56  ;;  %v5214_v49 = vadd.f32 1.0, %v5182_v48 }
 0x4ce   : > { %v5242_v39 = vmul.f32 %v5210_v3, %v10897_v50  ;;  %v5184_v19 = vsel %vm5120_vm15, %v5088_v63, %v5152_v30  ;;  %v5215_v37 = vadd.f32 1.0, %v5183_v9  ;;  %v5243_v60 = vmul.f32 %v5211_v53, %v10902_v12 }
 0x4cf   : > { %v5244_v21 = vmul.f32 %v5212_v10, %v10905_v46  ;;  %v5185_v34 = vsel %vm5121_vm0, %v5089_v26, %v5153_v25  ;;  %v5216_v31 = vadd.f32 1.0, %v5184_v19  ;;  %v5245_v50 = vmul.f32 %v5213_v51, %v10916_v23 }
 0x4d0   : > { %v5246_v0 = vmul.f32 %v5214_v49, %v10910_v35  ;;  %5274 = vst [vmem:[%s6998_s23 + $0x188] sm:$0xff] %v5242_v39  ;;  %v4417_v12 = vmul.f32 0.5, %v10883_v14  ;;  %v5217_v41 = vadd.f32 1.0, %v5185_v34  ;;  %v5247_v46 = vmul.f32 %v5215_v37, %v10922_v38  ;;  %5275 = vst [vmem:[%s6998_s23 + $0x198] sm:$0xff] %v5243_v60 }
 0x4d1   : > { %5276 = vst [vmem:[%s6998_s23 + $0x1a8] sm:$0xff] %v5244_v21  ;;  %v5248_v47 = vmul.f32 %v5216_v31, %v10928_v5  ;;  %5277 = vst [vmem:[%s6998_s23 + $0x1b8] sm:$0xff] %v5245_v50 }
 0x4d2   : > { %5278 = vst [vmem:[%s6998_s23 + $0x1c8] sm:$0xff] %v5246_v0  ;;  %v5249_v14 = vmul.f32 %v5217_v41, %v4417_v12  ;;  %5279 = vst [vmem:[%s6998_s23 + $0x1d8] sm:$0xff] %v5247_v46 }
 0x4d3   : > { %5280 = vst [vmem:[%s6998_s23 + $0x1e8] sm:$0xff] %v5248_v47 }
 0x4d4   : > { %5281 = vst [vmem:[%s6998_s23 + $0x1f8] sm:$0xff] %v5249_v14 }
 0x4d5   : > { %6092 = shalt.err (!%p6089_p3)
}
 0x4d6   : > { %s6093_s16 = scalar_lea.hbm %s11015_s10, 8192  ;;  %s6097_s25 = scalar_lea.hbm %s11070_s5, 16384 }
 0x4d7   : > { %p6094_p4 = scmp.ne.s32.totalorder %s11015_s10, %s6093_s16  ;;  %p6098_p9 = scmp.lt.u32.totalorder %s11015_s10, %s11070_s5 }
 0x4d8   : > { %p6099_p10 = scmp.lt.u32.totalorder %s6097_s25, %s6093_s16  ;;  %p6101_p12 = scmp.lt.u32.totalorder %s6093_s16, %s11015_s10 }
 0x4d9   : > { %p6095_p7 = pnand %p6094_p4, %p6215_p5 }
 0x4da   : > { %p6100_p11 = por %p6099_p10, %p6098_p9 }
 0x4db   : > { %p6096_p8 = pneg %p6095_p7 }
 0x4dc   : > { %p6102_p13 = por %p6101_p12, %p6100_p11 }
 0x4de   : > { %p6103_p0 = pnand %p6102_p13, %p6096_p8 }
 0x4e0   : > { %6106 = shalt.err (!%p6103_p0)
}
 0x4e1   : > { %s6145_s6 = smov 256   ;;  %s6146_s7 = smov 16  }
 0x4e2   : > { %5544 = dma.vmem_to_hbm [thread:$0]  (%p6215_p5), %s11017_s8, 8192, %s11015_s10, %s11024_s11, %s6145_s6, %s6145_s6, %s6146_s7  }
 0x4e3 PF: > { %p5550_p1 = scmp.ge.s32.totalorder %s6141_s21, 2  ;;  %s5311_s22 = sand.u32 1, %s6129_s18  }
 0x4e4   : > { %s5312_s9 = scalar_lea.sflag [#allocation4], %s5311_s22 }
 0x4e5   : > { %p5547_p2 = pnand %p5550_p1, %p6219_p6 }
 0x4e7   : > { %6124 = dma.done.wait (!%p5547_p2), %s5312_s9, 8192  }
 0x4e8   : > { %6126 = vsyncadd (!%p5547_p2), %s5312_s9, 4294959104  ;;  %p15_p3 = scmp.ge.s32.totalorder %s6202_s24, 4   ;;  %s11780_s18 = smov %s6133_s19 }
 0x4e9   : > { %s11781_s19 = smov %s6137_s20  ;;  %s11782_s20 = smov %s6213_s27 }
 0x4ea   : > { %s11783_s21 = smov %s6202_s24  ;;  %17 = sbr.rel (!%p15_p3) target bundleno = 3 (0x3), region = 97 }
 0x4f1   :  { %5317 = vsyncpa [#allocation4], 1 }
 0x4f2   :  { %5319 = vsyncpa [#allocation4 + $0x1], 1 }

</bundles_post_ra>
